<compile_context>
chip_gen: v5e
topology: v5e:2x2
jax: 0.10.0
libtpu: 0.0.40
codegen_flags: <defaults>
</compile_context>

<pallas_src>
import functools

import numpy as np
import jax
import jax.numpy as jnp
from jax.experimental import pallas as pl
from jax.experimental.pallas import tpu as pltpu


def _round_up(x, m):
    return ((x + m - 1) // m) * m


def _softmax(x):
    # Manual softmax (max-shifted) — avoids any lowering surprises from
    # jax.nn.softmax's masked-max path and keeps everything on VPU/EUP/XLU.
    m = jnp.max(x, axis=-1, keepdims=True)
    e = jnp.exp(x - m)
    return e * pl.reciprocal(jnp.sum(e, axis=-1, keepdims=True), approx=False)


def _gru_attn_decoder_kernel(
    # ---- inputs (resident, constant block index) ----
    ids_ref,    # (B, S)      int32
    ctx_ref,    # (B, S, D)   f32
    mask_ref,   # (B, S)      f32
    demb_ref,   # (T, B, D)   f32   decode_input embeddings (time-major)
    tgt_ref,    # (T, B, 1)   int32 decode_target (time-major)
    temb_ref,   # (M, D)      f32   embeddings of decode_target rows, M = T*B
    valid_ref,  # (M, 1)      f32   (decode_target != 0) mask
    wg_ref, bg_ref,    # (3D, 2D), (1, 2D)   fused reset|update gate
    wc_ref, bc_ref,    # (3D, D),  (1, D)
    wo_ref, bo_ref,    # (D, D),   (1, D)
    wcp_ref, bcp_ref,  # (D, D),   (1, D)
    wm_ref, bm_ref,    # (1, D),   (1, 1)
    h0_ref,            # (1, D)
    # ---- streamed input (grid axis over vocab blocks) ----
    embw_ref,          # (v_block, D) f32
    # ---- output ----
    loss_ref,          # (1, 1) f32
    # ---- scratch (persists across grid steps) ----
    states_sc,         # (T, B, D) f32
    copy_sc,           # (T, B, 1) f32
    out_sc,            # (M, D)    f32
    tl_sc,             # (M, 1)    f32  target logit
    mode_sc,           # (M, 1)    f32
    cterm_sc,          # (M, 1)    f32  (1-mode)*copy
    m_sc,              # (M, 1)    f32  running max
    l_sc,              # (M, 1)    f32  running sum
    *, scale, seq_len, vocab, v_block, eps,
):
    v = pl.program_id(0)
    nv = pl.num_programs(0)
    B, S, D = ctx_ref.shape
    T = seq_len
    M = T * B

    # ------------------------------------------------------------------
    # Grid step 0: run the sequential recurrence + copy path, and compute
    # everything that does not depend on the vocab blocks.
    # ------------------------------------------------------------------
    @pl.when(v == 0)
    def _recurrence_and_init():
        loss_ref[...] = jnp.zeros((1, 1), jnp.float32)

        ctx = ctx_ref[...]                                   # (B, S, D)
        mask = mask_ref[...]
        ids = ids_ref[...]
        neg = (1.0 - mask) * (-1e30)                         # (B, S)

        wg = wg_ref[...]; bg = bg_ref[...]
        wc = wc_ref[...]; bc = bc_ref[...]
        wcp = wcp_ref[...]; bcp = bcp_ref[...]

        def lin3(a, e, s, w, b):
            # Linear(3D -> out) on concat([a, e, s]) without the concat.
            return (
                jnp.dot(a, w[0:D, :], preferred_element_type=jnp.float32)
                + jnp.dot(e, w[D:2 * D, :], preferred_element_type=jnp.float32)
                + jnp.dot(s, w[2 * D:3 * D, :], preferred_element_type=jnp.float32)
                + b
            )

        def step(i, state):
            emb = demb_ref[i]                                # (B, D)

            # attention over encoder context (MXU batched contractions)
            score = jnp.sum(
                jnp.einsum('bud,bsd->bus', state[:, None, :], ctx,
                           preferred_element_type=jnp.float32),
                axis=1) * scale + neg                        # (B, S)
            prob = _softmax(score)                           # (B, S)
            attn = jnp.sum(
                jnp.einsum('bus,bsd->bud', prob[:, None, :], ctx,
                           preferred_element_type=jnp.float32),
                axis=1)                                      # (B, D)

            # GRU gates (reset|update fused into one matmul)
            ru = jax.nn.sigmoid(lin3(attn, emb, state, wg, bg))  # (B, 2D)
            reset = ru[:, 0:D]
            upd = ru[:, D:2 * D]
            cand = jnp.tanh(lin3(attn, emb, reset * state, wc, bc))
            new_state = (1.0 - upd) * state + upd * cand
            states_sc[i] = new_state

            # copy / pointer distribution over the input sequence
            cp = jnp.dot(new_state, wcp, preferred_element_type=jnp.float32) + bcp
            ilog = jnp.sum(
                jnp.einsum('bud,bsd->bus', cp[:, None, :], ctx,
                           preferred_element_type=jnp.float32),
                axis=1) + neg                                # (B, S)
            iprob = _softmax(ilog)                           # (B, S)

            # only the target-token mass of the scatter_add is ever used:
            tgt_i = tgt_ref[i]                               # (B, 1) int32
            hit = (ids == tgt_i).astype(jnp.float32)         # (B, S)
            copy_sc[i] = jnp.sum(iprob * hit, axis=-1, keepdims=True)
            return new_state

        state0 = jnp.broadcast_to(h0_ref[...], (B, D)).astype(jnp.float32)
        jax.lax.fori_loop(0, T, step, state0, unroll=bool(T <= 16))

        # ---- batched (M = T*B rows) post-recurrence projections ----
        st2 = states_sc[...].reshape(M, D)
        out = jnp.dot(st2, wo_ref[...], preferred_element_type=jnp.float32) + bo_ref[...]
        out_sc[...] = out
        # target logit = out . embw[tgt]  (no (B,V) gather needed)
        tl_sc[...] = jnp.sum(out * temb_ref[...], axis=-1, keepdims=True)
        mode = jax.nn.sigmoid(
            jnp.sum(st2 * wm_ref[...], axis=-1, keepdims=True) + bm_ref[...])
        mode_sc[...] = mode
        cterm_sc[...] = (1.0 - mode) * copy_sc[...].reshape(M, 1)

        # online log-sum-exp state
        m_sc[...] = jnp.full((M, 1), -1e30, jnp.float32)
        l_sc[...] = jnp.zeros((M, 1), jnp.float32)

    # ------------------------------------------------------------------
    # Every grid step: one vocab block of the logits matmul + online LSE.
    # ------------------------------------------------------------------
    embw_blk = embw_ref[...]                                 # (v_block, D)
    logits = jax.lax.dot_general(
        out_sc[...], embw_blk, (((1,), (1,)), ((), ())),
        preferred_element_type=jnp.float32)                  # (M, v_block)
    col = jax.lax.broadcasted_iota(jnp.int32, (M, v_block), 1) + v * v_block
    logits = jnp.where(col < vocab, logits, -1e30)           # mask padded vocab rows

    m_prev = m_sc[...]
    l_prev = l_sc[...]
    m_new = jnp.maximum(m_prev, jnp.max(logits, axis=-1, keepdims=True))
    l_sc[...] = (l_prev * jnp.exp(m_prev - m_new)
                 + jnp.sum(jnp.exp(logits - m_new), axis=-1, keepdims=True))
    m_sc[...] = m_new

    # ------------------------------------------------------------------
    # Last grid step: assemble target probabilities and the masked NLL.
    # ------------------------------------------------------------------
    @pl.when(v == nv - 1)
    def _finalize():
        lse = m_sc[...] + jnp.log(l_sc[...])                 # (M, 1)
        p = mode_sc[...] * jnp.exp(tl_sc[...] - lse) + cterm_sc[...]
        valid = valid_ref[...]                               # (M, 1)
        nll = -jnp.log(p + eps) * valid
        cnt = jnp.sum(valid)
        loss = jnp.sum(nll) / jnp.maximum(cnt, 1.0)
        loss_ref[...] = jnp.full((1, 1), loss, jnp.float32)


def gru_attn_decoder_loss(input_ids, input_context, context_mask,
                          decode_input, decode_target, params, *, v_block=256):
    """Training path of GRUAttnDecoder.forward: returns the loss repeated bsz times."""
    B, S, D = input_context.shape
    T = decode_input.shape[1]
    V = params["emb"].shape[0]
    scale = float(1.0 / np.sqrt(D))

    # ---- pad batch to a sublane multiple (padded rows have target==0 => masked) ----
    B_pad = _round_up(B, 8)
    pad_b = B_pad - B

    def padb(x):
        if pad_b == 0:
            return x
        return jnp.pad(x, [(0, pad_b)] + [(0, 0)] * (x.ndim - 1))

    ids = padb(input_ids.astype(jnp.int32))                  # (B', S)
    ctx = padb(input_context.astype(jnp.float32))            # (B', S, D)
    mask = padb(context_mask.astype(jnp.float32))            # (B', S)
    din = padb(decode_input.astype(jnp.int32))               # (B', T)
    dtg = padb(decode_target.astype(jnp.int32))              # (B', T)

    # ---- vocab tiling (embedding matrix is streamed, never fully resident) ----
    emb = params["emb"].astype(jnp.float32)
    v_block = int(_round_up(min(v_block, _round_up(V, 8)), 8))
    V_pad = _round_up(V, v_block)
    embw = jnp.pad(emb, ((0, V_pad - V), (0, 0)))            # (V_pad, D)
    nv = V_pad // v_block

    # ---- glue gathers / reshapes (time-major so kernel row order is (t, b)) ----
    M = T * B_pad
    demb = jnp.transpose(emb[din], (1, 0, 2))                # (T, B', D)
    tgt_tb1 = jnp.transpose(dtg, (1, 0))[:, :, None]         # (T, B', 1)
    tgt_emb = jnp.transpose(emb[dtg], (1, 0, 2)).reshape(M, D)   # (M, D)
    valid = (jnp.transpose(dtg, (1, 0)).reshape(M, 1) != 0).astype(jnp.float32)

    # fused reset|update gate weights
    wg = jnp.concatenate([params["wr"], params["wu"]], axis=1).astype(jnp.float32)
    bg = jnp.concatenate([params["br"], params["bu"]], axis=1).astype(jnp.float32)

    inputs = [
        ids, ctx, mask, demb, tgt_tb1, tgt_emb, valid,
        wg, bg,
        params["wc"].astype(jnp.float32), params["bc"].astype(jnp.float32),
        params["wo"].astype(jnp.float32), params["bo"].astype(jnp.float32),
        params["wcp"].astype(jnp.float32), params["bcp"].astype(jnp.float32),
        params["wm"].astype(jnp.float32), params["bm"].astype(jnp.float32),
        params["h0"].astype(jnp.float32),
        embw,
    ]

    def _resident_spec(arr):
        zeros = (0,) * arr.ndim
        return pl.BlockSpec(arr.shape, lambda v, zeros=zeros: zeros)

    in_specs = [_resident_spec(a) for a in inputs[:-1]] + [
        pl.BlockSpec((v_block, D), lambda v: (v, 0))]        # streamed embedding tile

    scratch_shapes = [
        pltpu.VMEM((T, B_pad, D), jnp.float32),   # states
        pltpu.VMEM((T, B_pad, 1), jnp.float32),   # copy target mass
        pltpu.VMEM((M, D), jnp.float32),          # output projection
        pltpu.VMEM((M, 1), jnp.float32),          # target logit
        pltpu.VMEM((M, 1), jnp.float32),          # mode
        pltpu.VMEM((M, 1), jnp.float32),          # (1-mode)*copy
        pltpu.VMEM((M, 1), jnp.float32),          # running max
        pltpu.VMEM((M, 1), jnp.float32),          # running sum
    ]

    # ---- explicit VMEM budget (resident inputs x2 buffers + streamed tile + scratch) ----
    def _nbytes(a):
        return int(np.prod(a.shape)) * a.dtype.itemsize
    resident_bytes = sum(_nbytes(a) for a in inputs[:-1])
    scratch_bytes = 4 * (T * B_pad * D + T * B_pad + M * D + 5 * M)
    embw_bytes = 2 * v_block * D * 4
    vmem_limit = int(min(40 << 20,
                         max(16 << 20,
                             2 * resident_bytes + embw_bytes + scratch_bytes + (2 << 20))))

    kernel = functools.partial(
        _gru_attn_decoder_kernel,
        scale=scale, seq_len=T, vocab=V, v_block=v_block, eps=1e-6)

    out = pl.pallas_call(
        kernel,
        grid=(nv,),
        out_shape=jax.ShapeDtypeStruct((1, 1), jnp.float32),
        in_specs=in_specs,
        out_specs=pl.BlockSpec((1, 1), lambda v: (0, 0)),
        scratch_shapes=scratch_shapes,
        compiler_params=pltpu.CompilerParams(
            dimension_semantics=("arbitrary",),
            vmem_limit_bytes=vmem_limit),
    )(*inputs)

    return jnp.full((B,), out[0, 0])


def _reference_loss(input_ids, input_context, context_mask,
                    decode_input, decode_target, params):
    """Pure-JAX reference mirroring the PyTorch forward (training path)."""
    B, S, D = input_context.shape
    T = decode_input.shape[1]
    V = params["emb"].shape[0]
    scale = 1.0 / np.sqrt(D)
    embw = params["emb"]
    decode_emb = embw[decode_input]
    state = jnp.broadcast_to(params["h0"], (B, D))
    neg = (1.0 - context_mask) * (-1e30)

    def lin3(x, w, b):
        return x @ w + b

    dec_list = []
    for i in range(T):
        score = jnp.einsum("bsd,bd->bs", input_context, state) * scale + neg
        prob = jax.nn.softmax(score, -1)
        attn_vec = jnp.einsum("bs,bsd->bd", prob, input_context)
        emb = decode_emb[:, i, :]
        x = jnp.concatenate([attn_vec, emb, state], -1)
        r = jax.nn.sigmoid(lin3(x, params["wr"], params["br"]))
        u = jax.nn.sigmoid(lin3(x, params["wu"], params["bu"]))
        x2 = jnp.concatenate([attn_vec, emb, r * state], -1)
        c = jnp.tanh(lin3(x2, params["wc"], params["bc"]))
        state = (1 - u) * state + u * c
        out = state @ params["wo"] + params["bo"]
        vprob = jax.nn.softmax(out @ embw.T, -1)
        cp = state @ params["wcp"] + params["bcp"]
        ilog = jnp.einsum("bd,bsd->bs", cp, input_context) + neg
        iprob = jax.nn.softmax(ilog, -1)
        mode = jax.nn.sigmoid(jnp.sum(state * params["wm"], -1, keepdims=True) + params["bm"])
        vprob = vprob * mode
        src = iprob * (1 - mode)
        onehot = jax.nn.one_hot(input_ids, V, dtype=jnp.float32)
        vprob = vprob + jnp.einsum("bs,bsv->bv", src, onehot)
        dec_list.append(vprob[:, None, :])
    predict = jnp.concatenate(dec_list, 1).reshape(-1, V)
    tgt = decode_target.reshape(-1)
    p = jnp.take_along_axis(predict, tgt[:, None], axis=1)[:, 0]
    init_loss = -jnp.log(p + 1e-6) * (tgt != 0).astype(jnp.float32)
    loss = jnp.sum(init_loss) / jnp.sum((tgt != 0).astype(jnp.int32))
    return jnp.full((B,), loss)


def _init_params(key, dim, vocab):
    ks = jax.random.split(key, 16)
    s = 0.1
    return {
        "emb": jax.random.normal(ks[0], (vocab, dim), jnp.float32) * s,
        "wr": jax.random.normal(ks[1], (3 * dim, dim), jnp.float32) * s,
        "br": jax.random.normal(ks[2], (1, dim), jnp.float32) * s,
        "wu": jax.random.normal(ks[3], (3 * dim, dim), jnp.float32) * s,
        "bu": jax.random.normal(ks[4], (1, dim), jnp.float32) * s,
        "wc": jax.random.normal(ks[5], (3 * dim, dim), jnp.float32) * s,
        "bc": jax.random.normal(ks[6], (1, dim), jnp.float32) * s,
        "wo": jax.random.normal(ks[7], (dim, dim), jnp.float32) * s,
        "bo": jax.random.normal(ks[8], (1, dim), jnp.float32) * s,
        "wcp": jax.random.normal(ks[9], (dim, dim), jnp.float32) * s,
        "bcp": jax.random.normal(ks[10], (1, dim), jnp.float32) * s,
        "wm": jax.random.normal(ks[11], (1, dim), jnp.float32) * s,
        "bm": jax.random.normal(ks[12], (1, 1), jnp.float32) * s,
        "h0": jax.random.normal(ks[13], (1, dim), jnp.float32) * s,
    }


# TODO(synk): inference branches (greedy argmax feedback loop and beam search) are
# not implemented; only the training/loss path of forward() is translated.

if __name__ == "__main__":
    # Small shapes consistent with the module's forward.
    B, S, D, T, V = 2, 8, 32, 8, 80

    key = jax.random.PRNGKey(0)
    k_par, k_ids, k_ctx, k_din, k_tgt = jax.random.split(key, 5)

    params = _init_params(k_par, D, V)

    input_ids = jax.random.randint(k_ids, (B, S), 0, V, dtype=jnp.int32)
    input_context = jax.random.normal(k_ctx, (B, S, D), jnp.float32)
    context_mask = jnp.ones((B, S), jnp.float32).at[1, S - 2:].set(0.0)
    decode_input = jax.random.randint(k_din, (B, T), 1, V, dtype=jnp.int32)
    decode_target = jax.random.randint(k_tgt, (B, T), 1, V, dtype=jnp.int32)
    decode_target = decode_target.at[:, T - 1].set(0)   # padded tail position

    loss = gru_attn_decoder_loss(
        input_ids, input_context, context_mask, decode_input, decode_target,
        params, v_block=32)                              # 3 vocab tiles -> exercises online LSE
    loss = jax.block_until_ready(loss)

    ref = _reference_loss(
        input_ids, input_context, context_mask, decode_input, decode_target, params)
    np.testing.assert_allclose(np.asarray(loss), np.asarray(ref), rtol=1e-4, atol=1e-4)
    assert loss.shape == (B,) and np.all(np.isfinite(np.asarray(loss)))

    print("KERNEL_OK")
</pallas_src>

<mosaic_0001>
module attributes {stable_mosaic.version = 11 : i64} {
  func.func @_gru_attn_decoder_kernel(%arg0: i32, %arg1: memref<8x8xi32, #tpu.memory_space<vmem>>, %arg2: memref<8x8x32xf32, #tpu.memory_space<vmem>>, %arg3: memref<8x8xf32, #tpu.memory_space<vmem>>, %arg4: memref<8x8x32xf32, #tpu.memory_space<vmem>>, %arg5: memref<8x8x1xi32, #tpu.memory_space<vmem>>, %arg6: memref<64x32xf32, #tpu.memory_space<vmem>>, %arg7: memref<64x1xf32, #tpu.memory_space<vmem>>, %arg8: memref<96x64xf32, #tpu.memory_space<vmem>>, %arg9: memref<1x64xf32, #tpu.memory_space<vmem>>, %arg10: memref<96x32xf32, #tpu.memory_space<vmem>>, %arg11: memref<1x32xf32, #tpu.memory_space<vmem>>, %arg12: memref<32x32xf32, #tpu.memory_space<vmem>>, %arg13: memref<1x32xf32, #tpu.memory_space<vmem>>, %arg14: memref<32x32xf32, #tpu.memory_space<vmem>>, %arg15: memref<1x32xf32, #tpu.memory_space<vmem>>, %arg16: memref<1x32xf32, #tpu.memory_space<vmem>>, %arg17: memref<1x1xf32, #tpu.memory_space<vmem>>, %arg18: memref<1x32xf32, #tpu.memory_space<vmem>>, %arg19: memref<32x32xf32, #tpu.memory_space<vmem>>, %arg20: memref<1x1xf32, #tpu.memory_space<vmem>>, %arg21: memref<8x8x32xf32, #tpu.memory_space<vmem>>, %arg22: memref<8x8x1xf32, #tpu.memory_space<vmem>>, %arg23: memref<64x32xf32, #tpu.memory_space<vmem>>, %arg24: memref<64x1xf32, #tpu.memory_space<vmem>>, %arg25: memref<64x1xf32, #tpu.memory_space<vmem>>, %arg26: memref<64x1xf32, #tpu.memory_space<vmem>>, %arg27: memref<64x1xf32, #tpu.memory_space<vmem>>, %arg28: memref<64x1xf32, #tpu.memory_space<vmem>>) attributes {dimension_semantics = [#tpu.dimension_semantics<arbitrary>], iteration_bounds = array<i64: 3>, scalar_prefetch = 0 : i64, scratch_operands = 8 : i64, tpu.core_type = #tpu.core_type<tc>, window_params = [{pipeline_mode = #tpu.pipeline_mode<synchronous>, transform_indices = @transform_0, window_bounds = array<i64: 8, 8>}, {pipeline_mode = #tpu.pipeline_mode<synchronous>, transform_indices = @transform_1, window_bounds = array<i64: 8, 8, 32>}, {pipeline_mode = #tpu.pipeline_mode<synchronous>, transform_indices = @transform_2, window_bounds = array<i64: 8, 8>}, {pipeline_mode = #tpu.pipeline_mode<synchronous>, transform_indices = @transform_3, window_bounds = array<i64: 8, 8, 32>}, {pipeline_mode = #tpu.pipeline_mode<synchronous>, transform_indices = @transform_4, window_bounds = array<i64: 8, 8, 1>}, {pipeline_mode = #tpu.pipeline_mode<synchronous>, transform_indices = @transform_5, window_bounds = array<i64: 64, 32>}, {pipeline_mode = #tpu.pipeline_mode<synchronous>, transform_indices = @transform_6, window_bounds = array<i64: 64, 1>}, {pipeline_mode = #tpu.pipeline_mode<synchronous>, transform_indices = @transform_7, window_bounds = array<i64: 96, 64>}, {pipeline_mode = #tpu.pipeline_mode<synchronous>, transform_indices = @transform_8, window_bounds = array<i64: 1, 64>}, {pipeline_mode = #tpu.pipeline_mode<synchronous>, transform_indices = @transform_9, window_bounds = array<i64: 96, 32>}, {pipeline_mode = #tpu.pipeline_mode<synchronous>, transform_indices = @transform_10, window_bounds = array<i64: 1, 32>}, {pipeline_mode = #tpu.pipeline_mode<synchronous>, transform_indices = @transform_11, window_bounds = array<i64: 32, 32>}, {pipeline_mode = #tpu.pipeline_mode<synchronous>, transform_indices = @transform_12, window_bounds = array<i64: 1, 32>}, {pipeline_mode = #tpu.pipeline_mode<synchronous>, transform_indices = @transform_13, window_bounds = array<i64: 32, 32>}, {pipeline_mode = #tpu.pipeline_mode<synchronous>, transform_indices = @transform_14, window_bounds = array<i64: 1, 32>}, {pipeline_mode = #tpu.pipeline_mode<synchronous>, transform_indices = @transform_15, window_bounds = array<i64: 1, 32>}, {pipeline_mode = #tpu.pipeline_mode<synchronous>, transform_indices = @transform_16, window_bounds = array<i64: 1, 1>}, {pipeline_mode = #tpu.pipeline_mode<synchronous>, transform_indices = @transform_17, window_bounds = array<i64: 1, 32>}, {transform_indices = @transform_18, window_bounds = array<i64: 32, 32>}, {pipeline_mode = #tpu.pipeline_mode<synchronous>, transform_indices = @transform_19, window_bounds = array<i64: 1, 1>}]} {
    %c0_i32 = arith.constant 0 : i32
    %0 = arith.cmpi eq, %arg0, %c0_i32 : i32
    %1 = arith.extui %0 : i1 to i32
    %c0_i32_0 = arith.constant 0 : i32
    %2 = arith.cmpi ne, %1, %c0_i32_0 : i32
    scf.if %2 {
      %cst_16 = arith.constant 0.000000e+00 : f32
      %33 = vector.broadcast %cst_16 : f32 to vector<1x1xf32>
      %c0_17 = arith.constant 0 : index
      %c0_18 = arith.constant 0 : index
      %34 = vector.load %arg20[%c0_17, %c0_18] : memref<1x1xf32, #tpu.memory_space<vmem>>, vector<1x1xf32>
      tpu.vector_store %arg20[%c0_17, %c0_18], %33 {strides = array<i32>} : memref<1x1xf32, #tpu.memory_space<vmem>>, vector<1x1xf32>,
      %c0_19 = arith.constant 0 : index
      %c0_20 = arith.constant 0 : index
      %c0_21 = arith.constant 0 : index
      %35 = vector.load %arg2[%c0_19, %c0_20, %c0_21] : memref<8x8x32xf32, #tpu.memory_space<vmem>>, vector<8x8x32xf32>
      %c0_22 = arith.constant 0 : index
      %c0_23 = arith.constant 0 : index
      %36 = vector.load %arg3[%c0_22, %c0_23] : memref<8x8xf32, #tpu.memory_space<vmem>>, vector<8x8xf32>
      %c0_24 = arith.constant 0 : index
      %c0_25 = arith.constant 0 : index
      %37 = vector.load %arg1[%c0_24, %c0_25] : memref<8x8xi32, #tpu.memory_space<vmem>>, vector<8x8xi32>
      %cst_26 = arith.constant 1.000000e+00 : f32
      %38 = vector.broadcast %cst_26 : f32 to vector<8x8xf32>
      %39 = arith.subf %38, %36 : vector<8x8xf32>
      %cst_27 = arith.constant -1.000000e+30 : f32
      %40 = vector.broadcast %cst_27 : f32 to vector<8x8xf32>
      %41 = arith.mulf %39, %40 : vector<8x8xf32>
      %c0_28 = arith.constant 0 : index
      %c0_29 = arith.constant 0 : index
      %42 = vector.load %arg8[%c0_28, %c0_29] : memref<96x64xf32, #tpu.memory_space<vmem>>, vector<96x64xf32>
      %c0_30 = arith.constant 0 : index
      %c0_31 = arith.constant 0 : index
      %43 = vector.load %arg9[%c0_30, %c0_31] : memref<1x64xf32, #tpu.memory_space<vmem>>, vector<1x64xf32>
      %c0_32 = arith.constant 0 : index
      %c0_33 = arith.constant 0 : index
      %44 = vector.load %arg10[%c0_32, %c0_33] : memref<96x32xf32, #tpu.memory_space<vmem>>, vector<96x32xf32>
      %c0_34 = arith.constant 0 : index
      %c0_35 = arith.constant 0 : index
      %45 = vector.load %arg11[%c0_34, %c0_35] : memref<1x32xf32, #tpu.memory_space<vmem>>, vector<1x32xf32>
      %c0_36 = arith.constant 0 : index
      %c0_37 = arith.constant 0 : index
      %46 = vector.load %arg14[%c0_36, %c0_37] : memref<32x32xf32, #tpu.memory_space<vmem>>, vector<32x32xf32>
      %c0_38 = arith.constant 0 : index
      %c0_39 = arith.constant 0 : index
      %47 = vector.load %arg15[%c0_38, %c0_39] : memref<1x32xf32, #tpu.memory_space<vmem>>, vector<1x32xf32>
      %c0_40 = arith.constant 0 : index
      %c0_41 = arith.constant 0 : index
      %48 = vector.load %arg18[%c0_40, %c0_41] : memref<1x32xf32, #tpu.memory_space<vmem>>, vector<1x32xf32>
      %49 = vector.shape_cast %48 : vector<1x32xf32> to vector<1x32xf32>
      %50 = vector.broadcast %49 : vector<1x32xf32> to vector<8x32xf32>
      %c0_i32_42 = arith.constant 0 : i32
      %51 = arith.index_cast %c0_i32_42 : i32 to index
      %c0_43 = arith.constant 0 : index
      %c0_44 = arith.constant 0 : index
      %52 = vector.load %arg4[%51, %c0_43, %c0_44] : memref<8x8x32xf32, #tpu.memory_space<vmem>>, vector<1x8x32xf32>
      %53 = vector.shape_cast %52 : vector<1x8x32xf32> to vector<8x32xf32>
      %54 = vector.shape_cast %50 : vector<8x32xf32> to vector<8x1x32xf32>
      "tpu.trace_start"() <{level = 10 : i32, message = "bud,bsd->bus"}> : () -> ()
      %cst_45 = arith.constant dense<0.000000e+00> : vector<8x1x8xf32>
      %55 = tpu.matmul %54, %35, %cst_45 {dimension_numbers = #tpu.dot_dimension_numbers<[2], [2], [1], [1], [0, 0, 0, 1, 1, 1], [0], [0]>} : vector<8x1x32xf32>, vector<8x8x32xf32>, vector<8x1x8xf32> -> vector<8x1x8xf32>
      "tpu.trace_stop"() : () -> ()
      %cst_46 = arith.constant dense<0.000000e+00> : vector<8x8xf32>
      %56 = vector.multi_reduction <add>, %55, %cst_46 [1] : vector<8x1x8xf32> to vector<8x8xf32>
      %cst_47 = arith.constant 0.176776692 : f32
      %57 = vector.broadcast %cst_47 : f32 to vector<8x8xf32>
      %58 = arith.mulf %56, %57 : vector<8x8xf32>
      %59 = arith.addf %58, %41 : vector<8x8xf32>
      %cst_48 = arith.constant dense<0xFF800000> : vector<8xf32>
      %60 = vector.multi_reduction <maximumf>, %59, %cst_48 [1] : vector<8x8xf32> to vector<8xf32>
      %61 = vector.shape_cast %60 : vector<8xf32> to vector<8x1xf32>
      %62 = vector.broadcast %61 : vector<8x1xf32> to vector<8x8xf32>
      %63 = arith.subf %59, %62 : vector<8x8xf32>
      %64 = math.exp %63 : vector<8x8xf32>
      %cst_49 = arith.constant dense<0.000000e+00> : vector<8xf32>
      %65 = vector.multi_reduction <add>, %64, %cst_49 [1] : vector<8x8xf32> to vector<8xf32>
      %66 = vector.shape_cast %65 : vector<8xf32> to vector<8x1xf32>
      %67 = tpu.reciprocal %66 : vector<8x1xf32> -> vector<8x1xf32>
      %68 = vector.broadcast %67 : vector<8x1xf32> to vector<8x8xf32>
      %69 = arith.mulf %64, %68 : vector<8x8xf32>
      %70 = vector.shape_cast %69 : vector<8x8xf32> to vector<8x1x8xf32>
      "tpu.trace_start"() <{level = 10 : i32, message = "bus,bsd->bud"}> : () -> ()
      %cst_50 = arith.constant dense<0.000000e+00> : vector<8x1x32xf32>
      %71 = tpu.matmul %70, %35, %cst_50 {dimension_numbers = #tpu.dot_dimension_numbers<[2], [1], [1], [2], [0, 0, 0, 1, 1, 2], [0], [0]>} : vector<8x1x8xf32>, vector<8x8x32xf32>, vector<8x1x32xf32> -> vector<8x1x32xf32>
      "tpu.trace_stop"() : () -> ()
      %cst_51 = arith.constant dense<0.000000e+00> : vector<8x32xf32>
      %72 = vector.multi_reduction <add>, %71, %cst_51 [1] : vector<8x1x32xf32> to vector<8x32xf32>
      %73 = vector.extract_strided_slice %42 {offsets = [0, 0], sizes = [32, 64], strides = [1, 1]} : vector<96x64xf32> to vector<32x64xf32>
      %cst_52 = arith.constant dense<0.000000e+00> : vector<8x64xf32>
      %74 = tpu.matmul %72, %73, %cst_52 {dimension_numbers = #tpu.dot_dimension_numbers<[1], [0], [0], [1], [0, 0, 1, 1], [], []>} : vector<8x32xf32>, vector<32x64xf32>, vector<8x64xf32> -> vector<8x64xf32>
      %75 = vector.extract_strided_slice %42 {offsets = [32, 0], sizes = [32, 64], strides = [1, 1]} : vector<96x64xf32> to vector<32x64xf32>
      %cst_53 = arith.constant dense<0.000000e+00> : vector<8x64xf32>
      %76 = tpu.matmul %53, %75, %cst_53 {dimension_numbers = #tpu.dot_dimension_numbers<[1], [0], [0], [1], [0, 0, 1, 1], [], []>} : vector<8x32xf32>, vector<32x64xf32>, vector<8x64xf32> -> vector<8x64xf32>
      %77 = arith.addf %74, %76 : vector<8x64xf32>
      %78 = vector.extract_strided_slice %42 {offsets = [64, 0], sizes = [32, 64], strides = [1, 1]} : vector<96x64xf32> to vector<32x64xf32>
      %cst_54 = arith.constant dense<0.000000e+00> : vector<8x64xf32>
      %79 = tpu.matmul %50, %78, %cst_54 {dimension_numbers = #tpu.dot_dimension_numbers<[1], [0], [0], [1], [0, 0, 1, 1], [], []>} : vector<8x32xf32>, vector<32x64xf32>, vector<8x64xf32> -> vector<8x64xf32>
      %80 = arith.addf %77, %79 : vector<8x64xf32>
      %81 = vector.broadcast %43 : vector<1x64xf32> to vector<8x64xf32>
      %82 = arith.addf %80, %81 : vector<8x64xf32>
      %83 = arith.negf %82 : vector<8x64xf32>
      %84 = math.exp %83 : vector<8x64xf32>
      %cst_55 = arith.constant 1.000000e+00 : f32
      %85 = vector.broadcast %cst_55 : f32 to vector<8x64xf32>
      %86 = arith.addf %85, %84 : vector<8x64xf32>
      %87 = arith.divf %85, %86 : vector<8x64xf32>
      %88 = vector.extract_strided_slice %87 {offsets = [0, 0], sizes = [8, 32], strides = [1, 1]} : vector<8x64xf32> to vector<8x32xf32>
      %89 = vector.extract_strided_slice %87 {offsets = [0, 32], sizes = [8, 32], strides = [1, 1]} : vector<8x64xf32> to vector<8x32xf32>
      %90 = arith.mulf %88, %50 : vector<8x32xf32>
      %91 = vector.extract_strided_slice %44 {offsets = [0, 0], sizes = [32, 32], strides = [1, 1]} : vector<96x32xf32> to vector<32x32xf32>
      %cst_56 = arith.constant dense<0.000000e+00> : vector<8x32xf32>
      %92 = tpu.matmul %72, %91, %cst_56 {dimension_numbers = #tpu.dot_dimension_numbers<[1], [0], [0], [1], [0, 0, 1, 1], [], []>} : vector<8x32xf32>, vector<32x32xf32>, vector<8x32xf32> -> vector<8x32xf32>
      %93 = vector.extract_strided_slice %44 {offsets = [32, 0], sizes = [32, 32], strides = [1, 1]} : vector<96x32xf32> to vector<32x32xf32>
      %cst_57 = arith.constant dense<0.000000e+00> : vector<8x32xf32>
      %94 = tpu.matmul %53, %93, %cst_57 {dimension_numbers = #tpu.dot_dimension_numbers<[1], [0], [0], [1], [0, 0, 1, 1], [], []>} : vector<8x32xf32>, vector<32x32xf32>, vector<8x32xf32> -> vector<8x32xf32>
      %95 = arith.addf %92, %94 : vector<8x32xf32>
      %96 = vector.extract_strided_slice %44 {offsets = [64, 0], sizes = [32, 32], strides = [1, 1]} : vector<96x32xf32> to vector<32x32xf32>
      %cst_58 = arith.constant dense<0.000000e+00> : vector<8x32xf32>
      %97 = tpu.matmul %90, %96, %cst_58 {dimension_numbers = #tpu.dot_dimension_numbers<[1], [0], [0], [1], [0, 0, 1, 1], [], []>} : vector<8x32xf32>, vector<32x32xf32>, vector<8x32xf32> -> vector<8x32xf32>
      %98 = arith.addf %95, %97 : vector<8x32xf32>
      %99 = vector.broadcast %45 : vector<1x32xf32> to vector<8x32xf32>
      %100 = arith.addf %98, %99 : vector<8x32xf32>
      %101 = math.tanh %100 : vector<8x32xf32>
      %cst_59 = arith.constant 1.000000e+00 : f32
      %102 = vector.broadcast %cst_59 : f32 to vector<8x32xf32>
      %103 = arith.subf %102, %89 : vector<8x32xf32>
      %104 = arith.mulf %103, %50 : vector<8x32xf32>
      %105 = arith.mulf %89, %101 : vector<8x32xf32>
      %106 = arith.addf %104, %105 : vector<8x32xf32>
      %107 = arith.index_cast %c0_i32_42 : i32 to index
      %c0_60 = arith.constant 0 : index
      %c0_61 = arith.constant 0 : index
      %108 = vector.load %arg21[%107, %c0_60, %c0_61] : memref<8x8x32xf32, #tpu.memory_space<vmem>>, vector<1x8x32xf32>
      %109 = vector.shape_cast %108 : vector<1x8x32xf32> to vector<8x32xf32>
      %110 = vector.shape_cast %106 : vector<8x32xf32> to vector<1x8x32xf32>
      tpu.vector_store %arg21[%107, %c0_60, %c0_61], %110 {strides = array<i32>} : memref<8x8x32xf32, #tpu.memory_space<vmem>>, vector<1x8x32xf32>,
      %cst_62 = arith.constant dense<0.000000e+00> : vector<8x32xf32>
      %111 = tpu.matmul %106, %46, %cst_62 {dimension_numbers = #tpu.dot_dimension_numbers<[1], [0], [0], [1], [0, 0, 1, 1], [], []>} : vector<8x32xf32>, vector<32x32xf32>, vector<8x32xf32> -> vector<8x32xf32>
      %112 = vector.broadcast %47 : vector<1x32xf32> to vector<8x32xf32>
      %113 = arith.addf %111, %112 : vector<8x32xf32>
      %114 = vector.shape_cast %113 : vector<8x32xf32> to vector<8x1x32xf32>
      "tpu.trace_start"() <{level = 10 : i32, message = "bud,bsd->bus"}> : () -> ()
      %cst_63 = arith.constant dense<0.000000e+00> : vector<8x1x8xf32>
      %115 = tpu.matmul %114, %35, %cst_63 {dimension_numbers = #tpu.dot_dimension_numbers<[2], [2], [1], [1], [0, 0, 0, 1, 1, 1], [0], [0]>} : vector<8x1x32xf32>, vector<8x8x32xf32>, vector<8x1x8xf32> -> vector<8x1x8xf32>
      "tpu.trace_stop"() : () -> ()
      %cst_64 = arith.constant dense<0.000000e+00> : vector<8x8xf32>
      %116 = vector.multi_reduction <add>, %115, %cst_64 [1] : vector<8x1x8xf32> to vector<8x8xf32>
      %117 = arith.addf %116, %41 : vector<8x8xf32>
      %cst_65 = arith.constant dense<0xFF800000> : vector<8xf32>
      %118 = vector.multi_reduction <maximumf>, %117, %cst_65 [1] : vector<8x8xf32> to vector<8xf32>
      %119 = vector.shape_cast %118 : vector<8xf32> to vector<8x1xf32>
      %120 = vector.broadcast %119 : vector<8x1xf32> to vector<8x8xf32>
      %121 = arith.subf %117, %120 : vector<8x8xf32>
      %122 = math.exp %121 : vector<8x8xf32>
      %cst_66 = arith.constant dense<0.000000e+00> : vector<8xf32>
      %123 = vector.multi_reduction <add>, %122, %cst_66 [1] : vector<8x8xf32> to vector<8xf32>
      %124 = vector.shape_cast %123 : vector<8xf32> to vector<8x1xf32>
      %125 = tpu.reciprocal %124 : vector<8x1xf32> -> vector<8x1xf32>
      %126 = vector.broadcast %125 : vector<8x1xf32> to vector<8x8xf32>
      %127 = arith.mulf %122, %126 : vector<8x8xf32>
      %128 = arith.index_cast %c0_i32_42 : i32 to index
      %c0_67 = arith.constant 0 : index
      %c0_68 = arith.constant 0 : index
      %129 = vector.load %arg5[%128, %c0_67, %c0_68] : memref<8x8x1xi32, #tpu.memory_space<vmem>>, vector<1x8x1xi32>
      %130 = vector.shape_cast %129 : vector<1x8x1xi32> to vector<8x1xi32>
      %131 = vector.broadcast %130 : vector<8x1xi32> to vector<8x8xi32>
      %132 = arith.cmpi eq, %37, %131 : vector<8x8xi32>
      %133 = arith.extui %132 : vector<8x8xi1> to vector<8x8xi32>
      %134 = arith.sitofp %133 : vector<8x8xi32> to vector<8x8xf32>
      %135 = arith.mulf %127, %134 : vector<8x8xf32>
      %cst_69 = arith.constant dense<0.000000e+00> : vector<8xf32>
      %136 = vector.multi_reduction <add>, %135, %cst_69 [1] : vector<8x8xf32> to vector<8xf32>
      %137 = vector.shape_cast %136 : vector<8xf32> to vector<8x1xf32>
      %138 = arith.index_cast %c0_i32_42 : i32 to index
      %c0_70 = arith.constant 0 : index
      %c0_71 = arith.constant 0 : index
      %139 = vector.load %arg22[%138, %c0_70, %c0_71] : memref<8x8x1xf32, #tpu.memory_space<vmem>>, vector<1x8x1xf32>
      %140 = vector.shape_cast %139 : vector<1x8x1xf32> to vector<8x1xf32>
      %141 = vector.shape_cast %137 : vector<8x1xf32> to vector<1x8x1xf32>
      tpu.vector_store %arg22[%138, %c0_70, %c0_71], %141 {strides = array<i32>} : memref<8x8x1xf32, #tpu.memory_space<vmem>>, vector<1x8x1xf32>,
      %c1_i32 = arith.constant 1 : i32
      %142 = arith.index_cast %c1_i32 : i32 to index
      %c0_72 = arith.constant 0 : index
      %c0_73 = arith.constant 0 : index
      %143 = vector.load %arg4[%142, %c0_72, %c0_73] : memref<8x8x32xf32, #tpu.memory_space<vmem>>, vector<1x8x32xf32>
      %144 = vector.shape_cast %143 : vector<1x8x32xf32> to vector<8x32xf32>
      %145 = vector.shape_cast %106 : vector<8x32xf32> to vector<8x1x32xf32>
      "tpu.trace_start"() <{level = 10 : i32, message = "bud,bsd->bus"}> : () -> ()
      %cst_74 = arith.constant dense<0.000000e+00> : vector<8x1x8xf32>
      %146 = tpu.matmul %145, %35, %cst_74 {dimension_numbers = #tpu.dot_dimension_numbers<[2], [2], [1], [1], [0, 0, 0, 1, 1, 1], [0], [0]>} : vector<8x1x32xf32>, vector<8x8x32xf32>, vector<8x1x8xf32> -> vector<8x1x8xf32>
      "tpu.trace_stop"() : () -> ()
      %cst_75 = arith.constant dense<0.000000e+00> : vector<8x8xf32>
      %147 = vector.multi_reduction <add>, %146, %cst_75 [1] : vector<8x1x8xf32> to vector<8x8xf32>
      %cst_76 = arith.constant 0.176776692 : f32
      %148 = vector.broadcast %cst_76 : f32 to vector<8x8xf32>
      %149 = arith.mulf %147, %148 : vector<8x8xf32>
      %150 = arith.addf %149, %41 : vector<8x8xf32>
      %cst_77 = arith.constant dense<0xFF800000> : vector<8xf32>
      %151 = vector.multi_reduction <maximumf>, %150, %cst_77 [1] : vector<8x8xf32> to vector<8xf32>
      %152 = vector.shape_cast %151 : vector<8xf32> to vector<8x1xf32>
      %153 = vector.broadcast %152 : vector<8x1xf32> to vector<8x8xf32>
      %154 = arith.subf %150, %153 : vector<8x8xf32>
      %155 = math.exp %154 : vector<8x8xf32>
      %cst_78 = arith.constant dense<0.000000e+00> : vector<8xf32>
      %156 = vector.multi_reduction <add>, %155, %cst_78 [1] : vector<8x8xf32> to vector<8xf32>
      %157 = vector.shape_cast %156 : vector<8xf32> to vector<8x1xf32>
      %158 = tpu.reciprocal %157 : vector<8x1xf32> -> vector<8x1xf32>
      %159 = vector.broadcast %158 : vector<8x1xf32> to vector<8x8xf32>
      %160 = arith.mulf %155, %159 : vector<8x8xf32>
      %161 = vector.shape_cast %160 : vector<8x8xf32> to vector<8x1x8xf32>
      "tpu.trace_start"() <{level = 10 : i32, message = "bus,bsd->bud"}> : () -> ()
      %cst_79 = arith.constant dense<0.000000e+00> : vector<8x1x32xf32>
      %162 = tpu.matmul %161, %35, %cst_79 {dimension_numbers = #tpu.dot_dimension_numbers<[2], [1], [1], [2], [0, 0, 0, 1, 1, 2], [0], [0]>} : vector<8x1x8xf32>, vector<8x8x32xf32>, vector<8x1x32xf32> -> vector<8x1x32xf32>
      "tpu.trace_stop"() : () -> ()
      %cst_80 = arith.constant dense<0.000000e+00> : vector<8x32xf32>
      %163 = vector.multi_reduction <add>, %162, %cst_80 [1] : vector<8x1x32xf32> to vector<8x32xf32>
      %164 = vector.extract_strided_slice %42 {offsets = [0, 0], sizes = [32, 64], strides = [1, 1]} : vector<96x64xf32> to vector<32x64xf32>
      %cst_81 = arith.constant dense<0.000000e+00> : vector<8x64xf32>
      %165 = tpu.matmul %163, %164, %cst_81 {dimension_numbers = #tpu.dot_dimension_numbers<[1], [0], [0], [1], [0, 0, 1, 1], [], []>} : vector<8x32xf32>, vector<32x64xf32>, vector<8x64xf32> -> vector<8x64xf32>
      %166 = vector.extract_strided_slice %42 {offsets = [32, 0], sizes = [32, 64], strides = [1, 1]} : vector<96x64xf32> to vector<32x64xf32>
      %cst_82 = arith.constant dense<0.000000e+00> : vector<8x64xf32>
      %167 = tpu.matmul %144, %166, %cst_82 {dimension_numbers = #tpu.dot_dimension_numbers<[1], [0], [0], [1], [0, 0, 1, 1], [], []>} : vector<8x32xf32>, vector<32x64xf32>, vector<8x64xf32> -> vector<8x64xf32>
      %168 = arith.addf %165, %167 : vector<8x64xf32>
      %169 = vector.extract_strided_slice %42 {offsets = [64, 0], sizes = [32, 64], strides = [1, 1]} : vector<96x64xf32> to vector<32x64xf32>
      %cst_83 = arith.constant dense<0.000000e+00> : vector<8x64xf32>
      %170 = tpu.matmul %106, %169, %cst_83 {dimension_numbers = #tpu.dot_dimension_numbers<[1], [0], [0], [1], [0, 0, 1, 1], [], []>} : vector<8x32xf32>, vector<32x64xf32>, vector<8x64xf32> -> vector<8x64xf32>
      %171 = arith.addf %168, %170 : vector<8x64xf32>
      %172 = vector.broadcast %43 : vector<1x64xf32> to vector<8x64xf32>
      %173 = arith.addf %171, %172 : vector<8x64xf32>
      %174 = arith.negf %173 : vector<8x64xf32>
      %175 = math.exp %174 : vector<8x64xf32>
      %cst_84 = arith.constant 1.000000e+00 : f32
      %176 = vector.broadcast %cst_84 : f32 to vector<8x64xf32>
      %177 = arith.addf %176, %175 : vector<8x64xf32>
      %178 = arith.divf %176, %177 : vector<8x64xf32>
      %179 = vector.extract_strided_slice %178 {offsets = [0, 0], sizes = [8, 32], strides = [1, 1]} : vector<8x64xf32> to vector<8x32xf32>
      %180 = vector.extract_strided_slice %178 {offsets = [0, 32], sizes = [8, 32], strides = [1, 1]} : vector<8x64xf32> to vector<8x32xf32>
      %181 = arith.mulf %179, %106 : vector<8x32xf32>
      %182 = vector.extract_strided_slice %44 {offsets = [0, 0], sizes = [32, 32], strides = [1, 1]} : vector<96x32xf32> to vector<32x32xf32>
      %cst_85 = arith.constant dense<0.000000e+00> : vector<8x32xf32>
      %183 = tpu.matmul %163, %182, %cst_85 {dimension_numbers = #tpu.dot_dimension_numbers<[1], [0], [0], [1], [0, 0, 1, 1], [], []>} : vector<8x32xf32>, vector<32x32xf32>, vector<8x32xf32> -> vector<8x32xf32>
      %184 = vector.extract_strided_slice %44 {offsets = [32, 0], sizes = [32, 32], strides = [1, 1]} : vector<96x32xf32> to vector<32x32xf32>
      %cst_86 = arith.constant dense<0.000000e+00> : vector<8x32xf32>
      %185 = tpu.matmul %144, %184, %cst_86 {dimension_numbers = #tpu.dot_dimension_numbers<[1], [0], [0], [1], [0, 0, 1, 1], [], []>} : vector<8x32xf32>, vector<32x32xf32>, vector<8x32xf32> -> vector<8x32xf32>
      %186 = arith.addf %183, %185 : vector<8x32xf32>
      %187 = vector.extract_strided_slice %44 {offsets = [64, 0], sizes = [32, 32], strides = [1, 1]} : vector<96x32xf32> to vector<32x32xf32>
      %cst_87 = arith.constant dense<0.000000e+00> : vector<8x32xf32>
      %188 = tpu.matmul %181, %187, %cst_87 {dimension_numbers = #tpu.dot_dimension_numbers<[1], [0], [0], [1], [0, 0, 1, 1], [], []>} : vector<8x32xf32>, vector<32x32xf32>, vector<8x32xf32> -> vector<8x32xf32>
      %189 = arith.addf %186, %188 : vector<8x32xf32>
      %190 = vector.broadcast %45 : vector<1x32xf32> to vector<8x32xf32>
      %191 = arith.addf %189, %190 : vector<8x32xf32>
      %192 = math.tanh %191 : vector<8x32xf32>
      %cst_88 = arith.constant 1.000000e+00 : f32
      %193 = vector.broadcast %cst_88 : f32 to vector<8x32xf32>
      %194 = arith.subf %193, %180 : vector<8x32xf32>
      %195 = arith.mulf %194, %106 : vector<8x32xf32>
      %196 = arith.mulf %180, %192 : vector<8x32xf32>
      %197 = arith.addf %195, %196 : vector<8x32xf32>
      %198 = arith.index_cast %c1_i32 : i32 to index
      %c0_89 = arith.constant 0 : index
      %c0_90 = arith.constant 0 : index
      %199 = vector.load %arg21[%198, %c0_89, %c0_90] : memref<8x8x32xf32, #tpu.memory_space<vmem>>, vector<1x8x32xf32>
      %200 = vector.shape_cast %199 : vector<1x8x32xf32> to vector<8x32xf32>
      %201 = vector.shape_cast %197 : vector<8x32xf32> to vector<1x8x32xf32>
      tpu.vector_store %arg21[%198, %c0_89, %c0_90], %201 {strides = array<i32>} : memref<8x8x32xf32, #tpu.memory_space<vmem>>, vector<1x8x32xf32>,
      %cst_91 = arith.constant dense<0.000000e+00> : vector<8x32xf32>
      %202 = tpu.matmul %197, %46, %cst_91 {dimension_numbers = #tpu.dot_dimension_numbers<[1], [0], [0], [1], [0, 0, 1, 1], [], []>} : vector<8x32xf32>, vector<32x32xf32>, vector<8x32xf32> -> vector<8x32xf32>
      %203 = vector.broadcast %47 : vector<1x32xf32> to vector<8x32xf32>
      %204 = arith.addf %202, %203 : vector<8x32xf32>
      %205 = vector.shape_cast %204 : vector<8x32xf32> to vector<8x1x32xf32>
      "tpu.trace_start"() <{level = 10 : i32, message = "bud,bsd->bus"}> : () -> ()
      %cst_92 = arith.constant dense<0.000000e+00> : vector<8x1x8xf32>
      %206 = tpu.matmul %205, %35, %cst_92 {dimension_numbers = #tpu.dot_dimension_numbers<[2], [2], [1], [1], [0, 0, 0, 1, 1, 1], [0], [0]>} : vector<8x1x32xf32>, vector<8x8x32xf32>, vector<8x1x8xf32> -> vector<8x1x8xf32>
      "tpu.trace_stop"() : () -> ()
      %cst_93 = arith.constant dense<0.000000e+00> : vector<8x8xf32>
      %207 = vector.multi_reduction <add>, %206, %cst_93 [1] : vector<8x1x8xf32> to vector<8x8xf32>
      %208 = arith.addf %207, %41 : vector<8x8xf32>
      %cst_94 = arith.constant dense<0xFF800000> : vector<8xf32>
      %209 = vector.multi_reduction <maximumf>, %208, %cst_94 [1] : vector<8x8xf32> to vector<8xf32>
      %210 = vector.shape_cast %209 : vector<8xf32> to vector<8x1xf32>
      %211 = vector.broadcast %210 : vector<8x1xf32> to vector<8x8xf32>
      %212 = arith.subf %208, %211 : vector<8x8xf32>
      %213 = math.exp %212 : vector<8x8xf32>
      %cst_95 = arith.constant dense<0.000000e+00> : vector<8xf32>
      %214 = vector.multi_reduction <add>, %213, %cst_95 [1] : vector<8x8xf32> to vector<8xf32>
      %215 = vector.shape_cast %214 : vector<8xf32> to vector<8x1xf32>
      %216 = tpu.reciprocal %215 : vector<8x1xf32> -> vector<8x1xf32>
      %217 = vector.broadcast %216 : vector<8x1xf32> to vector<8x8xf32>
      %218 = arith.mulf %213, %217 : vector<8x8xf32>
      %219 = arith.index_cast %c1_i32 : i32 to index
      %c0_96 = arith.constant 0 : index
      %c0_97 = arith.constant 0 : index
      %220 = vector.load %arg5[%219, %c0_96, %c0_97] : memref<8x8x1xi32, #tpu.memory_space<vmem>>, vector<1x8x1xi32>
      %221 = vector.shape_cast %220 : vector<1x8x1xi32> to vector<8x1xi32>
      %222 = vector.broadcast %221 : vector<8x1xi32> to vector<8x8xi32>
      %223 = arith.cmpi eq, %37, %222 : vector<8x8xi32>
      %224 = arith.extui %223 : vector<8x8xi1> to vector<8x8xi32>
      %225 = arith.sitofp %224 : vector<8x8xi32> to vector<8x8xf32>
      %226 = arith.mulf %218, %225 : vector<8x8xf32>
      %cst_98 = arith.constant dense<0.000000e+00> : vector<8xf32>
      %227 = vector.multi_reduction <add>, %226, %cst_98 [1] : vector<8x8xf32> to vector<8xf32>
      %228 = vector.shape_cast %227 : vector<8xf32> to vector<8x1xf32>
      %229 = arith.index_cast %c1_i32 : i32 to index
      %c0_99 = arith.constant 0 : index
      %c0_100 = arith.constant 0 : index
      %230 = vector.load %arg22[%229, %c0_99, %c0_100] : memref<8x8x1xf32, #tpu.memory_space<vmem>>, vector<1x8x1xf32>
      %231 = vector.shape_cast %230 : vector<1x8x1xf32> to vector<8x1xf32>
      %232 = vector.shape_cast %228 : vector<8x1xf32> to vector<1x8x1xf32>
      tpu.vector_store %arg22[%229, %c0_99, %c0_100], %232 {strides = array<i32>} : memref<8x8x1xf32, #tpu.memory_space<vmem>>, vector<1x8x1xf32>,
      %c2_i32_101 = arith.constant 2 : i32
      %233 = arith.index_cast %c2_i32_101 : i32 to index
      %c0_102 = arith.constant 0 : index
      %c0_103 = arith.constant 0 : index
      %234 = vector.load %arg4[%233, %c0_102, %c0_103] : memref<8x8x32xf32, #tpu.memory_space<vmem>>, vector<1x8x32xf32>
      %235 = vector.shape_cast %234 : vector<1x8x32xf32> to vector<8x32xf32>
      %236 = vector.shape_cast %197 : vector<8x32xf32> to vector<8x1x32xf32>
      "tpu.trace_start"() <{level = 10 : i32, message = "bud,bsd->bus"}> : () -> ()
      %cst_104 = arith.constant dense<0.000000e+00> : vector<8x1x8xf32>
      %237 = tpu.matmul %236, %35, %cst_104 {dimension_numbers = #tpu.dot_dimension_numbers<[2], [2], [1], [1], [0, 0, 0, 1, 1, 1], [0], [0]>} : vector<8x1x32xf32>, vector<8x8x32xf32>, vector<8x1x8xf32> -> vector<8x1x8xf32>
      "tpu.trace_stop"() : () -> ()
      %cst_105 = arith.constant dense<0.000000e+00> : vector<8x8xf32>
      %238 = vector.multi_reduction <add>, %237, %cst_105 [1] : vector<8x1x8xf32> to vector<8x8xf32>
      %cst_106 = arith.constant 0.176776692 : f32
      %239 = vector.broadcast %cst_106 : f32 to vector<8x8xf32>
      %240 = arith.mulf %238, %239 : vector<8x8xf32>
      %241 = arith.addf %240, %41 : vector<8x8xf32>
      %cst_107 = arith.constant dense<0xFF800000> : vector<8xf32>
      %242 = vector.multi_reduction <maximumf>, %241, %cst_107 [1] : vector<8x8xf32> to vector<8xf32>
      %243 = vector.shape_cast %242 : vector<8xf32> to vector<8x1xf32>
      %244 = vector.broadcast %243 : vector<8x1xf32> to vector<8x8xf32>
      %245 = arith.subf %241, %244 : vector<8x8xf32>
      %246 = math.exp %245 : vector<8x8xf32>
      %cst_108 = arith.constant dense<0.000000e+00> : vector<8xf32>
      %247 = vector.multi_reduction <add>, %246, %cst_108 [1] : vector<8x8xf32> to vector<8xf32>
      %248 = vector.shape_cast %247 : vector<8xf32> to vector<8x1xf32>
      %249 = tpu.reciprocal %248 : vector<8x1xf32> -> vector<8x1xf32>
      %250 = vector.broadcast %249 : vector<8x1xf32> to vector<8x8xf32>
      %251 = arith.mulf %246, %250 : vector<8x8xf32>
      %252 = vector.shape_cast %251 : vector<8x8xf32> to vector<8x1x8xf32>
      "tpu.trace_start"() <{level = 10 : i32, message = "bus,bsd->bud"}> : () -> ()
      %cst_109 = arith.constant dense<0.000000e+00> : vector<8x1x32xf32>
      %253 = tpu.matmul %252, %35, %cst_109 {dimension_numbers = #tpu.dot_dimension_numbers<[2], [1], [1], [2], [0, 0, 0, 1, 1, 2], [0], [0]>} : vector<8x1x8xf32>, vector<8x8x32xf32>, vector<8x1x32xf32> -> vector<8x1x32xf32>
      "tpu.trace_stop"() : () -> ()
      %cst_110 = arith.constant dense<0.000000e+00> : vector<8x32xf32>
      %254 = vector.multi_reduction <add>, %253, %cst_110 [1] : vector<8x1x32xf32> to vector<8x32xf32>
      %255 = vector.extract_strided_slice %42 {offsets = [0, 0], sizes = [32, 64], strides = [1, 1]} : vector<96x64xf32> to vector<32x64xf32>
      %cst_111 = arith.constant dense<0.000000e+00> : vector<8x64xf32>
      %256 = tpu.matmul %254, %255, %cst_111 {dimension_numbers = #tpu.dot_dimension_numbers<[1], [0], [0], [1], [0, 0, 1, 1], [], []>} : vector<8x32xf32>, vector<32x64xf32>, vector<8x64xf32> -> vector<8x64xf32>
      %257 = vector.extract_strided_slice %42 {offsets = [32, 0], sizes = [32, 64], strides = [1, 1]} : vector<96x64xf32> to vector<32x64xf32>
      %cst_112 = arith.constant dense<0.000000e+00> : vector<8x64xf32>
      %258 = tpu.matmul %235, %257, %cst_112 {dimension_numbers = #tpu.dot_dimension_numbers<[1], [0], [0], [1], [0, 0, 1, 1], [], []>} : vector<8x32xf32>, vector<32x64xf32>, vector<8x64xf32> -> vector<8x64xf32>
      %259 = arith.addf %256, %258 : vector<8x64xf32>
      %260 = vector.extract_strided_slice %42 {offsets = [64, 0], sizes = [32, 64], strides = [1, 1]} : vector<96x64xf32> to vector<32x64xf32>
      %cst_113 = arith.constant dense<0.000000e+00> : vector<8x64xf32>
      %261 = tpu.matmul %197, %260, %cst_113 {dimension_numbers = #tpu.dot_dimension_numbers<[1], [0], [0], [1], [0, 0, 1, 1], [], []>} : vector<8x32xf32>, vector<32x64xf32>, vector<8x64xf32> -> vector<8x64xf32>
      %262 = arith.addf %259, %261 : vector<8x64xf32>
      %263 = vector.broadcast %43 : vector<1x64xf32> to vector<8x64xf32>
      %264 = arith.addf %262, %263 : vector<8x64xf32>
      %265 = arith.negf %264 : vector<8x64xf32>
      %266 = math.exp %265 : vector<8x64xf32>
      %cst_114 = arith.constant 1.000000e+00 : f32
      %267 = vector.broadcast %cst_114 : f32 to vector<8x64xf32>
      %268 = arith.addf %267, %266 : vector<8x64xf32>
      %269 = arith.divf %267, %268 : vector<8x64xf32>
      %270 = vector.extract_strided_slice %269 {offsets = [0, 0], sizes = [8, 32], strides = [1, 1]} : vector<8x64xf32> to vector<8x32xf32>
      %271 = vector.extract_strided_slice %269 {offsets = [0, 32], sizes = [8, 32], strides = [1, 1]} : vector<8x64xf32> to vector<8x32xf32>
      %272 = arith.mulf %270, %197 : vector<8x32xf32>
      %273 = vector.extract_strided_slice %44 {offsets = [0, 0], sizes = [32, 32], strides = [1, 1]} : vector<96x32xf32> to vector<32x32xf32>
      %cst_115 = arith.constant dense<0.000000e+00> : vector<8x32xf32>
      %274 = tpu.matmul %254, %273, %cst_115 {dimension_numbers = #tpu.dot_dimension_numbers<[1], [0], [0], [1], [0, 0, 1, 1], [], []>} : vector<8x32xf32>, vector<32x32xf32>, vector<8x32xf32> -> vector<8x32xf32>
      %275 = vector.extract_strided_slice %44 {offsets = [32, 0], sizes = [32, 32], strides = [1, 1]} : vector<96x32xf32> to vector<32x32xf32>
      %cst_116 = arith.constant dense<0.000000e+00> : vector<8x32xf32>
      %276 = tpu.matmul %235, %275, %cst_116 {dimension_numbers = #tpu.dot_dimension_numbers<[1], [0], [0], [1], [0, 0, 1, 1], [], []>} : vector<8x32xf32>, vector<32x32xf32>, vector<8x32xf32> -> vector<8x32xf32>
      %277 = arith.addf %274, %276 : vector<8x32xf32>
      %278 = vector.extract_strided_slice %44 {offsets = [64, 0], sizes = [32, 32], strides = [1, 1]} : vector<96x32xf32> to vector<32x32xf32>
      %cst_117 = arith.constant dense<0.000000e+00> : vector<8x32xf32>
      %279 = tpu.matmul %272, %278, %cst_117 {dimension_numbers = #tpu.dot_dimension_numbers<[1], [0], [0], [1], [0, 0, 1, 1], [], []>} : vector<8x32xf32>, vector<32x32xf32>, vector<8x32xf32> -> vector<8x32xf32>
      %280 = arith.addf %277, %279 : vector<8x32xf32>
      %281 = vector.broadcast %45 : vector<1x32xf32> to vector<8x32xf32>
      %282 = arith.addf %280, %281 : vector<8x32xf32>
      %283 = math.tanh %282 : vector<8x32xf32>
      %cst_118 = arith.constant 1.000000e+00 : f32
      %284 = vector.broadcast %cst_118 : f32 to vector<8x32xf32>
      %285 = arith.subf %284, %271 : vector<8x32xf32>
      %286 = arith.mulf %285, %197 : vector<8x32xf32>
      %287 = arith.mulf %271, %283 : vector<8x32xf32>
      %288 = arith.addf %286, %287 : vector<8x32xf32>
      %289 = arith.index_cast %c2_i32_101 : i32 to index
      %c0_119 = arith.constant 0 : index
      %c0_120 = arith.constant 0 : index
      %290 = vector.load %arg21[%289, %c0_119, %c0_120] : memref<8x8x32xf32, #tpu.memory_space<vmem>>, vector<1x8x32xf32>
      %291 = vector.shape_cast %290 : vector<1x8x32xf32> to vector<8x32xf32>
      %292 = vector.shape_cast %288 : vector<8x32xf32> to vector<1x8x32xf32>
      tpu.vector_store %arg21[%289, %c0_119, %c0_120], %292 {strides = array<i32>} : memref<8x8x32xf32, #tpu.memory_space<vmem>>, vector<1x8x32xf32>,
      %cst_121 = arith.constant dense<0.000000e+00> : vector<8x32xf32>
      %293 = tpu.matmul %288, %46, %cst_121 {dimension_numbers = #tpu.dot_dimension_numbers<[1], [0], [0], [1], [0, 0, 1, 1], [], []>} : vector<8x32xf32>, vector<32x32xf32>, vector<8x32xf32> -> vector<8x32xf32>
      %294 = vector.broadcast %47 : vector<1x32xf32> to vector<8x32xf32>
      %295 = arith.addf %293, %294 : vector<8x32xf32>
      %296 = vector.shape_cast %295 : vector<8x32xf32> to vector<8x1x32xf32>
      "tpu.trace_start"() <{level = 10 : i32, message = "bud,bsd->bus"}> : () -> ()
      %cst_122 = arith.constant dense<0.000000e+00> : vector<8x1x8xf32>
      %297 = tpu.matmul %296, %35, %cst_122 {dimension_numbers = #tpu.dot_dimension_numbers<[2], [2], [1], [1], [0, 0, 0, 1, 1, 1], [0], [0]>} : vector<8x1x32xf32>, vector<8x8x32xf32>, vector<8x1x8xf32> -> vector<8x1x8xf32>
      "tpu.trace_stop"() : () -> ()
      %cst_123 = arith.constant dense<0.000000e+00> : vector<8x8xf32>
      %298 = vector.multi_reduction <add>, %297, %cst_123 [1] : vector<8x1x8xf32> to vector<8x8xf32>
      %299 = arith.addf %298, %41 : vector<8x8xf32>
      %cst_124 = arith.constant dense<0xFF800000> : vector<8xf32>
      %300 = vector.multi_reduction <maximumf>, %299, %cst_124 [1] : vector<8x8xf32> to vector<8xf32>
      %301 = vector.shape_cast %300 : vector<8xf32> to vector<8x1xf32>
      %302 = vector.broadcast %301 : vector<8x1xf32> to vector<8x8xf32>
      %303 = arith.subf %299, %302 : vector<8x8xf32>
      %304 = math.exp %303 : vector<8x8xf32>
      %cst_125 = arith.constant dense<0.000000e+00> : vector<8xf32>
      %305 = vector.multi_reduction <add>, %304, %cst_125 [1] : vector<8x8xf32> to vector<8xf32>
      %306 = vector.shape_cast %305 : vector<8xf32> to vector<8x1xf32>
      %307 = tpu.reciprocal %306 : vector<8x1xf32> -> vector<8x1xf32>
      %308 = vector.broadcast %307 : vector<8x1xf32> to vector<8x8xf32>
      %309 = arith.mulf %304, %308 : vector<8x8xf32>
      %310 = arith.index_cast %c2_i32_101 : i32 to index
      %c0_126 = arith.constant 0 : index
      %c0_127 = arith.constant 0 : index
      %311 = vector.load %arg5[%310, %c0_126, %c0_127] : memref<8x8x1xi32, #tpu.memory_space<vmem>>, vector<1x8x1xi32>
      %312 = vector.shape_cast %311 : vector<1x8x1xi32> to vector<8x1xi32>
      %313 = vector.broadcast %312 : vector<8x1xi32> to vector<8x8xi32>
      %314 = arith.cmpi eq, %37, %313 : vector<8x8xi32>
      %315 = arith.extui %314 : vector<8x8xi1> to vector<8x8xi32>
      %316 = arith.sitofp %315 : vector<8x8xi32> to vector<8x8xf32>
      %317 = arith.mulf %309, %316 : vector<8x8xf32>
      %cst_128 = arith.constant dense<0.000000e+00> : vector<8xf32>
      %318 = vector.multi_reduction <add>, %317, %cst_128 [1] : vector<8x8xf32> to vector<8xf32>
      %319 = vector.shape_cast %318 : vector<8xf32> to vector<8x1xf32>
      %320 = arith.index_cast %c2_i32_101 : i32 to index
      %c0_129 = arith.constant 0 : index
      %c0_130 = arith.constant 0 : index
      %321 = vector.load %arg22[%320, %c0_129, %c0_130] : memref<8x8x1xf32, #tpu.memory_space<vmem>>, vector<1x8x1xf32>
      %322 = vector.shape_cast %321 : vector<1x8x1xf32> to vector<8x1xf32>
      %323 = vector.shape_cast %319 : vector<8x1xf32> to vector<1x8x1xf32>
      tpu.vector_store %arg22[%320, %c0_129, %c0_130], %323 {strides = array<i32>} : memref<8x8x1xf32, #tpu.memory_space<vmem>>, vector<1x8x1xf32>,
      %c3_i32 = arith.constant 3 : i32
      %324 = arith.index_cast %c3_i32 : i32 to index
      %c0_131 = arith.constant 0 : index
      %c0_132 = arith.constant 0 : index
      %325 = vector.load %arg4[%324, %c0_131, %c0_132] : memref<8x8x32xf32, #tpu.memory_space<vmem>>, vector<1x8x32xf32>
      %326 = vector.shape_cast %325 : vector<1x8x32xf32> to vector<8x32xf32>
      %327 = vector.shape_cast %288 : vector<8x32xf32> to vector<8x1x32xf32>
      "tpu.trace_start"() <{level = 10 : i32, message = "bud,bsd->bus"}> : () -> ()
      %cst_133 = arith.constant dense<0.000000e+00> : vector<8x1x8xf32>
      %328 = tpu.matmul %327, %35, %cst_133 {dimension_numbers = #tpu.dot_dimension_numbers<[2], [2], [1], [1], [0, 0, 0, 1, 1, 1], [0], [0]>} : vector<8x1x32xf32>, vector<8x8x32xf32>, vector<8x1x8xf32> -> vector<8x1x8xf32>
      "tpu.trace_stop"() : () -> ()
      %cst_134 = arith.constant dense<0.000000e+00> : vector<8x8xf32>
      %329 = vector.multi_reduction <add>, %328, %cst_134 [1] : vector<8x1x8xf32> to vector<8x8xf32>
      %cst_135 = arith.constant 0.176776692 : f32
      %330 = vector.broadcast %cst_135 : f32 to vector<8x8xf32>
      %331 = arith.mulf %329, %330 : vector<8x8xf32>
      %332 = arith.addf %331, %41 : vector<8x8xf32>
      %cst_136 = arith.constant dense<0xFF800000> : vector<8xf32>
      %333 = vector.multi_reduction <maximumf>, %332, %cst_136 [1] : vector<8x8xf32> to vector<8xf32>
      %334 = vector.shape_cast %333 : vector<8xf32> to vector<8x1xf32>
      %335 = vector.broadcast %334 : vector<8x1xf32> to vector<8x8xf32>
      %336 = arith.subf %332, %335 : vector<8x8xf32>
      %337 = math.exp %336 : vector<8x8xf32>
      %cst_137 = arith.constant dense<0.000000e+00> : vector<8xf32>
      %338 = vector.multi_reduction <add>, %337, %cst_137 [1] : vector<8x8xf32> to vector<8xf32>
      %339 = vector.shape_cast %338 : vector<8xf32> to vector<8x1xf32>
      %340 = tpu.reciprocal %339 : vector<8x1xf32> -> vector<8x1xf32>
      %341 = vector.broadcast %340 : vector<8x1xf32> to vector<8x8xf32>
      %342 = arith.mulf %337, %341 : vector<8x8xf32>
      %343 = vector.shape_cast %342 : vector<8x8xf32> to vector<8x1x8xf32>
      "tpu.trace_start"() <{level = 10 : i32, message = "bus,bsd->bud"}> : () -> ()
      %cst_138 = arith.constant dense<0.000000e+00> : vector<8x1x32xf32>
      %344 = tpu.matmul %343, %35, %cst_138 {dimension_numbers = #tpu.dot_dimension_numbers<[2], [1], [1], [2], [0, 0, 0, 1, 1, 2], [0], [0]>} : vector<8x1x8xf32>, vector<8x8x32xf32>, vector<8x1x32xf32> -> vector<8x1x32xf32>
      "tpu.trace_stop"() : () -> ()
      %cst_139 = arith.constant dense<0.000000e+00> : vector<8x32xf32>
      %345 = vector.multi_reduction <add>, %344, %cst_139 [1] : vector<8x1x32xf32> to vector<8x32xf32>
      %346 = vector.extract_strided_slice %42 {offsets = [0, 0], sizes = [32, 64], strides = [1, 1]} : vector<96x64xf32> to vector<32x64xf32>
      %cst_140 = arith.constant dense<0.000000e+00> : vector<8x64xf32>
      %347 = tpu.matmul %345, %346, %cst_140 {dimension_numbers = #tpu.dot_dimension_numbers<[1], [0], [0], [1], [0, 0, 1, 1], [], []>} : vector<8x32xf32>, vector<32x64xf32>, vector<8x64xf32> -> vector<8x64xf32>
      %348 = vector.extract_strided_slice %42 {offsets = [32, 0], sizes = [32, 64], strides = [1, 1]} : vector<96x64xf32> to vector<32x64xf32>
      %cst_141 = arith.constant dense<0.000000e+00> : vector<8x64xf32>
      %349 = tpu.matmul %326, %348, %cst_141 {dimension_numbers = #tpu.dot_dimension_numbers<[1], [0], [0], [1], [0, 0, 1, 1], [], []>} : vector<8x32xf32>, vector<32x64xf32>, vector<8x64xf32> -> vector<8x64xf32>
      %350 = arith.addf %347, %349 : vector<8x64xf32>
      %351 = vector.extract_strided_slice %42 {offsets = [64, 0], sizes = [32, 64], strides = [1, 1]} : vector<96x64xf32> to vector<32x64xf32>
      %cst_142 = arith.constant dense<0.000000e+00> : vector<8x64xf32>
      %352 = tpu.matmul %288, %351, %cst_142 {dimension_numbers = #tpu.dot_dimension_numbers<[1], [0], [0], [1], [0, 0, 1, 1], [], []>} : vector<8x32xf32>, vector<32x64xf32>, vector<8x64xf32> -> vector<8x64xf32>
      %353 = arith.addf %350, %352 : vector<8x64xf32>
      %354 = vector.broadcast %43 : vector<1x64xf32> to vector<8x64xf32>
      %355 = arith.addf %353, %354 : vector<8x64xf32>
      %356 = arith.negf %355 : vector<8x64xf32>
      %357 = math.exp %356 : vector<8x64xf32>
      %cst_143 = arith.constant 1.000000e+00 : f32
      %358 = vector.broadcast %cst_143 : f32 to vector<8x64xf32>
      %359 = arith.addf %358, %357 : vector<8x64xf32>
      %360 = arith.divf %358, %359 : vector<8x64xf32>
      %361 = vector.extract_strided_slice %360 {offsets = [0, 0], sizes = [8, 32], strides = [1, 1]} : vector<8x64xf32> to vector<8x32xf32>
      %362 = vector.extract_strided_slice %360 {offsets = [0, 32], sizes = [8, 32], strides = [1, 1]} : vector<8x64xf32> to vector<8x32xf32>
      %363 = arith.mulf %361, %288 : vector<8x32xf32>
      %364 = vector.extract_strided_slice %44 {offsets = [0, 0], sizes = [32, 32], strides = [1, 1]} : vector<96x32xf32> to vector<32x32xf32>
      %cst_144 = arith.constant dense<0.000000e+00> : vector<8x32xf32>
      %365 = tpu.matmul %345, %364, %cst_144 {dimension_numbers = #tpu.dot_dimension_numbers<[1], [0], [0], [1], [0, 0, 1, 1], [], []>} : vector<8x32xf32>, vector<32x32xf32>, vector<8x32xf32> -> vector<8x32xf32>
      %366 = vector.extract_strided_slice %44 {offsets = [32, 0], sizes = [32, 32], strides = [1, 1]} : vector<96x32xf32> to vector<32x32xf32>
      %cst_145 = arith.constant dense<0.000000e+00> : vector<8x32xf32>
      %367 = tpu.matmul %326, %366, %cst_145 {dimension_numbers = #tpu.dot_dimension_numbers<[1], [0], [0], [1], [0, 0, 1, 1], [], []>} : vector<8x32xf32>, vector<32x32xf32>, vector<8x32xf32> -> vector<8x32xf32>
      %368 = arith.addf %365, %367 : vector<8x32xf32>
      %369 = vector.extract_strided_slice %44 {offsets = [64, 0], sizes = [32, 32], strides = [1, 1]} : vector<96x32xf32> to vector<32x32xf32>
      %cst_146 = arith.constant dense<0.000000e+00> : vector<8x32xf32>
      %370 = tpu.matmul %363, %369, %cst_146 {dimension_numbers = #tpu.dot_dimension_numbers<[1], [0], [0], [1], [0, 0, 1, 1], [], []>} : vector<8x32xf32>, vector<32x32xf32>, vector<8x32xf32> -> vector<8x32xf32>
      %371 = arith.addf %368, %370 : vector<8x32xf32>
      %372 = vector.broadcast %45 : vector<1x32xf32> to vector<8x32xf32>
      %373 = arith.addf %371, %372 : vector<8x32xf32>
      %374 = math.tanh %373 : vector<8x32xf32>
      %cst_147 = arith.constant 1.000000e+00 : f32
      %375 = vector.broadcast %cst_147 : f32 to vector<8x32xf32>
      %376 = arith.subf %375, %362 : vector<8x32xf32>
      %377 = arith.mulf %376, %288 : vector<8x32xf32>
      %378 = arith.mulf %362, %374 : vector<8x32xf32>
      %379 = arith.addf %377, %378 : vector<8x32xf32>
      %380 = arith.index_cast %c3_i32 : i32 to index
      %c0_148 = arith.constant 0 : index
      %c0_149 = arith.constant 0 : index
      %381 = vector.load %arg21[%380, %c0_148, %c0_149] : memref<8x8x32xf32, #tpu.memory_space<vmem>>, vector<1x8x32xf32>
      %382 = vector.shape_cast %381 : vector<1x8x32xf32> to vector<8x32xf32>
      %383 = vector.shape_cast %379 : vector<8x32xf32> to vector<1x8x32xf32>
      tpu.vector_store %arg21[%380, %c0_148, %c0_149], %383 {strides = array<i32>} : memref<8x8x32xf32, #tpu.memory_space<vmem>>, vector<1x8x32xf32>,
      %cst_150 = arith.constant dense<0.000000e+00> : vector<8x32xf32>
      %384 = tpu.matmul %379, %46, %cst_150 {dimension_numbers = #tpu.dot_dimension_numbers<[1], [0], [0], [1], [0, 0, 1, 1], [], []>} : vector<8x32xf32>, vector<32x32xf32>, vector<8x32xf32> -> vector<8x32xf32>
      %385 = vector.broadcast %47 : vector<1x32xf32> to vector<8x32xf32>
      %386 = arith.addf %384, %385 : vector<8x32xf32>
      %387 = vector.shape_cast %386 : vector<8x32xf32> to vector<8x1x32xf32>
      "tpu.trace_start"() <{level = 10 : i32, message = "bud,bsd->bus"}> : () -> ()
      %cst_151 = arith.constant dense<0.000000e+00> : vector<8x1x8xf32>
      %388 = tpu.matmul %387, %35, %cst_151 {dimension_numbers = #tpu.dot_dimension_numbers<[2], [2], [1], [1], [0, 0, 0, 1, 1, 1], [0], [0]>} : vector<8x1x32xf32>, vector<8x8x32xf32>, vector<8x1x8xf32> -> vector<8x1x8xf32>
      "tpu.trace_stop"() : () -> ()
      %cst_152 = arith.constant dense<0.000000e+00> : vector<8x8xf32>
      %389 = vector.multi_reduction <add>, %388, %cst_152 [1] : vector<8x1x8xf32> to vector<8x8xf32>
      %390 = arith.addf %389, %41 : vector<8x8xf32>
      %cst_153 = arith.constant dense<0xFF800000> : vector<8xf32>
      %391 = vector.multi_reduction <maximumf>, %390, %cst_153 [1] : vector<8x8xf32> to vector<8xf32>
      %392 = vector.shape_cast %391 : vector<8xf32> to vector<8x1xf32>
      %393 = vector.broadcast %392 : vector<8x1xf32> to vector<8x8xf32>
      %394 = arith.subf %390, %393 : vector<8x8xf32>
      %395 = math.exp %394 : vector<8x8xf32>
      %cst_154 = arith.constant dense<0.000000e+00> : vector<8xf32>
      %396 = vector.multi_reduction <add>, %395, %cst_154 [1] : vector<8x8xf32> to vector<8xf32>
      %397 = vector.shape_cast %396 : vector<8xf32> to vector<8x1xf32>
      %398 = tpu.reciprocal %397 : vector<8x1xf32> -> vector<8x1xf32>
      %399 = vector.broadcast %398 : vector<8x1xf32> to vector<8x8xf32>
      %400 = arith.mulf %395, %399 : vector<8x8xf32>
      %401 = arith.index_cast %c3_i32 : i32 to index
      %c0_155 = arith.constant 0 : index
      %c0_156 = arith.constant 0 : index
      %402 = vector.load %arg5[%401, %c0_155, %c0_156] : memref<8x8x1xi32, #tpu.memory_space<vmem>>, vector<1x8x1xi32>
      %403 = vector.shape_cast %402 : vector<1x8x1xi32> to vector<8x1xi32>
      %404 = vector.broadcast %403 : vector<8x1xi32> to vector<8x8xi32>
      %405 = arith.cmpi eq, %37, %404 : vector<8x8xi32>
      %406 = arith.extui %405 : vector<8x8xi1> to vector<8x8xi32>
      %407 = arith.sitofp %406 : vector<8x8xi32> to vector<8x8xf32>
      %408 = arith.mulf %400, %407 : vector<8x8xf32>
      %cst_157 = arith.constant dense<0.000000e+00> : vector<8xf32>
      %409 = vector.multi_reduction <add>, %408, %cst_157 [1] : vector<8x8xf32> to vector<8xf32>
      %410 = vector.shape_cast %409 : vector<8xf32> to vector<8x1xf32>
      %411 = arith.index_cast %c3_i32 : i32 to index
      %c0_158 = arith.constant 0 : index
      %c0_159 = arith.constant 0 : index
      %412 = vector.load %arg22[%411, %c0_158, %c0_159] : memref<8x8x1xf32, #tpu.memory_space<vmem>>, vector<1x8x1xf32>
      %413 = vector.shape_cast %412 : vector<1x8x1xf32> to vector<8x1xf32>
      %414 = vector.shape_cast %410 : vector<8x1xf32> to vector<1x8x1xf32>
      tpu.vector_store %arg22[%411, %c0_158, %c0_159], %414 {strides = array<i32>} : memref<8x8x1xf32, #tpu.memory_space<vmem>>, vector<1x8x1xf32>,
      %c4_i32 = arith.constant 4 : i32
      %415 = arith.index_cast %c4_i32 : i32 to index
      %c0_160 = arith.constant 0 : index
      %c0_161 = arith.constant 0 : index
      %416 = vector.load %arg4[%415, %c0_160, %c0_161] : memref<8x8x32xf32, #tpu.memory_space<vmem>>, vector<1x8x32xf32>
      %417 = vector.shape_cast %416 : vector<1x8x32xf32> to vector<8x32xf32>
      %418 = vector.shape_cast %379 : vector<8x32xf32> to vector<8x1x32xf32>
      "tpu.trace_start"() <{level = 10 : i32, message = "bud,bsd->bus"}> : () -> ()
      %cst_162 = arith.constant dense<0.000000e+00> : vector<8x1x8xf32>
      %419 = tpu.matmul %418, %35, %cst_162 {dimension_numbers = #tpu.dot_dimension_numbers<[2], [2], [1], [1], [0, 0, 0, 1, 1, 1], [0], [0]>} : vector<8x1x32xf32>, vector<8x8x32xf32>, vector<8x1x8xf32> -> vector<8x1x8xf32>
      "tpu.trace_stop"() : () -> ()
      %cst_163 = arith.constant dense<0.000000e+00> : vector<8x8xf32>
      %420 = vector.multi_reduction <add>, %419, %cst_163 [1] : vector<8x1x8xf32> to vector<8x8xf32>
      %cst_164 = arith.constant 0.176776692 : f32
      %421 = vector.broadcast %cst_164 : f32 to vector<8x8xf32>
      %422 = arith.mulf %420, %421 : vector<8x8xf32>
      %423 = arith.addf %422, %41 : vector<8x8xf32>
      %cst_165 = arith.constant dense<0xFF800000> : vector<8xf32>
      %424 = vector.multi_reduction <maximumf>, %423, %cst_165 [1] : vector<8x8xf32> to vector<8xf32>
      %425 = vector.shape_cast %424 : vector<8xf32> to vector<8x1xf32>
      %426 = vector.broadcast %425 : vector<8x1xf32> to vector<8x8xf32>
      %427 = arith.subf %423, %426 : vector<8x8xf32>
      %428 = math.exp %427 : vector<8x8xf32>
      %cst_166 = arith.constant dense<0.000000e+00> : vector<8xf32>
      %429 = vector.multi_reduction <add>, %428, %cst_166 [1] : vector<8x8xf32> to vector<8xf32>
      %430 = vector.shape_cast %429 : vector<8xf32> to vector<8x1xf32>
      %431 = tpu.reciprocal %430 : vector<8x1xf32> -> vector<8x1xf32>
      %432 = vector.broadcast %431 : vector<8x1xf32> to vector<8x8xf32>
      %433 = arith.mulf %428, %432 : vector<8x8xf32>
      %434 = vector.shape_cast %433 : vector<8x8xf32> to vector<8x1x8xf32>
      "tpu.trace_start"() <{level = 10 : i32, message = "bus,bsd->bud"}> : () -> ()
      %cst_167 = arith.constant dense<0.000000e+00> : vector<8x1x32xf32>
      %435 = tpu.matmul %434, %35, %cst_167 {dimension_numbers = #tpu.dot_dimension_numbers<[2], [1], [1], [2], [0, 0, 0, 1, 1, 2], [0], [0]>} : vector<8x1x8xf32>, vector<8x8x32xf32>, vector<8x1x32xf32> -> vector<8x1x32xf32>
      "tpu.trace_stop"() : () -> ()
      %cst_168 = arith.constant dense<0.000000e+00> : vector<8x32xf32>
      %436 = vector.multi_reduction <add>, %435, %cst_168 [1] : vector<8x1x32xf32> to vector<8x32xf32>
      %437 = vector.extract_strided_slice %42 {offsets = [0, 0], sizes = [32, 64], strides = [1, 1]} : vector<96x64xf32> to vector<32x64xf32>
      %cst_169 = arith.constant dense<0.000000e+00> : vector<8x64xf32>
      %438 = tpu.matmul %436, %437, %cst_169 {dimension_numbers = #tpu.dot_dimension_numbers<[1], [0], [0], [1], [0, 0, 1, 1], [], []>} : vector<8x32xf32>, vector<32x64xf32>, vector<8x64xf32> -> vector<8x64xf32>
      %439 = vector.extract_strided_slice %42 {offsets = [32, 0], sizes = [32, 64], strides = [1, 1]} : vector<96x64xf32> to vector<32x64xf32>
      %cst_170 = arith.constant dense<0.000000e+00> : vector<8x64xf32>
      %440 = tpu.matmul %417, %439, %cst_170 {dimension_numbers = #tpu.dot_dimension_numbers<[1], [0], [0], [1], [0, 0, 1, 1], [], []>} : vector<8x32xf32>, vector<32x64xf32>, vector<8x64xf32> -> vector<8x64xf32>
      %441 = arith.addf %438, %440 : vector<8x64xf32>
      %442 = vector.extract_strided_slice %42 {offsets = [64, 0], sizes = [32, 64], strides = [1, 1]} : vector<96x64xf32> to vector<32x64xf32>
      %cst_171 = arith.constant dense<0.000000e+00> : vector<8x64xf32>
      %443 = tpu.matmul %379, %442, %cst_171 {dimension_numbers = #tpu.dot_dimension_numbers<[1], [0], [0], [1], [0, 0, 1, 1], [], []>} : vector<8x32xf32>, vector<32x64xf32>, vector<8x64xf32> -> vector<8x64xf32>
      %444 = arith.addf %441, %443 : vector<8x64xf32>
      %445 = vector.broadcast %43 : vector<1x64xf32> to vector<8x64xf32>
      %446 = arith.addf %444, %445 : vector<8x64xf32>
      %447 = arith.negf %446 : vector<8x64xf32>
      %448 = math.exp %447 : vector<8x64xf32>
      %cst_172 = arith.constant 1.000000e+00 : f32
      %449 = vector.broadcast %cst_172 : f32 to vector<8x64xf32>
      %450 = arith.addf %449, %448 : vector<8x64xf32>
      %451 = arith.divf %449, %450 : vector<8x64xf32>
      %452 = vector.extract_strided_slice %451 {offsets = [0, 0], sizes = [8, 32], strides = [1, 1]} : vector<8x64xf32> to vector<8x32xf32>
      %453 = vector.extract_strided_slice %451 {offsets = [0, 32], sizes = [8, 32], strides = [1, 1]} : vector<8x64xf32> to vector<8x32xf32>
      %454 = arith.mulf %452, %379 : vector<8x32xf32>
      %455 = vector.extract_strided_slice %44 {offsets = [0, 0], sizes = [32, 32], strides = [1, 1]} : vector<96x32xf32> to vector<32x32xf32>
      %cst_173 = arith.constant dense<0.000000e+00> : vector<8x32xf32>
      %456 = tpu.matmul %436, %455, %cst_173 {dimension_numbers = #tpu.dot_dimension_numbers<[1], [0], [0], [1], [0, 0, 1, 1], [], []>} : vector<8x32xf32>, vector<32x32xf32>, vector<8x32xf32> -> vector<8x32xf32>
      %457 = vector.extract_strided_slice %44 {offsets = [32, 0], sizes = [32, 32], strides = [1, 1]} : vector<96x32xf32> to vector<32x32xf32>
      %cst_174 = arith.constant dense<0.000000e+00> : vector<8x32xf32>
      %458 = tpu.matmul %417, %457, %cst_174 {dimension_numbers = #tpu.dot_dimension_numbers<[1], [0], [0], [1], [0, 0, 1, 1], [], []>} : vector<8x32xf32>, vector<32x32xf32>, vector<8x32xf32> -> vector<8x32xf32>
      %459 = arith.addf %456, %458 : vector<8x32xf32>
      %460 = vector.extract_strided_slice %44 {offsets = [64, 0], sizes = [32, 32], strides = [1, 1]} : vector<96x32xf32> to vector<32x32xf32>
      %cst_175 = arith.constant dense<0.000000e+00> : vector<8x32xf32>
      %461 = tpu.matmul %454, %460, %cst_175 {dimension_numbers = #tpu.dot_dimension_numbers<[1], [0], [0], [1], [0, 0, 1, 1], [], []>} : vector<8x32xf32>, vector<32x32xf32>, vector<8x32xf32> -> vector<8x32xf32>
      %462 = arith.addf %459, %461 : vector<8x32xf32>
      %463 = vector.broadcast %45 : vector<1x32xf32> to vector<8x32xf32>
      %464 = arith.addf %462, %463 : vector<8x32xf32>
      %465 = math.tanh %464 : vector<8x32xf32>
      %cst_176 = arith.constant 1.000000e+00 : f32
      %466 = vector.broadcast %cst_176 : f32 to vector<8x32xf32>
      %467 = arith.subf %466, %453 : vector<8x32xf32>
      %468 = arith.mulf %467, %379 : vector<8x32xf32>
      %469 = arith.mulf %453, %465 : vector<8x32xf32>
      %470 = arith.addf %468, %469 : vector<8x32xf32>
      %471 = arith.index_cast %c4_i32 : i32 to index
      %c0_177 = arith.constant 0 : index
      %c0_178 = arith.constant 0 : index
      %472 = vector.load %arg21[%471, %c0_177, %c0_178] : memref<8x8x32xf32, #tpu.memory_space<vmem>>, vector<1x8x32xf32>
      %473 = vector.shape_cast %472 : vector<1x8x32xf32> to vector<8x32xf32>
      %474 = vector.shape_cast %470 : vector<8x32xf32> to vector<1x8x32xf32>
      tpu.vector_store %arg21[%471, %c0_177, %c0_178], %474 {strides = array<i32>} : memref<8x8x32xf32, #tpu.memory_space<vmem>>, vector<1x8x32xf32>,
      %cst_179 = arith.constant dense<0.000000e+00> : vector<8x32xf32>
      %475 = tpu.matmul %470, %46, %cst_179 {dimension_numbers = #tpu.dot_dimension_numbers<[1], [0], [0], [1], [0, 0, 1, 1], [], []>} : vector<8x32xf32>, vector<32x32xf32>, vector<8x32xf32> -> vector<8x32xf32>
      %476 = vector.broadcast %47 : vector<1x32xf32> to vector<8x32xf32>
      %477 = arith.addf %475, %476 : vector<8x32xf32>
      %478 = vector.shape_cast %477 : vector<8x32xf32> to vector<8x1x32xf32>
      "tpu.trace_start"() <{level = 10 : i32, message = "bud,bsd->bus"}> : () -> ()
      %cst_180 = arith.constant dense<0.000000e+00> : vector<8x1x8xf32>
      %479 = tpu.matmul %478, %35, %cst_180 {dimension_numbers = #tpu.dot_dimension_numbers<[2], [2], [1], [1], [0, 0, 0, 1, 1, 1], [0], [0]>} : vector<8x1x32xf32>, vector<8x8x32xf32>, vector<8x1x8xf32> -> vector<8x1x8xf32>
      "tpu.trace_stop"() : () -> ()
      %cst_181 = arith.constant dense<0.000000e+00> : vector<8x8xf32>
      %480 = vector.multi_reduction <add>, %479, %cst_181 [1] : vector<8x1x8xf32> to vector<8x8xf32>
      %481 = arith.addf %480, %41 : vector<8x8xf32>
      %cst_182 = arith.constant dense<0xFF800000> : vector<8xf32>
      %482 = vector.multi_reduction <maximumf>, %481, %cst_182 [1] : vector<8x8xf32> to vector<8xf32>
      %483 = vector.shape_cast %482 : vector<8xf32> to vector<8x1xf32>
      %484 = vector.broadcast %483 : vector<8x1xf32> to vector<8x8xf32>
      %485 = arith.subf %481, %484 : vector<8x8xf32>
      %486 = math.exp %485 : vector<8x8xf32>
      %cst_183 = arith.constant dense<0.000000e+00> : vector<8xf32>
      %487 = vector.multi_reduction <add>, %486, %cst_183 [1] : vector<8x8xf32> to vector<8xf32>
      %488 = vector.shape_cast %487 : vector<8xf32> to vector<8x1xf32>
      %489 = tpu.reciprocal %488 : vector<8x1xf32> -> vector<8x1xf32>
      %490 = vector.broadcast %489 : vector<8x1xf32> to vector<8x8xf32>
      %491 = arith.mulf %486, %490 : vector<8x8xf32>
      %492 = arith.index_cast %c4_i32 : i32 to index
      %c0_184 = arith.constant 0 : index
      %c0_185 = arith.constant 0 : index
      %493 = vector.load %arg5[%492, %c0_184, %c0_185] : memref<8x8x1xi32, #tpu.memory_space<vmem>>, vector<1x8x1xi32>
      %494 = vector.shape_cast %493 : vector<1x8x1xi32> to vector<8x1xi32>
      %495 = vector.broadcast %494 : vector<8x1xi32> to vector<8x8xi32>
      %496 = arith.cmpi eq, %37, %495 : vector<8x8xi32>
      %497 = arith.extui %496 : vector<8x8xi1> to vector<8x8xi32>
      %498 = arith.sitofp %497 : vector<8x8xi32> to vector<8x8xf32>
      %499 = arith.mulf %491, %498 : vector<8x8xf32>
      %cst_186 = arith.constant dense<0.000000e+00> : vector<8xf32>
      %500 = vector.multi_reduction <add>, %499, %cst_186 [1] : vector<8x8xf32> to vector<8xf32>
      %501 = vector.shape_cast %500 : vector<8xf32> to vector<8x1xf32>
      %502 = arith.index_cast %c4_i32 : i32 to index
      %c0_187 = arith.constant 0 : index
      %c0_188 = arith.constant 0 : index
      %503 = vector.load %arg22[%502, %c0_187, %c0_188] : memref<8x8x1xf32, #tpu.memory_space<vmem>>, vector<1x8x1xf32>
      %504 = vector.shape_cast %503 : vector<1x8x1xf32> to vector<8x1xf32>
      %505 = vector.shape_cast %501 : vector<8x1xf32> to vector<1x8x1xf32>
      tpu.vector_store %arg22[%502, %c0_187, %c0_188], %505 {strides = array<i32>} : memref<8x8x1xf32, #tpu.memory_space<vmem>>, vector<1x8x1xf32>,
      %c5_i32 = arith.constant 5 : i32
      %506 = arith.index_cast %c5_i32 : i32 to index
      %c0_189 = arith.constant 0 : index
      %c0_190 = arith.constant 0 : index
      %507 = vector.load %arg4[%506, %c0_189, %c0_190] : memref<8x8x32xf32, #tpu.memory_space<vmem>>, vector<1x8x32xf32>
      %508 = vector.shape_cast %507 : vector<1x8x32xf32> to vector<8x32xf32>
      %509 = vector.shape_cast %470 : vector<8x32xf32> to vector<8x1x32xf32>
      "tpu.trace_start"() <{level = 10 : i32, message = "bud,bsd->bus"}> : () -> ()
      %cst_191 = arith.constant dense<0.000000e+00> : vector<8x1x8xf32>
      %510 = tpu.matmul %509, %35, %cst_191 {dimension_numbers = #tpu.dot_dimension_numbers<[2], [2], [1], [1], [0, 0, 0, 1, 1, 1], [0], [0]>} : vector<8x1x32xf32>, vector<8x8x32xf32>, vector<8x1x8xf32> -> vector<8x1x8xf32>
      "tpu.trace_stop"() : () -> ()
      %cst_192 = arith.constant dense<0.000000e+00> : vector<8x8xf32>
      %511 = vector.multi_reduction <add>, %510, %cst_192 [1] : vector<8x1x8xf32> to vector<8x8xf32>
      %cst_193 = arith.constant 0.176776692 : f32
      %512 = vector.broadcast %cst_193 : f32 to vector<8x8xf32>
      %513 = arith.mulf %511, %512 : vector<8x8xf32>
      %514 = arith.addf %513, %41 : vector<8x8xf32>
      %cst_194 = arith.constant dense<0xFF800000> : vector<8xf32>
      %515 = vector.multi_reduction <maximumf>, %514, %cst_194 [1] : vector<8x8xf32> to vector<8xf32>
      %516 = vector.shape_cast %515 : vector<8xf32> to vector<8x1xf32>
      %517 = vector.broadcast %516 : vector<8x1xf32> to vector<8x8xf32>
      %518 = arith.subf %514, %517 : vector<8x8xf32>
      %519 = math.exp %518 : vector<8x8xf32>
      %cst_195 = arith.constant dense<0.000000e+00> : vector<8xf32>
      %520 = vector.multi_reduction <add>, %519, %cst_195 [1] : vector<8x8xf32> to vector<8xf32>
      %521 = vector.shape_cast %520 : vector<8xf32> to vector<8x1xf32>
      %522 = tpu.reciprocal %521 : vector<8x1xf32> -> vector<8x1xf32>
      %523 = vector.broadcast %522 : vector<8x1xf32> to vector<8x8xf32>
      %524 = arith.mulf %519, %523 : vector<8x8xf32>
      %525 = vector.shape_cast %524 : vector<8x8xf32> to vector<8x1x8xf32>
      "tpu.trace_start"() <{level = 10 : i32, message = "bus,bsd->bud"}> : () -> ()
      %cst_196 = arith.constant dense<0.000000e+00> : vector<8x1x32xf32>
      %526 = tpu.matmul %525, %35, %cst_196 {dimension_numbers = #tpu.dot_dimension_numbers<[2], [1], [1], [2], [0, 0, 0, 1, 1, 2], [0], [0]>} : vector<8x1x8xf32>, vector<8x8x32xf32>, vector<8x1x32xf32> -> vector<8x1x32xf32>
      "tpu.trace_stop"() : () -> ()
      %cst_197 = arith.constant dense<0.000000e+00> : vector<8x32xf32>
      %527 = vector.multi_reduction <add>, %526, %cst_197 [1] : vector<8x1x32xf32> to vector<8x32xf32>
      %528 = vector.extract_strided_slice %42 {offsets = [0, 0], sizes = [32, 64], strides = [1, 1]} : vector<96x64xf32> to vector<32x64xf32>
      %cst_198 = arith.constant dense<0.000000e+00> : vector<8x64xf32>
      %529 = tpu.matmul %527, %528, %cst_198 {dimension_numbers = #tpu.dot_dimension_numbers<[1], [0], [0], [1], [0, 0, 1, 1], [], []>} : vector<8x32xf32>, vector<32x64xf32>, vector<8x64xf32> -> vector<8x64xf32>
      %530 = vector.extract_strided_slice %42 {offsets = [32, 0], sizes = [32, 64], strides = [1, 1]} : vector<96x64xf32> to vector<32x64xf32>
      %cst_199 = arith.constant dense<0.000000e+00> : vector<8x64xf32>
      %531 = tpu.matmul %508, %530, %cst_199 {dimension_numbers = #tpu.dot_dimension_numbers<[1], [0], [0], [1], [0, 0, 1, 1], [], []>} : vector<8x32xf32>, vector<32x64xf32>, vector<8x64xf32> -> vector<8x64xf32>
      %532 = arith.addf %529, %531 : vector<8x64xf32>
      %533 = vector.extract_strided_slice %42 {offsets = [64, 0], sizes = [32, 64], strides = [1, 1]} : vector<96x64xf32> to vector<32x64xf32>
      %cst_200 = arith.constant dense<0.000000e+00> : vector<8x64xf32>
      %534 = tpu.matmul %470, %533, %cst_200 {dimension_numbers = #tpu.dot_dimension_numbers<[1], [0], [0], [1], [0, 0, 1, 1], [], []>} : vector<8x32xf32>, vector<32x64xf32>, vector<8x64xf32> -> vector<8x64xf32>
      %535 = arith.addf %532, %534 : vector<8x64xf32>
      %536 = vector.broadcast %43 : vector<1x64xf32> to vector<8x64xf32>
      %537 = arith.addf %535, %536 : vector<8x64xf32>
      %538 = arith.negf %537 : vector<8x64xf32>
      %539 = math.exp %538 : vector<8x64xf32>
      %cst_201 = arith.constant 1.000000e+00 : f32
      %540 = vector.broadcast %cst_201 : f32 to vector<8x64xf32>
      %541 = arith.addf %540, %539 : vector<8x64xf32>
      %542 = arith.divf %540, %541 : vector<8x64xf32>
      %543 = vector.extract_strided_slice %542 {offsets = [0, 0], sizes = [8, 32], strides = [1, 1]} : vector<8x64xf32> to vector<8x32xf32>
      %544 = vector.extract_strided_slice %542 {offsets = [0, 32], sizes = [8, 32], strides = [1, 1]} : vector<8x64xf32> to vector<8x32xf32>
      %545 = arith.mulf %543, %470 : vector<8x32xf32>
      %546 = vector.extract_strided_slice %44 {offsets = [0, 0], sizes = [32, 32], strides = [1, 1]} : vector<96x32xf32> to vector<32x32xf32>
      %cst_202 = arith.constant dense<0.000000e+00> : vector<8x32xf32>
      %547 = tpu.matmul %527, %546, %cst_202 {dimension_numbers = #tpu.dot_dimension_numbers<[1], [0], [0], [1], [0, 0, 1, 1], [], []>} : vector<8x32xf32>, vector<32x32xf32>, vector<8x32xf32> -> vector<8x32xf32>
      %548 = vector.extract_strided_slice %44 {offsets = [32, 0], sizes = [32, 32], strides = [1, 1]} : vector<96x32xf32> to vector<32x32xf32>
      %cst_203 = arith.constant dense<0.000000e+00> : vector<8x32xf32>
      %549 = tpu.matmul %508, %548, %cst_203 {dimension_numbers = #tpu.dot_dimension_numbers<[1], [0], [0], [1], [0, 0, 1, 1], [], []>} : vector<8x32xf32>, vector<32x32xf32>, vector<8x32xf32> -> vector<8x32xf32>
      %550 = arith.addf %547, %549 : vector<8x32xf32>
      %551 = vector.extract_strided_slice %44 {offsets = [64, 0], sizes = [32, 32], strides = [1, 1]} : vector<96x32xf32> to vector<32x32xf32>
      %cst_204 = arith.constant dense<0.000000e+00> : vector<8x32xf32>
      %552 = tpu.matmul %545, %551, %cst_204 {dimension_numbers = #tpu.dot_dimension_numbers<[1], [0], [0], [1], [0, 0, 1, 1], [], []>} : vector<8x32xf32>, vector<32x32xf32>, vector<8x32xf32> -> vector<8x32xf32>
      %553 = arith.addf %550, %552 : vector<8x32xf32>
      %554 = vector.broadcast %45 : vector<1x32xf32> to vector<8x32xf32>
      %555 = arith.addf %553, %554 : vector<8x32xf32>
      %556 = math.tanh %555 : vector<8x32xf32>
      %cst_205 = arith.constant 1.000000e+00 : f32
      %557 = vector.broadcast %cst_205 : f32 to vector<8x32xf32>
      %558 = arith.subf %557, %544 : vector<8x32xf32>
      %559 = arith.mulf %558, %470 : vector<8x32xf32>
      %560 = arith.mulf %544, %556 : vector<8x32xf32>
      %561 = arith.addf %559, %560 : vector<8x32xf32>
      %562 = arith.index_cast %c5_i32 : i32 to index
      %c0_206 = arith.constant 0 : index
      %c0_207 = arith.constant 0 : index
      %563 = vector.load %arg21[%562, %c0_206, %c0_207] : memref<8x8x32xf32, #tpu.memory_space<vmem>>, vector<1x8x32xf32>
      %564 = vector.shape_cast %563 : vector<1x8x32xf32> to vector<8x32xf32>
      %565 = vector.shape_cast %561 : vector<8x32xf32> to vector<1x8x32xf32>
      tpu.vector_store %arg21[%562, %c0_206, %c0_207], %565 {strides = array<i32>} : memref<8x8x32xf32, #tpu.memory_space<vmem>>, vector<1x8x32xf32>,
      %cst_208 = arith.constant dense<0.000000e+00> : vector<8x32xf32>
      %566 = tpu.matmul %561, %46, %cst_208 {dimension_numbers = #tpu.dot_dimension_numbers<[1], [0], [0], [1], [0, 0, 1, 1], [], []>} : vector<8x32xf32>, vector<32x32xf32>, vector<8x32xf32> -> vector<8x32xf32>
      %567 = vector.broadcast %47 : vector<1x32xf32> to vector<8x32xf32>
      %568 = arith.addf %566, %567 : vector<8x32xf32>
      %569 = vector.shape_cast %568 : vector<8x32xf32> to vector<8x1x32xf32>
      "tpu.trace_start"() <{level = 10 : i32, message = "bud,bsd->bus"}> : () -> ()
      %cst_209 = arith.constant dense<0.000000e+00> : vector<8x1x8xf32>
      %570 = tpu.matmul %569, %35, %cst_209 {dimension_numbers = #tpu.dot_dimension_numbers<[2], [2], [1], [1], [0, 0, 0, 1, 1, 1], [0], [0]>} : vector<8x1x32xf32>, vector<8x8x32xf32>, vector<8x1x8xf32> -> vector<8x1x8xf32>
      "tpu.trace_stop"() : () -> ()
      %cst_210 = arith.constant dense<0.000000e+00> : vector<8x8xf32>
      %571 = vector.multi_reduction <add>, %570, %cst_210 [1] : vector<8x1x8xf32> to vector<8x8xf32>
      %572 = arith.addf %571, %41 : vector<8x8xf32>
      %cst_211 = arith.constant dense<0xFF800000> : vector<8xf32>
      %573 = vector.multi_reduction <maximumf>, %572, %cst_211 [1] : vector<8x8xf32> to vector<8xf32>
      %574 = vector.shape_cast %573 : vector<8xf32> to vector<8x1xf32>
      %575 = vector.broadcast %574 : vector<8x1xf32> to vector<8x8xf32>
      %576 = arith.subf %572, %575 : vector<8x8xf32>
      %577 = math.exp %576 : vector<8x8xf32>
      %cst_212 = arith.constant dense<0.000000e+00> : vector<8xf32>
      %578 = vector.multi_reduction <add>, %577, %cst_212 [1] : vector<8x8xf32> to vector<8xf32>
      %579 = vector.shape_cast %578 : vector<8xf32> to vector<8x1xf32>
      %580 = tpu.reciprocal %579 : vector<8x1xf32> -> vector<8x1xf32>
      %581 = vector.broadcast %580 : vector<8x1xf32> to vector<8x8xf32>
      %582 = arith.mulf %577, %581 : vector<8x8xf32>
      %583 = arith.index_cast %c5_i32 : i32 to index
      %c0_213 = arith.constant 0 : index
      %c0_214 = arith.constant 0 : index
      %584 = vector.load %arg5[%583, %c0_213, %c0_214] : memref<8x8x1xi32, #tpu.memory_space<vmem>>, vector<1x8x1xi32>
      %585 = vector.shape_cast %584 : vector<1x8x1xi32> to vector<8x1xi32>
      %586 = vector.broadcast %585 : vector<8x1xi32> to vector<8x8xi32>
      %587 = arith.cmpi eq, %37, %586 : vector<8x8xi32>
      %588 = arith.extui %587 : vector<8x8xi1> to vector<8x8xi32>
      %589 = arith.sitofp %588 : vector<8x8xi32> to vector<8x8xf32>
      %590 = arith.mulf %582, %589 : vector<8x8xf32>
      %cst_215 = arith.constant dense<0.000000e+00> : vector<8xf32>
      %591 = vector.multi_reduction <add>, %590, %cst_215 [1] : vector<8x8xf32> to vector<8xf32>
      %592 = vector.shape_cast %591 : vector<8xf32> to vector<8x1xf32>
      %593 = arith.index_cast %c5_i32 : i32 to index
      %c0_216 = arith.constant 0 : index
      %c0_217 = arith.constant 0 : index
      %594 = vector.load %arg22[%593, %c0_216, %c0_217] : memref<8x8x1xf32, #tpu.memory_space<vmem>>, vector<1x8x1xf32>
      %595 = vector.shape_cast %594 : vector<1x8x1xf32> to vector<8x1xf32>
      %596 = vector.shape_cast %592 : vector<8x1xf32> to vector<1x8x1xf32>
      tpu.vector_store %arg22[%593, %c0_216, %c0_217], %596 {strides = array<i32>} : memref<8x8x1xf32, #tpu.memory_space<vmem>>, vector<1x8x1xf32>,
      %c6_i32 = arith.constant 6 : i32
      %597 = arith.index_cast %c6_i32 : i32 to index
      %c0_218 = arith.constant 0 : index
      %c0_219 = arith.constant 0 : index
      %598 = vector.load %arg4[%597, %c0_218, %c0_219] : memref<8x8x32xf32, #tpu.memory_space<vmem>>, vector<1x8x32xf32>
      %599 = vector.shape_cast %598 : vector<1x8x32xf32> to vector<8x32xf32>
      %600 = vector.shape_cast %561 : vector<8x32xf32> to vector<8x1x32xf32>
      "tpu.trace_start"() <{level = 10 : i32, message = "bud,bsd->bus"}> : () -> ()
      %cst_220 = arith.constant dense<0.000000e+00> : vector<8x1x8xf32>
      %601 = tpu.matmul %600, %35, %cst_220 {dimension_numbers = #tpu.dot_dimension_numbers<[2], [2], [1], [1], [0, 0, 0, 1, 1, 1], [0], [0]>} : vector<8x1x32xf32>, vector<8x8x32xf32>, vector<8x1x8xf32> -> vector<8x1x8xf32>
      "tpu.trace_stop"() : () -> ()
      %cst_221 = arith.constant dense<0.000000e+00> : vector<8x8xf32>
      %602 = vector.multi_reduction <add>, %601, %cst_221 [1] : vector<8x1x8xf32> to vector<8x8xf32>
      %cst_222 = arith.constant 0.176776692 : f32
      %603 = vector.broadcast %cst_222 : f32 to vector<8x8xf32>
      %604 = arith.mulf %602, %603 : vector<8x8xf32>
      %605 = arith.addf %604, %41 : vector<8x8xf32>
      %cst_223 = arith.constant dense<0xFF800000> : vector<8xf32>
      %606 = vector.multi_reduction <maximumf>, %605, %cst_223 [1] : vector<8x8xf32> to vector<8xf32>
      %607 = vector.shape_cast %606 : vector<8xf32> to vector<8x1xf32>
      %608 = vector.broadcast %607 : vector<8x1xf32> to vector<8x8xf32>
      %609 = arith.subf %605, %608 : vector<8x8xf32>
      %610 = math.exp %609 : vector<8x8xf32>
      %cst_224 = arith.constant dense<0.000000e+00> : vector<8xf32>
      %611 = vector.multi_reduction <add>, %610, %cst_224 [1] : vector<8x8xf32> to vector<8xf32>
      %612 = vector.shape_cast %611 : vector<8xf32> to vector<8x1xf32>
      %613 = tpu.reciprocal %612 : vector<8x1xf32> -> vector<8x1xf32>
      %614 = vector.broadcast %613 : vector<8x1xf32> to vector<8x8xf32>
      %615 = arith.mulf %610, %614 : vector<8x8xf32>
      %616 = vector.shape_cast %615 : vector<8x8xf32> to vector<8x1x8xf32>
      "tpu.trace_start"() <{level = 10 : i32, message = "bus,bsd->bud"}> : () -> ()
      %cst_225 = arith.constant dense<0.000000e+00> : vector<8x1x32xf32>
      %617 = tpu.matmul %616, %35, %cst_225 {dimension_numbers = #tpu.dot_dimension_numbers<[2], [1], [1], [2], [0, 0, 0, 1, 1, 2], [0], [0]>} : vector<8x1x8xf32>, vector<8x8x32xf32>, vector<8x1x32xf32> -> vector<8x1x32xf32>
      "tpu.trace_stop"() : () -> ()
      %cst_226 = arith.constant dense<0.000000e+00> : vector<8x32xf32>
      %618 = vector.multi_reduction <add>, %617, %cst_226 [1] : vector<8x1x32xf32> to vector<8x32xf32>
      %619 = vector.extract_strided_slice %42 {offsets = [0, 0], sizes = [32, 64], strides = [1, 1]} : vector<96x64xf32> to vector<32x64xf32>
      %cst_227 = arith.constant dense<0.000000e+00> : vector<8x64xf32>
      %620 = tpu.matmul %618, %619, %cst_227 {dimension_numbers = #tpu.dot_dimension_numbers<[1], [0], [0], [1], [0, 0, 1, 1], [], []>} : vector<8x32xf32>, vector<32x64xf32>, vector<8x64xf32> -> vector<8x64xf32>
      %621 = vector.extract_strided_slice %42 {offsets = [32, 0], sizes = [32, 64], strides = [1, 1]} : vector<96x64xf32> to vector<32x64xf32>
      %cst_228 = arith.constant dense<0.000000e+00> : vector<8x64xf32>
      %622 = tpu.matmul %599, %621, %cst_228 {dimension_numbers = #tpu.dot_dimension_numbers<[1], [0], [0], [1], [0, 0, 1, 1], [], []>} : vector<8x32xf32>, vector<32x64xf32>, vector<8x64xf32> -> vector<8x64xf32>
      %623 = arith.addf %620, %622 : vector<8x64xf32>
      %624 = vector.extract_strided_slice %42 {offsets = [64, 0], sizes = [32, 64], strides = [1, 1]} : vector<96x64xf32> to vector<32x64xf32>
      %cst_229 = arith.constant dense<0.000000e+00> : vector<8x64xf32>
      %625 = tpu.matmul %561, %624, %cst_229 {dimension_numbers = #tpu.dot_dimension_numbers<[1], [0], [0], [1], [0, 0, 1, 1], [], []>} : vector<8x32xf32>, vector<32x64xf32>, vector<8x64xf32> -> vector<8x64xf32>
      %626 = arith.addf %623, %625 : vector<8x64xf32>
      %627 = vector.broadcast %43 : vector<1x64xf32> to vector<8x64xf32>
      %628 = arith.addf %626, %627 : vector<8x64xf32>
      %629 = arith.negf %628 : vector<8x64xf32>
      %630 = math.exp %629 : vector<8x64xf32>
      %cst_230 = arith.constant 1.000000e+00 : f32
      %631 = vector.broadcast %cst_230 : f32 to vector<8x64xf32>
      %632 = arith.addf %631, %630 : vector<8x64xf32>
      %633 = arith.divf %631, %632 : vector<8x64xf32>
      %634 = vector.extract_strided_slice %633 {offsets = [0, 0], sizes = [8, 32], strides = [1, 1]} : vector<8x64xf32> to vector<8x32xf32>
      %635 = vector.extract_strided_slice %633 {offsets = [0, 32], sizes = [8, 32], strides = [1, 1]} : vector<8x64xf32> to vector<8x32xf32>
      %636 = arith.mulf %634, %561 : vector<8x32xf32>
      %637 = vector.extract_strided_slice %44 {offsets = [0, 0], sizes = [32, 32], strides = [1, 1]} : vector<96x32xf32> to vector<32x32xf32>
      %cst_231 = arith.constant dense<0.000000e+00> : vector<8x32xf32>
      %638 = tpu.matmul %618, %637, %cst_231 {dimension_numbers = #tpu.dot_dimension_numbers<[1], [0], [0], [1], [0, 0, 1, 1], [], []>} : vector<8x32xf32>, vector<32x32xf32>, vector<8x32xf32> -> vector<8x32xf32>
      %639 = vector.extract_strided_slice %44 {offsets = [32, 0], sizes = [32, 32], strides = [1, 1]} : vector<96x32xf32> to vector<32x32xf32>
      %cst_232 = arith.constant dense<0.000000e+00> : vector<8x32xf32>
      %640 = tpu.matmul %599, %639, %cst_232 {dimension_numbers = #tpu.dot_dimension_numbers<[1], [0], [0], [1], [0, 0, 1, 1], [], []>} : vector<8x32xf32>, vector<32x32xf32>, vector<8x32xf32> -> vector<8x32xf32>
      %641 = arith.addf %638, %640 : vector<8x32xf32>
      %642 = vector.extract_strided_slice %44 {offsets = [64, 0], sizes = [32, 32], strides = [1, 1]} : vector<96x32xf32> to vector<32x32xf32>
      %cst_233 = arith.constant dense<0.000000e+00> : vector<8x32xf32>
      %643 = tpu.matmul %636, %642, %cst_233 {dimension_numbers = #tpu.dot_dimension_numbers<[1], [0], [0], [1], [0, 0, 1, 1], [], []>} : vector<8x32xf32>, vector<32x32xf32>, vector<8x32xf32> -> vector<8x32xf32>
      %644 = arith.addf %641, %643 : vector<8x32xf32>
      %645 = vector.broadcast %45 : vector<1x32xf32> to vector<8x32xf32>
      %646 = arith.addf %644, %645 : vector<8x32xf32>
      %647 = math.tanh %646 : vector<8x32xf32>
      %cst_234 = arith.constant 1.000000e+00 : f32
      %648 = vector.broadcast %cst_234 : f32 to vector<8x32xf32>
      %649 = arith.subf %648, %635 : vector<8x32xf32>
      %650 = arith.mulf %649, %561 : vector<8x32xf32>
      %651 = arith.mulf %635, %647 : vector<8x32xf32>
      %652 = arith.addf %650, %651 : vector<8x32xf32>
      %653 = arith.index_cast %c6_i32 : i32 to index
      %c0_235 = arith.constant 0 : index
      %c0_236 = arith.constant 0 : index
      %654 = vector.load %arg21[%653, %c0_235, %c0_236] : memref<8x8x32xf32, #tpu.memory_space<vmem>>, vector<1x8x32xf32>
      %655 = vector.shape_cast %654 : vector<1x8x32xf32> to vector<8x32xf32>
      %656 = vector.shape_cast %652 : vector<8x32xf32> to vector<1x8x32xf32>
      tpu.vector_store %arg21[%653, %c0_235, %c0_236], %656 {strides = array<i32>} : memref<8x8x32xf32, #tpu.memory_space<vmem>>, vector<1x8x32xf32>,
      %cst_237 = arith.constant dense<0.000000e+00> : vector<8x32xf32>
      %657 = tpu.matmul %652, %46, %cst_237 {dimension_numbers = #tpu.dot_dimension_numbers<[1], [0], [0], [1], [0, 0, 1, 1], [], []>} : vector<8x32xf32>, vector<32x32xf32>, vector<8x32xf32> -> vector<8x32xf32>
      %658 = vector.broadcast %47 : vector<1x32xf32> to vector<8x32xf32>
      %659 = arith.addf %657, %658 : vector<8x32xf32>
      %660 = vector.shape_cast %659 : vector<8x32xf32> to vector<8x1x32xf32>
      "tpu.trace_start"() <{level = 10 : i32, message = "bud,bsd->bus"}> : () -> ()
      %cst_238 = arith.constant dense<0.000000e+00> : vector<8x1x8xf32>
      %661 = tpu.matmul %660, %35, %cst_238 {dimension_numbers = #tpu.dot_dimension_numbers<[2], [2], [1], [1], [0, 0, 0, 1, 1, 1], [0], [0]>} : vector<8x1x32xf32>, vector<8x8x32xf32>, vector<8x1x8xf32> -> vector<8x1x8xf32>
      "tpu.trace_stop"() : () -> ()
      %cst_239 = arith.constant dense<0.000000e+00> : vector<8x8xf32>
      %662 = vector.multi_reduction <add>, %661, %cst_239 [1] : vector<8x1x8xf32> to vector<8x8xf32>
      %663 = arith.addf %662, %41 : vector<8x8xf32>
      %cst_240 = arith.constant dense<0xFF800000> : vector<8xf32>
      %664 = vector.multi_reduction <maximumf>, %663, %cst_240 [1] : vector<8x8xf32> to vector<8xf32>
      %665 = vector.shape_cast %664 : vector<8xf32> to vector<8x1xf32>
      %666 = vector.broadcast %665 : vector<8x1xf32> to vector<8x8xf32>
      %667 = arith.subf %663, %666 : vector<8x8xf32>
      %668 = math.exp %667 : vector<8x8xf32>
      %cst_241 = arith.constant dense<0.000000e+00> : vector<8xf32>
      %669 = vector.multi_reduction <add>, %668, %cst_241 [1] : vector<8x8xf32> to vector<8xf32>
      %670 = vector.shape_cast %669 : vector<8xf32> to vector<8x1xf32>
      %671 = tpu.reciprocal %670 : vector<8x1xf32> -> vector<8x1xf32>
      %672 = vector.broadcast %671 : vector<8x1xf32> to vector<8x8xf32>
      %673 = arith.mulf %668, %672 : vector<8x8xf32>
      %674 = arith.index_cast %c6_i32 : i32 to index
      %c0_242 = arith.constant 0 : index
      %c0_243 = arith.constant 0 : index
      %675 = vector.load %arg5[%674, %c0_242, %c0_243] : memref<8x8x1xi32, #tpu.memory_space<vmem>>, vector<1x8x1xi32>
      %676 = vector.shape_cast %675 : vector<1x8x1xi32> to vector<8x1xi32>
      %677 = vector.broadcast %676 : vector<8x1xi32> to vector<8x8xi32>
      %678 = arith.cmpi eq, %37, %677 : vector<8x8xi32>
      %679 = arith.extui %678 : vector<8x8xi1> to vector<8x8xi32>
      %680 = arith.sitofp %679 : vector<8x8xi32> to vector<8x8xf32>
      %681 = arith.mulf %673, %680 : vector<8x8xf32>
      %cst_244 = arith.constant dense<0.000000e+00> : vector<8xf32>
      %682 = vector.multi_reduction <add>, %681, %cst_244 [1] : vector<8x8xf32> to vector<8xf32>
      %683 = vector.shape_cast %682 : vector<8xf32> to vector<8x1xf32>
      %684 = arith.index_cast %c6_i32 : i32 to index
      %c0_245 = arith.constant 0 : index
      %c0_246 = arith.constant 0 : index
      %685 = vector.load %arg22[%684, %c0_245, %c0_246] : memref<8x8x1xf32, #tpu.memory_space<vmem>>, vector<1x8x1xf32>
      %686 = vector.shape_cast %685 : vector<1x8x1xf32> to vector<8x1xf32>
      %687 = vector.shape_cast %683 : vector<8x1xf32> to vector<1x8x1xf32>
      tpu.vector_store %arg22[%684, %c0_245, %c0_246], %687 {strides = array<i32>} : memref<8x8x1xf32, #tpu.memory_space<vmem>>, vector<1x8x1xf32>,
      %c7_i32 = arith.constant 7 : i32
      %688 = arith.index_cast %c7_i32 : i32 to index
      %c0_247 = arith.constant 0 : index
      %c0_248 = arith.constant 0 : index
      %689 = vector.load %arg4[%688, %c0_247, %c0_248] : memref<8x8x32xf32, #tpu.memory_space<vmem>>, vector<1x8x32xf32>
      %690 = vector.shape_cast %689 : vector<1x8x32xf32> to vector<8x32xf32>
      %691 = vector.shape_cast %652 : vector<8x32xf32> to vector<8x1x32xf32>
      "tpu.trace_start"() <{level = 10 : i32, message = "bud,bsd->bus"}> : () -> ()
      %cst_249 = arith.constant dense<0.000000e+00> : vector<8x1x8xf32>
      %692 = tpu.matmul %691, %35, %cst_249 {dimension_numbers = #tpu.dot_dimension_numbers<[2], [2], [1], [1], [0, 0, 0, 1, 1, 1], [0], [0]>} : vector<8x1x32xf32>, vector<8x8x32xf32>, vector<8x1x8xf32> -> vector<8x1x8xf32>
      "tpu.trace_stop"() : () -> ()
      %cst_250 = arith.constant dense<0.000000e+00> : vector<8x8xf32>
      %693 = vector.multi_reduction <add>, %692, %cst_250 [1] : vector<8x1x8xf32> to vector<8x8xf32>
      %cst_251 = arith.constant 0.176776692 : f32
      %694 = vector.broadcast %cst_251 : f32 to vector<8x8xf32>
      %695 = arith.mulf %693, %694 : vector<8x8xf32>
      %696 = arith.addf %695, %41 : vector<8x8xf32>
      %cst_252 = arith.constant dense<0xFF800000> : vector<8xf32>
      %697 = vector.multi_reduction <maximumf>, %696, %cst_252 [1] : vector<8x8xf32> to vector<8xf32>
      %698 = vector.shape_cast %697 : vector<8xf32> to vector<8x1xf32>
      %699 = vector.broadcast %698 : vector<8x1xf32> to vector<8x8xf32>
      %700 = arith.subf %696, %699 : vector<8x8xf32>
      %701 = math.exp %700 : vector<8x8xf32>
      %cst_253 = arith.constant dense<0.000000e+00> : vector<8xf32>
      %702 = vector.multi_reduction <add>, %701, %cst_253 [1] : vector<8x8xf32> to vector<8xf32>
      %703 = vector.shape_cast %702 : vector<8xf32> to vector<8x1xf32>
      %704 = tpu.reciprocal %703 : vector<8x1xf32> -> vector<8x1xf32>
      %705 = vector.broadcast %704 : vector<8x1xf32> to vector<8x8xf32>
      %706 = arith.mulf %701, %705 : vector<8x8xf32>
      %707 = vector.shape_cast %706 : vector<8x8xf32> to vector<8x1x8xf32>
      "tpu.trace_start"() <{level = 10 : i32, message = "bus,bsd->bud"}> : () -> ()
      %cst_254 = arith.constant dense<0.000000e+00> : vector<8x1x32xf32>
      %708 = tpu.matmul %707, %35, %cst_254 {dimension_numbers = #tpu.dot_dimension_numbers<[2], [1], [1], [2], [0, 0, 0, 1, 1, 2], [0], [0]>} : vector<8x1x8xf32>, vector<8x8x32xf32>, vector<8x1x32xf32> -> vector<8x1x32xf32>
      "tpu.trace_stop"() : () -> ()
      %cst_255 = arith.constant dense<0.000000e+00> : vector<8x32xf32>
      %709 = vector.multi_reduction <add>, %708, %cst_255 [1] : vector<8x1x32xf32> to vector<8x32xf32>
      %710 = vector.extract_strided_slice %42 {offsets = [0, 0], sizes = [32, 64], strides = [1, 1]} : vector<96x64xf32> to vector<32x64xf32>
      %cst_256 = arith.constant dense<0.000000e+00> : vector<8x64xf32>
      %711 = tpu.matmul %709, %710, %cst_256 {dimension_numbers = #tpu.dot_dimension_numbers<[1], [0], [0], [1], [0, 0, 1, 1], [], []>} : vector<8x32xf32>, vector<32x64xf32>, vector<8x64xf32> -> vector<8x64xf32>
      %712 = vector.extract_strided_slice %42 {offsets = [32, 0], sizes = [32, 64], strides = [1, 1]} : vector<96x64xf32> to vector<32x64xf32>
      %cst_257 = arith.constant dense<0.000000e+00> : vector<8x64xf32>
      %713 = tpu.matmul %690, %712, %cst_257 {dimension_numbers = #tpu.dot_dimension_numbers<[1], [0], [0], [1], [0, 0, 1, 1], [], []>} : vector<8x32xf32>, vector<32x64xf32>, vector<8x64xf32> -> vector<8x64xf32>
      %714 = arith.addf %711, %713 : vector<8x64xf32>
      %715 = vector.extract_strided_slice %42 {offsets = [64, 0], sizes = [32, 64], strides = [1, 1]} : vector<96x64xf32> to vector<32x64xf32>
      %cst_258 = arith.constant dense<0.000000e+00> : vector<8x64xf32>
      %716 = tpu.matmul %652, %715, %cst_258 {dimension_numbers = #tpu.dot_dimension_numbers<[1], [0], [0], [1], [0, 0, 1, 1], [], []>} : vector<8x32xf32>, vector<32x64xf32>, vector<8x64xf32> -> vector<8x64xf32>
      %717 = arith.addf %714, %716 : vector<8x64xf32>
      %718 = vector.broadcast %43 : vector<1x64xf32> to vector<8x64xf32>
      %719 = arith.addf %717, %718 : vector<8x64xf32>
      %720 = arith.negf %719 : vector<8x64xf32>
      %721 = math.exp %720 : vector<8x64xf32>
      %cst_259 = arith.constant 1.000000e+00 : f32
      %722 = vector.broadcast %cst_259 : f32 to vector<8x64xf32>
      %723 = arith.addf %722, %721 : vector<8x64xf32>
      %724 = arith.divf %722, %723 : vector<8x64xf32>
      %725 = vector.extract_strided_slice %724 {offsets = [0, 0], sizes = [8, 32], strides = [1, 1]} : vector<8x64xf32> to vector<8x32xf32>
      %726 = vector.extract_strided_slice %724 {offsets = [0, 32], sizes = [8, 32], strides = [1, 1]} : vector<8x64xf32> to vector<8x32xf32>
      %727 = arith.mulf %725, %652 : vector<8x32xf32>
      %728 = vector.extract_strided_slice %44 {offsets = [0, 0], sizes = [32, 32], strides = [1, 1]} : vector<96x32xf32> to vector<32x32xf32>
      %cst_260 = arith.constant dense<0.000000e+00> : vector<8x32xf32>
      %729 = tpu.matmul %709, %728, %cst_260 {dimension_numbers = #tpu.dot_dimension_numbers<[1], [0], [0], [1], [0, 0, 1, 1], [], []>} : vector<8x32xf32>, vector<32x32xf32>, vector<8x32xf32> -> vector<8x32xf32>
      %730 = vector.extract_strided_slice %44 {offsets = [32, 0], sizes = [32, 32], strides = [1, 1]} : vector<96x32xf32> to vector<32x32xf32>
      %cst_261 = arith.constant dense<0.000000e+00> : vector<8x32xf32>
      %731 = tpu.matmul %690, %730, %cst_261 {dimension_numbers = #tpu.dot_dimension_numbers<[1], [0], [0], [1], [0, 0, 1, 1], [], []>} : vector<8x32xf32>, vector<32x32xf32>, vector<8x32xf32> -> vector<8x32xf32>
      %732 = arith.addf %729, %731 : vector<8x32xf32>
      %733 = vector.extract_strided_slice %44 {offsets = [64, 0], sizes = [32, 32], strides = [1, 1]} : vector<96x32xf32> to vector<32x32xf32>
      %cst_262 = arith.constant dense<0.000000e+00> : vector<8x32xf32>
      %734 = tpu.matmul %727, %733, %cst_262 {dimension_numbers = #tpu.dot_dimension_numbers<[1], [0], [0], [1], [0, 0, 1, 1], [], []>} : vector<8x32xf32>, vector<32x32xf32>, vector<8x32xf32> -> vector<8x32xf32>
      %735 = arith.addf %732, %734 : vector<8x32xf32>
      %736 = vector.broadcast %45 : vector<1x32xf32> to vector<8x32xf32>
      %737 = arith.addf %735, %736 : vector<8x32xf32>
      %738 = math.tanh %737 : vector<8x32xf32>
      %cst_263 = arith.constant 1.000000e+00 : f32
      %739 = vector.broadcast %cst_263 : f32 to vector<8x32xf32>
      %740 = arith.subf %739, %726 : vector<8x32xf32>
      %741 = arith.mulf %740, %652 : vector<8x32xf32>
      %742 = arith.mulf %726, %738 : vector<8x32xf32>
      %743 = arith.addf %741, %742 : vector<8x32xf32>
      %744 = arith.index_cast %c7_i32 : i32 to index
      %c0_264 = arith.constant 0 : index
      %c0_265 = arith.constant 0 : index
      %745 = vector.load %arg21[%744, %c0_264, %c0_265] : memref<8x8x32xf32, #tpu.memory_space<vmem>>, vector<1x8x32xf32>
      %746 = vector.shape_cast %745 : vector<1x8x32xf32> to vector<8x32xf32>
      %747 = vector.shape_cast %743 : vector<8x32xf32> to vector<1x8x32xf32>
      tpu.vector_store %arg21[%744, %c0_264, %c0_265], %747 {strides = array<i32>} : memref<8x8x32xf32, #tpu.memory_space<vmem>>, vector<1x8x32xf32>,
      %cst_266 = arith.constant dense<0.000000e+00> : vector<8x32xf32>
      %748 = tpu.matmul %743, %46, %cst_266 {dimension_numbers = #tpu.dot_dimension_numbers<[1], [0], [0], [1], [0, 0, 1, 1], [], []>} : vector<8x32xf32>, vector<32x32xf32>, vector<8x32xf32> -> vector<8x32xf32>
      %749 = vector.broadcast %47 : vector<1x32xf32> to vector<8x32xf32>
      %750 = arith.addf %748, %749 : vector<8x32xf32>
      %751 = vector.shape_cast %750 : vector<8x32xf32> to vector<8x1x32xf32>
      "tpu.trace_start"() <{level = 10 : i32, message = "bud,bsd->bus"}> : () -> ()
      %cst_267 = arith.constant dense<0.000000e+00> : vector<8x1x8xf32>
      %752 = tpu.matmul %751, %35, %cst_267 {dimension_numbers = #tpu.dot_dimension_numbers<[2], [2], [1], [1], [0, 0, 0, 1, 1, 1], [0], [0]>} : vector<8x1x32xf32>, vector<8x8x32xf32>, vector<8x1x8xf32> -> vector<8x1x8xf32>
      "tpu.trace_stop"() : () -> ()
      %cst_268 = arith.constant dense<0.000000e+00> : vector<8x8xf32>
      %753 = vector.multi_reduction <add>, %752, %cst_268 [1] : vector<8x1x8xf32> to vector<8x8xf32>
      %754 = arith.addf %753, %41 : vector<8x8xf32>
      %cst_269 = arith.constant dense<0xFF800000> : vector<8xf32>
      %755 = vector.multi_reduction <maximumf>, %754, %cst_269 [1] : vector<8x8xf32> to vector<8xf32>
      %756 = vector.shape_cast %755 : vector<8xf32> to vector<8x1xf32>
      %757 = vector.broadcast %756 : vector<8x1xf32> to vector<8x8xf32>
      %758 = arith.subf %754, %757 : vector<8x8xf32>
      %759 = math.exp %758 : vector<8x8xf32>
      %cst_270 = arith.constant dense<0.000000e+00> : vector<8xf32>
      %760 = vector.multi_reduction <add>, %759, %cst_270 [1] : vector<8x8xf32> to vector<8xf32>
      %761 = vector.shape_cast %760 : vector<8xf32> to vector<8x1xf32>
      %762 = tpu.reciprocal %761 : vector<8x1xf32> -> vector<8x1xf32>
      %763 = vector.broadcast %762 : vector<8x1xf32> to vector<8x8xf32>
      %764 = arith.mulf %759, %763 : vector<8x8xf32>
      %765 = arith.index_cast %c7_i32 : i32 to index
      %c0_271 = arith.constant 0 : index
      %c0_272 = arith.constant 0 : index
      %766 = vector.load %arg5[%765, %c0_271, %c0_272] : memref<8x8x1xi32, #tpu.memory_space<vmem>>, vector<1x8x1xi32>
      %767 = vector.shape_cast %766 : vector<1x8x1xi32> to vector<8x1xi32>
      %768 = vector.broadcast %767 : vector<8x1xi32> to vector<8x8xi32>
      %769 = arith.cmpi eq, %37, %768 : vector<8x8xi32>
      %770 = arith.extui %769 : vector<8x8xi1> to vector<8x8xi32>
      %771 = arith.sitofp %770 : vector<8x8xi32> to vector<8x8xf32>
      %772 = arith.mulf %764, %771 : vector<8x8xf32>
      %cst_273 = arith.constant dense<0.000000e+00> : vector<8xf32>
      %773 = vector.multi_reduction <add>, %772, %cst_273 [1] : vector<8x8xf32> to vector<8xf32>
      %774 = vector.shape_cast %773 : vector<8xf32> to vector<8x1xf32>
      %775 = arith.index_cast %c7_i32 : i32 to index
      %c0_274 = arith.constant 0 : index
      %c0_275 = arith.constant 0 : index
      %776 = vector.load %arg22[%775, %c0_274, %c0_275] : memref<8x8x1xf32, #tpu.memory_space<vmem>>, vector<1x8x1xf32>
      %777 = vector.shape_cast %776 : vector<1x8x1xf32> to vector<8x1xf32>
      %778 = vector.shape_cast %774 : vector<8x1xf32> to vector<1x8x1xf32>
      tpu.vector_store %arg22[%775, %c0_274, %c0_275], %778 {strides = array<i32>} : memref<8x8x1xf32, #tpu.memory_space<vmem>>, vector<1x8x1xf32>,
      %c8_i32 = arith.constant 8 : i32
      %c0_276 = arith.constant 0 : index
      %c0_277 = arith.constant 0 : index
      %c0_278 = arith.constant 0 : index
      %779 = vector.load %arg21[%c0_276, %c0_277, %c0_278] : memref<8x8x32xf32, #tpu.memory_space<vmem>>, vector<8x8x32xf32>
      %780 = vector.shape_cast %779 : vector<8x8x32xf32> to vector<64x32xf32>
      %c0_279 = arith.constant 0 : index
      %c0_280 = arith.constant 0 : index
      %781 = vector.load %arg12[%c0_279, %c0_280] : memref<32x32xf32, #tpu.memory_space<vmem>>, vector<32x32xf32>
      %cst_281 = arith.constant dense<0.000000e+00> : vector<64x32xf32>
      %782 = tpu.matmul %780, %781, %cst_281 {dimension_numbers = #tpu.dot_dimension_numbers<[1], [0], [0], [1], [0, 0, 1, 1], [], []>} : vector<64x32xf32>, vector<32x32xf32>, vector<64x32xf32> -> vector<64x32xf32>
      %c0_282 = arith.constant 0 : index
      %c0_283 = arith.constant 0 : index
      %783 = vector.load %arg13[%c0_282, %c0_283] : memref<1x32xf32, #tpu.memory_space<vmem>>, vector<1x32xf32>
      %784 = vector.broadcast %783 : vector<1x32xf32> to vector<64x32xf32>
      %785 = arith.addf %782, %784 : vector<64x32xf32>
      %c0_284 = arith.constant 0 : index
      %c0_285 = arith.constant 0 : index
      %786 = vector.load %arg23[%c0_284, %c0_285] : memref<64x32xf32, #tpu.memory_space<vmem>>, vector<64x32xf32>
      tpu.vector_store %arg23[%c0_284, %c0_285], %785 {strides = array<i32>} : memref<64x32xf32, #tpu.memory_space<vmem>>, vector<64x32xf32>,
      %c0_286 = arith.constant 0 : index
      %c0_287 = arith.constant 0 : index
      %787 = vector.load %arg6[%c0_286, %c0_287] : memref<64x32xf32, #tpu.memory_space<vmem>>, vector<64x32xf32>
      %788 = arith.mulf %785, %787 : vector<64x32xf32>
      %cst_288 = arith.constant dense<0.000000e+00> : vector<64xf32>
      %789 = vector.multi_reduction <add>, %788, %cst_288 [1] : vector<64x32xf32> to vector<64xf32>
      %790 = vector.shape_cast %789 : vector<64xf32> to vector<64x1xf32>
      %c0_289 = arith.constant 0 : index
      %c0_290 = arith.constant 0 : index
      %791 = vector.load %arg24[%c0_289, %c0_290] : memref<64x1xf32, #tpu.memory_space<vmem>>, vector<64x1xf32>
      tpu.vector_store %arg24[%c0_289, %c0_290], %790 {strides = array<i32>} : memref<64x1xf32, #tpu.memory_space<vmem>>, vector<64x1xf32>,
      %c0_291 = arith.constant 0 : index
      %c0_292 = arith.constant 0 : index
      %792 = vector.load %arg16[%c0_291, %c0_292] : memref<1x32xf32, #tpu.memory_space<vmem>>, vector<1x32xf32>
      %793 = vector.broadcast %792 : vector<1x32xf32> to vector<64x32xf32>
      %794 = arith.mulf %780, %793 : vector<64x32xf32>
      %cst_293 = arith.constant dense<0.000000e+00> : vector<64xf32>
      %795 = vector.multi_reduction <add>, %794, %cst_293 [1] : vector<64x32xf32> to vector<64xf32>
      %796 = vector.shape_cast %795 : vector<64xf32> to vector<64x1xf32>
      %c0_294 = arith.constant 0 : index
      %c0_295 = arith.constant 0 : index
      %797 = vector.load %arg17[%c0_294, %c0_295] : memref<1x1xf32, #tpu.memory_space<vmem>>, vector<1x1xf32>
      %798 = vector.broadcast %797 : vector<1x1xf32> to vector<64x1xf32>
      %799 = arith.addf %796, %798 : vector<64x1xf32>
      %800 = arith.negf %799 : vector<64x1xf32>
      %801 = math.exp %800 : vector<64x1xf32>
      %cst_296 = arith.constant 1.000000e+00 : f32
      %802 = vector.broadcast %cst_296 : f32 to vector<64x1xf32>
      %803 = arith.addf %802, %801 : vector<64x1xf32>
      %804 = arith.divf %802, %803 : vector<64x1xf32>
      %c0_297 = arith.constant 0 : index
      %c0_298 = arith.constant 0 : index
      %805 = vector.load %arg25[%c0_297, %c0_298] : memref<64x1xf32, #tpu.memory_space<vmem>>, vector<64x1xf32>
      tpu.vector_store %arg25[%c0_297, %c0_298], %804 {strides = array<i32>} : memref<64x1xf32, #tpu.memory_space<vmem>>, vector<64x1xf32>,
      %cst_299 = arith.constant 1.000000e+00 : f32
      %806 = vector.broadcast %cst_299 : f32 to vector<64x1xf32>
      %807 = arith.subf %806, %804 : vector<64x1xf32>
      %c0_300 = arith.constant 0 : index
      %c0_301 = arith.constant 0 : index
      %c0_302 = arith.constant 0 : index
      %808 = vector.load %arg22[%c0_300, %c0_301, %c0_302] : memref<8x8x1xf32, #tpu.memory_space<vmem>>, vector<8x8x1xf32>
      %809 = vector.shape_cast %808 : vector<8x8x1xf32> to vector<64x1xf32>
      %810 = arith.mulf %807, %809 : vector<64x1xf32>
      %c0_303 = arith.constant 0 : index
      %c0_304 = arith.constant 0 : index
      %811 = vector.load %arg26[%c0_303, %c0_304] : memref<64x1xf32, #tpu.memory_space<vmem>>, vector<64x1xf32>
      tpu.vector_store %arg26[%c0_303, %c0_304], %810 {strides = array<i32>} : memref<64x1xf32, #tpu.memory_space<vmem>>, vector<64x1xf32>,
      %cst_305 = arith.constant -1.000000e+30 : f32
      %812 = vector.broadcast %cst_305 : f32 to vector<64x1xf32>
      %c0_306 = arith.constant 0 : index
      %c0_307 = arith.constant 0 : index
      %813 = vector.load %arg27[%c0_306, %c0_307] : memref<64x1xf32, #tpu.memory_space<vmem>>, vector<64x1xf32>
      tpu.vector_store %arg27[%c0_306, %c0_307], %812 {strides = array<i32>} : memref<64x1xf32, #tpu.memory_space<vmem>>, vector<64x1xf32>,
      %cst_308 = arith.constant 0.000000e+00 : f32
      %814 = vector.broadcast %cst_308 : f32 to vector<64x1xf32>
      %c0_309 = arith.constant 0 : index
      %c0_310 = arith.constant 0 : index
      %815 = vector.load %arg28[%c0_309, %c0_310] : memref<64x1xf32, #tpu.memory_space<vmem>>, vector<64x1xf32>
      tpu.vector_store %arg28[%c0_309, %c0_310], %814 {strides = array<i32>} : memref<64x1xf32, #tpu.memory_space<vmem>>, vector<64x1xf32>,
    } else {
    }
    %c0 = arith.constant 0 : index
    %c0_1 = arith.constant 0 : index
    %3 = vector.load %arg19[%c0, %c0_1] : memref<32x32xf32, #tpu.memory_space<vmem>>, vector<32x32xf32>
    %c0_2 = arith.constant 0 : index
    %c0_3 = arith.constant 0 : index
    %4 = vector.load %arg23[%c0_2, %c0_3] : memref<64x32xf32, #tpu.memory_space<vmem>>, vector<64x32xf32>
    %cst = arith.constant dense<0.000000e+00> : vector<64x32xf32>
    %5 = tpu.matmul %4, %3, %cst {dimension_numbers = #tpu.dot_dimension_numbers<[1], [1], [0], [0], [0, 0, 1, 0], [], []>} : vector<64x32xf32>, vector<32x32xf32>, vector<64x32xf32> -> vector<64x32xf32>
    %6 = tpu.iota {dimensions = array<i32: 1>} : vector<64x32xi32>
    %c32_i32 = arith.constant 32 : i32
    %7 = arith.muli %arg0, %c32_i32 : i32
    %8 = vector.broadcast %7 : i32 to vector<64x32xi32>
    %9 = arith.addi %6, %8 : vector<64x32xi32>
    %c80_i32 = arith.constant 80 : i32
    %10 = vector.broadcast %c80_i32 : i32 to vector<64x32xi32>
    %11 = arith.cmpi slt, %9, %10 : vector<64x32xi32>
    %cst_4 = arith.constant -1.000000e+30 : f32
    %12 = vector.broadcast %cst_4 : f32 to vector<64x32xf32>
    %13 = arith.select %11, %5, %12 : vector<64x32xi1>, vector<64x32xf32>
    %c0_5 = arith.constant 0 : index
    %c0_6 = arith.constant 0 : index
    %14 = vector.load %arg27[%c0_5, %c0_6] : memref<64x1xf32, #tpu.memory_space<vmem>>, vector<64x1xf32>
    %c0_7 = arith.constant 0 : index
    %c0_8 = arith.constant 0 : index
    %15 = vector.load %arg28[%c0_7, %c0_8] : memref<64x1xf32, #tpu.memory_space<vmem>>, vector<64x1xf32>
    %cst_9 = arith.constant dense<0xFF800000> : vector<64xf32>
    %16 = vector.multi_reduction <maximumf>, %13, %cst_9 [1] : vector<64x32xf32> to vector<64xf32>
    %17 = vector.shape_cast %16 : vector<64xf32> to vector<64x1xf32>
    %18 = arith.maximumf %14, %17 : vector<64x1xf32>
    %19 = arith.subf %14, %18 : vector<64x1xf32>
    %20 = math.exp %19 : vector<64x1xf32>
    %21 = arith.mulf %15, %20 : vector<64x1xf32>
    %22 = vector.broadcast %18 : vector<64x1xf32> to vector<64x32xf32>
    %23 = arith.subf %13, %22 : vector<64x32xf32>
    %24 = math.exp %23 : vector<64x32xf32>
    %cst_10 = arith.constant dense<0.000000e+00> : vector<64xf32>
    %25 = vector.multi_reduction <add>, %24, %cst_10 [1] : vector<64x32xf32> to vector<64xf32>
    %26 = vector.shape_cast %25 : vector<64xf32> to vector<64x1xf32>
    %27 = arith.addf %21, %26 : vector<64x1xf32>
    %c0_11 = arith.constant 0 : index
    %c0_12 = arith.constant 0 : index
    %28 = vector.load %arg28[%c0_11, %c0_12] : memref<64x1xf32, #tpu.memory_space<vmem>>, vector<64x1xf32>
    tpu.vector_store %arg28[%c0_11, %c0_12], %27 {strides = array<i32>} : memref<64x1xf32, #tpu.memory_space<vmem>>, vector<64x1xf32>,
    %c0_13 = arith.constant 0 : index
    %c0_14 = arith.constant 0 : index
    %29 = vector.load %arg27[%c0_13, %c0_14] : memref<64x1xf32, #tpu.memory_space<vmem>>, vector<64x1xf32>
    tpu.vector_store %arg27[%c0_13, %c0_14], %18 {strides = array<i32>} : memref<64x1xf32, #tpu.memory_space<vmem>>, vector<64x1xf32>,
    %c2_i32 = arith.constant 2 : i32
    %30 = arith.cmpi eq, %arg0, %c2_i32 : i32
    %31 = arith.extui %30 : i1 to i32
    %c0_i32_15 = arith.constant 0 : i32
    %32 = arith.cmpi ne, %31, %c0_i32_15 : i32
    scf.if %32 {
      %c0_16 = arith.constant 0 : index
      %c0_17 = arith.constant 0 : index
      %33 = vector.load %arg27[%c0_16, %c0_17] : memref<64x1xf32, #tpu.memory_space<vmem>>, vector<64x1xf32>
      %c0_18 = arith.constant 0 : index
      %c0_19 = arith.constant 0 : index
      %34 = vector.load %arg28[%c0_18, %c0_19] : memref<64x1xf32, #tpu.memory_space<vmem>>, vector<64x1xf32>
      %35 = math.log %34 : vector<64x1xf32>
      %36 = arith.addf %33, %35 : vector<64x1xf32>
      %c0_20 = arith.constant 0 : index
      %c0_21 = arith.constant 0 : index
      %37 = vector.load %arg25[%c0_20, %c0_21] : memref<64x1xf32, #tpu.memory_space<vmem>>, vector<64x1xf32>
      %c0_22 = arith.constant 0 : index
      %c0_23 = arith.constant 0 : index
      %38 = vector.load %arg24[%c0_22, %c0_23] : memref<64x1xf32, #tpu.memory_space<vmem>>, vector<64x1xf32>
      %39 = arith.subf %38, %36 : vector<64x1xf32>
      %40 = math.exp %39 : vector<64x1xf32>
      %41 = arith.mulf %37, %40 : vector<64x1xf32>
      %c0_24 = arith.constant 0 : index
      %c0_25 = arith.constant 0 : index
      %42 = vector.load %arg26[%c0_24, %c0_25] : memref<64x1xf32, #tpu.memory_space<vmem>>, vector<64x1xf32>
      %43 = arith.addf %41, %42 : vector<64x1xf32>
      %c0_26 = arith.constant 0 : index
      %c0_27 = arith.constant 0 : index
      %44 = vector.load %arg7[%c0_26, %c0_27] : memref<64x1xf32, #tpu.memory_space<vmem>>, vector<64x1xf32>
      %cst_28 = arith.constant 9.99999997E-7 : f32
      %45 = vector.broadcast %cst_28 : f32 to vector<64x1xf32>
      %46 = arith.addf %43, %45 : vector<64x1xf32>
      %47 = math.log %46 : vector<64x1xf32>
      %cst_29 = arith.constant 0.000000e+00 : f32
      %48 = vector.broadcast %cst_29 : f32 to vector<64x1xf32>
      %49 = arith.subf %48, %47 : vector<64x1xf32>
      %50 = arith.mulf %49, %44 : vector<64x1xf32>
      %51 = vector.shape_cast %44 : vector<64x1xf32> to vector<1x64x1xf32>
      %cst_30 = arith.constant dense<0.000000e+00> : vector<1xf32>
      %52 = vector.multi_reduction <add>, %51, %cst_30 [1, 2] : vector<1x64x1xf32> to vector<1xf32>
      %53 = vector.shape_cast %52 : vector<1xf32> to vector<1x1x1xf32>
      %54 = vector.extract %53[0, 0, 0] : f32 from vector<1x1x1xf32>
      %55 = vector.shape_cast %50 : vector<64x1xf32> to vector<1x64x1xf32>
      %cst_31 = arith.constant dense<0.000000e+00> : vector<1xf32>
      %56 = vector.multi_reduction <add>, %55, %cst_31 [1, 2] : vector<1x64x1xf32> to vector<1xf32>
      %57 = vector.shape_cast %56 : vector<1xf32> to vector<1x1x1xf32>
      %58 = vector.extract %57[0, 0, 0] : f32 from vector<1x1x1xf32>
      %cst_32 = arith.constant 1.000000e+00 : f32
      %59 = arith.maximumf %54, %cst_32 : f32
      %60 = arith.divf %58, %59 : f32
      %61 = vector.broadcast %60 : f32 to vector<1x1xf32>
      %c0_33 = arith.constant 0 : index
      %c0_34 = arith.constant 0 : index
      %62 = vector.load %arg20[%c0_33, %c0_34] : memref<1x1xf32, #tpu.memory_space<vmem>>, vector<1x1xf32>
      tpu.vector_store %arg20[%c0_33, %c0_34], %61 {strides = array<i32>} : memref<1x1xf32, #tpu.memory_space<vmem>>, vector<1x1xf32>,
    } else {
    }
    return
  }
  func.func @transform_0(%arg0: i32) -> (i32, i32) {
    %c0_i32 = arith.constant 0 : i32
    %c0_i32_0 = arith.constant 0 : i32
    %c0_i32_1 = arith.constant 0 : i32
    return %c0_i32, %c0_i32_0 : i32, i32
  }
  func.func @transform_1(%arg0: i32) -> (i32, i32, i32) {
    %c0_i32 = arith.constant 0 : i32
    %c0_i32_0 = arith.constant 0 : i32
    %c0_i32_1 = arith.constant 0 : i32
    %c0_i32_2 = arith.constant 0 : i32
    return %c0_i32, %c0_i32_0, %c0_i32_1 : i32, i32, i32
  }
  func.func @transform_2(%arg0: i32) -> (i32, i32) {
    %c0_i32 = arith.constant 0 : i32
    %c0_i32_0 = arith.constant 0 : i32
    %c0_i32_1 = arith.constant 0 : i32
    return %c0_i32, %c0_i32_0 : i32, i32
  }
  func.func @transform_3(%arg0: i32) -> (i32, i32, i32) {
    %c0_i32 = arith.constant 0 : i32
    %c0_i32_0 = arith.constant 0 : i32
    %c0_i32_1 = arith.constant 0 : i32
    %c0_i32_2 = arith.constant 0 : i32
    return %c0_i32, %c0_i32_0, %c0_i32_1 : i32, i32, i32
  }
  func.func @transform_4(%arg0: i32) -> (i32, i32, i32) {
    %c0_i32 = arith.constant 0 : i32
    %c0_i32_0 = arith.constant 0 : i32
    %c0_i32_1 = arith.constant 0 : i32
    %c0_i32_2 = arith.constant 0 : i32
    return %c0_i32, %c0_i32_0, %c0_i32_1 : i32, i32, i32
  }
  func.func @transform_5(%arg0: i32) -> (i32, i32) {
    %c0_i32 = arith.constant 0 : i32
    %c0_i32_0 = arith.constant 0 : i32
    %c0_i32_1 = arith.constant 0 : i32
    return %c0_i32, %c0_i32_0 : i32, i32
  }
  func.func @transform_6(%arg0: i32) -> (i32, i32) {
    %c0_i32 = arith.constant 0 : i32
    %c0_i32_0 = arith.constant 0 : i32
    %c0_i32_1 = arith.constant 0 : i32
    return %c0_i32, %c0_i32_0 : i32, i32
  }
  func.func @transform_7(%arg0: i32) -> (i32, i32) {
    %c0_i32 = arith.constant 0 : i32
    %c0_i32_0 = arith.constant 0 : i32
    %c0_i32_1 = arith.constant 0 : i32
    return %c0_i32, %c0_i32_0 : i32, i32
  }
  func.func @transform_8(%arg0: i32) -> (i32, i32) {
    %c0_i32 = arith.constant 0 : i32
    %c0_i32_0 = arith.constant 0 : i32
    %c0_i32_1 = arith.constant 0 : i32
    return %c0_i32, %c0_i32_0 : i32, i32
  }
  func.func @transform_9(%arg0: i32) -> (i32, i32) {
    %c0_i32 = arith.constant 0 : i32
    %c0_i32_0 = arith.constant 0 : i32
    %c0_i32_1 = arith.constant 0 : i32
    return %c0_i32, %c0_i32_0 : i32, i32
  }
  func.func @transform_10(%arg0: i32) -> (i32, i32) {
    %c0_i32 = arith.constant 0 : i32
    %c0_i32_0 = arith.constant 0 : i32
    %c0_i32_1 = arith.constant 0 : i32
    return %c0_i32, %c0_i32_0 : i32, i32
  }
  func.func @transform_11(%arg0: i32) -> (i32, i32) {
    %c0_i32 = arith.constant 0 : i32
    %c0_i32_0 = arith.constant 0 : i32
    %c0_i32_1 = arith.constant 0 : i32
    return %c0_i32, %c0_i32_0 : i32, i32
  }
  func.func @transform_12(%arg0: i32) -> (i32, i32) {
    %c0_i32 = arith.constant 0 : i32
    %c0_i32_0 = arith.constant 0 : i32
    %c0_i32_1 = arith.constant 0 : i32
    return %c0_i32, %c0_i32_0 : i32, i32
  }
  func.func @transform_13(%arg0: i32) -> (i32, i32) {
    %c0_i32 = arith.constant 0 : i32
    %c0_i32_0 = arith.constant 0 : i32
    %c0_i32_1 = arith.constant 0 : i32
    return %c0_i32, %c0_i32_0 : i32, i32
  }
  func.func @transform_14(%arg0: i32) -> (i32, i32) {
    %c0_i32 = arith.constant 0 : i32
    %c0_i32_0 = arith.constant 0 : i32
    %c0_i32_1 = arith.constant 0 : i32
    return %c0_i32, %c0_i32_0 : i32, i32
  }
  func.func @transform_15(%arg0: i32) -> (i32, i32) {
    %c0_i32 = arith.constant 0 : i32
    %c0_i32_0 = arith.constant 0 : i32
    %c0_i32_1 = arith.constant 0 : i32
    return %c0_i32, %c0_i32_0 : i32, i32
  }
  func.func @transform_16(%arg0: i32) -> (i32, i32) {
    %c0_i32 = arith.constant 0 : i32
    %c0_i32_0 = arith.constant 0 : i32
    %c0_i32_1 = arith.constant 0 : i32
    return %c0_i32, %c0_i32_0 : i32, i32
  }
  func.func @transform_17(%arg0: i32) -> (i32, i32) {
    %c0_i32 = arith.constant 0 : i32
    %c0_i32_0 = arith.constant 0 : i32
    %c0_i32_1 = arith.constant 0 : i32
    return %c0_i32, %c0_i32_0 : i32, i32
  }
  func.func @transform_18(%arg0: i32) -> (i32, i32) {
    %c0_i32 = arith.constant 0 : i32
    %c0_i32_0 = arith.constant 0 : i32
    return %arg0, %c0_i32 : i32, i32
  }
  func.func @transform_19(%arg0: i32) -> (i32, i32) {
    %c0_i32 = arith.constant 0 : i32
    %c0_i32_0 = arith.constant 0 : i32
    %c0_i32_1 = arith.constant 0 : i32
    return %c0_i32, %c0_i32_0 : i32, i32
  }
}

</mosaic_0001>

<bundles_post_ra>
// kernel: tpu_custom_call.1
= control target key start
LH: loop header
LB: loop body
LE: loop exit
PB: predicated region body
PF: predicated region fallthrough
CT: control target
= control target key end

     0   :  { %s15731_s0 = inlined_call_operand.vmem [shape: s32[8,8], index: 0, kind: input, shape index: {}]   ;;  %s15732_s1 = inlined_call_operand.vmem [shape: f32[8,8,32], index: 1, kind: input, shape index: {}]   ;;  %s15733_s2 = inlined_call_operand.vmem [shape: f32[8,8], index: 2, kind: input, shape index: {}]   ;;  %s15734_s3 = inlined_call_operand.vmem [shape: f32[8,8,32], index: 3, kind: input, shape index: {}]   ;;  %s15735_s4 = inlined_call_operand.vmem [shape: s32[8,8,1], index: 4, kind: input, shape index: {}]   ;;  %s15736_s5 = inlined_call_operand.vmem [shape: f32[64,32], index: 5, kind: input, shape index: {}]   ;;  %s15737_s6 = inlined_call_operand.vmem [shape: f32[64,1], index: 6, kind: input, shape index: {}]   ;;  %s15738_s7 = inlined_call_operand.vmem [shape: f32[96,64], index: 7, kind: input, shape index: {}]   ;;  %s15739_s8 = inlined_call_operand.vmem [shape: f32[1,64], index: 8, kind: input, shape index: {}]   ;;  %s15740_s9 = inlined_call_operand.vmem [shape: f32[96,32], index: 9, kind: input, shape index: {}]   ;;  %s15741_s10 = inlined_call_operand.vmem [shape: f32[1,32], index: 10, kind: input, shape index: {}]   ;;  %s15742_s11 = inlined_call_operand.vmem [shape: f32[32,32], index: 11, kind: input, shape index: {}]   ;;  %s15743_s12 = inlined_call_operand.vmem [shape: f32[1,32], index: 12, kind: input, shape index: {}]   ;;  %s15744_s13 = inlined_call_operand.vmem [shape: f32[32,32], index: 13, kind: input, shape index: {}]   ;;  %s15745_s14 = inlined_call_operand.vmem [shape: f32[1,32], index: 14, kind: input, shape index: {}]   ;;  %s15746_s15 = inlined_call_operand.vmem [shape: f32[1,32], index: 15, kind: input, shape index: {}]   ;;  %s15747_s16 = inlined_call_operand.<no memory space> [shape: f32[1,1], index: 16, kind: input, shape index: {}]   ;;  %s15748_s17 = inlined_call_operand.vmem [shape: f32[1,32], index: 17, kind: input, shape index: {}]   ;;  %s15749_s18 = inlined_call_operand.vmem [shape: f32[96,32], index: 18, kind: input, shape index: {}]   ;;  %s15750_s19 = inlined_call_operand.hbm [shape: f32[1,1], index: 19, kind: output, shape index: {}]  }
   0x1   :  { %15799 = sst [smem:[#allocation78_spill]] %s15731_s0  ;;  %v24_v0 = vstv %s15747_s16 }
   0x2   :  { %15800 = sst [smem:[#allocation79_spill]] %s15732_s1  ;;  %25 = vst [vmem:[#allocation10] sm:$0x1] %v24_v0 }
   0x3   :  { %15801 = sst [smem:[#allocation80_spill]] %s15733_s2 }
   0x4   :  { %15802 = sst [smem:[#allocation81_spill]] %s15734_s3 }
   0x5   :  { %26 = vsyncpa [#allocation12], 0  ;;  %s12139_s20 = smov 0  }
   0x6 LB: > { %s12145_s21 = sadd.s32 4294967295, %s12026_s20   ;;  %p10894_p0 = scmp.ge.s32.totalorder %s12026_s20, 1  ;;  %s12026_s20 = sphi %s12139_s20, %s32_s20  }
   0x7   : > { %p536_p1 = scmp.lt.s32.totalorder %s12026_s20, 4 }
   0x9   : > { %p537_p2 = pnand %p10894_p0, %p536_p1 }
   0xa   : > { %s10895_s16 = sshll.u32 (!%p537_p2), %s12145_s21, 2  ;;  %p10897_p4 = scmp.ne.s32.totalorder (!%p537_p2), %s12145_s21, 0 }
   0xb   : > { %540 = sbr.rel (%p537_p2) target bundleno = 12586 (0x312a), region = 96  ;;  %p588_p3 = scmp.lt.s32.totalorder (!%p537_p2), %s10895_s16, 11 }
  0x10   : > { %s15981_s16 = smov (!%p588_p3, %s10895_s16), 11  ;;  %596 = sbr.rel (%p10897_p4) target bundleno = 11774 (0x2dfe), region = 100 }
  0x11   : > { %s10896_s1 = sshll.u32 %s15981_s16, 3 }
  0x12   : > { %s12153_s23 = scalar_lea.vmem %s15749_s18, %s10896_s1 }
  0x15   : > { %s15803_s3 = sld [smem:[#allocation79_spill]]  ;;  %vm654_vm0 = vcmask 261120   ;;  %v12183_v5 = vld [vmem:[%s15748_s17] ss:$0 sm:$0xff]  ;;  %vm904_vm1 = vcmask 1041409   ;;  %vm907_vm2 = vcmask 1042434  }
  0x16   : > { %v648_v8 = vrot.slane %v12183_v5, 2  ;;  %v647_v9 = vrot.slane %v12183_v5, 1  ;;  %v649_v10 = vrot.slane %v12183_v5, 3  ;;  %v650_v13 = vrot.slane %v12183_v5, 4  ;;  %s15804_s16 = sld [smem:[#allocation80_spill]]  ;;  %s12028_s1 = smov 32  }
  0x17   : > { %v652_v14 = vrot.slane %v12183_v5, 6  ;;  %v651_v15 = vrot.slane %v12183_v5, 5  ;;  %v653_v16 = vrot.slane %v12183_v5, 7  ;;  %vm910_vm3 = vcmask 1043459   ;;  %1407 = vrot.lane.b32.xlu1 %v12183_v5, %s12028_s1  ;;  %s15813_s30 = sld [smem:[#allocation81_spill]]  ;;  %s12029_s25 = smov 96  }
  0x18   : > { %vm913_vm4 = vcmask 1044484   ;;  %vm916_vm5 = vcmask 1045509   ;;  %vm919_vm6 = vcmask 1046534   ;;  %vm922_vm7 = vcmask 1047559   ;;  %s15915_s29 = sld [smem:[#allocation78_spill]] }
  0x19   : > { %vm925_vm8 = vcmask 64512  }
  0x1b   : > { %v12159_v1 = vld [vmem:[%s15803_s3] sm:$0xff]  ;;  %v12164_v2 = vld [vmem:[%s15803_s3 + $0x10] sm:$0xff]  ;;  %v12169_v3 = vld [vmem:[%s15803_s3 + $0x8] sm:$0xff] }
  0x1c   : > { %10898 = vmatpush.xpose.msk.msra.mxu0 %vm654_vm0, %v12159_v1  ;;  %10902 = vmatpush.xpose.msk.msra.mxu2 %vm654_vm0, %v12164_v2  ;;  %v12178_v4 = vld [vmem:[%s15803_s3 + $0x18] sm:$0xff]  ;;  %v12192_v6 = vld [vmem:[%s15803_s3 + $0x30] sm:$0xff]  ;;  %v12209_v11 = vld [vmem:[%s15803_s3 + $0x20] sm:$0xff] }
  0x1d   : > { %10900 = vmatpush.xpose.msk.msra.mxu1 %vm654_vm0, %v12169_v3  ;;  %10904 = vmatpush.xpose.msk.msra.mxu3 %vm654_vm0, %v12178_v4  ;;  %v12197_v7 = vld [vmem:[%s15803_s3 + $0x38] sm:$0xff]  ;;  %v12214_v12 = vld [vmem:[%s15803_s3 + $0x28] sm:$0xff]  ;;  %v607_v17 = vld [vmem:[%s15804_s16] sm:$0xff] }
  0x1e   : > { %v609_v18 = vsub.f32 1.0, %v607_v17 }
  0x1f   : > { %10899 = vmatmul.msk.f32.vlgmr.msra.gmra.mxu0 %vm654_vm0, %v12183_v5  ;;  %10903 = vmatmul.msk.f32.vlgmr.msra.gmra.mxu2 %vm654_vm0, %v648_v8 }
  0x20   : > { %10910 = vmatpush.xpose.msk.msrb.mxu2 %vm654_vm0, %v12192_v6  ;;  %10901 = vmatmul.msk.f32.vlgmr.msra.gmra.mxu1 %vm654_vm0, %v647_v9  ;;  %v12244_v19 = vmul.f32 -1e+30, %v609_v18 }
  0x21   : > { %10912 = vmatpush.xpose.msk.msrb.mxu3 %vm654_vm0, %v12197_v7  ;;  %10908 = vmatpush.xpose.msk.msrb.mxu1 %vm654_vm0, %v12214_v12 }
  0x22   : > { %10905 = vmatmul.msk.f32.vlgmr.msra.gmra.mxu3 %vm654_vm0, %v649_v10  ;;  %10906 = vmatpush.xpose.msk.msrb.mxu0 %vm654_vm0, %v12209_v11  ;;  %15805 = vst [vmem:[#allocation14_spill] sm:$0xff] %v12244_v19  ;;  %v12247_v22 = vrot.slane %v12244_v19, 1  ;;  %v12251_v26 = vrot.slane %v12244_v19, 2  ;;  %v12254_v28 = vrot.slane %v12244_v19, 3  ;;  %v12257_v29 = vrot.slane %v12244_v19, 4 }
  0x23   : > { %v12260_v33 = vrot.slane %v12244_v19, 5  ;;  %v12270_v49 = vrot.slane %v12244_v19, 6  ;;  %v12273_v51 = vrot.slane %v12244_v19, 7 }
  0x24   : > { %1097 = vmatpush.msra.mxu2 %v12164_v2  ;;  %15806 = vst [vmem:[#allocation15_spill] sm:$0xff] %v12247_v22 }
  0x25   : > { %1120 = vmatpush.msra.mxu3 %v12178_v4  ;;  %1074 = vmatpush.msra.mxu1 %v12169_v3  ;;  %15807 = vst [vmem:[#allocation16_spill] sm:$0xff] %v12251_v26 }
  0x26   : > { %1051 = vmatpush.msra.mxu0 %v12159_v1  ;;  %15808 = vst [vmem:[#allocation17_spill] sm:$0xff] %v12254_v28 }
  0x27   : > { %10907 = vmatmul.msk.f32.vlgmr.msrb.gmra.mxu0 %vm654_vm0, %v650_v13  ;;  %10911 = vmatmul.msk.f32.vlgmr.msrb.gmra.mxu2 %vm654_vm0, %v652_v14  ;;  %15809 = vst [vmem:[#allocation18_spill] sm:$0xff] %v12257_v29 }
  0x28   : > { %10909 = vmatmul.msk.f32.vlgmr.msrb.gmra.mxu1 %vm654_vm0, %v651_v15  ;;  %1189 = vmatpush.msrb.mxu2 %v12192_v6  ;;  %15810 = vst [vmem:[#allocation19_spill] sm:$0xff] %v12260_v33 }
  0x29   : > { %1143 = vmatpush.msrb.mxu0 %v12209_v11  ;;  %1166 = vmatpush.msrb.mxu1 %v12214_v12  ;;  %15811 = vst [vmem:[#allocation20_spill] sm:$0xff] %v12270_v49 }
  0x2a   : > { %10913 = vmatmul.msk.f32.vlgmr.msrb.gmra.mxu3 %vm654_vm0, %v653_v16  ;;  %15812 = vst [vmem:[#allocation21_spill] sm:$0xff] %v12273_v51 }
  0x2b   : > { %1212 = vmatpush.msrb.mxu3 %v12197_v7 }
  0x9c   : > { %v677_v20 = vpop.f32.mrf.mxu0 }
  0x9d   : > { %v702_v21 = vpop.f32.mrf.mxu1  ;;  %v863_v24 = vmul.f32 0.17677669, %v677_v20 }
  0x9e   : > { %v864_v23 = vmul.f32 0.17677669, %v702_v21 }
  0x9f   : > { %v887_v34 = vadd.f32 %v863_v24, %v12244_v19 }
  0xa0   : > { %v888_v25 = vadd.f32 %v12247_v22, %v864_v23 }
  0xa2   : > { %v727_v27 = vpop.f32.mrf.mxu2  ;;  %v903_v35 = vrot.slane %v888_v25, 7 }
  0xa3   : > { %v865_v30 = vmul.f32 0.17677669, %v727_v27 }
  0xa4   : > { %v777_v32 = vpop.f32.mrf.mxu0  ;;  %v905_v44 = vsel %vm904_vm1, %v903_v35, %v887_v34 }
  0xa5   : > { %v752_v31 = vpop.f32.mrf.mxu3  ;;  %v867_v37 = vmul.f32 0.17677669, %v777_v32  ;;  %v802_v38 = vpop.f32.mrf.mxu1  ;;  %v889_v39 = vadd.f32 %v12251_v26, %v865_v30 }
  0xa6   : > { %v866_v36 = vmul.f32 0.17677669, %v752_v31  ;;  %v868_v40 = vmul.f32 0.17677669, %v802_v38 }
  0xa7   : > { %v891_v42 = vadd.f32 %v12257_v29, %v867_v37  ;;  %v906_v43 = vrot.slane %v889_v39, 6 }
  0xa8   : > { %v890_v41 = vadd.f32 %v12254_v28, %v866_v36  ;;  %v892_v46 = vadd.f32 %v12260_v33, %v868_v40 }
  0xa9   : > { %v908_v47 = vsel %vm907_vm2, %v906_v43, %v905_v44  ;;  %v912_v48 = vrot.slane %v891_v42, 4 }
  0xaa   : > { %v909_v45 = vrot.slane %v890_v41, 5  ;;  %v827_v50 = vpop.f32.mrf.mxu2  ;;  %v915_v55 = vrot.slane %v892_v46, 3 }
  0xab   : > { %v869_v53 = vmul.f32 0.17677669, %v827_v50 }
  0xac   : > { %v911_v52 = vsel %vm910_vm3, %v909_v45, %v908_v47 }
  0xad   : > { %v852_v54 = vpop.f32.mrf.mxu3  ;;  %v893_v57 = vadd.f32 %v12270_v49, %v869_v53  ;;  %v914_v58 = vsel %vm913_vm4, %v912_v48, %v911_v52 }
  0xae   : > { %v870_v56 = vmul.f32 0.17677669, %v852_v54  ;;  %v917_v61 = vsel %vm916_vm5, %v915_v55, %v914_v58 }
  0xaf   : > { %v918_v60 = vrot.slane %v893_v57, 2 }
  0xb0   : > { %v894_v59 = vadd.f32 %v12273_v51, %v870_v56 }
  0xb1   : > { %v920_v63 = vsel %vm919_vm6, %v918_v60, %v917_v61 }
  0xb2   : > { %v921_v62 = vrot.slane %v894_v59, 1 }
  0xb4   : > { %v923_v0 = vsel %vm922_vm7, %v921_v62, %v920_v63 }
  0xb5   : > { %v926_v8 = vsel %vm925_vm8, %v923_v0, -inf }
  0xb6   : > { %927 = vmax.xlane.f32.xlu0 %v926_v8 }
 0x129   : > { %v928_v9 = vpop.xlane.xlu0 %927 }
 0x12a   : > { %v930_v10 = vrot.slane %v928_v9, 1  ;;  %v931_v13 = vrot.slane %v928_v9, 2  ;;  %v932_v14 = vrot.slane %v928_v9, 3  ;;  %v933_v15 = vrot.slane %v928_v9, 4 }
 0x12b   : > { %v934_v16 = vrot.slane %v928_v9, 5  ;;  %v945_v17 = vsub.f32 %v887_v34, %v928_v9  ;;  %v935_v18 = vrot.slane %v928_v9, 6  ;;  %v936_v20 = vrot.slane %v928_v9, 7 }
 0x12c   : > { %v946_v21 = vsub.f32 %v888_v25, %v930_v10  ;;  %v947_v23 = vsub.f32 %v889_v39, %v931_v13  ;;  %v948_v24 = vsub.f32 %v890_v41, %v932_v14  ;;  %v949_v27 = vsub.f32 %v891_v42, %v933_v15 }
 0x12d   : > { %v953_v30 = vmul.f32 1.442695, %v945_v17  ;;  %v950_v31 = vsub.f32 %v892_v46, %v934_v16  ;;  %v951_v32 = vsub.f32 %v893_v57, %v935_v18  ;;  %v952_v38 = vsub.f32 %v894_v59, %v936_v20 }
 0x12e   : > { %v955_v35 = vmul.f32 1.442695, %v946_v21  ;;  %v957_v36 = vmul.f32 1.442695, %v947_v23  ;;  %v959_v37 = vmul.f32 1.442695, %v948_v24 }
 0x12f   : > { %11400 = vpow2.f32 %v953_v30  ;;  %v961_v40 = vmul.f32 1.442695, %v949_v27  ;;  %v963_v43 = vmul.f32 1.442695, %v950_v31  ;;  %v965_v44 = vmul.f32 1.442695, %v951_v32 }
 0x130   : > { %11402 = vpow2.f32 %v955_v35  ;;  %v967_v34 = vmul.f32 1.442695, %v952_v38 }
 0x131   : > { %11404 = vpow2.f32 %v957_v36 }
 0x132   : > { %11406 = vpow2.f32 %v959_v37 }
 0x133   : > { %11408 = vpow2.f32 %v961_v40 }
 0x134   : > { %11410 = vpow2.f32 %v963_v43 }
 0x135   : > { %v11401_v25 = vpop.eup %11400  ;;  %11412 = vpow2.f32 %v965_v44 }
 0x136   : > { %v11403_v39 = vpop.eup %11402  ;;  %11414 = vpow2.f32 %v967_v34 }
 0x137   : > { %v11405_v41 = vpop.eup %11404  ;;  %v977_v42 = vrot.slane %v11403_v39, 7 }
 0x138   : > { %v11407_v45 = vpop.eup %11406  ;;  %v979_v46 = vrot.slane %v11405_v41, 6 }
 0x139   : > { %v11409_v47 = vpop.eup %11408  ;;  %v978_v48 = vsel %vm904_vm1, %v977_v42, %v11401_v25  ;;  %v981_v50 = vrot.slane %v11407_v45, 5 }
 0x13a   : > { %v11411_v52 = vpop.eup %11410  ;;  %v980_v53 = vsel %vm907_vm2, %v979_v46, %v978_v48  ;;  %v983_v54 = vrot.slane %v11409_v47, 4  ;;  %v12320_v46 = vld [vmem:[%s15738_s7 + $0x58] sm:$0xff]  ;;  %v12332_v48 = vld [vmem:[%s15740_s9 + $0x30] sm:$0xff] }
 0x13b   : > { %v11413_v55 = vpop.eup %11412  ;;  %v982_v56 = vsel %vm910_vm3, %v981_v50, %v980_v53  ;;  %v985_v57 = vrot.slane %v11411_v52, 3  ;;  %v12337_v50 = vld [vmem:[%s15738_s7 + $0x50] sm:$0xff]  ;;  %v12348_v53 = vld [vmem:[%s15740_s9 + $0x28] sm:$0xff] }
 0x13c   : > { %v11415_v58 = vpop.eup %11414  ;;  %v984_v59 = vsel %vm913_vm4, %v983_v54, %v982_v56  ;;  %v987_v60 = vrot.slane %v11413_v55, 2  ;;  %v646_v54 = vld [vmem:[%s15813_s30] sm:$0xff]  ;;  %v12363_v56 = vld [vmem:[%s15738_s7 + $0x48] sm:$0xff] }
 0x13d   : > { %v986_v61 = vsel %vm916_vm5, %v985_v57, %v984_v59  ;;  %v989_v62 = vrot.slane %v11415_v58, 1  ;;  %v12370_v57 = vld [vmem:[%s15740_s9 + $0x20] sm:$0xff]  ;;  %v12382_v59 = vld [vmem:[%s15738_s7 + $0x10] sm:$0xff] }
 0x13e   : > { %v988_v63 = vsel %vm919_vm6, %v987_v60, %v986_v61  ;;  %v12387_v60 = vld [vmem:[%s15738_s7 + $0x40] sm:$0xff]  ;;  %v12394_v61 = vld [vmem:[%s15740_s9 + $0x10] sm:$0xff] }
 0x13f   : > { %v990_v0 = vsel %vm922_vm7, %v989_v62, %v988_v63  ;;  %v12401_v62 = vld [vmem:[%s15738_s7 + $0x8] sm:$0xff] }
 0x140   : > { %v992_v8 = vsel %vm925_vm8, %v990_v0, 0.0  ;;  %v12408_v63 = vld [vmem:[%s15740_s9 + $0x8] sm:$0xff]  ;;  %v12415_v0 = vld [vmem:[%s15738_s7] sm:$0xff] }
 0x141   : > { %993 = vadd.xlane.f32.xlu0 %v992_v8  ;;  %v12423_v8 = vld [vmem:[%s15740_s9] sm:$0xff] }
 0x1b4   : > { %v994_v9 = vpop.xlane.xlu0 %993 }
 0x1b5   : > { %11416 = vrcp.f32 %v994_v9  ;;  %v1006_v15 = vand.u32 2147483648, %v994_v9  ;;  %v1004_v17 = vand.u32 2147483647, %v994_v9  ;;  %vm1000_vm10 = vweird.f32 %v994_v9 }
 0x1b7   : > { %v1007_v20 = vor.u32 1.1754944e-38, %v1006_v15  ;;  %vm1005_vm12 = vcmp.eq.f32.partialorder %v1004_v17, 8.507059e+37 }
 0x1bb   : > { %v11417_v10 = vpop.eup %11416 }
 0x1bc   : > { %v996_v13 = vmul.f32 %v11417_v10, %v994_v9  ;;  %vm1001_vm9 = vweird.f32 %v11417_v10 }
 0x1bd   : > { %vm1002_vm11 = vmor %vm1000_vm10, %vm1001_vm9 }
 0x1be   : > { %v997_v14 = vsub.f32 1.0, %v996_v13 }
 0x1c0   : > { %v998_v16 = vmul.f32 %v11417_v10, %v997_v14 }
 0x1c2   : > { %v999_v18 = vadd.f32 %v11417_v10, %v998_v16 }
 0x1c4   : > { %v1003_v21 = vsel %vm1002_vm11, %v11417_v10, %v999_v18 }
 0x1c5   : > { %v1008_v23 = vsel %vm1005_vm12, %v1007_v20, %v1003_v21 }
 0x1c6   : > { %v1025_v24 = vmul.f32 %v11401_v25, %v1008_v23  ;;  %v1010_v27 = vrot.slane %v1008_v23, 1  ;;  %v1011_v30 = vrot.slane %v1008_v23, 2  ;;  %v1012_v31 = vrot.slane %v1008_v23, 3 }
 0x1c7   : > { %v1013_v37 = vrot.slane %v1008_v23, 4  ;;  %v1014_v38 = vrot.slane %v1008_v23, 5  ;;  %v1015_v40 = vrot.slane %v1008_v23, 6  ;;  %v1016_v43 = vrot.slane %v1008_v23, 7 }
 0x1c8   : > { %10914 = vmatmul.msk.f32.vlgmr.msra.gmra.mxu0 %vm925_vm8, %v1025_v24  ;;  %v1026_v32 = vmul.f32 %v11403_v39, %v1010_v27  ;;  %v1027_v35 = vmul.f32 %v11405_v41, %v1011_v30  ;;  %v1028_v36 = vmul.f32 %v11407_v45, %v1012_v31  ;;  %v12304_v39 = vld [vmem:[%s15738_s7 + $0x38] sm:$0xff]  ;;  %v12310_v41 = vld [vmem:[%s15738_s7 + $0x30] sm:$0xff] }
 0x1c9   : > { %v1029_v44 = vmul.f32 %v11409_v47, %v1013_v37  ;;  %v1030_v34 = vmul.f32 %v11411_v52, %v1014_v38  ;;  %v1031_v25 = vmul.f32 %v11413_v55, %v1015_v40  ;;  %v1032_v42 = vmul.f32 %v11415_v58, %v1016_v43  ;;  %1240 = vmatpush.msra.mxu0 %v12304_v39  ;;  %v12315_v45 = vld [vmem:[%s15740_s9 + $0x38] sm:$0xff]  ;;  %v12327_v47 = vld [vmem:[%s15738_s7 + $0x28] sm:$0xff]  ;;  %v12343_v52 = vld [vmem:[%s15738_s7 + $0x20] sm:$0xff] }
 0x1ca   : > { %10915 = vmatmul.msk.f32.vlgmr.msra.gmra.mxu1 %vm925_vm8, %v1026_v32  ;;  %10916 = vmatmul.msk.f32.vlgmr.msra.gmra.mxu2 %vm925_vm8, %v1027_v35  ;;  %v12358_v55 = vld [vmem:[%s15738_s7 + $0x18] sm:$0xff] }
 0x1cb   : > { %10917 = vmatmul.msk.f32.vlgmr.msra.gmra.mxu3 %vm925_vm8, %v1028_v36  ;;  %1241 = vmatpush.msra.mxu0 %v12310_v41  ;;  %v12375_v58 = vld [vmem:[%s15740_s9 + $0x18] sm:$0xff] }
 0x1cc   : > { %1349 = vmatpush.msra.mxu3 %v12315_v45  ;;  %1304 = vmatpush.msra.mxu2 %v12320_v46 }
 0x1cd   : > { %1242 = vmatpush.msra.mxu0 %v12327_v47  ;;  %1284 = vmatpush.msra.mxu1 %v12358_v55 }
 0x1ce   : > { %1350 = vmatpush.msra.mxu3 %v12332_v48  ;;  %1305 = vmatpush.msra.mxu2 %v12337_v50 }
 0x1cf   : > { %1243 = vmatpush.msra.mxu0 %v12343_v52  ;;  %1285 = vmatpush.msra.mxu1 %v12382_v59 }
 0x1d0   : > { %10918 = vmatmul.msk.f32.vlgmr.msrb.gmra.mxu0 %vm925_vm8, %v1029_v44  ;;  %1351 = vmatpush.msra.mxu3 %v12348_v53  ;;  %v12448_v44 = vld [vmem:[%s15740_s9 + $0x58] sm:$0xff] }
 0x1d1   : > { %1306 = vmatpush.msra.mxu2 %v12363_v56  ;;  %1369 = vmatpush.msrb.mxu0 %v12375_v58 }
 0x1d2   : > { %10919 = vmatmul.msk.f32.vlgmr.msrb.gmra.mxu1 %vm925_vm8, %v1030_v34  ;;  %10920 = vmatmul.msk.f32.vlgmr.msrb.gmra.mxu2 %vm925_vm8, %v1031_v25  ;;  %v12453_v34 = vld [vmem:[%s15740_s9 + $0x50] sm:$0xff]  ;;  %v12459_v25 = vld [vmem:[%s15740_s9 + $0x48] sm:$0xff] }
 0x1d3   : > { %10921 = vmatmul.msk.f32.vlgmr.msrb.gmra.mxu3 %vm925_vm8, %v1032_v42  ;;  %1307 = vmatpush.msra.mxu2 %v12387_v60  ;;  %v12465_v42 = vld [vmem:[%s15740_s9 + $0x40] sm:$0xff] }
 0x1d4   : > { %1352 = vmatpush.msra.mxu3 %v12370_v57  ;;  %1370 = vmatpush.msrb.mxu0 %v12394_v61 }
 0x1d5   : > { %1286 = vmatpush.msra.mxu1 %v12401_v62 }
 0x1d6   : > { %1371 = vmatpush.msrb.mxu0 %v12408_v63  ;;  %10930 = vmatpush.xpose.msk.msrb.mxu3 %vm654_vm0, %v12159_v1 }
 0x1d7   : > { %1287 = vmatpush.msra.mxu1 %v12415_v0 }
 0x1d8   : > { %10922 = vmatmul.msk.f32.vlgmr.msra.gmra.mxu0 %vm654_vm0, %v646_v54 }
 0x1d9   : > { %1372 = vmatpush.msrb.mxu0 %v12423_v8  ;;  %1392 = vmatpush.msrb.mxu1 %v12448_v44 }
 0x1da   : > { %10924 = vmatmul.msk.f32.vlgmr.msra.gmra.mxu2 %vm654_vm0, %v12183_v5 }
 0x1db   : > { %10926 = vmatmul.msk.f32.vlgmr.msra.gmra.mxu3 %vm654_vm0, %v646_v54  ;;  %10932 = vmatpush.xpose.msk.msra.mxu0 %vm654_vm0, %v12169_v3 }
 0x1dc   : > { %10938 = vmatpush.xpose.msk.msra.mxu3 %vm654_vm0, %v12209_v11  ;;  %1393 = vmatpush.msrb.mxu1 %v12453_v34 }
 0x1de   : > { %1394 = vmatpush.msrb.mxu1 %v12459_v25 }
 0x1e0   : > { %1395 = vmatpush.msrb.mxu1 %v12465_v42 }
 0x245   : > { %v1053_v9 = vpop.f32.mrf.mxu0 }
 0x247   : > { %v1076_v10 = vpop.f32.mrf.mxu1 }
 0x248   : > { %v1256_v13 = vrot.slane %v1076_v10, 7 }
 0x24a   : > { %v1257_v17 = vsel %vm904_vm1, %v1256_v13, %v1053_v9 }
 0x24d   : > { %v1099_v14 = vpop.f32.mrf.mxu2  ;;  %v1145_v20 = vpop.f32.mrf.mxu0 }
 0x24e   : > { %v1258_v15 = vrot.slane %v1099_v14, 6  ;;  %v1122_v16 = vpop.f32.mrf.mxu3  ;;  %v1262_v27 = vrot.slane %v1145_v20, 4  ;;  %v12474_v14 = vld [vmem:[%s15739_s8] ss:$0 sm:$0xff] }
 0x24f   : > { %v1260_v18 = vrot.slane %v1122_v16, 5  ;;  %v1168_v23 = vpop.f32.mrf.mxu1 }
 0x250   : > { %v1259_v21 = vsel %vm907_vm2, %v1258_v15, %v1257_v17  ;;  %v1264_v30 = vrot.slane %v1168_v23, 3 }
 0x251   : > { %v1261_v24 = vsel %vm910_vm3, %v1260_v18, %v1259_v21 }
 0x252   : > { %v1263_v31 = vsel %vm913_vm4, %v1262_v27, %v1261_v24 }
 0x253   : > { %v1265_v37 = vsel %vm916_vm5, %v1264_v30, %v1263_v31 }
 0x255   : > { %v1191_v32 = vpop.f32.mrf.mxu2  ;;  %v1245_v54 = vpop.f32.mrf.mxu0 }
 0x256   : > { %v1266_v35 = vrot.slane %v1191_v32, 2  ;;  %v1214_v36 = vpop.f32.mrf.mxu3 }
 0x257   : > { %v1268_v38 = vrot.slane %v1214_v36, 1 }
 0x258   : > { %v1267_v40 = vsel %vm919_vm6, %v1266_v35, %v1265_v37 }
 0x259   : > { %v1269_v43 = vsel %vm922_vm7, %v1268_v38, %v1267_v40 }
 0x25a   : > { %10923 = vmatmul.msk.f32.vlgmr.msra.gmra.mxu1 %vm654_vm0, %v1269_v43  ;;  %10927 = vmatmul.msk.f32.vlgmr.msrb.gmra.mxu0 %vm654_vm0, %v1269_v43 }
 0x25b   : > { %10940 = vmatpush.xpose.msk.msrb.mxu0 %vm654_vm0, %v12214_v12  ;;  %10934 = vmatpush.xpose.msk.msra.mxu1 %vm654_vm0, %v12164_v2 }
 0x25d   : > { %v1309_v10 = vpop.f32.mrf.mxu2 }
 0x25e   : > { %v1354_v40 = vpop.f32.mrf.mxu3 }
 0x2d7   : > { %v1289_v9 = vpop.f32.mrf.mxu1  ;;  %v1374_v43 = vpop.f32.mrf.mxu0 }
 0x2d8   : > { %v1290_v13 = vadd.f32 %v1289_v9, %v1245_v54  ;;  %v1375_v54 = vadd.f32 %v1374_v43, %v1354_v40  ;;  %v12484_v9 = vld [vmem:[%s15741_s10] ss:$0 sm:$0xff] }
 0x2da   : > { %v1312_v15 = vadd.f32 %v1309_v10, %v1290_v13 }
 0x2dc   : > { %v1316_v16 = vadd.f32 %v12474_v14, %v1312_v15 }
 0x2de   : > { %v10925_v17 = vmul.f32 -1.442695, %v1316_v16 }
 0x2e0   : > { %11418 = vpow2.f32 %v10925_v17 }
 0x2e6   : > { %v11419_v18 = vpop.eup %11418 }
 0x2e7   : > { %v1320_v20 = vadd.f32 1.0, %v11419_v18 }
 0x2e9   : > { %11420 = vrcp.f32 %v1320_v20  ;;  %v1332_v27 = vand.u32 2147483648, %v1320_v20  ;;  %v1330_v31 = vand.u32 2147483647, %v1320_v20  ;;  %vm1326_vm14 = vweird.f32 %v1320_v20 }
 0x2eb   : > { %v1333_v35 = vor.u32 1.1754944e-38, %v1332_v27  ;;  %vm1331_vm9 = vcmp.eq.f32.partialorder %v1330_v31, 8.507059e+37  ;;  %v12502_v31 = vld [vmem:[%s15744_s13 + $0x10] sm:$0xff] }
 0x2ef   : > { %v11421_v21 = vpop.eup %11420 }
 0x2f0   : > { %v1322_v23 = vmul.f32 %v11421_v21, %v1320_v20  ;;  %vm1327_vm13 = vweird.f32 %v11421_v21 }
 0x2f1   : > { %vm1328_vm15 = vmor %vm1326_vm14, %vm1327_vm13 }
 0x2f2   : > { %v1323_v24 = vsub.f32 1.0, %v1322_v23 }
 0x2f4   : > { %v1324_v30 = vmul.f32 %v11421_v21, %v1323_v24 }
 0x2f6   : > { %v1325_v32 = vadd.f32 %v11421_v21, %v1324_v30  ;;  %v12497_v30 = vld [vmem:[%s15744_s13 + $0x18] sm:$0xff] }
 0x2f7   : > { %1439 = vmatpush.msrb.mxu2 %v12497_v30 }
 0x2f8   : > { %v1329_v36 = vsel %vm1328_vm15, %v11421_v21, %v1325_v32 }
 0x2f9   : > { %v1334_v37 = vsel %vm1331_vm9, %v1333_v35, %v1329_v36  ;;  %v12508_v36 = vld [vmem:[%s15744_s13 + $0x8] sm:$0xff]  ;;  %1440 = vmatpush.msrb.mxu2 %v12502_v31 }
 0x2fa   : > { %v1336_v38 = vmul.f32 %v12183_v5, %v1334_v37  ;;  %v1408_v5 = vpop.permute.xlu1 %1407  ;;  %v1406_v17 = vsub.f32 1.0, %v1334_v37 }
 0x2fb   : > { %1441 = vmatpush.msrb.mxu2 %v12508_v36 }
 0x2fc   : > { %10928 = vmatmul.msk.f32.vlgmr.msrb.gmra.mxu1 %vm654_vm0, %v1336_v38  ;;  %v1410_v20 = vmul.f32 %v1408_v5, %v1406_v17 }
 0x2fd   : > { %10942 = vmatpush.xpose.msk.msrb.mxu1 %vm654_vm0, %v12192_v6 }
 0x379   : > { %v1397_v10 = vpop.f32.mrf.mxu1 }
 0x37a   : > { %v1400_v13 = vadd.f32 %v1397_v10, %v1375_v54 }
 0x37c   : > { %v1404_v15 = vadd.f32 %v12484_v9, %v1400_v13 }
 0x37e   : > { %11422 = vtanh.f32 %v1404_v15 }
 0x384   : > { %v11423_v16 = vpop.eup %11422 }
 0x385   : > { %1412 = vrot.lane.b32.xlu1 %v11423_v16, %s12028_s1 }
 0x3f7   : > { %v1413_v18 = vpop.permute.xlu1 %1412 }
 0x3f8   : > { %v1415_v21 = vmul.f32 %v1413_v18, %v1334_v37  ;;  %v12516_v37 = vld [vmem:[%s15744_s13] sm:$0xff] }
 0x3f9   : > { %1442 = vmatpush.msrb.mxu2 %v12516_v37 }
 0x3fa   : > { %v12488_v23 = vadd.f32 %v1415_v21, %v1410_v20  ;;  %v12545_v21 = vld [vmem:[%s15745_s14] ss:$0 sm:$0xff] }
 0x3fb   : > { %10936 = vmatpush.xpose.msk.msra.mxu2 %vm654_vm0, %v12178_v4 }
 0x3fc   : > { %1418 = vrot.lane.b32.xlu2 %v12488_v23, %s12029_s25  ;;  %v1840_v24 = vrot.slane %v12488_v23, 3  ;;  %v1838_v27 = vrot.slane %v12488_v23, 1  ;;  %v1845_v38 = vperm.slane %v12488_v23, 0  ;;  %v1841_v40 = vrot.slane %v12488_v23, 4 }
 0x3fd   : > { %v1839_v54 = vrot.slane %v12488_v23, 2  ;;  %v1842_v13 = vrot.slane %v12488_v23, 5  ;;  %v1844_v16 = vrot.slane %v12488_v23, 7  ;;  %v1843_v17 = vrot.slane %v12488_v23, 6 }
 0x3fe   : > { %v1920_v32 = vperm.slane %v1840_v24, 0  ;;  %v1870_v35 = vperm.slane %v1838_v27, 0  ;;  %v1945_v43 = vperm.slane %v1841_v40, 0 }
 0x3ff   : > { %v1895_v10 = vperm.slane %v1839_v54, 0  ;;  %v1970_v15 = vperm.slane %v1842_v13, 0  ;;  %v2020_v5 = vperm.slane %v1844_v16, 0  ;;  %v1995_v18 = vperm.slane %v1843_v17, 0 }
 0x400   : > { %1921 = vrot.lane.b32.xlu0 %v1920_v32, %s12029_s25  ;;  %1871 = vrot.lane.b32.xlu1 %v1870_v35, %s12029_s25 }
 0x404   : > { %1846 = vrot.lane.b32.xlu2 %v1845_v38, %s12029_s25 }
 0x408   : > { %1946 = vrot.lane.b32.xlu1 %v1945_v43, %s12029_s25 }
 0x40c   : > { %1896 = vrot.lane.b32.xlu2 %v1895_v10, %s12029_s25 }
 0x410   : > { %1971 = vrot.lane.b32.xlu1 %v1970_v15, %s12029_s25 }
 0x414   : > { %2021 = vrot.lane.b32.xlu2 %v2020_v5, %s12029_s25 }
 0x41c   : > { %1996 = vrot.lane.b32.xlu2 %v1995_v18, %s12029_s25 }
 0x456   : > { %v12534_v20 = vpop.permute.xlu2 %1418 }
 0x457   : > { %1421 = vst.msk [vmem:[#allocation2] sm:$0xff] %vm654_vm0, %v12534_v20  ;;  %10929 = vmatmul.msk.f32.vlgmr.msrb.gmra.mxu2 %vm654_vm0, %v12534_v20 }
 0x458   : > { %10944 = vmatpush.xpose.msk.msrb.mxu2 %vm654_vm0, %v12197_v7 }
 0x45e   : > { %v1847_v24 = vpop.permute.xlu2 %1846 }
 0x466   : > { %v1897_v43 = vpop.permute.xlu2 %1896 }
 0x46e   : > { %v2022_v5 = vpop.permute.xlu2 %2021 }
 0x472   : > { %v1872_v54 = vpop.permute.xlu1 %1871  ;;  %v1922_v18 = vpop.permute.xlu0 %1921 }
 0x47a   : > { %v1947_v17 = vpop.permute.xlu1 %1946 }
 0x4da   : > { %v1444_v27 = vpop.f32.mrf.mxu2 }
 0x4db   : > { %v1445_v32 = vadd.f32 %v12545_v21, %v1444_v27  ;;  %v1997_v27 = vpop.permute.xlu2 %1996 }
 0x4dd   : > { %10931 = vmatmul.msk.f32.vlgmr.msrb.gmra.mxu3 %vm654_vm0, %v1445_v32  ;;  %v1448_v35 = vrot.slane %v1445_v32, 1  ;;  %v1449_v38 = vrot.slane %v1445_v32, 2  ;;  %v1450_v40 = vrot.slane %v1445_v32, 3  ;;  %v1451_v10 = vrot.slane %v1445_v32, 4 }
 0x4de   : > { %10948 = vmatpush.xpose.msk.msrb.mxu3 %vm654_vm0, %v12159_v1  ;;  %v1452_v13 = vrot.slane %v1445_v32, 5  ;;  %v1453_v15 = vrot.slane %v1445_v32, 6  ;;  %v1454_v16 = vrot.slane %v1445_v32, 7  ;;  %v1972_v32 = vpop.permute.xlu1 %1971 }
 0x4df   : > { %10933 = vmatmul.msk.f32.vlgmr.msra.gmra.mxu0 %vm654_vm0, %v1448_v35  ;;  %10935 = vmatmul.msk.f32.vlgmr.msra.gmra.mxu1 %vm654_vm0, %v1449_v38 }
 0x4e0   : > { %10937 = vmatmul.msk.f32.vlgmr.msra.gmra.mxu2 %vm654_vm0, %v1450_v40  ;;  %10950 = vmatpush.xpose.msk.msra.mxu0 %vm654_vm0, %v12169_v3 }
 0x4e1   : > { %10954 = vmatpush.xpose.msk.msra.mxu2 %vm654_vm0, %v12178_v4  ;;  %10952 = vmatpush.xpose.msk.msra.mxu1 %vm654_vm0, %v12164_v2 }
 0x4e5   : > { %10939 = vmatmul.msk.f32.vlgmr.msra.gmra.mxu3 %vm654_vm0, %v1451_v10 }
 0x4e6   : > { %10956 = vmatpush.xpose.msk.msra.mxu3 %vm654_vm0, %v12209_v11 }
 0x4e7   : > { %10941 = vmatmul.msk.f32.vlgmr.msrb.gmra.mxu0 %vm654_vm0, %v1452_v13  ;;  %10943 = vmatmul.msk.f32.vlgmr.msrb.gmra.mxu1 %vm654_vm0, %v1453_v15 }
 0x4e8   : > { %10945 = vmatmul.msk.f32.vlgmr.msrb.gmra.mxu2 %vm654_vm0, %v1454_v16  ;;  %10958 = vmatpush.xpose.msk.msrb.mxu0 %vm654_vm0, %v12214_v12 }
 0x4e9   : > { %10962 = vmatpush.xpose.msk.msrb.mxu2 %vm654_vm0, %v12197_v7  ;;  %10960 = vmatpush.xpose.msk.msrb.mxu1 %vm654_vm0, %v12192_v6 }
 0x4ed   : > { %10949 = vmatmul.msk.f32.vlgmr.msrb.gmra.mxu3 %vm654_vm0, %v1847_v24 }
 0x4ee   : > { %2217 = vmatpush.msrb.mxu3 %v12159_v1 }
 0x4ef   : > { %10951 = vmatmul.msk.f32.vlgmr.msra.gmra.mxu0 %vm654_vm0, %v1872_v54  ;;  %10953 = vmatmul.msk.f32.vlgmr.msra.gmra.mxu1 %vm654_vm0, %v1897_v43 }
 0x4f0   : > { %10955 = vmatmul.msk.f32.vlgmr.msra.gmra.mxu2 %vm654_vm0, %v1922_v18  ;;  %2240 = vmatpush.msra.mxu0 %v12169_v3 }
 0x4f1   : > { %2286 = vmatpush.msra.mxu2 %v12178_v4  ;;  %2263 = vmatpush.msra.mxu1 %v12164_v2 }
 0x4f5   : > { %10957 = vmatmul.msk.f32.vlgmr.msra.gmra.mxu3 %vm654_vm0, %v1947_v17 }
 0x4f6   : > { %2309 = vmatpush.msra.mxu3 %v12209_v11 }
 0x4f7   : > { %10959 = vmatmul.msk.f32.vlgmr.msrb.gmra.mxu0 %vm654_vm0, %v1972_v32  ;;  %10961 = vmatmul.msk.f32.vlgmr.msrb.gmra.mxu1 %vm654_vm0, %v1997_v27 }
 0x4f8   : > { %10963 = vmatmul.msk.f32.vlgmr.msrb.gmra.mxu2 %vm654_vm0, %v2022_v5  ;;  %2332 = vmatpush.msrb.mxu0 %v12214_v12 }
 0x4f9   : > { %2378 = vmatpush.msrb.mxu2 %v12197_v7  ;;  %2355 = vmatpush.msrb.mxu1 %v12192_v6 }
 0x55c   : > { %v12588_v1 = vpop.f32.mrf.mxu0  ;;  %v12590_v2 = vpop.f32.mrf.mxu1 }
 0x55d   : > { %15814 = vst [vmem:[#allocation22_spill] sm:$0xff] %v12588_v1 }
 0x55e   : > { %15815 = vst [vmem:[#allocation23_spill] sm:$0xff] %v12590_v2 }
 0x560   : > { %v12592_v3 = vpop.f32.mrf.mxu3 }
 0x561   : > { %15816 = vst [vmem:[#allocation24_spill] sm:$0xff] %v12592_v3 }
 0x563   : > { %v12594_v4 = vpop.f32.mrf.mxu2 }
 0x564   : > { %15817 = vst [vmem:[#allocation25_spill] sm:$0xff] %v12594_v4  ;;  %v12596_v11 = vpop.f32.mrf.mxu0  ;;  %v12598_v24 = vpop.f32.mrf.mxu1 }
 0x565   : > { %15818 = vst [vmem:[#allocation26_spill] sm:$0xff] %v12596_v11 }
 0x566   : > { %15819 = vst [vmem:[#allocation27_spill] sm:$0xff] %v12598_v24 }
 0x568   : > { %v12600_v35 = vpop.f32.mrf.mxu3 }
 0x569   : > { %15820 = vst [vmem:[#allocation28_spill] sm:$0xff] %v12600_v35 }
 0x56b   : > { %v12602_v38 = vpop.f32.mrf.mxu2 }
 0x56c   : > { %15821 = vst [vmem:[#allocation29_spill] sm:$0xff] %v12602_v38  ;;  %v1892_v12 = vpop.f32.mrf.mxu0  ;;  %v1917_v7 = vpop.f32.mrf.mxu1 }
 0x56d   : > { %v2054_v40 = vmul.f32 0.17677669, %v1892_v12  ;;  %v2055_v54 = vmul.f32 0.17677669, %v1917_v7 }
 0x56f   : > { %v2062_v13 = vadd.f32 %v2054_v40, %v12247_v22  ;;  %v2063_v32 = vadd.f32 %v2055_v54, %v12251_v26 }
 0x570   : > { %v1867_v6 = vpop.f32.mrf.mxu3 }
 0x571   : > { %v2053_v43 = vmul.f32 0.17677669, %v1867_v6  ;;  %v2077_v24 = vrot.slane %v2062_v13, 7  ;;  %v2079_v40 = vrot.slane %v2063_v32, 6 }
 0x573   : > { %v1942_v10 = vpop.f32.mrf.mxu2  ;;  %v2061_v17 = vadd.f32 %v2053_v43, %v12244_v19 }
 0x574   : > { %v2056_v15 = vmul.f32 0.17677669, %v1942_v10  ;;  %v1992_v16 = vpop.f32.mrf.mxu0  ;;  %v2017_v5 = vpop.f32.mrf.mxu1 }
 0x575   : > { %v2058_v27 = vmul.f32 0.17677669, %v1992_v16  ;;  %v2059_v38 = vmul.f32 0.17677669, %v2017_v5  ;;  %v2078_v6 = vsel %vm904_vm1, %v2077_v24, %v2061_v17 }
 0x576   : > { %v2064_v18 = vadd.f32 %v2056_v15, %v12254_v28  ;;  %v2080_v15 = vsel %vm907_vm2, %v2079_v40, %v2078_v6 }
 0x577   : > { %v2066_v35 = vadd.f32 %v2058_v27, %v12260_v33  ;;  %v2067_v10 = vadd.f32 %v2059_v38, %v12270_v49 }
 0x578   : > { %v1967_v11 = vpop.f32.mrf.mxu3  ;;  %v2081_v7 = vrot.slane %v2064_v18, 5 }
 0x579   : > { %v2057_v12 = vmul.f32 0.17677669, %v1967_v11  ;;  %v2085_v5 = vrot.slane %v2066_v35, 3  ;;  %v2087_v3 = vrot.slane %v2067_v10, 2 }
 0x57a   : > { %v2082_v54 = vsel %vm910_vm3, %v2081_v7, %v2080_v15 }
 0x57b   : > { %v2065_v2 = vadd.f32 %v2057_v12, %v12257_v29  ;;  %v2042_v43 = vpop.f32.mrf.mxu2 }
 0x57c   : > { %v2060_v4 = vmul.f32 0.17677669, %v2042_v43 }
 0x57d   : > { %v2083_v16 = vrot.slane %v2065_v2, 4 }
 0x57e   : > { %v2068_v11 = vadd.f32 %v2060_v4, %v12273_v51 }
 0x57f   : > { %v2084_v24 = vsel %vm913_vm4, %v2083_v16, %v2082_v54 }
 0x580   : > { %v2089_v1 = vrot.slane %v2068_v11, 1  ;;  %v2086_v27 = vsel %vm916_vm5, %v2085_v5, %v2084_v24 }
 0x581   : > { %v2088_v38 = vsel %vm919_vm6, %v2087_v3, %v2086_v27 }
 0x582   : > { %v2090_v12 = vsel %vm922_vm7, %v2089_v1, %v2088_v38 }
 0x583   : > { %v2092_v43 = vsel %vm925_vm8, %v2090_v12, -inf }
 0x584   : > { %2093 = vmax.xlane.f32.xlu0 %v2092_v43 }
 0x5f7   : > { %v2094_v6 = vpop.xlane.xlu0 %2093 }
 0x5f8   : > { %v2096_v40 = vrot.slane %v2094_v6, 1  ;;  %v2097_v33 = vrot.slane %v2094_v6, 2  ;;  %v2098_v7 = vrot.slane %v2094_v6, 3  ;;  %v2099_v15 = vrot.slane %v2094_v6, 4 }
 0x5f9   : > { %v2100_v49 = vrot.slane %v2094_v6, 5  ;;  %v2111_v4 = vsub.f32 %v2061_v17, %v2094_v6  ;;  %v2101_v51 = vrot.slane %v2094_v6, 6  ;;  %v2102_v29 = vrot.slane %v2094_v6, 7 }
 0x5fa   : > { %v2112_v16 = vsub.f32 %v2062_v13, %v2096_v40  ;;  %v2113_v54 = vsub.f32 %v2063_v32, %v2097_v33  ;;  %v2114_v28 = vsub.f32 %v2064_v18, %v2098_v7  ;;  %v2115_v5 = vsub.f32 %v2065_v2, %v2099_v15 }
 0x5fb   : > { %v2119_v24 = vmul.f32 1.442695, %v2111_v4  ;;  %v2116_v3 = vsub.f32 %v2066_v35, %v2100_v49  ;;  %v2117_v27 = vsub.f32 %v2067_v10, %v2101_v51  ;;  %v2118_v43 = vsub.f32 %v2068_v11, %v2102_v29 }
 0x5fc   : > { %v2121_v1 = vmul.f32 1.442695, %v2112_v16  ;;  %v2123_v38 = vmul.f32 1.442695, %v2113_v54  ;;  %v2125_v12 = vmul.f32 1.442695, %v2114_v28 }
 0x5fd   : > { %11424 = vpow2.f32 %v2119_v24  ;;  %v2127_v19 = vmul.f32 1.442695, %v2115_v5  ;;  %v2129_v22 = vmul.f32 1.442695, %v2116_v3  ;;  %v2131_v26 = vmul.f32 1.442695, %v2117_v27 }
 0x5fe   : > { %11426 = vpow2.f32 %v2121_v1  ;;  %v2133_v17 = vmul.f32 1.442695, %v2118_v43 }
 0x5ff   : > { %11428 = vpow2.f32 %v2123_v38 }
 0x600   : > { %11430 = vpow2.f32 %v2125_v12 }
 0x601   : > { %11432 = vpow2.f32 %v2127_v19 }
 0x602   : > { %11434 = vpow2.f32 %v2129_v22 }
 0x603   : > { %v11425_v33 = vpop.eup %11424  ;;  %11436 = vpow2.f32 %v2131_v26 }
 0x604   : > { %v11427_v2 = vpop.eup %11426  ;;  %11438 = vpow2.f32 %v2133_v17 }
 0x605   : > { %v11429_v49 = vpop.eup %11428  ;;  %v2143_v51 = vrot.slane %v11427_v2, 7 }
 0x606   : > { %v11431_v35 = vpop.eup %11430  ;;  %v2145_v13 = vrot.slane %v11429_v49, 6 }
 0x607   : > { %v11433_v28 = vpop.eup %11432  ;;  %v2144_v29 = vsel %vm904_vm1, %v2143_v51, %v11425_v33  ;;  %v2147_v18 = vrot.slane %v11431_v35, 5 }
 0x608   : > { %v11435_v32 = vpop.eup %11434  ;;  %v2146_v10 = vsel %vm907_vm2, %v2145_v13, %v2144_v29  ;;  %v2149_v11 = vrot.slane %v11433_v28, 4 }
 0x609   : > { %v11437_v6 = vpop.eup %11436  ;;  %v2148_v19 = vsel %vm910_vm3, %v2147_v18, %v2146_v10  ;;  %v2151_v22 = vrot.slane %v11435_v32, 3 }
 0x60a   : > { %v11439_v40 = vpop.eup %11438  ;;  %v2150_v26 = vsel %vm913_vm4, %v2149_v11, %v2148_v19  ;;  %v2153_v7 = vrot.slane %v11437_v6, 2 }
 0x60b   : > { %v2152_v15 = vsel %vm916_vm5, %v2151_v22, %v2150_v26  ;;  %v2155_v4 = vrot.slane %v11439_v40, 1 }
 0x60c   : > { %v2154_v16 = vsel %vm919_vm6, %v2153_v7, %v2152_v15 }
 0x60d   : > { %v2156_v54 = vsel %vm922_vm7, %v2155_v4, %v2154_v16 }
 0x60e   : > { %v2158_v5 = vsel %vm925_vm8, %v2156_v54, 0.0 }
 0x60f   : > { %2159 = vadd.xlane.f32.xlu1 %v2158_v5 }
 0x682   : > { %v2160_v24 = vpop.xlane.xlu1 %2159 }
 0x683   : > { %11440 = vrcp.f32 %v2160_v24  ;;  %v2172_v38 = vand.u32 2147483648, %v2160_v24  ;;  %v2170_v43 = vand.u32 2147483647, %v2160_v24  ;;  %vm2166_vm11 = vweird.f32 %v2160_v24 }
 0x685   : > { %v2173_v51 = vor.u32 1.1754944e-38, %v2172_v38  ;;  %vm2171_vm13 = vcmp.eq.f32.partialorder %v2170_v43, 8.507059e+37 }
 0x689   : > { %v11441_v3 = vpop.eup %11440 }
 0x68a   : > { %v2162_v27 = vmul.f32 %v11441_v3, %v2160_v24  ;;  %vm2167_vm10 = vweird.f32 %v11441_v3 }
 0x68b   : > { %vm2168_vm12 = vmor %vm2166_vm11, %vm2167_vm10 }
 0x68c   : > { %v2163_v1 = vsub.f32 1.0, %v2162_v27 }
 0x68e   : > { %v2164_v12 = vmul.f32 %v11441_v3, %v2163_v1 }
 0x690   : > { %v2165_v17 = vadd.f32 %v11441_v3, %v2164_v12 }
 0x692   : > { %v2169_v13 = vsel %vm2168_vm12, %v11441_v3, %v2165_v17 }
 0x693   : > { %v2174_v29 = vsel %vm2171_vm13, %v2173_v51, %v2169_v13 }
 0x694   : > { %v2191_v18 = vmul.f32 %v11425_v33, %v2174_v29  ;;  %v2176_v10 = vrot.slane %v2174_v29, 1  ;;  %v2177_v11 = vrot.slane %v2174_v29, 2  ;;  %v2178_v19 = vrot.slane %v2174_v29, 3 }
 0x695   : > { %v2179_v15 = vrot.slane %v2174_v29, 4  ;;  %v2180_v33 = vrot.slane %v2174_v29, 5  ;;  %v2181_v4 = vrot.slane %v2174_v29, 6 }
 0x696   : > { %10964 = vmatmul.msk.f32.vlgmr.msrb.gmra.mxu3 %vm925_vm8, %v2191_v18  ;;  %v2192_v22 = vmul.f32 %v11427_v2, %v2176_v10  ;;  %v2193_v26 = vmul.f32 %v11429_v49, %v2177_v11  ;;  %v2194_v7 = vmul.f32 %v11431_v35, %v2178_v19  ;;  %v2182_v2 = vrot.slane %v2174_v29, 7 }
 0x697   : > { %2406 = vmatpush.msrb.mxu3 %v12304_v39  ;;  %v2195_v39 = vmul.f32 %v11433_v28, %v2179_v15 }
 0x698   : > { %10965 = vmatmul.msk.f32.vlgmr.msra.gmra.mxu0 %vm925_vm8, %v2192_v22  ;;  %10966 = vmatmul.msk.f32.vlgmr.msra.gmra.mxu1 %vm925_vm8, %v2193_v26  ;;  %v12728_v22 = vld [vmem:[%s15803_s3 + $0x30] sm:$0xff] }
 0x699   : > { %10967 = vmatmul.msk.f32.vlgmr.msra.gmra.mxu2 %vm925_vm8, %v2194_v7  ;;  %2470 = vmatpush.msra.mxu1 %v12320_v46  ;;  %v2196_v46 = vmul.f32 %v11435_v32, %v2180_v33  ;;  %v12711_v32 = vld [vmem:[%s15803_s3 + $0x10] sm:$0xff] }
 0x69a   : > { %2407 = vmatpush.msrb.mxu3 %v12310_v41  ;;  %2450 = vmatpush.msra.mxu0 %v12358_v55  ;;  %v2197_v41 = vmul.f32 %v11437_v6, %v2181_v4  ;;  %v2198_v55 = vmul.f32 %v11439_v40, %v2182_v2  ;;  %v12718_v6 = vld [vmem:[%s15803_s3 + $0x28] sm:$0xff] }
 0x69b   : > { %2471 = vmatpush.msra.mxu1 %v12337_v50  ;;  %2512 = vmatpush.msra.mxu2 %v12315_v45  ;;  %v12662_v45 = vld [vmem:[%s15803_s3] sm:$0xff]  ;;  %v12688_v50 = vld [vmem:[%s15803_s3 + $0x8] sm:$0xff] }
 0x69c   : > { %2408 = vmatpush.msrb.mxu3 %v12327_v47  ;;  %2451 = vmatpush.msra.mxu0 %v12382_v59  ;;  %v12676_v47 = vld [vmem:[%s15803_s3 + $0x18] sm:$0xff] }
 0x69d   : > { %2472 = vmatpush.msra.mxu1 %v12363_v56  ;;  %2513 = vmatpush.msra.mxu2 %v12332_v48  ;;  %v10947_v48 = vld [vmem:[%s15813_s30 + $0x8] sm:$0xff] }
 0x69e   : > { %10968 = vmatmul.msk.f32.vlgmr.msra.gmra.mxu3 %vm925_vm8, %v2195_v39  ;;  %2452 = vmatpush.msra.mxu0 %v12401_v62 }
 0x69f   : > { %2473 = vmatpush.msra.mxu1 %v12387_v60  ;;  %2409 = vmatpush.msrb.mxu3 %v12343_v52  ;;  %v12695_v52 = vld [vmem:[%s15803_s3 + $0x20] sm:$0xff] }
 0x6a0   : > { %10969 = vmatmul.msk.f32.vlgmr.msrb.gmra.mxu0 %vm925_vm8, %v2196_v46  ;;  %10970 = vmatmul.msk.f32.vlgmr.msrb.gmra.mxu1 %vm925_vm8, %v2197_v41 }
 0x6a1   : > { %10971 = vmatmul.msk.f32.vlgmr.msrb.gmra.mxu2 %vm925_vm8, %v2198_v55  ;;  %2532 = vmatpush.msra.mxu3 %v12375_v58 }
 0x6a2   : > { %2514 = vmatpush.msra.mxu2 %v12348_v53  ;;  %2453 = vmatpush.msra.mxu0 %v12415_v0 }
 0x6a3   : > { %2533 = vmatpush.msra.mxu3 %v12394_v61  ;;  %2594 = vmatpush.msrb.mxu1 %v12497_v30 }
 0x6a4   : > { %2555 = vmatpush.msrb.mxu0 %v12448_v44  ;;  %2515 = vmatpush.msra.mxu2 %v12370_v57 }
 0x6a5   : > { %2534 = vmatpush.msra.mxu3 %v12408_v63  ;;  %2595 = vmatpush.msrb.mxu1 %v12502_v31 }
 0x6a6   : > { %2556 = vmatpush.msrb.mxu0 %v12453_v34  ;;  %10980 = vmatpush.xpose.msk.msrb.mxu2 %vm654_vm0, %v12662_v45 }
 0x6a7   : > { %2535 = vmatpush.msra.mxu3 %v12423_v8  ;;  %2596 = vmatpush.msrb.mxu1 %v12508_v36 }
 0x6a8   : > { %2557 = vmatpush.msrb.mxu0 %v12459_v25  ;;  %10974 = vmatmul.msk.f32.vlgmr.msra.gmra.mxu1 %vm654_vm0, %v12534_v20 }
 0x6a9   : > { %2597 = vmatpush.msrb.mxu1 %v12516_v37  ;;  %10972 = vmatmul.msk.f32.vlgmr.msrb.gmra.mxu3 %vm654_vm0, %v10947_v48 }
 0x6aa   : > { %2558 = vmatpush.msrb.mxu0 %v12465_v42  ;;  %10976 = vmatmul.msk.f32.vlgmr.msra.gmra.mxu2 %vm654_vm0, %v10947_v48 }
 0x6ab   : > { %10986 = vmatpush.xpose.msk.msra.mxu1 %vm654_vm0, %v12676_v47  ;;  %10982 = vmatpush.xpose.msk.msrb.mxu3 %vm654_vm0, %v12688_v50 }
 0x6ac   : > { %10988 = vmatpush.xpose.msk.msra.mxu2 %vm654_vm0, %v12695_v52 }
 0x715   : > { %v2242_v53 = vpop.f32.mrf.mxu0  ;;  %v2265_v56 = vpop.f32.mrf.mxu1 }
 0x716   : > { %v2422_v59 = vrot.slane %v2242_v53, 7  ;;  %v2424_v62 = vrot.slane %v2265_v56, 6 }
 0x719   : > { %v2219_v57 = vpop.f32.mrf.mxu3 }
 0x71a   : > { %v2423_v60 = vsel %vm904_vm1, %v2422_v59, %v2219_v57 }
 0x71b   : > { %v2425_v44 = vsel %vm907_vm2, %v2424_v62, %v2423_v60 }
 0x71c   : > { %v2288_v58 = vpop.f32.mrf.mxu2 }
 0x71d   : > { %v2426_v61 = vrot.slane %v2288_v58, 5  ;;  %v2334_v63 = vpop.f32.mrf.mxu0  ;;  %v2357_v0 = vpop.f32.mrf.mxu1 }
 0x71e   : > { %v2430_v42 = vrot.slane %v2334_v63, 3  ;;  %v2432_v30 = vrot.slane %v2357_v0, 2 }
 0x71f   : > { %v2427_v25 = vsel %vm910_vm3, %v2426_v61, %v2425_v44 }
 0x721   : > { %v2311_v8 = vpop.f32.mrf.mxu3 }
 0x722   : > { %v2428_v34 = vrot.slane %v2311_v8, 4 }
 0x724   : > { %v2429_v31 = vsel %vm913_vm4, %v2428_v34, %v2427_v25  ;;  %v2380_v36 = vpop.f32.mrf.mxu2 }
 0x725   : > { %v2431_v37 = vsel %vm916_vm5, %v2430_v42, %v2429_v31  ;;  %v2434_v49 = vrot.slane %v2380_v36, 1  ;;  %v2475_v5 = vpop.f32.mrf.mxu1  ;;  %v12764_v42 = vld [vmem:[%s15803_s3 + $0x38] sm:$0xff] }
 0x726   : > { %v2433_v35 = vsel %vm919_vm6, %v2432_v30, %v2431_v37 }
 0x727   : > { %v2435_v28 = vsel %vm922_vm7, %v2434_v49, %v2433_v35 }
 0x728   : > { %10973 = vmatmul.msk.f32.vlgmr.msra.gmra.mxu0 %vm654_vm0, %v2435_v28  ;;  %10977 = vmatmul.msk.f32.vlgmr.msra.gmra.mxu3 %vm654_vm0, %v2435_v28 }
 0x729   : > { %10984 = vmatpush.xpose.msk.msra.mxu0 %vm654_vm0, %v12711_v32  ;;  %10990 = vmatpush.xpose.msk.msra.mxu3 %vm654_vm0, %v12718_v6 }
 0x72c   : > { %v2411_v40 = vpop.f32.mrf.mxu3 }
 0x72d   : > { %v2517_v26 = vpop.f32.mrf.mxu2 }
 0x7a5   : > { %v2455_v16 = vpop.f32.mrf.mxu0 }
 0x7a6   : > { %v2456_v54 = vadd.f32 %v2455_v16, %v2411_v40 }
 0x7a8   : > { %v2478_v24 = vadd.f32 %v2475_v5, %v2456_v54 }
 0x7aa   : > { %v2479_v3 = vadd.f32 %v12474_v14, %v2478_v24 }
 0x7ab   : > { %v2537_v7 = vpop.f32.mrf.mxu3 }
 0x7ac   : > { %v10975_v27 = vmul.f32 -1.442695, %v2479_v3  ;;  %v2538_v15 = vadd.f32 %v2537_v7, %v2517_v26 }
 0x7ae   : > { %11442 = vpow2.f32 %v10975_v27 }
 0x7b4   : > { %v11443_v1 = vpop.eup %11442 }
 0x7b5   : > { %v2483_v38 = vadd.f32 1.0, %v11443_v1 }
 0x7b7   : > { %11444 = vrcp.f32 %v2483_v38  ;;  %v2495_v51 = vand.u32 2147483648, %v2483_v38  ;;  %v2493_v29 = vand.u32 2147483647, %v2483_v38  ;;  %vm2489_vm15 = vweird.f32 %v2483_v38 }
 0x7b9   : > { %v2496_v10 = vor.u32 1.1754944e-38, %v2495_v51  ;;  %vm2494_vm10 = vcmp.eq.f32.partialorder %v2493_v29, 8.507059e+37 }
 0x7bd   : > { %v11445_v12 = vpop.eup %11444 }
 0x7be   : > { %v2485_v43 = vmul.f32 %v11445_v12, %v2483_v38  ;;  %vm2490_vm14 = vweird.f32 %v11445_v12 }
 0x7bf   : > { %vm2491_vm9 = vmor %vm2489_vm15, %vm2490_vm14 }
 0x7c0   : > { %v2486_v17 = vsub.f32 1.0, %v2485_v43 }
 0x7c2   : > { %v2487_v13 = vmul.f32 %v11445_v12, %v2486_v17 }
 0x7c4   : > { %v2488_v18 = vadd.f32 %v11445_v12, %v2487_v13 }
 0x7c6   : > { %v2492_v11 = vsel %vm2491_vm9, %v11445_v12, %v2488_v18 }
 0x7c7   : > { %v2497_v19 = vsel %vm2494_vm10, %v2496_v10, %v2492_v11 }
 0x7c8   : > { %v2499_v14 = vmul.f32 %v2497_v19, %v12534_v20  ;;  %v2566_v20 = vsub.f32 1.0, %v2497_v19 }
 0x7ca   : > { %10978 = vmatmul.msk.f32.vlgmr.msrb.gmra.mxu0 %vm654_vm0, %v2499_v14  ;;  %v2567_v41 = vmul.f32 %v2566_v20, %v12488_v23  ;;  %v15831_v20 = vld [vmem:[#allocation15_spill] sm:$0xff] }
 0x7cb   : > { %10992 = vmatpush.xpose.msk.msrb.mxu0 %vm654_vm0, %v12728_v22 }
 0x847   : > { %v2560_v33 = vpop.f32.mrf.mxu0 }
 0x848   : > { %v2563_v4 = vadd.f32 %v2560_v33, %v2538_v15 }
 0x84a   : > { %v2564_v2 = vadd.f32 %v12484_v9, %v2563_v4 }
 0x84c   : > { %11446 = vtanh.f32 %v2564_v2  ;;  %v15830_v2 = vld [vmem:[#allocation16_spill] sm:$0xff] }
 0x852   : > { %v11447_v39 = vpop.eup %11446 }
 0x853   : > { %2569 = vrot.lane.b32.xlu2 %v11447_v39, %s12028_s1 }
 0x8ad   : > { %v2570_v46 = vpop.permute.xlu2 %2569 }
 0x8ae   : > { %v2572_v55 = vmul.f32 %v2570_v46, %v2497_v19 }
 0x8b0   : > { %v12735_v48 = vadd.f32 %v2572_v55, %v2567_v41 }
 0x8b2   : > { %2575 = vrot.lane.b32.xlu2 %v12735_v48, %s12029_s25  ;;  %v2998_v53 = vrot.slane %v12735_v48, 5  ;;  %v2997_v56 = vrot.slane %v12735_v48, 4  ;;  %v3001_v58 = vperm.slane %v12735_v48, 0  ;;  %v2994_v23 = vrot.slane %v12735_v48, 1 }
 0x8b3   : > { %v2995_v60 = vrot.slane %v12735_v48, 2  ;;  %v2996_v62 = vrot.slane %v12735_v48, 3  ;;  %v2999_v0 = vrot.slane %v12735_v48, 6  ;;  %v3000_v44 = vrot.slane %v12735_v48, 7 }
 0x8b4   : > { %v3126_v57 = vperm.slane %v2998_v53, 0  ;;  %v3101_v9 = vperm.slane %v2997_v56, 0  ;;  %v3026_v59 = vperm.slane %v2994_v23, 0  ;;  %v15832_v53 = vld [vmem:[#allocation14_spill] sm:$0xff] }
 0x8b5   : > { %v3051_v61 = vperm.slane %v2995_v60, 0  ;;  %v3076_v63 = vperm.slane %v2996_v62, 0  ;;  %v3151_v8 = vperm.slane %v2999_v0, 0  ;;  %v3176_v34 = vperm.slane %v3000_v44, 0  ;;  %v15834_v44 = vld [vmem:[#allocation18_spill] sm:$0xff] }
 0x8b6   : > { %3127 = vrot.lane.b32.xlu1 %v3126_v57, %s12029_s25  ;;  %3102 = vrot.lane.b32.xlu0 %v3101_v9, %s12029_s25  ;;  %v15833_v9 = vld [vmem:[#allocation17_spill] sm:$0xff] }
 0x8ba   : > { %3002 = vrot.lane.b32.xlu2 %v3001_v58, %s12029_s25 }
 0x8c2   : > { %3027 = vrot.lane.b32.xlu2 %v3026_v59, %s12029_s25 }
 0x8ca   : > { %3052 = vrot.lane.b32.xlu2 %v3051_v61, %s12029_s25 }
 0x8d2   : > { %3077 = vrot.lane.b32.xlu2 %v3076_v63, %s12029_s25 }
 0x8da   : > { %3152 = vrot.lane.b32.xlu2 %v3151_v8, %s12029_s25 }
 0x8e2   : > { %3177 = vrot.lane.b32.xlu2 %v3176_v34, %s12029_s25 }
 0x90c   : > { %v12755_v25 = vpop.permute.xlu2 %2575 }
 0x90d   : > { %2579 = vst.msk [vmem:[#allocation2 + $0x8] sm:$0xff] %vm654_vm0, %v12755_v25  ;;  %10979 = vmatmul.msk.f32.vlgmr.msrb.gmra.mxu1 %vm654_vm0, %v12755_v25 }
 0x90e   : > { %10994 = vmatpush.xpose.msk.msrb.mxu1 %vm654_vm0, %v12764_v42 }
 0x914   : > { %v3003_v30 = vpop.permute.xlu2 %3002 }
 0x91c   : > { %v3028_v31 = vpop.permute.xlu2 %3027 }
 0x924   : > { %v3053_v36 = vpop.permute.xlu2 %3052 }
 0x928   : > { %v3103_v27 = vpop.permute.xlu0 %3102  ;;  %v3128_v1 = vpop.permute.xlu1 %3127 }
 0x98a   : > { %v2599_v37 = vpop.f32.mrf.mxu1 }
 0x98b   : > { %v2600_v49 = vadd.f32 %v12545_v21, %v2599_v37  ;;  %v3078_v21 = vpop.permute.xlu2 %3077 }
 0x98d   : > { %10981 = vmatmul.msk.f32.vlgmr.msrb.gmra.mxu2 %vm654_vm0, %v2600_v49  ;;  %v2603_v35 = vrot.slane %v2600_v49, 1  ;;  %v2604_v28 = vrot.slane %v2600_v49, 2  ;;  %v2605_v40 = vrot.slane %v2600_v49, 3  ;;  %v2606_v16 = vrot.slane %v2600_v49, 4 }
 0x98e   : > { %10999 = vmatpush.xpose.msk.msrb.mxu2 %vm654_vm0, %v12662_v45  ;;  %v2607_v54 = vrot.slane %v2600_v49, 5  ;;  %v2608_v5 = vrot.slane %v2600_v49, 6  ;;  %v2609_v24 = vrot.slane %v2600_v49, 7  ;;  %v15836_v49 = vld [vmem:[#allocation21_spill] sm:$0xff] }
 0x98f   : > { %10983 = vmatmul.msk.f32.vlgmr.msrb.gmra.mxu3 %vm654_vm0, %v2603_v35  ;;  %10985 = vmatmul.msk.f32.vlgmr.msra.gmra.mxu0 %vm654_vm0, %v2604_v28 }
 0x990   : > { %10987 = vmatmul.msk.f32.vlgmr.msra.gmra.mxu1 %vm654_vm0, %v2605_v40  ;;  %11001 = vmatpush.xpose.msk.msrb.mxu3 %vm654_vm0, %v12688_v50  ;;  %v15837_v40 = vld [vmem:[#allocation19_spill] sm:$0xff] }
 0x991   : > { %11003 = vmatpush.xpose.msk.msra.mxu0 %vm654_vm0, %v12711_v32  ;;  %11005 = vmatpush.xpose.msk.msra.mxu1 %vm654_vm0, %v12676_v47 }
 0x993   : > { %v3153_v3 = vpop.permute.xlu2 %3152 }
 0x995   : > { %10989 = vmatmul.msk.f32.vlgmr.msra.gmra.mxu2 %vm654_vm0, %v2606_v16 }
 0x996   : > { %11007 = vmatpush.xpose.msk.msra.mxu2 %vm654_vm0, %v12695_v52 }
 0x997   : > { %10991 = vmatmul.msk.f32.vlgmr.msra.gmra.mxu3 %vm654_vm0, %v2607_v54  ;;  %10993 = vmatmul.msk.f32.vlgmr.msrb.gmra.mxu0 %vm654_vm0, %v2608_v5 }
 0x998   : > { %10995 = vmatmul.msk.f32.vlgmr.msrb.gmra.mxu1 %vm654_vm0, %v2609_v24  ;;  %11009 = vmatpush.xpose.msk.msra.mxu3 %vm654_vm0, %v12718_v6 }
 0x999   : > { %11011 = vmatpush.xpose.msk.msrb.mxu0 %vm654_vm0, %v12728_v22  ;;  %11013 = vmatpush.xpose.msk.msrb.mxu1 %vm654_vm0, %v12764_v42 }
 0x99b   : > { %v3178_v38 = vpop.permute.xlu2 %3177 }
 0x99d   : > { %11000 = vmatmul.msk.f32.vlgmr.msrb.gmra.mxu2 %vm654_vm0, %v3003_v30 }
 0x99e   : > { %3373 = vmatpush.msrb.mxu2 %v12662_v45 }
 0x99f   : > { %11002 = vmatmul.msk.f32.vlgmr.msrb.gmra.mxu3 %vm654_vm0, %v3028_v31  ;;  %11004 = vmatmul.msk.f32.vlgmr.msra.gmra.mxu0 %vm654_vm0, %v3053_v36  ;;  %v15835_v36 = vld [vmem:[#allocation20_spill] sm:$0xff] }
 0x9a0   : > { %11006 = vmatmul.msk.f32.vlgmr.msra.gmra.mxu1 %vm654_vm0, %v3078_v21  ;;  %3396 = vmatpush.msrb.mxu3 %v12688_v50 }
 0x9a1   : > { %3419 = vmatpush.msra.mxu0 %v12711_v32  ;;  %3442 = vmatpush.msra.mxu1 %v12676_v47 }
 0x9a5   : > { %11008 = vmatmul.msk.f32.vlgmr.msra.gmra.mxu2 %vm654_vm0, %v3103_v27 }
 0x9a6   : > { %3465 = vmatpush.msra.mxu2 %v12695_v52 }
 0x9a7   : > { %11010 = vmatmul.msk.f32.vlgmr.msra.gmra.mxu3 %vm654_vm0, %v3128_v1  ;;  %11012 = vmatmul.msk.f32.vlgmr.msrb.gmra.mxu0 %vm654_vm0, %v3153_v3 }
 0x9a8   : > { %11014 = vmatmul.msk.f32.vlgmr.msrb.gmra.mxu1 %vm654_vm0, %v3178_v38  ;;  %3488 = vmatpush.msra.mxu3 %v12718_v6 }
 0x9a9   : > { %3511 = vmatpush.msrb.mxu0 %v12728_v22  ;;  %3534 = vmatpush.msrb.mxu1 %v12764_v42 }
 0xa0c   : > { %v12809_v12 = vpop.f32.mrf.mxu0 }
 0xa0d   : > { %15822 = vst [vmem:[#allocation30_spill] sm:$0xff] %v12809_v12  ;;  %v12811_v43 = vpop.f32.mrf.mxu1 }
 0xa0e   : > { %15823 = vst [vmem:[#allocation31_spill] sm:$0xff] %v12811_v43 }
 0xa10   : > { %v12813_v17 = vpop.f32.mrf.mxu2 }
 0xa11   : > { %15824 = vst [vmem:[#allocation32_spill] sm:$0xff] %v12813_v17 }
 0xa12   : > { %v12815_v51 = vpop.f32.mrf.mxu3 }
 0xa13   : > { %15825 = vst [vmem:[#allocation33_spill] sm:$0xff] %v12815_v51 }
 0xa14   : > { %v12817_v13 = vpop.f32.mrf.mxu0 }
 0xa15   : > { %15826 = vst [vmem:[#allocation34_spill] sm:$0xff] %v12817_v13  ;;  %v12819_v29 = vpop.f32.mrf.mxu1 }
 0xa16   : > { %15827 = vst [vmem:[#allocation35_spill] sm:$0xff] %v12819_v29 }
 0xa18   : > { %v12821_v18 = vpop.f32.mrf.mxu2 }
 0xa19   : > { %15828 = vst [vmem:[#allocation36_spill] sm:$0xff] %v12821_v18 }
 0xa1a   : > { %v12823_v10 = vpop.f32.mrf.mxu3 }
 0xa1b   : > { %15829 = vst [vmem:[#allocation37_spill] sm:$0xff] %v12823_v10 }
 0xa1c   : > { %v3073_v11 = vpop.f32.mrf.mxu0 }
 0xa1d   : > { %v3098_v19 = vpop.f32.mrf.mxu1  ;;  %v3211_v26 = vmul.f32 0.17677669, %v3073_v11 }
 0xa1e   : > { %v3212_v4 = vmul.f32 0.17677669, %v3098_v19 }
 0xa1f   : > { %v3219_v39 = vadd.f32 %v3211_v26, %v15830_v2 }
 0xa20   : > { %v3023_v14 = vpop.f32.mrf.mxu2  ;;  %v3220_v58 = vadd.f32 %v3212_v4, %v15833_v9 }
 0xa21   : > { %v3209_v15 = vmul.f32 0.17677669, %v3023_v14  ;;  %v3235_v60 = vrot.slane %v3219_v39, 6 }
 0xa22   : > { %v3048_v7 = vpop.f32.mrf.mxu3  ;;  %v3237_v31 = vrot.slane %v3220_v58, 5 }
 0xa23   : > { %v3210_v33 = vmul.f32 0.17677669, %v3048_v7  ;;  %v3217_v56 = vadd.f32 %v3209_v15, %v15832_v53 }
 0xa24   : > { %v3173_v41 = vpop.f32.mrf.mxu0 }
 0xa25   : > { %v3218_v46 = vadd.f32 %v3210_v33, %v15831_v20  ;;  %v3198_v55 = vpop.f32.mrf.mxu1  ;;  %v3215_v23 = vmul.f32 0.17677669, %v3173_v41 }
 0xa26   : > { %v3216_v62 = vmul.f32 0.17677669, %v3198_v55 }
 0xa27   : > { %v3233_v57 = vrot.slane %v3218_v46, 7  ;;  %v3223_v37 = vadd.f32 %v3215_v23, %v15835_v36 }
 0xa28   : > { %v3123_v59 = vpop.f32.mrf.mxu2  ;;  %v3224_v35 = vadd.f32 %v3216_v62, %v15836_v49 }
 0xa29   : > { %v3234_v61 = vsel %vm904_vm1, %v3233_v57, %v3217_v56  ;;  %v3213_v63 = vmul.f32 0.17677669, %v3123_v59  ;;  %v3243_v24 = vrot.slane %v3223_v37, 2 }
 0xa2a   : > { %v3148_v0 = vpop.f32.mrf.mxu3  ;;  %v3236_v8 = vsel %vm907_vm2, %v3235_v60, %v3234_v61  ;;  %v3245_v3 = vrot.slane %v3224_v35, 1 }
 0xa2b   : > { %v3221_v34 = vadd.f32 %v3213_v63, %v15834_v44  ;;  %v3214_v30 = vmul.f32 0.17677669, %v3148_v0  ;;  %v3238_v16 = vsel %vm910_vm3, %v3237_v31, %v3236_v8 }
 0xa2d   : > { %v3239_v28 = vrot.slane %v3221_v34, 4  ;;  %v3222_v21 = vadd.f32 %v3214_v30, %v15837_v40 }
 0xa2f   : > { %v3241_v54 = vrot.slane %v3222_v21, 3  ;;  %v3240_v5 = vsel %vm913_vm4, %v3239_v28, %v3238_v16 }
 0xa31   : > { %v3242_v27 = vsel %vm916_vm5, %v3241_v54, %v3240_v5 }
 0xa32   : > { %v3244_v1 = vsel %vm919_vm6, %v3243_v24, %v3242_v27 }
 0xa33   : > { %v3246_v38 = vsel %vm922_vm7, %v3245_v3, %v3244_v1 }
 0xa34   : > { %v3248_v11 = vsel %vm925_vm8, %v3246_v38, -inf }
 0xa35   : > { %3249 = vmax.xlane.f32.xlu0 %v3248_v11 }
 0xaa8   : > { %v3250_v19 = vpop.xlane.xlu0 %3249 }
 0xaa9   : > { %v3252_v14 = vrot.slane %v3250_v19, 1  ;;  %v3253_v26 = vrot.slane %v3250_v19, 2  ;;  %v3254_v7 = vrot.slane %v3250_v19, 3  ;;  %v3255_v15 = vrot.slane %v3250_v19, 4 }
 0xaaa   : > { %v3256_v33 = vrot.slane %v3250_v19, 5  ;;  %v3267_v4 = vsub.f32 %v3217_v56, %v3250_v19  ;;  %v3257_v41 = vrot.slane %v3250_v19, 6  ;;  %v3258_v55 = vrot.slane %v3250_v19, 7 }
 0xaab   : > { %v3268_v57 = vsub.f32 %v3218_v46, %v3252_v14  ;;  %v3269_v23 = vsub.f32 %v3219_v39, %v3253_v26  ;;  %v3270_v59 = vsub.f32 %v3220_v58, %v3254_v7  ;;  %v3271_v60 = vsub.f32 %v3221_v34, %v3255_v15 }
 0xaac   : > { %v3275_v61 = vmul.f32 1.442695, %v3267_v4  ;;  %v3272_v62 = vsub.f32 %v3222_v21, %v3256_v33  ;;  %v3273_v63 = vsub.f32 %v3223_v37, %v3257_v41  ;;  %v3274_v31 = vsub.f32 %v3224_v35, %v3258_v55 }
 0xaad   : > { %v3277_v0 = vmul.f32 1.442695, %v3268_v57  ;;  %v3279_v8 = vmul.f32 1.442695, %v3269_v23  ;;  %v3281_v30 = vmul.f32 1.442695, %v3270_v59 }
 0xaae   : > { %11448 = vpow2.f32 %v3275_v61  ;;  %v3283_v28 = vmul.f32 1.442695, %v3271_v60  ;;  %v3285_v16 = vmul.f32 1.442695, %v3272_v62  ;;  %v3287_v54 = vmul.f32 1.442695, %v3273_v63 }
 0xaaf   : > { %11450 = vpow2.f32 %v3277_v0  ;;  %v3289_v56 = vmul.f32 1.442695, %v3274_v31 }
 0xab0   : > { %11452 = vpow2.f32 %v3279_v8 }
 0xab1   : > { %11454 = vpow2.f32 %v3281_v30 }
 0xab2   : > { %11456 = vpow2.f32 %v3283_v28 }
 0xab3   : > { %11458 = vpow2.f32 %v3285_v16 }
 0xab4   : > { %v11449_v39 = vpop.eup %11448  ;;  %11460 = vpow2.f32 %v3287_v54 }
 0xab5   : > { %v11451_v46 = vpop.eup %11450  ;;  %11462 = vpow2.f32 %v3289_v56 }
 0xab6   : > { %v11453_v58 = vpop.eup %11452  ;;  %v3299_v34 = vrot.slane %v11451_v46, 7 }
 0xab7   : > { %v11455_v37 = vpop.eup %11454  ;;  %v3301_v21 = vrot.slane %v11453_v58, 6 }
 0xab8   : > { %v11457_v5 = vpop.eup %11456  ;;  %v3300_v35 = vsel %vm904_vm1, %v3299_v34, %v11449_v39  ;;  %v3303_v24 = vrot.slane %v11455_v37, 5 }
 0xab9   : > { %v12842_v3 = vpop.eup %11458  ;;  %v3302_v27 = vsel %vm907_vm2, %v3301_v21, %v3300_v35  ;;  %v3305_v1 = vrot.slane %v11457_v5, 4 }
 0xaba   : > { %v12845_v38 = vpop.eup %11460  ;;  %v3304_v11 = vsel %vm910_vm3, %v3303_v24, %v3302_v27  ;;  %v3307_v19 = vrot.slane %v12842_v3, 3  ;;  %v12862_v24 = vld [vmem:[%s15738_s7 + $0x38] sm:$0xff]  ;;  %v12877_v27 = vld [vmem:[%s15738_s7 + $0x30] sm:$0xff] }
 0xabb   : > { %v12849_v14 = vpop.eup %11462  ;;  %v3306_v26 = vsel %vm913_vm4, %v3305_v1, %v3304_v11  ;;  %v3309_v7 = vrot.slane %v12845_v38, 2  ;;  %v12883_v1 = vld [vmem:[%s15738_s7 + $0x18] sm:$0xff] }
 0xabc   : > { %v3308_v15 = vsel %vm916_vm5, %v3307_v19, %v3306_v26  ;;  %v3311_v33 = vrot.slane %v12849_v14, 1  ;;  %v12889_v19 = vld [vmem:[%s15738_s7 + $0x50] sm:$0xff]  ;;  %v12895_v26 = vld [vmem:[%s15740_s9 + $0x38] sm:$0xff] }
 0xabd   : > { %v3310_v4 = vsel %vm919_vm6, %v3309_v7, %v3308_v15  ;;  %v12901_v15 = vld [vmem:[%s15738_s7 + $0x28] sm:$0xff] }
 0xabe   : > { %v3312_v41 = vsel %vm922_vm7, %v3311_v33, %v3310_v4  ;;  %v12907_v33 = vld [vmem:[%s15738_s7 + $0x10] sm:$0xff]  ;;  %v12913_v4 = vld [vmem:[%s15738_s7 + $0x48] sm:$0xff] }
 0xabf   : > { %v3314_v55 = vsel %vm925_vm8, %v3312_v41, 0.0 }
 0xac0   : > { %3315 = vadd.xlane.f32.xlu2 %v3314_v55 }
 0xb33   : > { %v3316_v57 = vpop.xlane.xlu2 %3315 }
 0xb34   : > { %11464 = vrcp.f32 %v3316_v57  ;;  %v3328_v61 = vand.u32 2147483648, %v3316_v57  ;;  %v3326_v63 = vand.u32 2147483647, %v3316_v57  ;;  %vm3322_vm12 = vweird.f32 %v3316_v57 }
 0xb36   : > { %v3329_v8 = vor.u32 1.1754944e-38, %v3328_v61  ;;  %vm3327_vm14 = vcmp.eq.f32.partialorder %v3326_v63, 8.507059e+37  ;;  %v12968_v61 = vld [vmem:[%s15740_s9 + $0x10] sm:$0xff]  ;;  %v12980_v63 = vld [vmem:[%s15740_s9 + $0x20] sm:$0xff] }
 0xb3a   : > { %v11465_v23 = vpop.eup %11464 }
 0xb3b   : > { %v3318_v59 = vmul.f32 %v11465_v23, %v3316_v57  ;;  %vm3323_vm11 = vweird.f32 %v11465_v23  ;;  %v12928_v57 = vld [vmem:[%s15738_s7 + $0x8] sm:$0xff] }
 0xb3c   : > { %vm3324_vm13 = vmor %vm3322_vm12, %vm3323_vm11 }
 0xb3d   : > { %v3319_v60 = vsub.f32 1.0, %v3318_v59  ;;  %v12935_v59 = vld [vmem:[%s15738_s7 + $0x40] sm:$0xff] }
 0xb3f   : > { %v3320_v62 = vmul.f32 %v11465_v23, %v3319_v60  ;;  %v12962_v60 = vld [vmem:[%s15740_s9 + $0x28] sm:$0xff] }
 0xb41   : > { %v3321_v0 = vadd.f32 %v11465_v23, %v3320_v62  ;;  %v12974_v62 = vld [vmem:[%s15740_s9 + $0x58] sm:$0xff] }
 0xb43   : > { %v3325_v30 = vsel %vm3324_vm13, %v11465_v23, %v3321_v0  ;;  %v12986_v0 = vld [vmem:[%s15744_s13 + $0x18] sm:$0xff] }
 0xb44   : > { %v3330_v31 = vsel %vm3327_vm14, %v3329_v8, %v3325_v30  ;;  %v12992_v8 = vld [vmem:[%s15740_s9 + $0x8] sm:$0xff]  ;;  %v12998_v30 = vld [vmem:[%s15740_s9 + $0x50] sm:$0xff] }
 0xb45   : > { %v3347_v28 = vmul.f32 %v11449_v39, %v3330_v31  ;;  %v3332_v16 = vrot.slane %v3330_v31, 1  ;;  %v3333_v54 = vrot.slane %v3330_v31, 2  ;;  %v3334_v56 = vrot.slane %v3330_v31, 3 }
 0xb46   : > { %v3335_v39 = vrot.slane %v3330_v31, 4  ;;  %v3338_v11 = vrot.slane %v3330_v31, 7 }
 0xb47   : > { %11015 = vmatmul.msk.f32.vlgmr.msrb.gmra.mxu2 %vm925_vm8, %v3347_v28  ;;  %v3348_v34 = vmul.f32 %v11451_v46, %v3332_v16  ;;  %v3349_v21 = vmul.f32 %v11453_v58, %v3333_v54  ;;  %v3350_v35 = vmul.f32 %v11455_v37, %v3334_v56  ;;  %v12871_v46 = vld [vmem:[%s15738_s7 + $0x58] sm:$0xff]  ;;  %v3336_v58 = vrot.slane %v3330_v31, 5  ;;  %v13012_v28 = vld [vmem:[%s15740_s9] sm:$0xff]  ;;  %v13018_v16 = vld [vmem:[%s15740_s9 + $0x48] sm:$0xff] }
 0xb48   : > { %3562 = vmatpush.msrb.mxu2 %v12862_v24  ;;  %v3337_v37 = vrot.slane %v3330_v31, 6  ;;  %v3351_v7 = vmul.f32 %v11457_v5, %v3335_v39  ;;  %v12919_v5 = vld [vmem:[%s15740_s9 + $0x30] sm:$0xff]  ;;  %v3354_v23 = vmul.f32 %v12849_v14, %v3338_v11  ;;  %v12956_v14 = vld [vmem:[%s15738_s7] sm:$0xff]  ;;  %v13032_v56 = vld [vmem:[%s15744_s13 + $0x8] sm:$0xff] }
 0xb49   : > { %11016 = vmatmul.msk.f32.vlgmr.msrb.gmra.mxu3 %vm925_vm8, %v3348_v34  ;;  %11017 = vmatmul.msk.f32.vlgmr.msra.gmra.mxu0 %vm925_vm8, %v3349_v21  ;;  %v3352_v41 = vmul.f32 %v12842_v3, %v3336_v58  ;;  %v12941_v3 = vld [vmem:[%s15738_s7 + $0x20] sm:$0xff]  ;;  %v13004_v31 = vld [vmem:[%s15744_s13 + $0x10] sm:$0xff] }
 0xb4a   : > { %11018 = vmatmul.msk.f32.vlgmr.msra.gmra.mxu1 %vm925_vm8, %v3350_v35  ;;  %3626 = vmatpush.msra.mxu0 %v12871_v46  ;;  %v3353_v55 = vmul.f32 %v12845_v38, %v3337_v37  ;;  %v12950_v38 = vld [vmem:[%s15740_s9 + $0x18] sm:$0xff]  ;;  %v13026_v54 = vld [vmem:[%s15740_s9 + $0x40] sm:$0xff]  ;;  %v10998_v21 = vld [vmem:[%s15813_s30 + $0x10] sm:$0xff] }
 0xb4b   : > { %3563 = vmatpush.msrb.mxu2 %v12877_v27  ;;  %3606 = vmatpush.msrb.mxu3 %v12883_v1  ;;  %v13038_v34 = vld [vmem:[%s15744_s13] sm:$0xff] }
 0xb4c   : > { %3627 = vmatpush.msra.mxu0 %v12889_v19  ;;  %3668 = vmatpush.msra.mxu1 %v12895_v26  ;;  %15838 = vst [vmem:[#allocation38_spill] sm:$0xff] %v13038_v34 }
 0xb4d   : > { %3564 = vmatpush.msrb.mxu2 %v12901_v15  ;;  %3607 = vmatpush.msrb.mxu3 %v12907_v33 }
 0xb4e   : > { %3628 = vmatpush.msra.mxu0 %v12913_v4  ;;  %3669 = vmatpush.msra.mxu1 %v12919_v5 }
 0xb4f   : > { %11019 = vmatmul.msk.f32.vlgmr.msra.gmra.mxu2 %vm925_vm8, %v3351_v7  ;;  %3608 = vmatpush.msrb.mxu3 %v12928_v57 }
 0xb50   : > { %3629 = vmatpush.msra.mxu0 %v12935_v59  ;;  %3565 = vmatpush.msrb.mxu2 %v12941_v3 }
 0xb51   : > { %11020 = vmatmul.msk.f32.vlgmr.msra.gmra.mxu3 %vm925_vm8, %v3352_v41  ;;  %11021 = vmatmul.msk.f32.vlgmr.msrb.gmra.mxu0 %vm925_vm8, %v3353_v55 }
 0xb52   : > { %11022 = vmatmul.msk.f32.vlgmr.msrb.gmra.mxu1 %vm925_vm8, %v3354_v23  ;;  %3688 = vmatpush.msra.mxu2 %v12950_v38 }
 0xb53   : > { %3609 = vmatpush.msrb.mxu3 %v12956_v14  ;;  %3670 = vmatpush.msra.mxu1 %v12962_v60 }
 0xb54   : > { %3689 = vmatpush.msra.mxu2 %v12968_v61  ;;  %3750 = vmatpush.msrb.mxu0 %v12986_v0 }
 0xb55   : > { %3711 = vmatpush.msra.mxu3 %v12974_v62  ;;  %3671 = vmatpush.msra.mxu1 %v12980_v63 }
 0xb56   : > { %3690 = vmatpush.msra.mxu2 %v12992_v8  ;;  %3751 = vmatpush.msrb.mxu0 %v13004_v31 }
 0xb57   : > { %3712 = vmatpush.msra.mxu3 %v12998_v30  ;;  %11031 = vmatpush.xpose.msk.msrb.mxu1 %vm654_vm0, %v12662_v45 }
 0xb58   : > { %3691 = vmatpush.msra.mxu2 %v13012_v28  ;;  %3752 = vmatpush.msrb.mxu0 %v13032_v56 }
 0xb59   : > { %3713 = vmatpush.msra.mxu3 %v13018_v16  ;;  %11025 = vmatmul.msk.f32.vlgmr.msra.gmra.mxu0 %vm654_vm0, %v12755_v25 }
 0xb5a   : > { %3753 = vmatpush.msrb.mxu0 %v13038_v34  ;;  %11023 = vmatmul.msk.f32.vlgmr.msrb.gmra.mxu2 %vm654_vm0, %v10998_v21 }
 0xb5b   : > { %3714 = vmatpush.msra.mxu3 %v13026_v54  ;;  %11027 = vmatmul.msk.f32.vlgmr.msra.gmra.mxu1 %vm654_vm0, %v10998_v21 }
 0xb5c   : > { %11037 = vmatpush.xpose.msk.msra.mxu0 %vm654_vm0, %v12676_v47  ;;  %11033 = vmatpush.xpose.msk.msrb.mxu2 %vm654_vm0, %v12688_v50 }
 0xb5d   : > { %11039 = vmatpush.xpose.msk.msra.mxu1 %vm654_vm0, %v12695_v52 }
 0xbc6   : > { %v3421_v35 = vpop.f32.mrf.mxu0 }
 0xbc7   : > { %v3444_v39 = vpop.f32.mrf.mxu1  ;;  %v3580_v7 = vrot.slane %v3421_v35, 6 }
 0xbc8   : > { %v3582_v23 = vrot.slane %v3444_v39, 5 }
 0xbca   : > { %v3375_v58 = vpop.f32.mrf.mxu2 }
 0xbcc   : > { %v3398_v37 = vpop.f32.mrf.mxu3 }
 0xbcd   : > { %v3578_v11 = vrot.slane %v3398_v37, 7 }
 0xbce   : > { %v3513_v13 = vpop.f32.mrf.mxu0 }
 0xbcf   : > { %v3579_v41 = vsel %vm904_vm1, %v3578_v11, %v3375_v58  ;;  %v3536_v10 = vpop.f32.mrf.mxu1  ;;  %v3588_v51 = vrot.slane %v3513_v13, 2 }
 0xbd0   : > { %v3581_v55 = vsel %vm907_vm2, %v3580_v7, %v3579_v41  ;;  %v3590_v34 = vrot.slane %v3536_v10, 1 }
 0xbd1   : > { %v3583_v18 = vsel %vm910_vm3, %v3582_v23, %v3581_v55 }
 0xbd2   : > { %v3467_v29 = vpop.f32.mrf.mxu2 }
 0xbd3   : > { %v3584_v21 = vrot.slane %v3467_v29, 4 }
 0xbd4   : > { %v3490_v43 = vpop.f32.mrf.mxu3 }
 0xbd5   : > { %v3585_v12 = vsel %vm913_vm4, %v3584_v21, %v3583_v18  ;;  %v3586_v17 = vrot.slane %v3490_v43, 3 }
 0xbd6   : > { %v3631_v18 = vpop.f32.mrf.mxu0 }
 0xbd7   : > { %v3587_v37 = vsel %vm916_vm5, %v3586_v17, %v3585_v12  ;;  %v13068_v12 = vld [vmem:[%s15739_s8] ss:$0 sm:$0xff] }
 0xbd8   : > { %v3589_v35 = vsel %vm919_vm6, %v3588_v51, %v3587_v37 }
 0xbd9   : > { %v3591_v58 = vsel %vm922_vm7, %v3590_v34, %v3589_v35 }
 0xbda   : > { %11024 = vmatmul.msk.f32.vlgmr.msrb.gmra.mxu3 %vm654_vm0, %v3591_v58  ;;  %11028 = vmatmul.msk.f32.vlgmr.msra.gmra.mxu2 %vm654_vm0, %v3591_v58 }
 0xbdb   : > { %11035 = vmatpush.xpose.msk.msrb.mxu3 %vm654_vm0, %v12711_v32  ;;  %11041 = vmatpush.xpose.msk.msra.mxu2 %vm654_vm0, %v12718_v6 }
 0xbdd   : > { %v3567_v29 = vpop.f32.mrf.mxu2 }
 0xc5d   : > { %v3611_v43 = vpop.f32.mrf.mxu3 }
 0xc5e   : > { %v3612_v13 = vadd.f32 %v3611_v43, %v3567_v29 }
 0xc60   : > { %v3634_v10 = vadd.f32 %v3631_v18, %v3612_v13  ;;  %v3673_v13 = vpop.f32.mrf.mxu1  ;;  %v3693_v18 = vpop.f32.mrf.mxu2 }
 0xc62   : > { %v3635_v17 = vadd.f32 %v13068_v12, %v3634_v10  ;;  %v3694_v10 = vadd.f32 %v3693_v18, %v3673_v13 }
 0xc64   : > { %v11026_v51 = vmul.f32 -1.442695, %v3635_v17 }
 0xc66   : > { %11466 = vpow2.f32 %v11026_v51 }
 0xc6c   : > { %v11467_v34 = vpop.eup %11466 }
 0xc6d   : > { %v3639_v39 = vadd.f32 1.0, %v11467_v34  ;;  %v13078_v34 = vld [vmem:[%s15741_s10] ss:$0 sm:$0xff] }
 0xc6f   : > { %11468 = vrcp.f32 %v3639_v39  ;;  %v3651_v55 = vand.u32 2147483648, %v3639_v39  ;;  %v3649_v21 = vand.u32 2147483647, %v3639_v39  ;;  %vm3645_vm9 = vweird.f32 %v3639_v39 }
 0xc71   : > { %v3652_v35 = vor.u32 1.1754944e-38, %v3651_v55  ;;  %vm3650_vm11 = vcmp.eq.f32.partialorder %v3649_v21, 8.507059e+37 }
 0xc75   : > { %v11469_v11 = vpop.eup %11468 }
 0xc76   : > { %v3641_v7 = vmul.f32 %v11469_v11, %v3639_v39  ;;  %vm3646_vm15 = vweird.f32 %v11469_v11 }
 0xc77   : > { %vm3647_vm10 = vmor %vm3645_vm9, %vm3646_vm15 }
 0xc78   : > { %v3642_v41 = vsub.f32 1.0, %v3641_v7 }
 0xc7a   : > { %v3643_v23 = vmul.f32 %v11469_v11, %v3642_v41 }
 0xc7c   : > { %v3644_v37 = vadd.f32 %v11469_v11, %v3643_v23 }
 0xc7e   : > { %v3648_v58 = vsel %vm3647_vm10, %v11469_v11, %v3644_v37 }
 0xc7f   : > { %v3653_v29 = vsel %vm3650_vm11, %v3652_v35, %v3648_v58 }
 0xc80   : > { %v3655_v43 = vmul.f32 %v3653_v29, %v12755_v25  ;;  %v3722_v25 = vsub.f32 1.0, %v3653_v29 }
 0xc82   : > { %11029 = vmatmul.msk.f32.vlgmr.msra.gmra.mxu3 %vm654_vm0, %v3655_v43  ;;  %v3723_v41 = vmul.f32 %v3722_v25, %v12735_v48 }
 0xc83   : > { %11043 = vmatpush.xpose.msk.msra.mxu3 %vm654_vm0, %v12728_v22 }
 0xd05   : > { %v3716_v17 = vpop.f32.mrf.mxu3 }
 0xd06   : > { %v3719_v51 = vadd.f32 %v3716_v17, %v3694_v10 }
 0xd08   : > { %v3720_v39 = vadd.f32 %v13078_v34, %v3719_v51 }
 0xd0a   : > { %11470 = vtanh.f32 %v3720_v39 }
 0xd10   : > { %v11471_v11 = vpop.eup %11470 }
 0xd11   : > { %3725 = vrot.lane.b32.xlu1 %v11471_v11, %s12028_s1 }
 0xd83   : > { %v3726_v7 = vpop.permute.xlu1 %3725 }
 0xd84   : > { %v3728_v55 = vmul.f32 %v3726_v7, %v3653_v29 }
 0xd86   : > { %v13083_v23 = vadd.f32 %v3728_v55, %v3723_v41 }
 0xd88   : > { %3731 = vrot.lane.b32.xlu1 %v13083_v23, %s12029_s25  ;;  %v4154_v21 = vrot.slane %v13083_v23, 5  ;;  %v4152_v37 = vrot.slane %v13083_v23, 3  ;;  %v4157_v43 = vperm.slane %v13083_v23, 0  ;;  %v4156_v48 = vrot.slane %v13083_v23, 7 }
 0xd89   : > { %v4150_v13 = vrot.slane %v13083_v23, 1  ;;  %v4151_v10 = vrot.slane %v13083_v23, 2  ;;  %v4155_v51 = vrot.slane %v13083_v23, 6  ;;  %v4153_v11 = vrot.slane %v13083_v23, 4 }
 0xd8a   : > { %v4282_v35 = vperm.slane %v4154_v21, 0  ;;  %v4232_v58 = vperm.slane %v4152_v37, 0  ;;  %v4332_v29 = vperm.slane %v4156_v48, 0  ;;  %v13114_v37 = vld [vmem:[%s15745_s14] ss:$0 sm:$0xff] }
 0xd8b   : > { %v4182_v18 = vperm.slane %v4150_v13, 0  ;;  %v4207_v17 = vperm.slane %v4151_v10, 0  ;;  %v4307_v39 = vperm.slane %v4155_v51, 0  ;;  %v4257_v25 = vperm.slane %v4153_v11, 0 }
 0xd8c   : > { %4283 = vrot.lane.b32.xlu2 %v4282_v35, %s12029_s25  ;;  %4233 = vrot.lane.b32.xlu0 %v4232_v58, %s12029_s25 }
 0xd90   : > { %4158 = vrot.lane.b32.xlu1 %v4157_v43, %s12029_s25 }
 0xd94   : > { %4333 = vrot.lane.b32.xlu0 %v4332_v29, %s12029_s25 }
 0xd98   : > { %4183 = vrot.lane.b32.xlu1 %v4182_v18, %s12029_s25 }
 0xda0   : > { %4208 = vrot.lane.b32.xlu1 %v4207_v17, %s12029_s25 }
 0xda8   : > { %4308 = vrot.lane.b32.xlu1 %v4307_v39, %s12029_s25 }
 0xdb0   : > { %4258 = vrot.lane.b32.xlu1 %v4257_v25, %s12029_s25 }
 0xde6   : > { %v4284_v25 = vpop.permute.xlu2 %4283 }
 0xdfa   : > { %v13103_v7 = vpop.permute.xlu1 %3731 }
 0xdfb   : > { %3735 = vst.msk [vmem:[#allocation2 + $0x10] sm:$0xff] %vm654_vm0, %v13103_v7  ;;  %11030 = vmatmul.msk.f32.vlgmr.msrb.gmra.mxu0 %vm654_vm0, %v13103_v7 }
 0xdfc   : > { %11045 = vmatpush.xpose.msk.msrb.mxu0 %vm654_vm0, %v12764_v42 }
 0xdfe   : > { %v4234_v39 = vpop.permute.xlu0 %4233 }
 0xe02   : > { %v4159_v41 = vpop.permute.xlu1 %4158 }
 0xe0a   : > { %v4184_v55 = vpop.permute.xlu1 %4183 }
 0xe12   : > { %v4209_v29 = vpop.permute.xlu1 %4208 }
 0xe1a   : > { %v4309_v51 = vpop.permute.xlu1 %4308 }
 0xe22   : > { %v4259_v11 = vpop.permute.xlu1 %4258 }
 0xe78   : > { %v3755_v21 = vpop.f32.mrf.mxu0 }
 0xe79   : > { %v3756_v35 = vadd.f32 %v13114_v37, %v3755_v21 }
 0xe7b   : > { %11032 = vmatmul.msk.f32.vlgmr.msrb.gmra.mxu1 %vm654_vm0, %v3756_v35  ;;  %v3759_v58 = vrot.slane %v3756_v35, 1  ;;  %v3760_v43 = vrot.slane %v3756_v35, 2  ;;  %v3761_v48 = vrot.slane %v3756_v35, 3  ;;  %v3762_v13 = vrot.slane %v3756_v35, 4 }
 0xe7c   : > { %11050 = vmatpush.xpose.msk.msrb.mxu1 %vm654_vm0, %v12662_v45  ;;  %v3763_v18 = vrot.slane %v3756_v35, 5  ;;  %v3764_v10 = vrot.slane %v3756_v35, 6  ;;  %v3765_v17 = vrot.slane %v3756_v35, 7 }
 0xe7d   : > { %11034 = vmatmul.msk.f32.vlgmr.msrb.gmra.mxu2 %vm654_vm0, %v3759_v58  ;;  %11036 = vmatmul.msk.f32.vlgmr.msrb.gmra.mxu3 %vm654_vm0, %v3760_v43 }
 0xe7e   : > { %11038 = vmatmul.msk.f32.vlgmr.msra.gmra.mxu0 %vm654_vm0, %v3761_v48  ;;  %11052 = vmatpush.xpose.msk.msrb.mxu2 %vm654_vm0, %v12688_v50 }
 0xe7f   : > { %11054 = vmatpush.xpose.msk.msrb.mxu3 %vm654_vm0, %v12711_v32  ;;  %11056 = vmatpush.xpose.msk.msra.mxu0 %vm654_vm0, %v12676_v47 }
 0xe83   : > { %11040 = vmatmul.msk.f32.vlgmr.msra.gmra.mxu1 %vm654_vm0, %v3762_v13 }
 0xe84   : > { %11058 = vmatpush.xpose.msk.msra.mxu1 %vm654_vm0, %v12695_v52 }
 0xe85   : > { %11042 = vmatmul.msk.f32.vlgmr.msra.gmra.mxu2 %vm654_vm0, %v3763_v18  ;;  %11044 = vmatmul.msk.f32.vlgmr.msra.gmra.mxu3 %vm654_vm0, %v3764_v10 }
 0xe86   : > { %11046 = vmatmul.msk.f32.vlgmr.msrb.gmra.mxu0 %vm654_vm0, %v3765_v17  ;;  %11060 = vmatpush.xpose.msk.msra.mxu2 %vm654_vm0, %v12718_v6 }
 0xe87   : > { %11062 = vmatpush.xpose.msk.msra.mxu3 %vm654_vm0, %v12728_v22  ;;  %11064 = vmatpush.xpose.msk.msrb.mxu0 %vm654_vm0, %v12764_v42 }
 0xe8b   : > { %11051 = vmatmul.msk.f32.vlgmr.msrb.gmra.mxu1 %vm654_vm0, %v4159_v41  ;;  %v4334_v41 = vpop.permute.xlu0 %4333 }
 0xe8c   : > { %4529 = vmatpush.msrb.mxu1 %v12662_v45 }
 0xe8d   : > { %11053 = vmatmul.msk.f32.vlgmr.msrb.gmra.mxu2 %vm654_vm0, %v4184_v55  ;;  %11055 = vmatmul.msk.f32.vlgmr.msrb.gmra.mxu3 %vm654_vm0, %v4209_v29 }
 0xe8e   : > { %11057 = vmatmul.msk.f32.vlgmr.msra.gmra.mxu0 %vm654_vm0, %v4234_v39  ;;  %4552 = vmatpush.msrb.mxu2 %v12688_v50 }
 0xe8f   : > { %4575 = vmatpush.msrb.mxu3 %v12711_v32  ;;  %4598 = vmatpush.msra.mxu0 %v12676_v47 }
 0xe93   : > { %11059 = vmatmul.msk.f32.vlgmr.msra.gmra.mxu1 %vm654_vm0, %v4259_v11 }
 0xe94   : > { %4621 = vmatpush.msra.mxu1 %v12695_v52 }
 0xe95   : > { %11061 = vmatmul.msk.f32.vlgmr.msra.gmra.mxu2 %vm654_vm0, %v4284_v25  ;;  %11063 = vmatmul.msk.f32.vlgmr.msra.gmra.mxu3 %vm654_vm0, %v4309_v51 }
 0xe96   : > { %11065 = vmatmul.msk.f32.vlgmr.msrb.gmra.mxu0 %vm654_vm0, %v4334_v41  ;;  %4644 = vmatpush.msra.mxu2 %v12718_v6 }
 0xe97   : > { %4667 = vmatpush.msra.mxu3 %v12728_v22  ;;  %4690 = vmatpush.msrb.mxu0 %v12764_v42 }
 0xef8   : > { %v13157_v45 = vpop.f32.mrf.mxu1 }
 0xef9   : > { %15839 = vst [vmem:[#allocation39_spill] sm:$0xff] %v13157_v45 }
 0xefb   : > { %v13159_v47 = vpop.f32.mrf.mxu0 }
 0xefc   : > { %15840 = vst [vmem:[#allocation40_spill] sm:$0xff] %v13159_v47 }
 0xf00   : > { %v13161_v50 = vpop.f32.mrf.mxu2  ;;  %v13163_v52 = vpop.f32.mrf.mxu3 }
 0xf01   : > { %15841 = vst [vmem:[#allocation41_spill] sm:$0xff] %v13161_v50  ;;  %v13165_v32 = vpop.f32.mrf.mxu1 }
 0xf02   : > { %15842 = vst [vmem:[#allocation42_spill] sm:$0xff] %v13163_v52 }
 0xf03   : > { %15843 = vst [vmem:[#allocation43_spill] sm:$0xff] %v13165_v32  ;;  %v13167_v55 = vpop.f32.mrf.mxu0 }
 0xf04   : > { %15844 = vst [vmem:[#allocation44_spill] sm:$0xff] %v13167_v55 }
 0xf08   : > { %v13169_v21 = vpop.f32.mrf.mxu2  ;;  %v13171_v35 = vpop.f32.mrf.mxu3 }
 0xf09   : > { %15845 = vst [vmem:[#allocation45_spill] sm:$0xff] %v13169_v21  ;;  %v4179_v6 = vpop.f32.mrf.mxu1 }
 0xf0a   : > { %15846 = vst [vmem:[#allocation46_spill] sm:$0xff] %v13171_v35  ;;  %v4365_v58 = vmul.f32 0.17677669, %v4179_v6 }
 0xf0b   : > { %v4254_v22 = vpop.f32.mrf.mxu0 }
 0xf0c   : > { %v4368_v48 = vmul.f32 0.17677669, %v4254_v22  ;;  %v4373_v11 = vadd.f32 %v4365_v58, %v15832_v53 }
 0xf0e   : > { %v4376_v25 = vadd.f32 %v4368_v48, %v15833_v9 }
 0xf10   : > { %v4204_v42 = vpop.f32.mrf.mxu2  ;;  %v4229_v43 = vpop.f32.mrf.mxu3 }
 0xf11   : > { %v4366_v29 = vmul.f32 0.17677669, %v4204_v42  ;;  %v4367_v13 = vmul.f32 0.17677669, %v4229_v43  ;;  %v4279_v18 = vpop.f32.mrf.mxu1 }
 0xf12   : > { %v4369_v51 = vmul.f32 0.17677669, %v4279_v18 }
 0xf13   : > { %v4374_v10 = vadd.f32 %v4366_v29, %v15831_v20  ;;  %v4375_v17 = vadd.f32 %v4367_v13, %v15830_v2  ;;  %v4354_v39 = vpop.f32.mrf.mxu0  ;;  %v4393_v29 = vrot.slane %v4376_v25, 5 }
 0xf14   : > { %v4372_v35 = vmul.f32 0.17677669, %v4354_v39  ;;  %v4377_v42 = vadd.f32 %v4369_v51, %v15834_v44 }
 0xf15   : > { %v4389_v41 = vrot.slane %v4374_v10, 7  ;;  %v4391_v55 = vrot.slane %v4375_v17, 6 }
 0xf16   : > { %v4380_v18 = vadd.f32 %v4372_v35, %v15836_v49  ;;  %v4395_v45 = vrot.slane %v4377_v42, 4 }
 0xf17   : > { %v4390_v6 = vsel %vm904_vm1, %v4389_v41, %v4373_v11 }
 0xf18   : > { %v4392_v22 = vsel %vm907_vm2, %v4391_v55, %v4390_v6  ;;  %v4304_v43 = vpop.f32.mrf.mxu2  ;;  %v4329_v32 = vpop.f32.mrf.mxu3  ;;  %v4401_v6 = vrot.slane %v4380_v18, 1 }
 0xf19   : > { %v4370_v21 = vmul.f32 0.17677669, %v4304_v43  ;;  %v4371_v13 = vmul.f32 0.17677669, %v4329_v32  ;;  %v4394_v47 = vsel %vm910_vm3, %v4393_v29, %v4392_v22 }
 0xf1a   : > { %v4396_v55 = vsel %vm913_vm4, %v4395_v45, %v4394_v47 }
 0xf1b   : > { %v4378_v58 = vadd.f32 %v4370_v21, %v15837_v40  ;;  %v4379_v48 = vadd.f32 %v4371_v13, %v15835_v36 }
 0xf1d   : > { %v4397_v41 = vrot.slane %v4378_v58, 3  ;;  %v4399_v39 = vrot.slane %v4379_v48, 2 }
 0xf1f   : > { %v4398_v51 = vsel %vm916_vm5, %v4397_v41, %v4396_v55 }
 0xf20   : > { %v4400_v52 = vsel %vm919_vm6, %v4399_v39, %v4398_v51 }
 0xf21   : > { %v4402_v32 = vsel %vm922_vm7, %v4401_v6, %v4400_v52 }
 0xf22   : > { %v4404_v35 = vsel %vm925_vm8, %v4402_v32, -inf }
 0xf23   : > { %4405 = vmax.xlane.f32.xlu1 %v4404_v35 }
 0xf96   : > { %v4406_v21 = vpop.xlane.xlu1 %4405 }
 0xf97   : > { %v4408_v43 = vrot.slane %v4406_v21, 1  ;;  %v4409_v13 = vrot.slane %v4406_v21, 2  ;;  %v4410_v50 = vrot.slane %v4406_v21, 3  ;;  %v4411_v22 = vrot.slane %v4406_v21, 4 }
 0xf98   : > { %v4412_v29 = vrot.slane %v4406_v21, 5  ;;  %v4423_v49 = vsub.f32 %v4373_v11, %v4406_v21  ;;  %v4413_v36 = vrot.slane %v4406_v21, 6  ;;  %v4414_v40 = vrot.slane %v4406_v21, 7 }
 0xf99   : > { %v4424_v45 = vsub.f32 %v4374_v10, %v4408_v43  ;;  %v4425_v47 = vsub.f32 %v4375_v17, %v4409_v13  ;;  %v4426_v44 = vsub.f32 %v4376_v25, %v4410_v50  ;;  %v4427_v41 = vsub.f32 %v4377_v42, %v4411_v22 }
 0xf9a   : > { %v4431_v55 = vmul.f32 1.442695, %v4423_v49  ;;  %v4428_v39 = vsub.f32 %v4378_v58, %v4412_v29  ;;  %v4429_v51 = vsub.f32 %v4379_v48, %v4413_v36  ;;  %v4430_v35 = vsub.f32 %v4380_v18, %v4414_v40 }
 0xf9b   : > { %v4433_v52 = vmul.f32 1.442695, %v4424_v45  ;;  %v4435_v6 = vmul.f32 1.442695, %v4425_v47  ;;  %v4437_v32 = vmul.f32 1.442695, %v4426_v44 }
 0xf9c   : > { %11472 = vpow2.f32 %v4431_v55  ;;  %v4439_v9 = vmul.f32 1.442695, %v4427_v41  ;;  %v4441_v53 = vmul.f32 1.442695, %v4428_v39  ;;  %v4443_v2 = vmul.f32 1.442695, %v4429_v51 }
 0xf9d   : > { %11474 = vpow2.f32 %v4433_v52  ;;  %v4445_v11 = vmul.f32 1.442695, %v4430_v35 }
 0xf9e   : > { %11476 = vpow2.f32 %v4435_v6 }
 0xf9f   : > { %11478 = vpow2.f32 %v4437_v32 }
 0xfa0   : > { %11480 = vpow2.f32 %v4439_v9 }
 0xfa1   : > { %11482 = vpow2.f32 %v4441_v53 }
 0xfa2   : > { %v11473_v10 = vpop.eup %11472  ;;  %11484 = vpow2.f32 %v4443_v2 }
 0xfa3   : > { %v11475_v50 = vpop.eup %11474  ;;  %11486 = vpow2.f32 %v4445_v11 }
 0xfa4   : > { %v11477_v49 = vpop.eup %11476  ;;  %v4455_v36 = vrot.slane %v11475_v50, 7 }
 0xfa5   : > { %v11479_v17 = vpop.eup %11478  ;;  %v4457_v25 = vrot.slane %v11477_v49, 6 }
 0xfa6   : > { %v11481_v44 = vpop.eup %11480  ;;  %v4456_v40 = vsel %vm904_vm1, %v4455_v36, %v11473_v10  ;;  %v4459_v42 = vrot.slane %v11479_v17, 5 }
 0xfa7   : > { %v11483_v18 = vpop.eup %11482  ;;  %v4458_v58 = vsel %vm907_vm2, %v4457_v25, %v4456_v40  ;;  %v4461_v48 = vrot.slane %v11481_v44, 4 }
 0xfa8   : > { %v11485_v21 = vpop.eup %11484  ;;  %v4460_v9 = vsel %vm910_vm3, %v4459_v42, %v4458_v58  ;;  %v4463_v53 = vrot.slane %v11483_v18, 3 }
 0xfa9   : > { %v11487_v43 = vpop.eup %11486  ;;  %v4462_v2 = vsel %vm913_vm4, %v4461_v48, %v4460_v9  ;;  %v4465_v13 = vrot.slane %v11485_v21, 2 }
 0xfaa   : > { %v4464_v22 = vsel %vm916_vm5, %v4463_v53, %v4462_v2  ;;  %v4467_v29 = vrot.slane %v11487_v43, 1 }
 0xfab   : > { %v4466_v45 = vsel %vm919_vm6, %v4465_v13, %v4464_v22 }
 0xfac   : > { %v4468_v47 = vsel %vm922_vm7, %v4467_v29, %v4466_v45  ;;  %v13287_v45 = vld [vmem:[%s15803_s3 + $0x28] sm:$0xff] }
 0xfad   : > { %v4470_v41 = vsel %vm925_vm8, %v4468_v47, 0.0 }
 0xfae   : > { %4471 = vadd.xlane.f32.xlu0 %v4470_v41 }
0x1021   : > { %v4472_v55 = vpop.xlane.xlu0 %4471 }
0x1022   : > { %11488 = vrcp.f32 %v4472_v55  ;;  %v4484_v6 = vand.u32 2147483648, %v4472_v55  ;;  %v4482_v35 = vand.u32 2147483647, %v4472_v55  ;;  %vm4478_vm13 = vweird.f32 %v4472_v55 }
0x1024   : > { %v4485_v36 = vor.u32 1.1754944e-38, %v4484_v6  ;;  %vm4483_vm15 = vcmp.eq.f32.partialorder %v4482_v35, 8.507059e+37 }
0x1028   : > { %v11489_v39 = vpop.eup %11488 }
0x1029   : > { %v4474_v51 = vmul.f32 %v11489_v39, %v4472_v55  ;;  %vm4479_vm12 = vweird.f32 %v11489_v39 }
0x102a   : > { %vm4480_vm14 = vmor %vm4478_vm13, %vm4479_vm12 }
0x102b   : > { %v4475_v52 = vsub.f32 1.0, %v4474_v51 }
0x102d   : > { %v4476_v32 = vmul.f32 %v11489_v39, %v4475_v52 }
0x102f   : > { %v4477_v11 = vadd.f32 %v11489_v39, %v4476_v32 }
0x1031   : > { %v4481_v25 = vsel %vm4480_vm14, %v11489_v39, %v4477_v11 }
0x1032   : > { %v4486_v40 = vsel %vm4483_vm15, %v4485_v36, %v4481_v25 }
0x1033   : > { %v4503_v42 = vmul.f32 %v11473_v10, %v4486_v40  ;;  %v4488_v58 = vrot.slane %v4486_v40, 1  ;;  %v4489_v48 = vrot.slane %v4486_v40, 2  ;;  %v4490_v9 = vrot.slane %v4486_v40, 3 }
0x1034   : > { %v4491_v22 = vrot.slane %v4486_v40, 4  ;;  %v4492_v10 = vrot.slane %v4486_v40, 5  ;;  %v4493_v29 = vrot.slane %v4486_v40, 6 }
0x1035   : > { %11066 = vmatmul.msk.f32.vlgmr.msrb.gmra.mxu1 %vm925_vm8, %v4503_v42  ;;  %v4504_v53 = vmul.f32 %v11475_v50, %v4488_v58  ;;  %v4505_v2 = vmul.f32 %v11477_v49, %v4489_v48  ;;  %v4506_v13 = vmul.f32 %v11479_v17, %v4490_v9  ;;  %v4494_v50 = vrot.slane %v4486_v40, 7 }
0x1036   : > { %4718 = vmatpush.msrb.mxu1 %v12862_v24  ;;  %v4507_v24 = vmul.f32 %v11481_v44, %v4491_v22 }
0x1037   : > { %11067 = vmatmul.msk.f32.vlgmr.msrb.gmra.mxu2 %vm925_vm8, %v4504_v53  ;;  %11068 = vmatmul.msk.f32.vlgmr.msrb.gmra.mxu3 %vm925_vm8, %v4505_v2 }
0x1038   : > { %11069 = vmatmul.msk.f32.vlgmr.msra.gmra.mxu0 %vm925_vm8, %v4506_v13  ;;  %4782 = vmatpush.msrb.mxu3 %v12871_v46  ;;  %v4508_v46 = vmul.f32 %v11483_v18, %v4492_v10  ;;  %v13297_v13 = vld [vmem:[%s15803_s3 + $0x30] sm:$0xff] }
0x1039   : > { %4719 = vmatpush.msrb.mxu1 %v12877_v27  ;;  %4762 = vmatpush.msrb.mxu2 %v12883_v1  ;;  %v4509_v27 = vmul.f32 %v11485_v21, %v4493_v29  ;;  %v4510_v1 = vmul.f32 %v11487_v43, %v4494_v50  ;;  %v13280_v43 = vld [vmem:[%s15803_s3 + $0x10] sm:$0xff] }
0x103a   : > { %4783 = vmatpush.msrb.mxu3 %v12889_v19  ;;  %4824 = vmatpush.msra.mxu0 %v12895_v26  ;;  %v13231_v19 = vld [vmem:[%s15803_s3] sm:$0xff] }
0x103b   : > { %4720 = vmatpush.msrb.mxu1 %v12901_v15  ;;  %4763 = vmatpush.msrb.mxu2 %v12907_v33  ;;  %v15847_v26 = vld [vmem:[#allocation38_spill] sm:$0xff]  ;;  %v13245_v15 = vld [vmem:[%s15803_s3 + $0x18] sm:$0xff] }
0x103c   : > { %4784 = vmatpush.msrb.mxu3 %v12913_v4  ;;  %4825 = vmatpush.msra.mxu0 %v12919_v5  ;;  %v11049_v33 = vld [vmem:[%s15813_s30 + $0x18] sm:$0xff]  ;;  %v13257_v4 = vld [vmem:[%s15803_s3 + $0x8] sm:$0xff]  ;;  %v13264_v5 = vld [vmem:[%s15803_s3 + $0x20] sm:$0xff] }
0x103d   : > { %11070 = vmatmul.msk.f32.vlgmr.msra.gmra.mxu1 %vm925_vm8, %v4507_v24  ;;  %4764 = vmatpush.msrb.mxu2 %v12928_v57 }
0x103e   : > { %4785 = vmatpush.msrb.mxu3 %v12935_v59  ;;  %4721 = vmatpush.msrb.mxu1 %v12941_v3 }
0x103f   : > { %11071 = vmatmul.msk.f32.vlgmr.msra.gmra.mxu2 %vm925_vm8, %v4508_v46  ;;  %11072 = vmatmul.msk.f32.vlgmr.msra.gmra.mxu3 %vm925_vm8, %v4509_v27 }
0x1040   : > { %11073 = vmatmul.msk.f32.vlgmr.msrb.gmra.mxu0 %vm925_vm8, %v4510_v1  ;;  %4844 = vmatpush.msra.mxu1 %v12950_v38 }
0x1041   : > { %4826 = vmatpush.msra.mxu0 %v12962_v60  ;;  %4765 = vmatpush.msrb.mxu2 %v12956_v14 }
0x1042   : > { %4845 = vmatpush.msra.mxu1 %v12968_v61  ;;  %4906 = vmatpush.msra.mxu3 %v12986_v0 }
0x1043   : > { %4867 = vmatpush.msra.mxu2 %v12974_v62  ;;  %4827 = vmatpush.msra.mxu0 %v12980_v63 }
0x1044   : > { %4846 = vmatpush.msra.mxu1 %v12992_v8  ;;  %4907 = vmatpush.msra.mxu3 %v13004_v31 }
0x1045   : > { %4868 = vmatpush.msra.mxu2 %v12998_v30  ;;  %11082 = vmatpush.xpose.msk.msrb.mxu0 %vm654_vm0, %v13231_v19 }
0x1046   : > { %4847 = vmatpush.msra.mxu1 %v13012_v28  ;;  %4908 = vmatpush.msra.mxu3 %v13032_v56 }
0x1047   : > { %4869 = vmatpush.msra.mxu2 %v13018_v16  ;;  %11076 = vmatmul.msk.f32.vlgmr.msrb.gmra.mxu3 %vm654_vm0, %v13103_v7 }
0x1048   : > { %4909 = vmatpush.msra.mxu3 %v15847_v26  ;;  %11074 = vmatmul.msk.f32.vlgmr.msrb.gmra.mxu1 %vm654_vm0, %v11049_v33 }
0x1049   : > { %4870 = vmatpush.msra.mxu2 %v13026_v54  ;;  %11078 = vmatmul.msk.f32.vlgmr.msra.gmra.mxu0 %vm654_vm0, %v11049_v33 }
0x104a   : > { %11088 = vmatpush.xpose.msk.msrb.mxu3 %vm654_vm0, %v13245_v15  ;;  %11084 = vmatpush.xpose.msk.msrb.mxu1 %vm654_vm0, %v13257_v4 }
0x104b   : > { %11090 = vmatpush.xpose.msk.msra.mxu0 %vm654_vm0, %v13264_v5 }
0x10b2   : > { %v4531_v57 = vpop.f32.mrf.mxu1 }
0x10b5   : > { %v4600_v59 = vpop.f32.mrf.mxu0 }
0x10b6   : > { %v4738_v63 = vrot.slane %v4600_v59, 5 }
0x10ba   : > { %v4554_v3 = vpop.f32.mrf.mxu2  ;;  %v4577_v38 = vpop.f32.mrf.mxu3 }
0x10bb   : > { %v4734_v14 = vrot.slane %v4554_v3, 7  ;;  %v4736_v60 = vrot.slane %v4577_v38, 6  ;;  %v4623_v0 = vpop.f32.mrf.mxu1 }
0x10bc   : > { %v4740_v31 = vrot.slane %v4623_v0, 4 }
0x10bd   : > { %v4735_v61 = vsel %vm904_vm1, %v4734_v14, %v4531_v57  ;;  %v4692_v30 = vpop.f32.mrf.mxu0 }
0x10be   : > { %v4737_v62 = vsel %vm907_vm2, %v4736_v60, %v4735_v61  ;;  %v4746_v17 = vrot.slane %v4692_v30, 1 }
0x10bf   : > { %v4739_v8 = vsel %vm910_vm3, %v4738_v63, %v4737_v62 }
0x10c0   : > { %v4741_v49 = vsel %vm913_vm4, %v4740_v31, %v4739_v8 }
0x10c2   : > { %v4646_v28 = vpop.f32.mrf.mxu2  ;;  %v4669_v16 = vpop.f32.mrf.mxu3 }
0x10c3   : > { %v4742_v54 = vrot.slane %v4646_v28, 3  ;;  %v4744_v56 = vrot.slane %v4669_v16, 2 }
0x10c5   : > { %v4743_v44 = vsel %vm916_vm5, %v4742_v54, %v4741_v49  ;;  %v4723_v47 = vpop.f32.mrf.mxu1  ;;  %v13333_v54 = vld [vmem:[%s15803_s3 + $0x38] sm:$0xff] }
0x10c6   : > { %v4745_v18 = vsel %vm919_vm6, %v4744_v56, %v4743_v44  ;;  %v4829_v22 = vpop.f32.mrf.mxu0 }
0x10c7   : > { %v4747_v21 = vsel %vm922_vm7, %v4746_v17, %v4745_v18 }
0x10c8   : > { %11075 = vmatmul.msk.f32.vlgmr.msrb.gmra.mxu2 %vm654_vm0, %v4747_v21  ;;  %11079 = vmatmul.msk.f32.vlgmr.msra.gmra.mxu1 %vm654_vm0, %v4747_v21 }
0x10c9   : > { %11086 = vmatpush.xpose.msk.msrb.mxu2 %vm654_vm0, %v13280_v43  ;;  %11092 = vmatpush.xpose.msk.msra.mxu1 %vm654_vm0, %v13287_v45 }
0x10ca   : > { %v4787_v39 = vpop.f32.mrf.mxu3 }
0x1145   : > { %v4849_v10 = vpop.f32.mrf.mxu1 }
0x1146   : > { %v4850_v29 = vadd.f32 %v4849_v10, %v4829_v22 }
0x114b   : > { %v4767_v41 = vpop.f32.mrf.mxu2 }
0x114c   : > { %v4768_v55 = vadd.f32 %v4767_v41, %v4723_v47 }
0x114e   : > { %v4790_v51 = vadd.f32 %v4787_v39, %v4768_v55 }
0x1150   : > { %v4791_v52 = vadd.f32 %v13068_v12, %v4790_v51 }
0x1152   : > { %v11077_v6 = vmul.f32 -1.442695, %v4791_v52 }
0x1154   : > { %11490 = vpow2.f32 %v11077_v6 }
0x115a   : > { %v11491_v32 = vpop.eup %11490 }
0x115b   : > { %v4795_v35 = vadd.f32 1.0, %v11491_v32 }
0x115d   : > { %11492 = vrcp.f32 %v4795_v35  ;;  %v4807_v40 = vand.u32 2147483648, %v4795_v35  ;;  %v4805_v58 = vand.u32 2147483647, %v4795_v35  ;;  %vm4801_vm10 = vweird.f32 %v4795_v35 }
0x115f   : > { %v4808_v9 = vor.u32 1.1754944e-38, %v4807_v40  ;;  %vm4806_vm12 = vcmp.eq.f32.partialorder %v4805_v58, 8.507059e+37 }
0x1163   : > { %v11493_v11 = vpop.eup %11492 }
0x1164   : > { %v4797_v36 = vmul.f32 %v11493_v11, %v4795_v35  ;;  %vm4802_vm9 = vweird.f32 %v11493_v11 }
0x1165   : > { %vm4803_vm11 = vmor %vm4801_vm10, %vm4802_vm9 }
0x1166   : > { %v4798_v25 = vsub.f32 1.0, %v4797_v36 }
0x1168   : > { %v4799_v42 = vmul.f32 %v11493_v11, %v4798_v25 }
0x116a   : > { %v4800_v48 = vadd.f32 %v11493_v11, %v4799_v42 }
0x116c   : > { %v4804_v53 = vsel %vm4803_vm11, %v11493_v11, %v4800_v48 }
0x116d   : > { %v4809_v2 = vsel %vm4806_vm12, %v4808_v9, %v4804_v53 }
0x116e   : > { %v4811_v12 = vmul.f32 %v4809_v2, %v13103_v7  ;;  %v4878_v7 = vsub.f32 1.0, %v4809_v2 }
0x1170   : > { %11080 = vmatmul.msk.f32.vlgmr.msra.gmra.mxu2 %vm654_vm0, %v4811_v12  ;;  %v4879_v26 = vmul.f32 %v4878_v7, %v13083_v23 }
0x1171   : > { %11094 = vmatpush.xpose.msk.msra.mxu2 %vm654_vm0, %v13297_v13 }
0x11f3   : > { %v4872_v50 = vpop.f32.mrf.mxu2 }
0x11f4   : > { %v4875_v24 = vadd.f32 %v4872_v50, %v4850_v29 }
0x11f6   : > { %v4876_v46 = vadd.f32 %v13078_v34, %v4875_v24 }
0x11f8   : > { %11494 = vtanh.f32 %v4876_v46 }
0x11fe   : > { %v11495_v27 = vpop.eup %11494 }
0x11ff   : > { %4881 = vrot.lane.b32.xlu2 %v11495_v27, %s12028_s1 }
0x1259   : > { %v4882_v1 = vpop.permute.xlu2 %4881 }
0x125a   : > { %v4884_v33 = vmul.f32 %v4882_v1, %v4809_v2 }
0x125c   : > { %v13304_v57 = vadd.f32 %v4884_v33, %v4879_v26 }
0x125e   : > { %4887 = vrot.lane.b32.xlu2 %v13304_v57, %s12029_s25  ;;  %v5312_v59 = vrot.slane %v13304_v57, 7  ;;  %v5306_v3 = vrot.slane %v13304_v57, 1  ;;  %v5313_v14 = vperm.slane %v13304_v57, 0  ;;  %v5307_v23 = vrot.slane %v13304_v57, 2 }
0x125f   : > { %v5308_v61 = vrot.slane %v13304_v57, 3  ;;  %v5311_v63 = vrot.slane %v13304_v57, 6  ;;  %v5309_v8 = vrot.slane %v13304_v57, 4  ;;  %v5310_v31 = vrot.slane %v13304_v57, 5 }
0x1260   : > { %v5488_v38 = vperm.slane %v5312_v59, 0  ;;  %v5338_v34 = vperm.slane %v5306_v3, 0  ;;  %v5363_v60 = vperm.slane %v5307_v23, 0  ;;  %v15856_v59 = vld [vmem:[#allocation16_spill] sm:$0xff]  ;;  %v15858_v23 = vld [vmem:[#allocation17_spill] sm:$0xff] }
0x1261   : > { %v5388_v62 = vperm.slane %v5308_v61, 0  ;;  %v5463_v0 = vperm.slane %v5311_v63, 0  ;;  %v5413_v30 = vperm.slane %v5309_v8, 0  ;;  %v5438_v28 = vperm.slane %v5310_v31, 0 }
0x1262   : > { %5489 = vrot.lane.b32.xlu0 %v5488_v38, %s12029_s25  ;;  %5339 = vrot.lane.b32.xlu1 %v5338_v34, %s12029_s25  ;;  %v15857_v34 = vld [vmem:[#allocation14_spill] sm:$0xff] }
0x1266   : > { %5314 = vrot.lane.b32.xlu2 %v5313_v14, %s12029_s25 }
0x126e   : > { %5364 = vrot.lane.b32.xlu2 %v5363_v60, %s12029_s25 }
0x1276   : > { %5389 = vrot.lane.b32.xlu2 %v5388_v62, %s12029_s25  ;;  %v15859_v62 = vld [vmem:[#allocation18_spill] sm:$0xff] }
0x127e   : > { %5464 = vrot.lane.b32.xlu2 %v5463_v0, %s12029_s25 }
0x1286   : > { %5414 = vrot.lane.b32.xlu2 %v5413_v30, %s12029_s25  ;;  %v15860_v30 = vld [vmem:[#allocation19_spill] sm:$0xff] }
0x128e   : > { %5439 = vrot.lane.b32.xlu2 %v5438_v28, %s12029_s25 }
0x12b8   : > { %v13324_v16 = vpop.permute.xlu2 %4887 }
0x12b9   : > { %4891 = vst.msk [vmem:[#allocation2 + $0x18] sm:$0xff] %vm654_vm0, %v13324_v16  ;;  %11081 = vmatmul.msk.f32.vlgmr.msra.gmra.mxu3 %vm654_vm0, %v13324_v16 }
0x12ba   : > { %11096 = vmatpush.xpose.msk.msra.mxu3 %vm654_vm0, %v13333_v54 }
0x12c0   : > { %v5315_v56 = vpop.permute.xlu2 %5314 }
0x12c8   : > { %v5365_v49 = vpop.permute.xlu2 %5364 }
0x12d0   : > { %v5390_v17 = vpop.permute.xlu2 %5389 }
0x12d4   : > { %v5340_v32 = vpop.permute.xlu1 %5339  ;;  %v5490_v11 = vpop.permute.xlu0 %5489 }
0x133c   : > { %v4911_v44 = vpop.f32.mrf.mxu3 }
0x133d   : > { %v4912_v18 = vadd.f32 %v13114_v37, %v4911_v44  ;;  %v5465_v37 = vpop.permute.xlu2 %5464 }
0x133f   : > { %11083 = vmatmul.msk.f32.vlgmr.msrb.gmra.mxu0 %vm654_vm0, %v4912_v18  ;;  %v4915_v21 = vrot.slane %v4912_v18, 1  ;;  %v4916_v47 = vrot.slane %v4912_v18, 2  ;;  %v4917_v41 = vrot.slane %v4912_v18, 3  ;;  %v4918_v55 = vrot.slane %v4912_v18, 4 }
0x1340   : > { %11101 = vmatpush.xpose.msk.msrb.mxu0 %vm654_vm0, %v13231_v19  ;;  %v4919_v39 = vrot.slane %v4912_v18, 5  ;;  %v4920_v51 = vrot.slane %v4912_v18, 6  ;;  %v4921_v52 = vrot.slane %v4912_v18, 7 }
0x1341   : > { %11085 = vmatmul.msk.f32.vlgmr.msrb.gmra.mxu1 %vm654_vm0, %v4915_v21  ;;  %11087 = vmatmul.msk.f32.vlgmr.msrb.gmra.mxu2 %vm654_vm0, %v4916_v47 }
0x1342   : > { %11089 = vmatmul.msk.f32.vlgmr.msrb.gmra.mxu3 %vm654_vm0, %v4917_v41  ;;  %11105 = vmatpush.xpose.msk.msrb.mxu2 %vm654_vm0, %v13280_v43  ;;  %v15861_v41 = vld [vmem:[#allocation20_spill] sm:$0xff] }
0x1343   : > { %11107 = vmatpush.xpose.msk.msrb.mxu3 %vm654_vm0, %v13245_v15  ;;  %11103 = vmatpush.xpose.msk.msrb.mxu1 %vm654_vm0, %v13257_v4 }
0x1345   : > { %v5415_v6 = vpop.permute.xlu2 %5414 }
0x1347   : > { %11091 = vmatmul.msk.f32.vlgmr.msra.gmra.mxu0 %vm654_vm0, %v4918_v55 }
0x1348   : > { %11109 = vmatpush.xpose.msk.msra.mxu0 %vm654_vm0, %v13264_v5 }
0x1349   : > { %11093 = vmatmul.msk.f32.vlgmr.msra.gmra.mxu1 %vm654_vm0, %v4919_v39  ;;  %11095 = vmatmul.msk.f32.vlgmr.msra.gmra.mxu2 %vm654_vm0, %v4920_v51  ;;  %v15862_v39 = vld [vmem:[#allocation21_spill] sm:$0xff] }
0x134a   : > { %11097 = vmatmul.msk.f32.vlgmr.msra.gmra.mxu3 %vm654_vm0, %v4921_v52  ;;  %11113 = vmatpush.xpose.msk.msra.mxu2 %vm654_vm0, %v13297_v13 }
0x134b   : > { %11115 = vmatpush.xpose.msk.msra.mxu3 %vm654_vm0, %v13333_v54  ;;  %11111 = vmatpush.xpose.msk.msra.mxu1 %vm654_vm0, %v13287_v45 }
0x134d   : > { %v5440_v35 = vpop.permute.xlu2 %5439 }
0x134f   : > { %11102 = vmatmul.msk.f32.vlgmr.msrb.gmra.mxu0 %vm654_vm0, %v5315_v56 }
0x1350   : > { %5685 = vmatpush.msrb.mxu0 %v13231_v19 }
0x1351   : > { %11104 = vmatmul.msk.f32.vlgmr.msrb.gmra.mxu1 %vm654_vm0, %v5340_v32  ;;  %11106 = vmatmul.msk.f32.vlgmr.msrb.gmra.mxu2 %vm654_vm0, %v5365_v49 }
0x1352   : > { %11108 = vmatmul.msk.f32.vlgmr.msrb.gmra.mxu3 %vm654_vm0, %v5390_v17  ;;  %5731 = vmatpush.msrb.mxu2 %v13280_v43 }
0x1353   : > { %5754 = vmatpush.msrb.mxu3 %v13245_v15  ;;  %5708 = vmatpush.msrb.mxu1 %v13257_v4 }
0x1357   : > { %11110 = vmatmul.msk.f32.vlgmr.msra.gmra.mxu0 %vm654_vm0, %v5415_v6 }
0x1358   : > { %5777 = vmatpush.msra.mxu0 %v13264_v5 }
0x1359   : > { %11112 = vmatmul.msk.f32.vlgmr.msra.gmra.mxu1 %vm654_vm0, %v5440_v35  ;;  %11114 = vmatmul.msk.f32.vlgmr.msra.gmra.mxu2 %vm654_vm0, %v5465_v37 }
0x135a   : > { %11116 = vmatmul.msk.f32.vlgmr.msra.gmra.mxu3 %vm654_vm0, %v5490_v11  ;;  %5823 = vmatpush.msra.mxu2 %v13297_v13 }
0x135b   : > { %5846 = vmatpush.msra.mxu3 %v13333_v54  ;;  %5800 = vmatpush.msra.mxu1 %v13287_v45 }
0x13bc   : > { %v13378_v36 = vpop.f32.mrf.mxu0 }
0x13bd   : > { %15848 = vst [vmem:[#allocation38_spill] sm:$0xff] %v13378_v36 }
0x13be   : > { %v13380_v25 = vpop.f32.mrf.mxu1 }
0x13bf   : > { %15849 = vst [vmem:[#allocation47_spill] sm:$0xff] %v13380_v25 }
0x13c4   : > { %v13382_v40 = vpop.f32.mrf.mxu2  ;;  %v13384_v42 = vpop.f32.mrf.mxu0 }
0x13c5   : > { %15850 = vst [vmem:[#allocation48_spill] sm:$0xff] %v13382_v40  ;;  %v13386_v58 = vpop.f32.mrf.mxu3 }
0x13c6   : > { %15851 = vst [vmem:[#allocation49_spill] sm:$0xff] %v13384_v42  ;;  %v13388_v48 = vpop.f32.mrf.mxu1 }
0x13c7   : > { %15852 = vst [vmem:[#allocation50_spill] sm:$0xff] %v13386_v58 }
0x13c8   : > { %15853 = vst [vmem:[#allocation51_spill] sm:$0xff] %v13388_v48 }
0x13cc   : > { %v13390_v9 = vpop.f32.mrf.mxu2  ;;  %v5335_v53 = vpop.f32.mrf.mxu0 }
0x13cd   : > { %15854 = vst [vmem:[#allocation52_spill] sm:$0xff] %v13390_v9  ;;  %v13392_v2 = vpop.f32.mrf.mxu3  ;;  %v5521_v29 = vmul.f32 0.17677669, %v5335_v53 }
0x13ce   : > { %15855 = vst [vmem:[#allocation53_spill] sm:$0xff] %v13392_v2  ;;  %v5360_v12 = vpop.f32.mrf.mxu1 }
0x13cf   : > { %v5522_v22 = vmul.f32 0.17677669, %v5360_v12  ;;  %v5529_v14 = vadd.f32 %v5521_v29, %v15857_v34 }
0x13d1   : > { %v5530_v10 = vadd.f32 %v5522_v22, %v15831_v20 }
0x13d3   : > { %v5545_v1 = vrot.slane %v5530_v10, 7 }
0x13d4   : > { %v5385_v50 = vpop.f32.mrf.mxu2  ;;  %v5435_v24 = vpop.f32.mrf.mxu0 }
0x13d5   : > { %v5523_v46 = vmul.f32 0.17677669, %v5385_v50  ;;  %v5410_v27 = vpop.f32.mrf.mxu3  ;;  %v5525_v7 = vmul.f32 0.17677669, %v5435_v24  ;;  %v5546_v0 = vsel %vm904_vm1, %v5545_v1, %v5529_v14 }
0x13d6   : > { %v5524_v26 = vmul.f32 0.17677669, %v5410_v27  ;;  %v5460_v33 = vpop.f32.mrf.mxu1 }
0x13d7   : > { %v5531_v3 = vadd.f32 %v5523_v46, %v15856_v59  ;;  %v5526_v38 = vmul.f32 0.17677669, %v5460_v33  ;;  %v5533_v63 = vadd.f32 %v5525_v7, %v15859_v62 }
0x13d8   : > { %v5532_v60 = vadd.f32 %v5524_v26, %v15858_v23 }
0x13d9   : > { %v5547_v61 = vrot.slane %v5531_v3, 6  ;;  %v5534_v31 = vadd.f32 %v5526_v38, %v15860_v30  ;;  %v5551_v17 = vrot.slane %v5533_v63, 4 }
0x13da   : > { %v5549_v8 = vrot.slane %v5532_v60, 5 }
0x13db   : > { %v5548_v28 = vsel %vm907_vm2, %v5547_v61, %v5546_v0  ;;  %v5553_v21 = vrot.slane %v5534_v31, 3 }
0x13dc   : > { %v5550_v56 = vsel %vm910_vm3, %v5549_v8, %v5548_v28  ;;  %v5485_v49 = vpop.f32.mrf.mxu2 }
0x13dd   : > { %v5527_v44 = vmul.f32 0.17677669, %v5485_v49  ;;  %v5510_v18 = vpop.f32.mrf.mxu3  ;;  %v5552_v55 = vsel %vm913_vm4, %v5551_v17, %v5550_v56 }
0x13de   : > { %v5528_v47 = vmul.f32 0.17677669, %v5510_v18  ;;  %v5554_v32 = vsel %vm916_vm5, %v5553_v21, %v5552_v55 }
0x13df   : > { %v5535_v37 = vadd.f32 %v5527_v44, %v15861_v41 }
0x13e0   : > { %v5536_v51 = vadd.f32 %v5528_v47, %v15862_v39 }
0x13e1   : > { %v5555_v52 = vrot.slane %v5535_v37, 2 }
0x13e2   : > { %v5557_v6 = vrot.slane %v5536_v51, 1 }
0x13e3   : > { %v5556_v35 = vsel %vm919_vm6, %v5555_v52, %v5554_v32 }
0x13e4   : > { %v5558_v11 = vsel %vm922_vm7, %v5557_v6, %v5556_v35 }
0x13e5   : > { %v5560_v53 = vsel %vm925_vm8, %v5558_v11, -inf }
0x13e6   : > { %5561 = vmax.xlane.f32.xlu0 %v5560_v53 }
0x1459   : > { %v5562_v12 = vpop.xlane.xlu0 %5561 }
0x145a   : > { %v5564_v22 = vrot.slane %v5562_v12, 1  ;;  %v5565_v29 = vrot.slane %v5562_v12, 2  ;;  %v5566_v50 = vrot.slane %v5562_v12, 3  ;;  %v5567_v24 = vrot.slane %v5562_v12, 4 }
0x145b   : > { %v5568_v46 = vrot.slane %v5562_v12, 5  ;;  %v5579_v27 = vsub.f32 %v5529_v14, %v5562_v12  ;;  %v5569_v7 = vrot.slane %v5562_v12, 6  ;;  %v5570_v1 = vrot.slane %v5562_v12, 7 }
0x145c   : > { %v5580_v26 = vsub.f32 %v5530_v10, %v5564_v22  ;;  %v5581_v33 = vsub.f32 %v5531_v3, %v5565_v29  ;;  %v5582_v38 = vsub.f32 %v5532_v60, %v5566_v50  ;;  %v5583_v61 = vsub.f32 %v5533_v63, %v5567_v24 }
0x145d   : > { %v5587_v0 = vmul.f32 1.442695, %v5579_v27  ;;  %v5584_v8 = vsub.f32 %v5534_v31, %v5568_v46  ;;  %v5585_v28 = vsub.f32 %v5535_v37, %v5569_v7  ;;  %v5586_v44 = vsub.f32 %v5536_v51, %v5570_v1 }
0x145e   : > { %v5589_v56 = vmul.f32 1.442695, %v5580_v26  ;;  %v5591_v49 = vmul.f32 1.442695, %v5581_v33  ;;  %v5593_v17 = vmul.f32 1.442695, %v5582_v38 }
0x145f   : > { %11496 = vpow2.f32 %v5587_v0  ;;  %v5595_v18 = vmul.f32 1.442695, %v5583_v61  ;;  %v5597_v21 = vmul.f32 1.442695, %v5584_v8  ;;  %v5599_v47 = vmul.f32 1.442695, %v5585_v28 }
0x1460   : > { %11498 = vpow2.f32 %v5589_v56  ;;  %v5601_v14 = vmul.f32 1.442695, %v5586_v44 }
0x1461   : > { %11500 = vpow2.f32 %v5591_v49 }
0x1462   : > { %11502 = vpow2.f32 %v5593_v17 }
0x1463   : > { %11504 = vpow2.f32 %v5595_v18 }
0x1464   : > { %11506 = vpow2.f32 %v5597_v21 }
0x1465   : > { %v11497_v10 = vpop.eup %11496  ;;  %11508 = vpow2.f32 %v5599_v47 }
0x1466   : > { %v11499_v3 = vpop.eup %11498  ;;  %11510 = vpow2.f32 %v5601_v14 }
0x1467   : > { %v11501_v60 = vpop.eup %11500  ;;  %v5611_v63 = vrot.slane %v11499_v3, 7 }
0x1468   : > { %v11503_v31 = vpop.eup %11502  ;;  %v5613_v37 = vrot.slane %v11501_v60, 6 }
0x1469   : > { %v11505_v55 = vpop.eup %11504  ;;  %v5612_v51 = vsel %vm904_vm1, %v5611_v63, %v11497_v10  ;;  %v5615_v52 = vrot.slane %v11503_v31, 5 }
0x146a   : > { %v13411_v6 = vpop.eup %11506  ;;  %v5614_v32 = vsel %vm907_vm2, %v5613_v37, %v5612_v51  ;;  %v5617_v35 = vrot.slane %v11505_v55, 4 }
0x146b   : > { %v13414_v11 = vpop.eup %11508  ;;  %v5616_v53 = vsel %vm910_vm3, %v5615_v52, %v5614_v32  ;;  %v5619_v12 = vrot.slane %v13411_v6, 3  ;;  %v13431_v52 = vld [vmem:[%s15738_s7 + $0x38] sm:$0xff]  ;;  %v13446_v32 = vld [vmem:[%s15738_s7 + $0x30] sm:$0xff] }
0x146c   : > { %v13418_v22 = vpop.eup %11510  ;;  %v5618_v29 = vsel %vm913_vm4, %v5617_v35, %v5616_v53  ;;  %v5621_v50 = vrot.slane %v13414_v11, 2  ;;  %v13452_v35 = vld [vmem:[%s15740_s9 + $0x38] sm:$0xff] }
0x146d   : > { %v5620_v24 = vsel %vm916_vm5, %v5619_v12, %v5618_v29  ;;  %v5623_v46 = vrot.slane %v13418_v22, 1  ;;  %v13458_v12 = vld [vmem:[%s15738_s7 + $0x50] sm:$0xff]  ;;  %v13464_v29 = vld [vmem:[%s15738_s7 + $0x18] sm:$0xff] }
0x146e   : > { %v5622_v27 = vsel %vm919_vm6, %v5621_v50, %v5620_v24  ;;  %v13470_v24 = vld [vmem:[%s15738_s7 + $0x28] sm:$0xff] }
0x146f   : > { %v5624_v7 = vsel %vm922_vm7, %v5623_v46, %v5622_v27  ;;  %v13476_v46 = vld [vmem:[%s15740_s9 + $0x30] sm:$0xff]  ;;  %v13482_v27 = vld [vmem:[%s15738_s7 + $0x48] sm:$0xff] }
0x1470   : > { %v5626_v1 = vsel %vm925_vm8, %v5624_v7, 0.0 }
0x1471   : > { %5627 = vadd.xlane.f32.xlu1 %v5626_v1 }
0x14e4   : > { %v5628_v26 = vpop.xlane.xlu1 %5627 }
0x14e5   : > { %11512 = vrcp.f32 %v5628_v26  ;;  %v5640_v0 = vand.u32 2147483648, %v5628_v26  ;;  %v5638_v28 = vand.u32 2147483647, %v5628_v26  ;;  %vm5634_vm14 = vweird.f32 %v5628_v26 }
0x14e7   : > { %v5641_v49 = vor.u32 1.1754944e-38, %v5640_v0  ;;  %vm5639_vm9 = vcmp.eq.f32.partialorder %v5638_v28, 8.507059e+37  ;;  %v13537_v0 = vld [vmem:[%s15740_s9 + $0x10] sm:$0xff]  ;;  %v13549_v28 = vld [vmem:[%s15738_s7] sm:$0xff] }
0x14eb   : > { %v11513_v33 = vpop.eup %11512 }
0x14ec   : > { %v5630_v38 = vmul.f32 %v11513_v33, %v5628_v26  ;;  %vm5635_vm13 = vweird.f32 %v11513_v33  ;;  %v13497_v26 = vld [vmem:[%s15740_s9 + $0x28] sm:$0xff] }
0x14ed   : > { %vm5636_vm15 = vmor %vm5634_vm14, %vm5635_vm13 }
0x14ee   : > { %v5631_v61 = vsub.f32 1.0, %v5630_v38  ;;  %v13504_v38 = vld [vmem:[%s15738_s7 + $0x40] sm:$0xff] }
0x14f0   : > { %v5632_v8 = vmul.f32 %v11513_v33, %v5631_v61  ;;  %v13531_v61 = vld [vmem:[%s15738_s7 + $0x8] sm:$0xff] }
0x14f2   : > { %v5633_v56 = vadd.f32 %v11513_v33, %v5632_v8  ;;  %v13543_v8 = vld [vmem:[%s15744_s13 + $0x18] sm:$0xff] }
0x14f4   : > { %v5637_v17 = vsel %vm5636_vm15, %v11513_v33, %v5633_v56  ;;  %v13557_v56 = vld [vmem:[%s15740_s9 + $0x8] sm:$0xff] }
0x14f5   : > { %v5642_v44 = vsel %vm5639_vm9, %v5641_v49, %v5637_v17  ;;  %v13563_v49 = vld [vmem:[%s15740_s9 + $0x58] sm:$0xff]  ;;  %v13569_v17 = vld [vmem:[%s15744_s13 + $0x10] sm:$0xff] }
0x14f6   : > { %v5659_v18 = vmul.f32 %v11497_v10, %v5642_v44  ;;  %v5644_v21 = vrot.slane %v5642_v44, 1  ;;  %v5645_v47 = vrot.slane %v5642_v44, 2  ;;  %v5646_v14 = vrot.slane %v5642_v44, 3 }
0x14f7   : > { %v5647_v10 = vrot.slane %v5642_v44, 4  ;;  %v5650_v53 = vrot.slane %v5642_v44, 7 }
0x14f8   : > { %11117 = vmatmul.msk.f32.vlgmr.msrb.gmra.mxu0 %vm925_vm8, %v5659_v18  ;;  %v5660_v63 = vmul.f32 %v11499_v3, %v5644_v21  ;;  %v5661_v37 = vmul.f32 %v11501_v60, %v5645_v47  ;;  %v5662_v51 = vmul.f32 %v11503_v31, %v5646_v14  ;;  %v13440_v3 = vld [vmem:[%s15738_s7 + $0x58] sm:$0xff]  ;;  %v5648_v60 = vrot.slane %v5642_v44, 5  ;;  %v13581_v18 = vld [vmem:[%s15740_s9 + $0x50] sm:$0xff]  ;;  %v13589_v21 = vld [vmem:[%s15740_s9 + $0x48] sm:$0xff] }
0x14f9   : > { %5874 = vmatpush.msrb.mxu0 %v13431_v52  ;;  %v5649_v31 = vrot.slane %v5642_v44, 6  ;;  %v5663_v50 = vmul.f32 %v11505_v55, %v5647_v10  ;;  %v13488_v55 = vld [vmem:[%s15738_s7 + $0x10] sm:$0xff]  ;;  %v5666_v33 = vmul.f32 %v13418_v22, %v5650_v53  ;;  %v13525_v22 = vld [vmem:[%s15740_s9 + $0x20] sm:$0xff]  ;;  %v13595_v47 = vld [vmem:[%s15744_s13 + $0x8] sm:$0xff] }
0x14fa   : > { %11118 = vmatmul.msk.f32.vlgmr.msrb.gmra.mxu1 %vm925_vm8, %v5660_v63  ;;  %11119 = vmatmul.msk.f32.vlgmr.msrb.gmra.mxu2 %vm925_vm8, %v5661_v37  ;;  %v5664_v7 = vmul.f32 %v13411_v6, %v5648_v60  ;;  %v13510_v6 = vld [vmem:[%s15738_s7 + $0x20] sm:$0xff] }
0x14fb   : > { %11120 = vmatmul.msk.f32.vlgmr.msrb.gmra.mxu3 %vm925_vm8, %v5662_v51  ;;  %5938 = vmatpush.msrb.mxu2 %v13440_v3  ;;  %v5665_v1 = vmul.f32 %v13414_v11, %v5649_v31  ;;  %v13519_v11 = vld [vmem:[%s15740_s9 + $0x18] sm:$0xff]  ;;  %v13575_v44 = vld [vmem:[%s15740_s9] sm:$0xff] }
0x14fc   : > { %5875 = vmatpush.msrb.mxu0 %v13446_v32  ;;  %5980 = vmatpush.msrb.mxu3 %v13452_v35  ;;  %v13601_v14 = vld [vmem:[%s15740_s9 + $0x40] sm:$0xff] }
0x14fd   : > { %5939 = vmatpush.msrb.mxu2 %v13458_v12  ;;  %5918 = vmatpush.msrb.mxu1 %v13464_v29  ;;  %v13607_v63 = vld [vmem:[%s15744_s13] sm:$0xff] }
0x14fe   : > { %5876 = vmatpush.msrb.mxu0 %v13470_v24  ;;  %5981 = vmatpush.msrb.mxu3 %v13476_v46  ;;  %15863 = vst [vmem:[#allocation54_spill] sm:$0xff] %v13607_v63  ;;  %v11100_v37 = vld [vmem:[%s15813_s30 + $0x20] sm:$0xff] }
0x14ff   : > { %5940 = vmatpush.msrb.mxu2 %v13482_v27  ;;  %5919 = vmatpush.msrb.mxu1 %v13488_v55 }
0x1500   : > { %11121 = vmatmul.msk.f32.vlgmr.msra.gmra.mxu0 %vm925_vm8, %v5663_v50  ;;  %5982 = vmatpush.msrb.mxu3 %v13497_v26 }
0x1501   : > { %5941 = vmatpush.msrb.mxu2 %v13504_v38  ;;  %5877 = vmatpush.msrb.mxu0 %v13510_v6 }
0x1502   : > { %11122 = vmatmul.msk.f32.vlgmr.msra.gmra.mxu1 %vm925_vm8, %v5664_v7  ;;  %11123 = vmatmul.msk.f32.vlgmr.msra.gmra.mxu2 %vm925_vm8, %v5665_v1 }
0x1503   : > { %11124 = vmatmul.msk.f32.vlgmr.msra.gmra.mxu3 %vm925_vm8, %v5666_v33  ;;  %6000 = vmatpush.msra.mxu0 %v13519_v11 }
0x1504   : > { %5983 = vmatpush.msrb.mxu3 %v13525_v22  ;;  %5920 = vmatpush.msrb.mxu1 %v13531_v61 }
0x1505   : > { %6001 = vmatpush.msra.mxu0 %v13537_v0  ;;  %6062 = vmatpush.msra.mxu2 %v13543_v8 }
0x1506   : > { %5921 = vmatpush.msrb.mxu1 %v13549_v28  ;;  %11133 = vmatpush.xpose.msk.msra.mxu3 %vm654_vm0, %v13231_v19 }
0x1507   : > { %6002 = vmatpush.msra.mxu0 %v13557_v56  ;;  %6063 = vmatpush.msra.mxu2 %v13569_v17 }
0x1508   : > { %6023 = vmatpush.msra.mxu1 %v13563_v49  ;;  %11125 = vmatmul.msk.f32.vlgmr.msrb.gmra.mxu0 %vm654_vm0, %v11100_v37 }
0x1509   : > { %6003 = vmatpush.msra.mxu0 %v13575_v44  ;;  %6064 = vmatpush.msra.mxu2 %v13595_v47 }
0x150a   : > { %6024 = vmatpush.msra.mxu1 %v13581_v18  ;;  %11127 = vmatmul.msk.f32.vlgmr.msrb.gmra.mxu2 %vm654_vm0, %v13324_v16 }
0x150b   : > { %6065 = vmatpush.msra.mxu2 %v13607_v63  ;;  %11129 = vmatmul.msk.f32.vlgmr.msrb.gmra.mxu3 %vm654_vm0, %v11100_v37 }
0x150c   : > { %6025 = vmatpush.msra.mxu1 %v13589_v21  ;;  %11135 = vmatpush.xpose.msk.msrb.mxu0 %vm654_vm0, %v13257_v4 }
0x150d   : > { %11139 = vmatpush.xpose.msk.msrb.mxu2 %vm654_vm0, %v13245_v15  ;;  %11141 = vmatpush.xpose.msk.msrb.mxu3 %vm654_vm0, %v13264_v5 }
0x150e   : > { %6026 = vmatpush.msra.mxu1 %v13601_v14 }
0x1575   : > { %v5687_v51 = vpop.f32.mrf.mxu0 }
0x1577   : > { %v5710_v10 = vpop.f32.mrf.mxu1 }
0x1578   : > { %v5890_v60 = vrot.slane %v5710_v10, 7 }
0x157a   : > { %v5891_v7 = vsel %vm904_vm1, %v5890_v60, %v5687_v51 }
0x157d   : > { %v5733_v31 = vpop.f32.mrf.mxu2  ;;  %v5779_v33 = vpop.f32.mrf.mxu0 }
0x157e   : > { %v5892_v53 = vrot.slane %v5733_v31, 6  ;;  %v5756_v50 = vpop.f32.mrf.mxu3  ;;  %v5896_v48 = vrot.slane %v5779_v33, 4 }
0x157f   : > { %v5894_v1 = vrot.slane %v5756_v50, 5  ;;  %v5802_v9 = vpop.f32.mrf.mxu1 }
0x1580   : > { %v5893_v2 = vsel %vm907_vm2, %v5892_v53, %v5891_v7  ;;  %v5898_v42 = vrot.slane %v5802_v9, 3 }
0x1581   : > { %v5895_v37 = vsel %vm910_vm3, %v5894_v1, %v5893_v2 }
0x1582   : > { %v5897_v36 = vsel %vm913_vm4, %v5896_v48, %v5895_v37 }
0x1583   : > { %v5899_v10 = vsel %vm916_vm5, %v5898_v42, %v5897_v36 }
0x1585   : > { %v5825_v58 = vpop.f32.mrf.mxu2  ;;  %v5879_v48 = vpop.f32.mrf.mxu0 }
0x1586   : > { %v5900_v40 = vrot.slane %v5825_v58, 2  ;;  %v5848_v25 = vpop.f32.mrf.mxu3 }
0x1587   : > { %v5902_v31 = vrot.slane %v5848_v25, 1  ;;  %v13637_v25 = vld [vmem:[%s15739_s8] ss:$0 sm:$0xff] }
0x1588   : > { %v5901_v63 = vsel %vm919_vm6, %v5900_v40, %v5899_v10 }
0x1589   : > { %v5903_v51 = vsel %vm922_vm7, %v5902_v31, %v5901_v63 }
0x158a   : > { %11126 = vmatmul.msk.f32.vlgmr.msrb.gmra.mxu1 %vm654_vm0, %v5903_v51  ;;  %11130 = vmatmul.msk.f32.vlgmr.msra.gmra.mxu0 %vm654_vm0, %v5903_v51 }
0x158b   : > { %11137 = vmatpush.xpose.msk.msrb.mxu1 %vm654_vm0, %v13280_v43  ;;  %11143 = vmatpush.xpose.msk.msra.mxu0 %vm654_vm0, %v13287_v45 }
0x158d   : > { %v5943_v2 = vpop.f32.mrf.mxu2 }
0x1607   : > { %v5923_v58 = vpop.f32.mrf.mxu1 }
0x1608   : > { %v5924_v9 = vadd.f32 %v5923_v58, %v5879_v48 }
0x160a   : > { %v5946_v36 = vadd.f32 %v5943_v2, %v5924_v9  ;;  %v5985_v9 = vpop.f32.mrf.mxu3  ;;  %v6005_v2 = vpop.f32.mrf.mxu0 }
0x160c   : > { %v5947_v40 = vadd.f32 %v13637_v25, %v5946_v36  ;;  %v6006_v36 = vadd.f32 %v6005_v2, %v5985_v9 }
0x160e   : > { %v11128_v42 = vmul.f32 -1.442695, %v5947_v40 }
0x1610   : > { %11514 = vpow2.f32 %v11128_v42 }
0x1616   : > { %v11515_v63 = vpop.eup %11514 }
0x1617   : > { %v5951_v60 = vadd.f32 1.0, %v11515_v63  ;;  %v13647_v63 = vld [vmem:[%s15741_s10] ss:$0 sm:$0xff] }
0x1619   : > { %11516 = vrcp.f32 %v5951_v60  ;;  %v5963_v1 = vand.u32 2147483648, %v5951_v60  ;;  %v5961_v37 = vand.u32 2147483647, %v5951_v60  ;;  %vm5957_vm11 = vweird.f32 %v5951_v60 }
0x161b   : > { %v5964_v31 = vor.u32 1.1754944e-38, %v5963_v1  ;;  %vm5962_vm13 = vcmp.eq.f32.partialorder %v5961_v37, 8.507059e+37 }
0x161f   : > { %v11517_v53 = vpop.eup %11516 }
0x1620   : > { %v5953_v50 = vmul.f32 %v11517_v53, %v5951_v60  ;;  %vm5958_vm10 = vweird.f32 %v11517_v53 }
0x1621   : > { %vm5959_vm12 = vmor %vm5957_vm11, %vm5958_vm10 }
0x1622   : > { %v5954_v7 = vsub.f32 1.0, %v5953_v50 }
0x1624   : > { %v5955_v33 = vmul.f32 %v11517_v53, %v5954_v7 }
0x1626   : > { %v5956_v10 = vadd.f32 %v11517_v53, %v5955_v33 }
0x1628   : > { %v5960_v51 = vsel %vm5959_vm12, %v11517_v53, %v5956_v10 }
0x1629   : > { %v5965_v48 = vsel %vm5962_vm13, %v5964_v31, %v5960_v51 }
0x162a   : > { %v5967_v58 = vmul.f32 %v5965_v48, %v13324_v16  ;;  %v6034_v16 = vsub.f32 1.0, %v5965_v48 }
0x162c   : > { %11131 = vmatmul.msk.f32.vlgmr.msra.gmra.mxu1 %vm654_vm0, %v5967_v58  ;;  %v6035_v7 = vmul.f32 %v6034_v16, %v13304_v57 }
0x162d   : > { %11145 = vmatpush.xpose.msk.msra.mxu1 %vm654_vm0, %v13297_v13 }
0x16a9   : > { %v6028_v40 = vpop.f32.mrf.mxu1 }
0x16aa   : > { %v6031_v42 = vadd.f32 %v6028_v40, %v6006_v36 }
0x16ac   : > { %v6032_v60 = vadd.f32 %v13647_v63, %v6031_v42 }
0x16ae   : > { %11518 = vtanh.f32 %v6032_v60 }
0x16b4   : > { %v11519_v53 = vpop.eup %11518 }
0x16b5   : > { %6037 = vrot.lane.b32.xlu2 %v11519_v53, %s12028_s1 }
0x170f   : > { %v6038_v50 = vpop.permute.xlu2 %6037 }
0x1710   : > { %v6040_v1 = vmul.f32 %v6038_v50, %v5965_v48 }
0x1712   : > { %v13652_v33 = vadd.f32 %v6040_v1, %v6035_v7 }
0x1714   : > { %6043 = vrot.lane.b32.xlu2 %v13652_v33, %s12029_s25  ;;  %v6465_v37 = vrot.slane %v13652_v33, 4  ;;  %v6463_v10 = vrot.slane %v13652_v33, 2  ;;  %v6469_v58 = vperm.slane %v13652_v33, 0  ;;  %v6464_v57 = vrot.slane %v13652_v33, 3 }
0x1715   : > { %v6462_v9 = vrot.slane %v13652_v33, 1  ;;  %v6468_v36 = vrot.slane %v13652_v33, 7  ;;  %v6466_v42 = vrot.slane %v13652_v33, 5  ;;  %v6467_v53 = vrot.slane %v13652_v33, 6 }
0x1716   : > { %v6569_v31 = vperm.slane %v6465_v37, 0  ;;  %v6519_v51 = vperm.slane %v6463_v10, 0  ;;  %v6544_v48 = vperm.slane %v6464_v57, 0 }
0x1717   : > { %v6494_v2 = vperm.slane %v6462_v9, 0  ;;  %v6644_v40 = vperm.slane %v6468_v36, 0  ;;  %v6594_v60 = vperm.slane %v6466_v42, 0  ;;  %v6619_v16 = vperm.slane %v6467_v53, 0 }
0x1718   : > { %6570 = vrot.lane.b32.xlu1 %v6569_v31, %s12029_s25  ;;  %6520 = vrot.lane.b32.xlu0 %v6519_v51, %s12029_s25  ;;  %v13683_v31 = vld [vmem:[%s15745_s14] ss:$0 sm:$0xff] }
0x171c   : > { %6470 = vrot.lane.b32.xlu2 %v6469_v58, %s12029_s25 }
0x1724   : > { %6545 = vrot.lane.b32.xlu2 %v6544_v48, %s12029_s25 }
0x172c   : > { %6495 = vrot.lane.b32.xlu2 %v6494_v2, %s12029_s25 }
0x1734   : > { %6645 = vrot.lane.b32.xlu2 %v6644_v40, %s12029_s25 }
0x173c   : > { %6595 = vrot.lane.b32.xlu2 %v6594_v60, %s12029_s25 }
0x1744   : > { %6620 = vrot.lane.b32.xlu2 %v6619_v16, %s12029_s25 }
0x176e   : > { %v13672_v50 = vpop.permute.xlu2 %6043 }
0x176f   : > { %6047 = vst.msk [vmem:[#allocation2 + $0x20] sm:$0xff] %vm654_vm0, %v13672_v50  ;;  %11132 = vmatmul.msk.f32.vlgmr.msra.gmra.mxu2 %vm654_vm0, %v13672_v50 }
0x1770   : > { %11147 = vmatpush.xpose.msk.msra.mxu2 %vm654_vm0, %v13333_v54 }
0x1776   : > { %v6471_v7 = vpop.permute.xlu2 %6470 }
0x177e   : > { %v6546_v1 = vpop.permute.xlu2 %6545 }
0x1786   : > { %v6496_v37 = vpop.permute.xlu2 %6495 }
0x178a   : > { %v6521_v53 = vpop.permute.xlu0 %6520  ;;  %v6571_v16 = vpop.permute.xlu1 %6570 }
0x178e   : > { %v6646_v9 = vpop.permute.xlu2 %6645 }
0x1796   : > { %v6596_v60 = vpop.permute.xlu2 %6595 }
0x17f2   : > { %v6067_v10 = vpop.f32.mrf.mxu2 }
0x17f3   : > { %v6068_v51 = vadd.f32 %v13683_v31, %v6067_v10  ;;  %v6621_v10 = vpop.permute.xlu2 %6620 }
0x17f5   : > { %11134 = vmatmul.msk.f32.vlgmr.msra.gmra.mxu3 %vm654_vm0, %v6068_v51  ;;  %v6071_v58 = vrot.slane %v6068_v51, 1  ;;  %v6072_v57 = vrot.slane %v6068_v51, 2  ;;  %v6073_v48 = vrot.slane %v6068_v51, 3  ;;  %v6074_v2 = vrot.slane %v6068_v51, 4 }
0x17f6   : > { %11152 = vmatpush.xpose.msk.msra.mxu3 %vm654_vm0, %v13231_v19  ;;  %v6075_v36 = vrot.slane %v6068_v51, 5  ;;  %v6076_v40 = vrot.slane %v6068_v51, 6  ;;  %v6077_v42 = vrot.slane %v6068_v51, 7 }
0x17f7   : > { %11136 = vmatmul.msk.f32.vlgmr.msrb.gmra.mxu0 %vm654_vm0, %v6071_v58  ;;  %11138 = vmatmul.msk.f32.vlgmr.msrb.gmra.mxu1 %vm654_vm0, %v6072_v57 }
0x17f8   : > { %11140 = vmatmul.msk.f32.vlgmr.msrb.gmra.mxu2 %vm654_vm0, %v6073_v48  ;;  %11154 = vmatpush.xpose.msk.msrb.mxu0 %vm654_vm0, %v13257_v4 }
0x17f9   : > { %11158 = vmatpush.xpose.msk.msrb.mxu2 %vm654_vm0, %v13245_v15  ;;  %11156 = vmatpush.xpose.msk.msrb.mxu1 %vm654_vm0, %v13280_v43 }
0x17fd   : > { %11142 = vmatmul.msk.f32.vlgmr.msrb.gmra.mxu3 %vm654_vm0, %v6074_v2 }
0x17fe   : > { %11160 = vmatpush.xpose.msk.msrb.mxu3 %vm654_vm0, %v13264_v5 }
0x17ff   : > { %11144 = vmatmul.msk.f32.vlgmr.msra.gmra.mxu0 %vm654_vm0, %v6075_v36  ;;  %11146 = vmatmul.msk.f32.vlgmr.msra.gmra.mxu1 %vm654_vm0, %v6076_v40 }
0x1800   : > { %11148 = vmatmul.msk.f32.vlgmr.msra.gmra.mxu2 %vm654_vm0, %v6077_v42  ;;  %11162 = vmatpush.xpose.msk.msra.mxu0 %vm654_vm0, %v13287_v45 }
0x1801   : > { %11166 = vmatpush.xpose.msk.msra.mxu2 %vm654_vm0, %v13333_v54  ;;  %11164 = vmatpush.xpose.msk.msra.mxu1 %vm654_vm0, %v13297_v13 }
0x1805   : > { %11153 = vmatmul.msk.f32.vlgmr.msra.gmra.mxu3 %vm654_vm0, %v6471_v7 }
0x1806   : > { %6841 = vmatpush.msra.mxu3 %v13231_v19 }
0x1807   : > { %11155 = vmatmul.msk.f32.vlgmr.msrb.gmra.mxu0 %vm654_vm0, %v6496_v37  ;;  %11157 = vmatmul.msk.f32.vlgmr.msrb.gmra.mxu1 %vm654_vm0, %v6521_v53 }
0x1808   : > { %11159 = vmatmul.msk.f32.vlgmr.msrb.gmra.mxu2 %vm654_vm0, %v6546_v1  ;;  %6864 = vmatpush.msrb.mxu0 %v13257_v4 }
0x1809   : > { %6910 = vmatpush.msrb.mxu2 %v13245_v15  ;;  %6887 = vmatpush.msrb.mxu1 %v13280_v43 }
0x180d   : > { %11161 = vmatmul.msk.f32.vlgmr.msrb.gmra.mxu3 %vm654_vm0, %v6571_v16 }
0x180e   : > { %6933 = vmatpush.msrb.mxu3 %v13264_v5 }
0x180f   : > { %11163 = vmatmul.msk.f32.vlgmr.msra.gmra.mxu0 %vm654_vm0, %v6596_v60  ;;  %11165 = vmatmul.msk.f32.vlgmr.msra.gmra.mxu1 %vm654_vm0, %v6621_v10 }
0x1810   : > { %11167 = vmatmul.msk.f32.vlgmr.msra.gmra.mxu2 %vm654_vm0, %v6646_v9  ;;  %6956 = vmatpush.msra.mxu0 %v13287_v45 }
0x1811   : > { %7002 = vmatpush.msra.mxu2 %v13333_v54  ;;  %6979 = vmatpush.msra.mxu1 %v13297_v13 }
0x1874   : > { %v13726_v19 = vpop.f32.mrf.mxu0  ;;  %v13728_v15 = vpop.f32.mrf.mxu1 }
0x1875   : > { %15864 = vst [vmem:[#allocation55_spill] sm:$0xff] %v13726_v19 }
0x1876   : > { %15865 = vst [vmem:[#allocation56_spill] sm:$0xff] %v13728_v15 }
0x1878   : > { %v13730_v4 = vpop.f32.mrf.mxu3 }
0x1879   : > { %15866 = vst [vmem:[#allocation57_spill] sm:$0xff] %v13730_v4 }
0x187b   : > { %v13732_v43 = vpop.f32.mrf.mxu2 }
0x187c   : > { %15867 = vst [vmem:[#allocation58_spill] sm:$0xff] %v13732_v43  ;;  %v13734_v5 = vpop.f32.mrf.mxu0  ;;  %v13736_v7 = vpop.f32.mrf.mxu1 }
0x187d   : > { %15868 = vst [vmem:[#allocation59_spill] sm:$0xff] %v13734_v5 }
0x187e   : > { %15869 = vst [vmem:[#allocation60_spill] sm:$0xff] %v13736_v7 }
0x1880   : > { %v13738_v1 = vpop.f32.mrf.mxu3 }
0x1881   : > { %15870 = vst [vmem:[#allocation61_spill] sm:$0xff] %v13738_v1 }
0x1883   : > { %v13740_v37 = vpop.f32.mrf.mxu2 }
0x1884   : > { %15871 = vst [vmem:[#allocation62_spill] sm:$0xff] %v13740_v37  ;;  %v6516_v45 = vpop.f32.mrf.mxu0  ;;  %v6541_v54 = vpop.f32.mrf.mxu1 }
0x1885   : > { %v6678_v51 = vmul.f32 0.17677669, %v6516_v45  ;;  %v6679_v57 = vmul.f32 0.17677669, %v6541_v54 }
0x1887   : > { %v6686_v9 = vadd.f32 %v6678_v51, %v15831_v20  ;;  %v6687_v16 = vadd.f32 %v6679_v57, %v15856_v59 }
0x1888   : > { %v6491_v13 = vpop.f32.mrf.mxu3 }
0x1889   : > { %v6677_v58 = vmul.f32 0.17677669, %v6491_v13  ;;  %v6701_v37 = vrot.slane %v6686_v9, 7  ;;  %v6703_v51 = vrot.slane %v6687_v16, 6 }
0x188b   : > { %v6566_v48 = vpop.f32.mrf.mxu2  ;;  %v6685_v42 = vadd.f32 %v6677_v58, %v15857_v34 }
0x188c   : > { %v6680_v2 = vmul.f32 0.17677669, %v6566_v48  ;;  %v6616_v36 = vpop.f32.mrf.mxu0  ;;  %v6641_v40 = vpop.f32.mrf.mxu1 }
0x188d   : > { %v6682_v53 = vmul.f32 0.17677669, %v6616_v36  ;;  %v6683_v10 = vmul.f32 0.17677669, %v6641_v40  ;;  %v6702_v13 = vsel %vm904_vm1, %v6701_v37, %v6685_v42 }
0x188e   : > { %v6688_v60 = vadd.f32 %v6680_v2, %v15858_v23  ;;  %v6704_v2 = vsel %vm907_vm2, %v6703_v51, %v6702_v13 }
0x188f   : > { %v6690_v5 = vadd.f32 %v6682_v53, %v15860_v30  ;;  %v6691_v48 = vadd.f32 %v6683_v10, %v15861_v41 }
0x1890   : > { %v6591_v7 = vpop.f32.mrf.mxu3  ;;  %v6705_v54 = vrot.slane %v6688_v60, 5 }
0x1891   : > { %v6681_v45 = vmul.f32 0.17677669, %v6591_v7  ;;  %v6709_v40 = vrot.slane %v6690_v5, 3  ;;  %v6711_v15 = vrot.slane %v6691_v48, 2 }
0x1892   : > { %v6706_v57 = vsel %vm910_vm3, %v6705_v54, %v6704_v2 }
0x1893   : > { %v6689_v1 = vadd.f32 %v6681_v45, %v15859_v62  ;;  %v6666_v58 = vpop.f32.mrf.mxu2 }
0x1894   : > { %v6684_v43 = vmul.f32 0.17677669, %v6666_v58 }
0x1895   : > { %v6707_v36 = vrot.slane %v6689_v1, 4 }
0x1896   : > { %v6692_v7 = vadd.f32 %v6684_v43, %v15862_v39 }
0x1897   : > { %v6708_v37 = vsel %vm913_vm4, %v6707_v36, %v6706_v57 }
0x1898   : > { %v6713_v4 = vrot.slane %v6692_v7, 1  ;;  %v6710_v53 = vsel %vm916_vm5, %v6709_v40, %v6708_v37 }
0x1899   : > { %v6712_v10 = vsel %vm919_vm6, %v6711_v15, %v6710_v53 }
0x189a   : > { %v6714_v45 = vsel %vm922_vm7, %v6713_v4, %v6712_v10 }
0x189b   : > { %v6716_v58 = vsel %vm925_vm8, %v6714_v45, -inf }
0x189c   : > { %6717 = vmax.xlane.f32.xlu0 %v6716_v58 }
0x190f   : > { %v6718_v13 = vpop.xlane.xlu0 %6717 }
0x1910   : > { %v6720_v51 = vrot.slane %v6718_v13, 1  ;;  %v6721_v19 = vrot.slane %v6718_v13, 2  ;;  %v6722_v54 = vrot.slane %v6718_v13, 3  ;;  %v6723_v2 = vrot.slane %v6718_v13, 4 }
0x1911   : > { %v6724_v30 = vrot.slane %v6718_v13, 5  ;;  %v6735_v43 = vsub.f32 %v6685_v42, %v6718_v13  ;;  %v6725_v39 = vrot.slane %v6718_v13, 6  ;;  %v6726_v41 = vrot.slane %v6718_v13, 7 }
0x1912   : > { %v6736_v36 = vsub.f32 %v6686_v9, %v6720_v51  ;;  %v6737_v57 = vsub.f32 %v6687_v16, %v6721_v19  ;;  %v6738_v62 = vsub.f32 %v6688_v60, %v6722_v54  ;;  %v6739_v40 = vsub.f32 %v6689_v1, %v6723_v2 }
0x1913   : > { %v6743_v37 = vmul.f32 1.442695, %v6735_v43  ;;  %v6740_v15 = vsub.f32 %v6690_v5, %v6724_v30  ;;  %v6741_v53 = vsub.f32 %v6691_v48, %v6725_v39  ;;  %v6742_v58 = vsub.f32 %v6692_v7, %v6726_v41 }
0x1914   : > { %v6745_v4 = vmul.f32 1.442695, %v6736_v36  ;;  %v6747_v10 = vmul.f32 1.442695, %v6737_v57  ;;  %v6749_v45 = vmul.f32 1.442695, %v6738_v62 }
0x1915   : > { %11520 = vpow2.f32 %v6743_v37  ;;  %v6751_v23 = vmul.f32 1.442695, %v6739_v40  ;;  %v6753_v34 = vmul.f32 1.442695, %v6740_v15  ;;  %v6755_v20 = vmul.f32 1.442695, %v6741_v53 }
0x1916   : > { %11522 = vpow2.f32 %v6745_v4  ;;  %v6757_v42 = vmul.f32 1.442695, %v6742_v58 }
0x1917   : > { %11524 = vpow2.f32 %v6747_v10 }
0x1918   : > { %11526 = vpow2.f32 %v6749_v45 }
0x1919   : > { %11528 = vpow2.f32 %v6751_v23 }
0x191a   : > { %11530 = vpow2.f32 %v6753_v34 }
0x191b   : > { %v11521_v19 = vpop.eup %11520  ;;  %11532 = vpow2.f32 %v6755_v20 }
0x191c   : > { %v11523_v1 = vpop.eup %11522  ;;  %11534 = vpow2.f32 %v6757_v42 }
0x191d   : > { %v11525_v30 = vpop.eup %11524  ;;  %v6767_v39 = vrot.slane %v11523_v1, 7 }
0x191e   : > { %v11527_v5 = vpop.eup %11526  ;;  %v6769_v9 = vrot.slane %v11525_v30, 6 }
0x191f   : > { %v11529_v62 = vpop.eup %11528  ;;  %v6768_v41 = vsel %vm904_vm1, %v6767_v39, %v11521_v19  ;;  %v6771_v60 = vrot.slane %v11527_v5, 5 }
0x1920   : > { %v11531_v16 = vpop.eup %11530  ;;  %v6770_v48 = vsel %vm907_vm2, %v6769_v9, %v6768_v41  ;;  %v6773_v7 = vrot.slane %v11529_v62, 4 }
0x1921   : > { %v11533_v13 = vpop.eup %11532  ;;  %v6772_v23 = vsel %vm910_vm3, %v6771_v60, %v6770_v48  ;;  %v6775_v34 = vrot.slane %v11531_v16, 3 }
0x1922   : > { %v11535_v51 = vpop.eup %11534  ;;  %v6774_v20 = vsel %vm913_vm4, %v6773_v7, %v6772_v23  ;;  %v6777_v54 = vrot.slane %v11533_v13, 2 }
0x1923   : > { %v6776_v2 = vsel %vm916_vm5, %v6775_v34, %v6774_v20  ;;  %v6779_v43 = vrot.slane %v11535_v51, 1 }
0x1924   : > { %v6778_v36 = vsel %vm919_vm6, %v6777_v54, %v6776_v2 }
0x1925   : > { %v6780_v57 = vsel %vm922_vm7, %v6779_v43, %v6778_v36  ;;  %v13856_v36 = vld [vmem:[%s15803_s3 + $0x28] sm:$0xff] }
0x1926   : > { %v6782_v40 = vsel %vm925_vm8, %v6780_v57, 0.0 }
0x1927   : > { %6783 = vadd.xlane.f32.xlu1 %v6782_v40 }
0x199a   : > { %v6784_v37 = vpop.xlane.xlu1 %6783 }
0x199b   : > { %11536 = vrcp.f32 %v6784_v37  ;;  %v6796_v10 = vand.u32 2147483648, %v6784_v37  ;;  %v6794_v58 = vand.u32 2147483647, %v6784_v37  ;;  %vm6790_vm15 = vweird.f32 %v6784_v37 }
0x199d   : > { %v6797_v39 = vor.u32 1.1754944e-38, %v6796_v10  ;;  %vm6795_vm10 = vcmp.eq.f32.partialorder %v6794_v58, 8.507059e+37 }
0x19a1   : > { %v11537_v15 = vpop.eup %11536 }
0x19a2   : > { %v6786_v53 = vmul.f32 %v11537_v15, %v6784_v37  ;;  %vm6791_vm14 = vweird.f32 %v11537_v15 }
0x19a3   : > { %vm6792_vm9 = vmor %vm6790_vm15, %vm6791_vm14 }
0x19a4   : > { %v6787_v4 = vsub.f32 1.0, %v6786_v53 }
0x19a6   : > { %v6788_v45 = vmul.f32 %v11537_v15, %v6787_v4 }
0x19a8   : > { %v6789_v42 = vadd.f32 %v11537_v15, %v6788_v45 }
0x19aa   : > { %v6793_v9 = vsel %vm6792_vm9, %v11537_v15, %v6789_v42 }
0x19ab   : > { %v6798_v41 = vsel %vm6795_vm10, %v6797_v39, %v6793_v9 }
0x19ac   : > { %v6815_v60 = vmul.f32 %v11521_v19, %v6798_v41  ;;  %v6800_v48 = vrot.slane %v6798_v41, 1  ;;  %v6801_v7 = vrot.slane %v6798_v41, 2  ;;  %v6802_v23 = vrot.slane %v6798_v41, 3 }
0x19ad   : > { %v6803_v2 = vrot.slane %v6798_v41, 4  ;;  %v6804_v19 = vrot.slane %v6798_v41, 5  ;;  %v6805_v43 = vrot.slane %v6798_v41, 6 }
0x19ae   : > { %11168 = vmatmul.msk.f32.vlgmr.msra.gmra.mxu3 %vm925_vm8, %v6815_v60  ;;  %v6816_v34 = vmul.f32 %v11523_v1, %v6800_v48  ;;  %v6817_v20 = vmul.f32 %v11525_v30, %v6801_v7  ;;  %v6818_v54 = vmul.f32 %v11527_v5, %v6802_v23  ;;  %v6806_v1 = vrot.slane %v6798_v41, 7 }
0x19af   : > { %7030 = vmatpush.msra.mxu3 %v13431_v52  ;;  %v6819_v52 = vmul.f32 %v11529_v62, %v6803_v2 }
0x19b0   : > { %11169 = vmatmul.msk.f32.vlgmr.msrb.gmra.mxu0 %vm925_vm8, %v6816_v34  ;;  %11170 = vmatmul.msk.f32.vlgmr.msrb.gmra.mxu1 %vm925_vm8, %v6817_v20 }
0x19b1   : > { %11171 = vmatmul.msk.f32.vlgmr.msrb.gmra.mxu2 %vm925_vm8, %v6818_v54  ;;  %7094 = vmatpush.msrb.mxu1 %v13440_v3  ;;  %v6820_v3 = vmul.f32 %v11531_v16, %v6804_v19  ;;  %v13866_v54 = vld [vmem:[%s15803_s3 + $0x30] sm:$0xff] }
0x19b2   : > { %7031 = vmatpush.msra.mxu3 %v13446_v32  ;;  %7074 = vmatpush.msrb.mxu0 %v13464_v29  ;;  %v6821_v32 = vmul.f32 %v11533_v13, %v6805_v43  ;;  %v6822_v29 = vmul.f32 %v11535_v51, %v6806_v1  ;;  %v13849_v51 = vld [vmem:[%s15803_s3 + $0x10] sm:$0xff] }
0x19b3   : > { %7095 = vmatpush.msrb.mxu1 %v13458_v12  ;;  %7136 = vmatpush.msrb.mxu2 %v13452_v35  ;;  %v13800_v35 = vld [vmem:[%s15803_s3] sm:$0xff] }
0x19b4   : > { %7032 = vmatpush.msra.mxu3 %v13470_v24  ;;  %7075 = vmatpush.msrb.mxu0 %v13488_v55  ;;  %v15872_v12 = vld [vmem:[#allocation54_spill] sm:$0xff]  ;;  %v13814_v24 = vld [vmem:[%s15803_s3 + $0x18] sm:$0xff] }
0x19b5   : > { %7096 = vmatpush.msrb.mxu1 %v13482_v27  ;;  %7137 = vmatpush.msrb.mxu2 %v13476_v46  ;;  %v11151_v46 = vld [vmem:[%s15813_s30 + $0x28] sm:$0xff]  ;;  %v13833_v55 = vld [vmem:[%s15803_s3 + $0x20] sm:$0xff] }
0x19b6   : > { %11172 = vmatmul.msk.f32.vlgmr.msrb.gmra.mxu3 %vm925_vm8, %v6819_v52  ;;  %7076 = vmatpush.msrb.mxu0 %v13531_v61  ;;  %v13826_v27 = vld [vmem:[%s15803_s3 + $0x8] sm:$0xff] }
0x19b7   : > { %7097 = vmatpush.msrb.mxu1 %v13504_v38  ;;  %7033 = vmatpush.msra.mxu3 %v13510_v6 }
0x19b8   : > { %11173 = vmatmul.msk.f32.vlgmr.msra.gmra.mxu0 %vm925_vm8, %v6820_v3  ;;  %11174 = vmatmul.msk.f32.vlgmr.msra.gmra.mxu1 %vm925_vm8, %v6821_v32 }
0x19b9   : > { %11175 = vmatmul.msk.f32.vlgmr.msra.gmra.mxu2 %vm925_vm8, %v6822_v29  ;;  %7156 = vmatpush.msrb.mxu3 %v13519_v11 }
0x19ba   : > { %7138 = vmatpush.msrb.mxu2 %v13497_v26  ;;  %7077 = vmatpush.msrb.mxu0 %v13549_v28 }
0x19bb   : > { %7157 = vmatpush.msrb.mxu3 %v13537_v0  ;;  %7218 = vmatpush.msra.mxu1 %v13543_v8 }
0x19bc   : > { %7179 = vmatpush.msra.mxu0 %v13563_v49  ;;  %7139 = vmatpush.msrb.mxu2 %v13525_v22 }
0x19bd   : > { %7158 = vmatpush.msrb.mxu3 %v13557_v56  ;;  %7219 = vmatpush.msra.mxu1 %v13569_v17 }
0x19be   : > { %7180 = vmatpush.msra.mxu0 %v13581_v18  ;;  %11184 = vmatpush.xpose.msk.msra.mxu2 %vm654_vm0, %v13800_v35 }
0x19bf   : > { %7159 = vmatpush.msrb.mxu3 %v13575_v44  ;;  %7220 = vmatpush.msra.mxu1 %v13595_v47 }
0x19c0   : > { %7181 = vmatpush.msra.mxu0 %v13589_v21  ;;  %11178 = vmatmul.msk.f32.vlgmr.msrb.gmra.mxu1 %vm654_vm0, %v13672_v50 }
0x19c1   : > { %7221 = vmatpush.msra.mxu1 %v15872_v12  ;;  %11176 = vmatmul.msk.f32.vlgmr.msra.gmra.mxu3 %vm654_vm0, %v11151_v46 }
0x19c2   : > { %7182 = vmatpush.msra.mxu0 %v13601_v14  ;;  %11180 = vmatmul.msk.f32.vlgmr.msrb.gmra.mxu2 %vm654_vm0, %v11151_v46 }
0x19c3   : > { %11190 = vmatpush.xpose.msk.msrb.mxu1 %vm654_vm0, %v13814_v24  ;;  %11186 = vmatpush.xpose.msk.msra.mxu3 %vm654_vm0, %v13826_v27 }
0x19c4   : > { %11192 = vmatpush.xpose.msk.msrb.mxu2 %vm654_vm0, %v13833_v55 }
0x1a2d   : > { %v6866_v26 = vpop.f32.mrf.mxu0  ;;  %v6889_v38 = vpop.f32.mrf.mxu1 }
0x1a2e   : > { %v7046_v22 = vrot.slane %v6866_v26, 7  ;;  %v7048_v8 = vrot.slane %v6889_v38, 6 }
0x1a31   : > { %v6843_v6 = vpop.f32.mrf.mxu3 }
0x1a32   : > { %v7047_v61 = vsel %vm904_vm1, %v7046_v22, %v6843_v6 }
0x1a33   : > { %v7049_v17 = vsel %vm907_vm2, %v7048_v8, %v7047_v61 }
0x1a34   : > { %v6912_v11 = vpop.f32.mrf.mxu2 }
0x1a35   : > { %v7050_v0 = vrot.slane %v6912_v11, 5  ;;  %v6958_v28 = vpop.f32.mrf.mxu0  ;;  %v6981_v56 = vpop.f32.mrf.mxu1 }
0x1a36   : > { %v7054_v21 = vrot.slane %v6958_v28, 3  ;;  %v7056_v47 = vrot.slane %v6981_v56, 2 }
0x1a37   : > { %v7051_v18 = vsel %vm910_vm3, %v7050_v0, %v7049_v17 }
0x1a39   : > { %v6935_v49 = vpop.f32.mrf.mxu3 }
0x1a3a   : > { %v7052_v44 = vrot.slane %v6935_v49, 4 }
0x1a3c   : > { %v7053_v14 = vsel %vm913_vm4, %v7052_v44, %v7051_v18  ;;  %v7004_v30 = vpop.f32.mrf.mxu2 }
0x1a3d   : > { %v7055_v5 = vsel %vm916_vm5, %v7054_v21, %v7053_v14  ;;  %v7058_v62 = vrot.slane %v7004_v30, 1  ;;  %v7099_v15 = vpop.f32.mrf.mxu1 }
0x1a3e   : > { %v7057_v16 = vsel %vm919_vm6, %v7056_v47, %v7055_v5  ;;  %v13902_v47 = vld [vmem:[%s15803_s3 + $0x38] sm:$0xff] }
0x1a3f   : > { %v7059_v13 = vsel %vm922_vm7, %v7058_v62, %v7057_v16 }
0x1a40   : > { %11177 = vmatmul.msk.f32.vlgmr.msrb.gmra.mxu0 %vm654_vm0, %v7059_v13  ;;  %11181 = vmatmul.msk.f32.vlgmr.msrb.gmra.mxu3 %vm654_vm0, %v7059_v13 }
0x1a41   : > { %11188 = vmatpush.xpose.msk.msrb.mxu0 %vm654_vm0, %v13849_v51  ;;  %11194 = vmatpush.xpose.msk.msrb.mxu3 %vm654_vm0, %v13856_v36 }
0x1a44   : > { %v7035_v57 = vpop.f32.mrf.mxu3 }
0x1a45   : > { %v7141_v2 = vpop.f32.mrf.mxu2 }
0x1abd   : > { %v7079_v40 = vpop.f32.mrf.mxu0 }
0x1abe   : > { %v7080_v37 = vadd.f32 %v7079_v40, %v7035_v57 }
0x1ac0   : > { %v7102_v53 = vadd.f32 %v7099_v15, %v7080_v37 }
0x1ac2   : > { %v7103_v4 = vadd.f32 %v13637_v25, %v7102_v53 }
0x1ac3   : > { %v7161_v19 = vpop.f32.mrf.mxu3 }
0x1ac4   : > { %v11179_v10 = vmul.f32 -1.442695, %v7103_v4  ;;  %v7162_v43 = vadd.f32 %v7161_v19, %v7141_v2 }
0x1ac6   : > { %11538 = vpow2.f32 %v11179_v10 }
0x1acc   : > { %v11539_v45 = vpop.eup %11538 }
0x1acd   : > { %v7107_v58 = vadd.f32 1.0, %v11539_v45 }
0x1acf   : > { %11540 = vrcp.f32 %v7107_v58  ;;  %v7119_v41 = vand.u32 2147483648, %v7107_v58  ;;  %v7117_v48 = vand.u32 2147483647, %v7107_v58  ;;  %vm7113_vm12 = vweird.f32 %v7107_v58 }
0x1ad1   : > { %v7120_v23 = vor.u32 1.1754944e-38, %v7119_v41  ;;  %vm7118_vm14 = vcmp.eq.f32.partialorder %v7117_v48, 8.507059e+37 }
0x1ad5   : > { %v11541_v42 = vpop.eup %11540 }
0x1ad6   : > { %v7109_v39 = vmul.f32 %v11541_v42, %v7107_v58  ;;  %vm7114_vm11 = vweird.f32 %v11541_v42 }
0x1ad7   : > { %vm7115_vm13 = vmor %vm7113_vm12, %vm7114_vm11 }
0x1ad8   : > { %v7110_v9 = vsub.f32 1.0, %v7109_v39 }
0x1ada   : > { %v7111_v60 = vmul.f32 %v11541_v42, %v7110_v9 }
0x1adc   : > { %v7112_v7 = vadd.f32 %v11541_v42, %v7111_v60 }
0x1ade   : > { %v7116_v34 = vsel %vm7115_vm13, %v11541_v42, %v7112_v7 }
0x1adf   : > { %v7121_v20 = vsel %vm7118_vm14, %v7120_v23, %v7116_v34 }
0x1ae0   : > { %v7123_v25 = vmul.f32 %v7121_v20, %v13672_v50  ;;  %v7190_v50 = vsub.f32 1.0, %v7121_v20 }
0x1ae2   : > { %11182 = vmatmul.msk.f32.vlgmr.msra.gmra.mxu0 %vm654_vm0, %v7123_v25  ;;  %v7191_v12 = vmul.f32 %v7190_v50, %v13652_v33  ;;  %v15881_v50 = vld [vmem:[#allocation15_spill] sm:$0xff] }
0x1ae3   : > { %11196 = vmatpush.xpose.msk.msra.mxu0 %vm654_vm0, %v13866_v54 }
0x1b5f   : > { %v7184_v1 = vpop.f32.mrf.mxu0 }
0x1b60   : > { %v7187_v52 = vadd.f32 %v7184_v1, %v7162_v43 }
0x1b62   : > { %v7188_v3 = vadd.f32 %v13647_v63, %v7187_v52 }
0x1b64   : > { %11542 = vtanh.f32 %v7188_v3 }
0x1b6a   : > { %v11543_v32 = vpop.eup %11542 }
0x1b6b   : > { %7193 = vrot.lane.b32.xlu2 %v11543_v32, %s12028_s1 }
0x1bc5   : > { %v7194_v29 = vpop.permute.xlu2 %7193 }
0x1bc6   : > { %v7196_v46 = vmul.f32 %v7194_v29, %v7121_v20 }
0x1bc8   : > { %v13873_v26 = vadd.f32 %v7196_v46, %v7191_v12 }
0x1bca   : > { %7199 = vrot.lane.b32.xlu2 %v13873_v26, %s12029_s25  ;;  %v7622_v38 = vrot.slane %v13873_v26, 5  ;;  %v7621_v6 = vrot.slane %v13873_v26, 4  ;;  %v7625_v22 = vperm.slane %v13873_v26, 0  ;;  %v7618_v33 = vrot.slane %v13873_v26, 1 }
0x1bcb   : > { %v7619_v0 = vrot.slane %v13873_v26, 2  ;;  %v7620_v28 = vrot.slane %v13873_v26, 3  ;;  %v7623_v49 = vrot.slane %v13873_v26, 6  ;;  %v7624_v44 = vrot.slane %v13873_v26, 7 }
0x1bcc   : > { %v7750_v11 = vperm.slane %v7622_v38, 0  ;;  %v7725_v63 = vperm.slane %v7621_v6, 0  ;;  %v7650_v61 = vperm.slane %v7618_v33, 0  ;;  %v15882_v38 = vld [vmem:[#allocation14_spill] sm:$0xff] }
0x1bcd   : > { %v7675_v8 = vperm.slane %v7619_v0, 0  ;;  %v7700_v56 = vperm.slane %v7620_v28, 0  ;;  %v7775_v17 = vperm.slane %v7623_v49, 0  ;;  %v7800_v18 = vperm.slane %v7624_v44, 0  ;;  %v15884_v44 = vld [vmem:[#allocation18_spill] sm:$0xff] }
0x1bce   : > { %7751 = vrot.lane.b32.xlu1 %v7750_v11, %s12029_s25  ;;  %7726 = vrot.lane.b32.xlu0 %v7725_v63, %s12029_s25  ;;  %v15883_v63 = vld [vmem:[#allocation17_spill] sm:$0xff] }
0x1bd2   : > { %7626 = vrot.lane.b32.xlu2 %v7625_v22, %s12029_s25 }
0x1bda   : > { %7651 = vrot.lane.b32.xlu2 %v7650_v61, %s12029_s25 }
0x1be2   : > { %7676 = vrot.lane.b32.xlu2 %v7675_v8, %s12029_s25 }
0x1bea   : > { %7701 = vrot.lane.b32.xlu2 %v7700_v56, %s12029_s25 }
0x1bf2   : > { %7776 = vrot.lane.b32.xlu2 %v7775_v17, %s12029_s25 }
0x1bfa   : > { %7801 = vrot.lane.b32.xlu2 %v7800_v18, %s12029_s25 }
0x1c24   : > { %v13893_v21 = vpop.permute.xlu2 %7199 }
0x1c25   : > { %7203 = vst.msk [vmem:[#allocation2 + $0x28] sm:$0xff] %vm654_vm0, %v13893_v21  ;;  %11183 = vmatmul.msk.f32.vlgmr.msra.gmra.mxu1 %vm654_vm0, %v13893_v21 }
0x1c26   : > { %11198 = vmatpush.xpose.msk.msra.mxu1 %vm654_vm0, %v13902_v47 }
0x1c2c   : > { %v7627_v14 = vpop.permute.xlu2 %7626 }
0x1c34   : > { %v7652_v30 = vpop.permute.xlu2 %7651 }
0x1c3c   : > { %v7677_v5 = vpop.permute.xlu2 %7676 }
0x1c40   : > { %v7727_v45 = vpop.permute.xlu0 %7726  ;;  %v7752_v58 = vpop.permute.xlu1 %7751 }
0x1ca2   : > { %v7223_v62 = vpop.f32.mrf.mxu1 }
0x1ca3   : > { %v7224_v16 = vadd.f32 %v13683_v31, %v7223_v62  ;;  %v7702_v31 = vpop.permute.xlu2 %7701 }
0x1ca5   : > { %11185 = vmatmul.msk.f32.vlgmr.msra.gmra.mxu2 %vm654_vm0, %v7224_v16  ;;  %v7227_v13 = vrot.slane %v7224_v16, 1  ;;  %v7228_v57 = vrot.slane %v7224_v16, 2  ;;  %v7229_v40 = vrot.slane %v7224_v16, 3  ;;  %v7230_v37 = vrot.slane %v7224_v16, 4 }
0x1ca6   : > { %11203 = vmatpush.xpose.msk.msra.mxu2 %vm654_vm0, %v13800_v35  ;;  %v7231_v15 = vrot.slane %v7224_v16, 5  ;;  %v7232_v53 = vrot.slane %v7224_v16, 6  ;;  %v7233_v4 = vrot.slane %v7224_v16, 7  ;;  %v15886_v16 = vld [vmem:[#allocation21_spill] sm:$0xff] }
0x1ca7   : > { %11187 = vmatmul.msk.f32.vlgmr.msra.gmra.mxu3 %vm654_vm0, %v7227_v13  ;;  %11189 = vmatmul.msk.f32.vlgmr.msrb.gmra.mxu0 %vm654_vm0, %v7228_v57 }
0x1ca8   : > { %11191 = vmatmul.msk.f32.vlgmr.msrb.gmra.mxu1 %vm654_vm0, %v7229_v40  ;;  %11205 = vmatpush.xpose.msk.msra.mxu3 %vm654_vm0, %v13826_v27  ;;  %v15887_v40 = vld [vmem:[#allocation19_spill] sm:$0xff] }
0x1ca9   : > { %11207 = vmatpush.xpose.msk.msrb.mxu0 %vm654_vm0, %v13849_v51  ;;  %11209 = vmatpush.xpose.msk.msrb.mxu1 %vm654_vm0, %v13814_v24 }
0x1cab   : > { %v7777_v10 = vpop.permute.xlu2 %7776 }
0x1cad   : > { %11193 = vmatmul.msk.f32.vlgmr.msrb.gmra.mxu2 %vm654_vm0, %v7230_v37 }
0x1cae   : > { %11211 = vmatpush.xpose.msk.msrb.mxu2 %vm654_vm0, %v13833_v55 }
0x1caf   : > { %11195 = vmatmul.msk.f32.vlgmr.msrb.gmra.mxu3 %vm654_vm0, %v7231_v15  ;;  %11197 = vmatmul.msk.f32.vlgmr.msra.gmra.mxu0 %vm654_vm0, %v7232_v53 }
0x1cb0   : > { %11199 = vmatmul.msk.f32.vlgmr.msra.gmra.mxu1 %vm654_vm0, %v7233_v4  ;;  %11213 = vmatpush.xpose.msk.msrb.mxu3 %vm654_vm0, %v13856_v36 }
0x1cb1   : > { %11215 = vmatpush.xpose.msk.msra.mxu0 %vm654_vm0, %v13866_v54  ;;  %11217 = vmatpush.xpose.msk.msra.mxu1 %vm654_vm0, %v13902_v47 }
0x1cb3   : > { %v7802_v42 = vpop.permute.xlu2 %7801 }
0x1cb5   : > { %11204 = vmatmul.msk.f32.vlgmr.msra.gmra.mxu2 %vm654_vm0, %v7627_v14 }
0x1cb6   : > { %7997 = vmatpush.msra.mxu2 %v13800_v35 }
0x1cb7   : > { %11206 = vmatmul.msk.f32.vlgmr.msra.gmra.mxu3 %vm654_vm0, %v7652_v30  ;;  %11208 = vmatmul.msk.f32.vlgmr.msrb.gmra.mxu0 %vm654_vm0, %v7677_v5  ;;  %v15885_v5 = vld [vmem:[#allocation20_spill] sm:$0xff] }
0x1cb8   : > { %11210 = vmatmul.msk.f32.vlgmr.msrb.gmra.mxu1 %vm654_vm0, %v7702_v31  ;;  %8020 = vmatpush.msra.mxu3 %v13826_v27 }
0x1cb9   : > { %8043 = vmatpush.msrb.mxu0 %v13849_v51  ;;  %8066 = vmatpush.msrb.mxu1 %v13814_v24 }
0x1cbd   : > { %11212 = vmatmul.msk.f32.vlgmr.msrb.gmra.mxu2 %vm654_vm0, %v7727_v45 }
0x1cbe   : > { %8089 = vmatpush.msrb.mxu2 %v13833_v55 }
0x1cbf   : > { %11214 = vmatmul.msk.f32.vlgmr.msrb.gmra.mxu3 %vm654_vm0, %v7752_v58  ;;  %11216 = vmatmul.msk.f32.vlgmr.msra.gmra.mxu0 %vm654_vm0, %v7777_v10 }
0x1cc0   : > { %11218 = vmatmul.msk.f32.vlgmr.msra.gmra.mxu1 %vm654_vm0, %v7802_v42  ;;  %8112 = vmatpush.msrb.mxu3 %v13856_v36 }
0x1cc1   : > { %8135 = vmatpush.msra.mxu0 %v13866_v54  ;;  %8158 = vmatpush.msra.mxu1 %v13902_v47 }
0x1d24   : > { %v13947_v39 = vpop.f32.mrf.mxu0 }
0x1d25   : > { %15873 = vst [vmem:[#allocation54_spill] sm:$0xff] %v13947_v39  ;;  %v13949_v9 = vpop.f32.mrf.mxu1 }
0x1d26   : > { %15874 = vst [vmem:[#allocation63_spill] sm:$0xff] %v13949_v9 }
0x1d28   : > { %v13951_v41 = vpop.f32.mrf.mxu2 }
0x1d29   : > { %15875 = vst [vmem:[#allocation64_spill] sm:$0xff] %v13951_v41 }
0x1d2a   : > { %v13953_v60 = vpop.f32.mrf.mxu3 }
0x1d2b   : > { %15876 = vst [vmem:[#allocation65_spill] sm:$0xff] %v13953_v60 }
0x1d2c   : > { %v13955_v48 = vpop.f32.mrf.mxu0 }
0x1d2d   : > { %15877 = vst [vmem:[#allocation66_spill] sm:$0xff] %v13955_v48  ;;  %v13957_v7 = vpop.f32.mrf.mxu1 }
0x1d2e   : > { %15878 = vst [vmem:[#allocation67_spill] sm:$0xff] %v13957_v7 }
0x1d30   : > { %v13959_v23 = vpop.f32.mrf.mxu2 }
0x1d31   : > { %15879 = vst [vmem:[#allocation68_spill] sm:$0xff] %v13959_v23 }
0x1d32   : > { %v13961_v34 = vpop.f32.mrf.mxu3 }
0x1d33   : > { %15880 = vst [vmem:[#allocation69_spill] sm:$0xff] %v13961_v34 }
0x1d34   : > { %v7697_v20 = vpop.f32.mrf.mxu0 }
0x1d35   : > { %v7722_v25 = vpop.f32.mrf.mxu1  ;;  %v7835_v19 = vmul.f32 0.17677669, %v7697_v20 }
0x1d36   : > { %v7836_v3 = vmul.f32 0.17677669, %v7722_v25 }
0x1d37   : > { %v7843_v32 = vadd.f32 %v7835_v19, %v15856_v59 }
0x1d38   : > { %v7647_v2 = vpop.f32.mrf.mxu2  ;;  %v7844_v22 = vadd.f32 %v7836_v3, %v15883_v63 }
0x1d39   : > { %v7833_v1 = vmul.f32 0.17677669, %v7647_v2  ;;  %v7859_v0 = vrot.slane %v7843_v32, 6 }
0x1d3a   : > { %v7672_v43 = vpop.f32.mrf.mxu3  ;;  %v7861_v30 = vrot.slane %v7844_v22, 5 }
0x1d3b   : > { %v7834_v52 = vmul.f32 0.17677669, %v7672_v43  ;;  %v7841_v6 = vadd.f32 %v7833_v1, %v15882_v38 }
0x1d3c   : > { %v7797_v12 = vpop.f32.mrf.mxu0 }
0x1d3d   : > { %v7842_v29 = vadd.f32 %v7834_v52, %v15881_v50  ;;  %v7822_v46 = vpop.f32.mrf.mxu1  ;;  %v7839_v33 = vmul.f32 0.17677669, %v7797_v12 }
0x1d3e   : > { %v7840_v28 = vmul.f32 0.17677669, %v7822_v46 }
0x1d3f   : > { %v7857_v11 = vrot.slane %v7842_v29, 7  ;;  %v7847_v62 = vadd.f32 %v7839_v33, %v15885_v5 }
0x1d40   : > { %v7747_v61 = vpop.f32.mrf.mxu2  ;;  %v7848_v13 = vadd.f32 %v7840_v28, %v15886_v16 }
0x1d41   : > { %v7858_v8 = vsel %vm904_vm1, %v7857_v11, %v7841_v6  ;;  %v7837_v56 = vmul.f32 0.17677669, %v7747_v61  ;;  %v7867_v4 = vrot.slane %v7847_v62, 2 }
0x1d42   : > { %v7772_v49 = vpop.f32.mrf.mxu3  ;;  %v7860_v17 = vsel %vm907_vm2, %v7859_v0, %v7858_v8  ;;  %v7869_v10 = vrot.slane %v7848_v13, 1 }
0x1d43   : > { %v7845_v18 = vadd.f32 %v7837_v56, %v15884_v44  ;;  %v7838_v14 = vmul.f32 0.17677669, %v7772_v49  ;;  %v7862_v37 = vsel %vm910_vm3, %v7861_v30, %v7860_v17 }
0x1d45   : > { %v7863_v57 = vrot.slane %v7845_v18, 4  ;;  %v7846_v31 = vadd.f32 %v7838_v14, %v15887_v40 }
0x1d47   : > { %v7865_v15 = vrot.slane %v7846_v31, 3  ;;  %v7864_v53 = vsel %vm913_vm4, %v7863_v57, %v7862_v37 }
0x1d49   : > { %v7866_v45 = vsel %vm916_vm5, %v7865_v15, %v7864_v53 }
0x1d4a   : > { %v7868_v58 = vsel %vm919_vm6, %v7867_v4, %v7866_v45 }
0x1d4b   : > { %v7870_v42 = vsel %vm922_vm7, %v7869_v10, %v7868_v58 }
0x1d4c   : > { %v7872_v20 = vsel %vm925_vm8, %v7870_v42, -inf }
0x1d4d   : > { %7873 = vmax.xlane.f32.xlu0 %v7872_v20 }
0x1dc0   : > { %v7874_v25 = vpop.xlane.xlu0 %7873 }
0x1dc1   : > { %v7876_v2 = vrot.slane %v7874_v25, 1  ;;  %v7877_v19 = vrot.slane %v7874_v25, 2  ;;  %v7878_v43 = vrot.slane %v7874_v25, 3  ;;  %v7879_v1 = vrot.slane %v7874_v25, 4 }
0x1dc2   : > { %v7880_v52 = vrot.slane %v7874_v25, 5  ;;  %v7891_v3 = vsub.f32 %v7841_v6, %v7874_v25  ;;  %v7881_v12 = vrot.slane %v7874_v25, 6  ;;  %v7882_v46 = vrot.slane %v7874_v25, 7 }
0x1dc3   : > { %v7892_v11 = vsub.f32 %v7842_v29, %v7876_v2  ;;  %v7893_v33 = vsub.f32 %v7843_v32, %v7877_v19  ;;  %v7894_v61 = vsub.f32 %v7844_v22, %v7878_v43  ;;  %v7895_v0 = vsub.f32 %v7845_v18, %v7879_v1 }
0x1dc4   : > { %v7899_v8 = vmul.f32 1.442695, %v7891_v3  ;;  %v7896_v28 = vsub.f32 %v7846_v31, %v7880_v52  ;;  %v7897_v56 = vsub.f32 %v7847_v62, %v7881_v12  ;;  %v7898_v30 = vsub.f32 %v7848_v13, %v7882_v46 }
0x1dc5   : > { %v7901_v49 = vmul.f32 1.442695, %v7892_v11  ;;  %v7903_v17 = vmul.f32 1.442695, %v7893_v33  ;;  %v7905_v14 = vmul.f32 1.442695, %v7894_v61 }
0x1dc6   : > { %11544 = vpow2.f32 %v7899_v8  ;;  %v7907_v57 = vmul.f32 1.442695, %v7895_v0  ;;  %v7909_v37 = vmul.f32 1.442695, %v7896_v28  ;;  %v7911_v15 = vmul.f32 1.442695, %v7897_v56 }
0x1dc7   : > { %11546 = vpow2.f32 %v7901_v49  ;;  %v7913_v6 = vmul.f32 1.442695, %v7898_v30 }
0x1dc8   : > { %11548 = vpow2.f32 %v7903_v17 }
0x1dc9   : > { %11550 = vpow2.f32 %v7905_v14 }
0x1dca   : > { %11552 = vpow2.f32 %v7907_v57 }
0x1dcb   : > { %11554 = vpow2.f32 %v7909_v37 }
0x1dcc   : > { %v11545_v32 = vpop.eup %11544  ;;  %11556 = vpow2.f32 %v7911_v15 }
0x1dcd   : > { %v11547_v29 = vpop.eup %11546  ;;  %11558 = vpow2.f32 %v7913_v6 }
0x1dce   : > { %v11549_v22 = vpop.eup %11548  ;;  %v7923_v18 = vrot.slane %v11547_v29, 7 }
0x1dcf   : > { %v11551_v62 = vpop.eup %11550  ;;  %v7925_v31 = vrot.slane %v11549_v22, 6 }
0x1dd0   : > { %v11553_v53 = vpop.eup %11552  ;;  %v7924_v13 = vsel %vm904_vm1, %v7923_v18, %v11545_v32  ;;  %v7927_v4 = vrot.slane %v11551_v62, 5 }
0x1dd1   : > { %v13980_v10 = vpop.eup %11554  ;;  %v7926_v45 = vsel %vm907_vm2, %v7925_v31, %v7924_v13  ;;  %v7929_v58 = vrot.slane %v11553_v53, 4 }
0x1dd2   : > { %v13983_v42 = vpop.eup %11556  ;;  %v7928_v20 = vsel %vm910_vm3, %v7927_v4, %v7926_v45  ;;  %v7931_v25 = vrot.slane %v13980_v10, 3  ;;  %v14000_v4 = vld [vmem:[%s15738_s7 + $0x38] sm:$0xff]  ;;  %v14015_v45 = vld [vmem:[%s15738_s7 + $0x30] sm:$0xff] }
0x1dd3   : > { %v13987_v2 = vpop.eup %11558  ;;  %v7930_v19 = vsel %vm913_vm4, %v7929_v58, %v7928_v20  ;;  %v7933_v43 = vrot.slane %v13983_v42, 2  ;;  %v14021_v58 = vld [vmem:[%s15738_s7 + $0x18] sm:$0xff] }
0x1dd4   : > { %v7932_v1 = vsel %vm916_vm5, %v7931_v25, %v7930_v19  ;;  %v7935_v52 = vrot.slane %v13987_v2, 1  ;;  %v14027_v25 = vld [vmem:[%s15738_s7 + $0x50] sm:$0xff]  ;;  %v14033_v19 = vld [vmem:[%s15740_s9 + $0x38] sm:$0xff] }
0x1dd5   : > { %v7934_v3 = vsel %vm919_vm6, %v7933_v43, %v7932_v1  ;;  %v14039_v1 = vld [vmem:[%s15738_s7 + $0x28] sm:$0xff] }
0x1dd6   : > { %v7936_v12 = vsel %vm922_vm7, %v7935_v52, %v7934_v3  ;;  %v14045_v52 = vld [vmem:[%s15738_s7 + $0x10] sm:$0xff]  ;;  %v14051_v3 = vld [vmem:[%s15738_s7 + $0x48] sm:$0xff] }
0x1dd7   : > { %v7938_v46 = vsel %vm925_vm8, %v7936_v12, 0.0 }
0x1dd8   : > { %7939 = vadd.xlane.f32.xlu2 %v7938_v46 }
0x1e4b   : > { %v7940_v11 = vpop.xlane.xlu2 %7939 }
0x1e4c   : > { %11560 = vrcp.f32 %v7940_v11  ;;  %v7952_v8 = vand.u32 2147483648, %v7940_v11  ;;  %v7950_v56 = vand.u32 2147483647, %v7940_v11  ;;  %vm7946_vm9 = vweird.f32 %v7940_v11 }
0x1e4e   : > { %v7953_v17 = vor.u32 1.1754944e-38, %v7952_v8  ;;  %vm7951_vm11 = vcmp.eq.f32.partialorder %v7950_v56, 8.507059e+37  ;;  %v14106_v8 = vld [vmem:[%s15740_s9 + $0x10] sm:$0xff]  ;;  %v14118_v56 = vld [vmem:[%s15740_s9 + $0x20] sm:$0xff] }
0x1e52   : > { %v11561_v33 = vpop.eup %11560 }
0x1e53   : > { %v7942_v61 = vmul.f32 %v11561_v33, %v7940_v11  ;;  %vm7947_vm15 = vweird.f32 %v11561_v33  ;;  %v14066_v11 = vld [vmem:[%s15738_s7 + $0x8] sm:$0xff] }
0x1e54   : > { %vm7948_vm10 = vmor %vm7946_vm9, %vm7947_vm15 }
0x1e55   : > { %v7943_v0 = vsub.f32 1.0, %v7942_v61  ;;  %v14073_v61 = vld [vmem:[%s15738_s7 + $0x40] sm:$0xff] }
0x1e57   : > { %v7944_v28 = vmul.f32 %v11561_v33, %v7943_v0  ;;  %v14100_v0 = vld [vmem:[%s15740_s9 + $0x28] sm:$0xff] }
0x1e59   : > { %v7945_v49 = vadd.f32 %v11561_v33, %v7944_v28  ;;  %v14112_v28 = vld [vmem:[%s15740_s9 + $0x58] sm:$0xff] }
0x1e5b   : > { %v7949_v14 = vsel %vm7948_vm10, %v11561_v33, %v7945_v49  ;;  %v14124_v49 = vld [vmem:[%s15744_s13 + $0x18] sm:$0xff] }
0x1e5c   : > { %v7954_v30 = vsel %vm7951_vm11, %v7953_v17, %v7949_v14  ;;  %v14130_v17 = vld [vmem:[%s15740_s9 + $0x8] sm:$0xff]  ;;  %v14136_v14 = vld [vmem:[%s15740_s9 + $0x50] sm:$0xff] }
0x1e5d   : > { %v7971_v57 = vmul.f32 %v11545_v32, %v7954_v30  ;;  %v7956_v37 = vrot.slane %v7954_v30, 1  ;;  %v7957_v15 = vrot.slane %v7954_v30, 2  ;;  %v7958_v6 = vrot.slane %v7954_v30, 3 }
0x1e5e   : > { %v7959_v32 = vrot.slane %v7954_v30, 4  ;;  %v7962_v20 = vrot.slane %v7954_v30, 7 }
0x1e5f   : > { %11219 = vmatmul.msk.f32.vlgmr.msra.gmra.mxu2 %vm925_vm8, %v7971_v57  ;;  %v7972_v18 = vmul.f32 %v11547_v29, %v7956_v37  ;;  %v7973_v31 = vmul.f32 %v11549_v22, %v7957_v15  ;;  %v7974_v13 = vmul.f32 %v11551_v62, %v7958_v6  ;;  %v14009_v29 = vld [vmem:[%s15738_s7 + $0x58] sm:$0xff]  ;;  %v7960_v22 = vrot.slane %v7954_v30, 5  ;;  %v14150_v57 = vld [vmem:[%s15740_s9] sm:$0xff]  ;;  %v14156_v37 = vld [vmem:[%s15740_s9 + $0x48] sm:$0xff] }
0x1e60   : > { %8186 = vmatpush.msra.mxu2 %v14000_v4  ;;  %v7961_v62 = vrot.slane %v7954_v30, 6  ;;  %v7975_v43 = vmul.f32 %v11553_v53, %v7959_v32  ;;  %v14057_v53 = vld [vmem:[%s15740_s9 + $0x30] sm:$0xff]  ;;  %v7978_v33 = vmul.f32 %v13987_v2, %v7962_v20  ;;  %v14094_v2 = vld [vmem:[%s15738_s7] sm:$0xff]  ;;  %v14170_v6 = vld [vmem:[%s15744_s13 + $0x8] sm:$0xff] }
0x1e61   : > { %11220 = vmatmul.msk.f32.vlgmr.msra.gmra.mxu3 %vm925_vm8, %v7972_v18  ;;  %11221 = vmatmul.msk.f32.vlgmr.msrb.gmra.mxu0 %vm925_vm8, %v7973_v31  ;;  %v7976_v12 = vmul.f32 %v13980_v10, %v7960_v22  ;;  %v14079_v10 = vld [vmem:[%s15738_s7 + $0x20] sm:$0xff]  ;;  %v14142_v30 = vld [vmem:[%s15744_s13 + $0x10] sm:$0xff] }
0x1e62   : > { %11222 = vmatmul.msk.f32.vlgmr.msrb.gmra.mxu1 %vm925_vm8, %v7974_v13  ;;  %8250 = vmatpush.msrb.mxu0 %v14009_v29  ;;  %v7977_v46 = vmul.f32 %v13983_v42, %v7961_v62  ;;  %v14088_v42 = vld [vmem:[%s15740_s9 + $0x18] sm:$0xff]  ;;  %v14164_v15 = vld [vmem:[%s15740_s9 + $0x40] sm:$0xff]  ;;  %v11202_v31 = vld [vmem:[%s15813_s30 + $0x30] sm:$0xff] }
0x1e63   : > { %8187 = vmatpush.msra.mxu2 %v14015_v45  ;;  %8230 = vmatpush.msra.mxu3 %v14021_v58  ;;  %v14176_v18 = vld [vmem:[%s15744_s13] sm:$0xff] }
0x1e64   : > { %8251 = vmatpush.msrb.mxu0 %v14027_v25  ;;  %8292 = vmatpush.msrb.mxu1 %v14033_v19  ;;  %15888 = vst [vmem:[#allocation15_spill] sm:$0xff] %v14176_v18 }
0x1e65   : > { %8188 = vmatpush.msra.mxu2 %v14039_v1  ;;  %8231 = vmatpush.msra.mxu3 %v14045_v52 }
0x1e66   : > { %8252 = vmatpush.msrb.mxu0 %v14051_v3  ;;  %8293 = vmatpush.msrb.mxu1 %v14057_v53 }
0x1e67   : > { %11223 = vmatmul.msk.f32.vlgmr.msrb.gmra.mxu2 %vm925_vm8, %v7975_v43  ;;  %8232 = vmatpush.msra.mxu3 %v14066_v11 }
0x1e68   : > { %8253 = vmatpush.msrb.mxu0 %v14073_v61  ;;  %8189 = vmatpush.msra.mxu2 %v14079_v10 }
0x1e69   : > { %11224 = vmatmul.msk.f32.vlgmr.msrb.gmra.mxu3 %vm925_vm8, %v7976_v12  ;;  %11225 = vmatmul.msk.f32.vlgmr.msra.gmra.mxu0 %vm925_vm8, %v7977_v46 }
0x1e6a   : > { %11226 = vmatmul.msk.f32.vlgmr.msra.gmra.mxu1 %vm925_vm8, %v7978_v33  ;;  %8312 = vmatpush.msrb.mxu2 %v14088_v42 }
0x1e6b   : > { %8233 = vmatpush.msra.mxu3 %v14094_v2  ;;  %8294 = vmatpush.msrb.mxu1 %v14100_v0 }
0x1e6c   : > { %8313 = vmatpush.msrb.mxu2 %v14106_v8  ;;  %8374 = vmatpush.msra.mxu0 %v14124_v49 }
0x1e6d   : > { %8335 = vmatpush.msrb.mxu3 %v14112_v28  ;;  %8295 = vmatpush.msrb.mxu1 %v14118_v56 }
0x1e6e   : > { %8314 = vmatpush.msrb.mxu2 %v14130_v17  ;;  %8375 = vmatpush.msra.mxu0 %v14142_v30 }
0x1e6f   : > { %8336 = vmatpush.msrb.mxu3 %v14136_v14  ;;  %11235 = vmatpush.xpose.msk.msra.mxu1 %vm654_vm0, %v13800_v35 }
0x1e70   : > { %8315 = vmatpush.msrb.mxu2 %v14150_v57  ;;  %8376 = vmatpush.msra.mxu0 %v14170_v6 }
0x1e71   : > { %8337 = vmatpush.msrb.mxu3 %v14156_v37  ;;  %11229 = vmatmul.msk.f32.vlgmr.msrb.gmra.mxu0 %vm654_vm0, %v13893_v21 }
0x1e72   : > { %8377 = vmatpush.msra.mxu0 %v14176_v18  ;;  %11227 = vmatmul.msk.f32.vlgmr.msra.gmra.mxu2 %vm654_vm0, %v11202_v31 }
0x1e73   : > { %8338 = vmatpush.msrb.mxu3 %v14164_v15  ;;  %11231 = vmatmul.msk.f32.vlgmr.msrb.gmra.mxu1 %vm654_vm0, %v11202_v31 }
0x1e74   : > { %11241 = vmatpush.xpose.msk.msrb.mxu0 %vm654_vm0, %v13814_v24  ;;  %11237 = vmatpush.xpose.msk.msra.mxu2 %vm654_vm0, %v13826_v27 }
0x1e75   : > { %11243 = vmatpush.xpose.msk.msrb.mxu1 %vm654_vm0, %v13833_v55 }
0x1ede   : > { %v8045_v13 = vpop.f32.mrf.mxu0 }
0x1edf   : > { %v8068_v32 = vpop.f32.mrf.mxu1  ;;  %v8204_v43 = vrot.slane %v8045_v13, 6 }
0x1ee0   : > { %v8206_v33 = vrot.slane %v8068_v32, 5 }
0x1ee2   : > { %v7999_v22 = vpop.f32.mrf.mxu2 }
0x1ee4   : > { %v8022_v62 = vpop.f32.mrf.mxu3 }
0x1ee5   : > { %v8202_v20 = vrot.slane %v8022_v62, 7 }
0x1ee6   : > { %v8137_v48 = vpop.f32.mrf.mxu0 }
0x1ee7   : > { %v8203_v12 = vsel %vm904_vm1, %v8202_v20, %v7999_v22  ;;  %v8160_v34 = vpop.f32.mrf.mxu1  ;;  %v8212_v60 = vrot.slane %v8137_v48, 2 }
0x1ee8   : > { %v8205_v46 = vsel %vm907_vm2, %v8204_v43, %v8203_v12  ;;  %v8214_v18 = vrot.slane %v8160_v34, 1 }
0x1ee9   : > { %v8207_v9 = vsel %vm910_vm3, %v8206_v33, %v8205_v46 }
0x1eea   : > { %v8091_v7 = vpop.f32.mrf.mxu2 }
0x1eeb   : > { %v8208_v31 = vrot.slane %v8091_v7, 4 }
0x1eec   : > { %v8114_v23 = vpop.f32.mrf.mxu3 }
0x1eed   : > { %v8209_v41 = vsel %vm913_vm4, %v8208_v31, %v8207_v9  ;;  %v8210_v39 = vrot.slane %v8114_v23, 3 }
0x1eee   : > { %v8255_v23 = vpop.f32.mrf.mxu0 }
0x1eef   : > { %v8211_v62 = vsel %vm916_vm5, %v8210_v39, %v8209_v41  ;;  %v14206_v39 = vld [vmem:[%s15739_s8] ss:$0 sm:$0xff] }
0x1ef0   : > { %v8213_v13 = vsel %vm919_vm6, %v8212_v60, %v8211_v62 }
0x1ef1   : > { %v8215_v22 = vsel %vm922_vm7, %v8214_v18, %v8213_v13 }
0x1ef2   : > { %11228 = vmatmul.msk.f32.vlgmr.msra.gmra.mxu3 %vm654_vm0, %v8215_v22  ;;  %11232 = vmatmul.msk.f32.vlgmr.msrb.gmra.mxu2 %vm654_vm0, %v8215_v22 }
0x1ef3   : > { %11239 = vmatpush.xpose.msk.msra.mxu3 %vm654_vm0, %v13849_v51  ;;  %11245 = vmatpush.xpose.msk.msrb.mxu2 %vm654_vm0, %v13856_v36 }
0x1ef5   : > { %v8191_v9 = vpop.f32.mrf.mxu2 }
0x1f75   : > { %v8235_v7 = vpop.f32.mrf.mxu3 }
0x1f76   : > { %v8236_v48 = vadd.f32 %v8235_v7, %v8191_v9 }
0x1f78   : > { %v8258_v34 = vadd.f32 %v8255_v23, %v8236_v48  ;;  %v8297_v48 = vpop.f32.mrf.mxu1  ;;  %v8317_v23 = vpop.f32.mrf.mxu2 }
0x1f7a   : > { %v8259_v41 = vadd.f32 %v14206_v39, %v8258_v34  ;;  %v8318_v34 = vadd.f32 %v8317_v23, %v8297_v48 }
0x1f7c   : > { %v11230_v60 = vmul.f32 -1.442695, %v8259_v41 }
0x1f7e   : > { %11562 = vpow2.f32 %v11230_v60 }
0x1f84   : > { %v11563_v18 = vpop.eup %11562 }
0x1f85   : > { %v8263_v32 = vadd.f32 1.0, %v11563_v18  ;;  %v14216_v18 = vld [vmem:[%s15741_s10] ss:$0 sm:$0xff] }
0x1f87   : > { %11564 = vrcp.f32 %v8263_v32  ;;  %v8275_v46 = vand.u32 2147483648, %v8263_v32  ;;  %v8273_v31 = vand.u32 2147483647, %v8263_v32  ;;  %vm8269_vm13 = vweird.f32 %v8263_v32 }
0x1f89   : > { %v8276_v13 = vor.u32 1.1754944e-38, %v8275_v46  ;;  %vm8274_vm15 = vcmp.eq.f32.partialorder %v8273_v31, 8.507059e+37 }
0x1f8d   : > { %v11565_v20 = vpop.eup %11564 }
0x1f8e   : > { %v8265_v43 = vmul.f32 %v11565_v20, %v8263_v32  ;;  %vm8270_vm12 = vweird.f32 %v11565_v20 }
0x1f8f   : > { %vm8271_vm14 = vmor %vm8269_vm13, %vm8270_vm12 }
0x1f90   : > { %v8266_v12 = vsub.f32 1.0, %v8265_v43 }
0x1f92   : > { %v8267_v33 = vmul.f32 %v11565_v20, %v8266_v12 }
0x1f94   : > { %v8268_v62 = vadd.f32 %v11565_v20, %v8267_v33 }
0x1f96   : > { %v8272_v22 = vsel %vm8271_vm14, %v11565_v20, %v8268_v62 }
0x1f97   : > { %v8277_v9 = vsel %vm8274_vm15, %v8276_v13, %v8272_v22 }
0x1f98   : > { %v8279_v7 = vmul.f32 %v8277_v9, %v13893_v21  ;;  %v8346_v21 = vsub.f32 1.0, %v8277_v9 }
0x1f9a   : > { %11233 = vmatmul.msk.f32.vlgmr.msrb.gmra.mxu3 %vm654_vm0, %v8279_v7  ;;  %v8347_v12 = vmul.f32 %v8346_v21, %v13873_v26 }
0x1f9b   : > { %11247 = vmatpush.xpose.msk.msrb.mxu3 %vm654_vm0, %v13866_v54 }
0x201d   : > { %v8340_v41 = vpop.f32.mrf.mxu3 }
0x201e   : > { %v8343_v60 = vadd.f32 %v8340_v41, %v8318_v34 }
0x2020   : > { %v8344_v32 = vadd.f32 %v14216_v18, %v8343_v60 }
0x2022   : > { %11566 = vtanh.f32 %v8344_v32 }
0x2028   : > { %v11567_v20 = vpop.eup %11566 }
0x2029   : > { %8349 = vrot.lane.b32.xlu1 %v11567_v20, %s12028_s1 }
0x209b   : > { %v8350_v43 = vpop.permute.xlu1 %8349 }
0x209c   : > { %v8352_v46 = vmul.f32 %v8350_v43, %v8277_v9 }
0x209e   : > { %v14221_v33 = vadd.f32 %v8352_v46, %v8347_v12 }
0x20a0   : > { %8355 = vrot.lane.b32.xlu1 %v14221_v33, %s12029_s25  ;;  %v8781_v31 = vperm.slane %v14221_v33, 0  ;;  %v8778_v62 = vrot.slane %v14221_v33, 5  ;;  %v8774_v22 = vrot.slane %v14221_v33, 1  ;;  %v8780_v7 = vrot.slane %v14221_v33, 7 }
0x20a1   : > { %v8775_v48 = vrot.slane %v14221_v33, 2  ;;  %v8776_v34 = vrot.slane %v14221_v33, 3  ;;  %v8779_v60 = vrot.slane %v14221_v33, 6  ;;  %v8777_v20 = vrot.slane %v14221_v33, 4 }
0x20a2   : > { %8782 = vrot.lane.b32.xlu0 %v8781_v31, %s12029_s25  ;;  %v8906_v13 = vperm.slane %v8778_v62, 0  ;;  %v8806_v26 = vperm.slane %v8774_v22, 0  ;;  %v8956_v9 = vperm.slane %v8780_v7, 0  ;;  %v14252_v62 = vld [vmem:[%s15745_s14] ss:$0 sm:$0xff] }
0x20a3   : > { %v8831_v23 = vperm.slane %v8775_v48, 0  ;;  %v8856_v41 = vperm.slane %v8776_v34, 0  ;;  %v8931_v32 = vperm.slane %v8779_v60, 0  ;;  %v8881_v21 = vperm.slane %v8777_v20, 0  ;;  %15889 = vst [vmem:[#allocation14_spill] sm:$0xff] %v14252_v62 }
0x20a4   : > { %8907 = vrot.lane.b32.xlu2 %v8906_v13, %s12029_s25 }
0x20a8   : > { %8807 = vrot.lane.b32.xlu1 %v8806_v26, %s12029_s25 }
0x20aa   : > { %8957 = vrot.lane.b32.xlu0 %v8956_v9, %s12029_s25 }
0x20b0   : > { %8832 = vrot.lane.b32.xlu1 %v8831_v23, %s12029_s25 }
0x20b8   : > { %8857 = vrot.lane.b32.xlu1 %v8856_v41, %s12029_s25 }
0x20c0   : > { %8932 = vrot.lane.b32.xlu1 %v8931_v32, %s12029_s25 }
0x20c8   : > { %8882 = vrot.lane.b32.xlu1 %v8881_v21, %s12029_s25 }
0x20fe   : > { %v8908_v21 = vpop.permute.xlu2 %8907 }
0x2112   : > { %v14241_v43 = vpop.permute.xlu1 %8355 }
0x2113   : > { %8359 = vst.msk [vmem:[#allocation2 + $0x30] sm:$0xff] %vm654_vm0, %v14241_v43  ;;  %11234 = vmatmul.msk.f32.vlgmr.msra.gmra.mxu0 %vm654_vm0, %v14241_v43 }
0x2114   : > { %11249 = vmatpush.xpose.msk.msra.mxu0 %vm654_vm0, %v13902_v47  ;;  %v8783_v32 = vpop.permute.xlu0 %8782 }
0x211a   : > { %v8808_v12 = vpop.permute.xlu1 %8807 }
0x2122   : > { %v8833_v46 = vpop.permute.xlu1 %8832 }
0x212a   : > { %v8858_v9 = vpop.permute.xlu1 %8857 }
0x2132   : > { %v8933_v60 = vpop.permute.xlu1 %8932 }
0x213a   : > { %v8883_v20 = vpop.permute.xlu1 %8882 }
0x2190   : > { %v8379_v31 = vpop.f32.mrf.mxu0 }
0x2191   : > { %v8380_v13 = vadd.f32 %v14252_v62, %v8379_v31  ;;  %v8958_v31 = vpop.permute.xlu0 %8957 }
0x2193   : > { %11236 = vmatmul.msk.f32.vlgmr.msra.gmra.mxu1 %vm654_vm0, %v8380_v13  ;;  %v8383_v22 = vrot.slane %v8380_v13, 1  ;;  %v8384_v7 = vrot.slane %v8380_v13, 2  ;;  %v8385_v26 = vrot.slane %v8380_v13, 3  ;;  %v8386_v48 = vrot.slane %v8380_v13, 4 }
0x2194   : > { %11254 = vmatpush.xpose.msk.msra.mxu1 %vm654_vm0, %v13800_v35  ;;  %v8387_v23 = vrot.slane %v8380_v13, 5  ;;  %v8388_v34 = vrot.slane %v8380_v13, 6  ;;  %v8389_v41 = vrot.slane %v8380_v13, 7 }
0x2195   : > { %11238 = vmatmul.msk.f32.vlgmr.msra.gmra.mxu2 %vm654_vm0, %v8383_v22  ;;  %11240 = vmatmul.msk.f32.vlgmr.msra.gmra.mxu3 %vm654_vm0, %v8384_v7 }
0x2196   : > { %11242 = vmatmul.msk.f32.vlgmr.msrb.gmra.mxu0 %vm654_vm0, %v8385_v26  ;;  %11256 = vmatpush.xpose.msk.msra.mxu2 %vm654_vm0, %v13826_v27 }
0x2197   : > { %11258 = vmatpush.xpose.msk.msra.mxu3 %vm654_vm0, %v13849_v51  ;;  %11260 = vmatpush.xpose.msk.msrb.mxu0 %vm654_vm0, %v13814_v24 }
0x219b   : > { %11244 = vmatmul.msk.f32.vlgmr.msrb.gmra.mxu1 %vm654_vm0, %v8386_v48 }
0x219c   : > { %11262 = vmatpush.xpose.msk.msrb.mxu1 %vm654_vm0, %v13833_v55 }
0x219d   : > { %11246 = vmatmul.msk.f32.vlgmr.msrb.gmra.mxu2 %vm654_vm0, %v8387_v23  ;;  %11248 = vmatmul.msk.f32.vlgmr.msrb.gmra.mxu3 %vm654_vm0, %v8388_v34 }
0x219e   : > { %11250 = vmatmul.msk.f32.vlgmr.msra.gmra.mxu0 %vm654_vm0, %v8389_v41  ;;  %11264 = vmatpush.xpose.msk.msrb.mxu2 %vm654_vm0, %v13856_v36 }
0x219f   : > { %11266 = vmatpush.xpose.msk.msrb.mxu3 %vm654_vm0, %v13866_v54  ;;  %11268 = vmatpush.xpose.msk.msra.mxu0 %vm654_vm0, %v13902_v47 }
0x21a3   : > { %11255 = vmatmul.msk.f32.vlgmr.msra.gmra.mxu1 %vm654_vm0, %v8783_v32 }
0x21a4   : > { %9153 = vmatpush.msra.mxu1 %v13800_v35 }
0x21a5   : > { %11257 = vmatmul.msk.f32.vlgmr.msra.gmra.mxu2 %vm654_vm0, %v8808_v12  ;;  %11259 = vmatmul.msk.f32.vlgmr.msra.gmra.mxu3 %vm654_vm0, %v8833_v46 }
0x21a6   : > { %11261 = vmatmul.msk.f32.vlgmr.msrb.gmra.mxu0 %vm654_vm0, %v8858_v9  ;;  %9176 = vmatpush.msra.mxu2 %v13826_v27 }
0x21a7   : > { %9199 = vmatpush.msra.mxu3 %v13849_v51  ;;  %9222 = vmatpush.msrb.mxu0 %v13814_v24 }
0x21ab   : > { %11263 = vmatmul.msk.f32.vlgmr.msrb.gmra.mxu1 %vm654_vm0, %v8883_v20 }
0x21ac   : > { %9245 = vmatpush.msrb.mxu1 %v13833_v55 }
0x21ad   : > { %11265 = vmatmul.msk.f32.vlgmr.msrb.gmra.mxu2 %vm654_vm0, %v8908_v21  ;;  %11267 = vmatmul.msk.f32.vlgmr.msrb.gmra.mxu3 %vm654_vm0, %v8933_v60 }
0x21ae   : > { %11269 = vmatmul.msk.f32.vlgmr.msra.gmra.mxu0 %vm654_vm0, %v8958_v31  ;;  %9268 = vmatpush.msrb.mxu2 %v13856_v36 }
0x21af   : > { %9291 = vmatpush.msrb.mxu3 %v13866_v54  ;;  %9314 = vmatpush.msra.mxu0 %v13902_v47 }
0x2210   : > { %v14295_v35 = vpop.f32.mrf.mxu1 }
0x2211   : > { %15890 = vst [vmem:[#allocation70_spill] sm:$0xff] %v14295_v35 }
0x2213   : > { %v14297_v24 = vpop.f32.mrf.mxu0 }
0x2214   : > { %15891 = vst [vmem:[#allocation71_spill] sm:$0xff] %v14297_v24 }
0x2218   : > { %v14299_v27 = vpop.f32.mrf.mxu2  ;;  %v14301_v55 = vpop.f32.mrf.mxu3 }
0x2219   : > { %15892 = vst [vmem:[#allocation72_spill] sm:$0xff] %v14299_v27  ;;  %v14303_v51 = vpop.f32.mrf.mxu1 }
0x221a   : > { %15893 = vst [vmem:[#allocation73_spill] sm:$0xff] %v14301_v55 }
0x221b   : > { %15894 = vst [vmem:[#allocation74_spill] sm:$0xff] %v14303_v51  ;;  %v14305_v12 = vpop.f32.mrf.mxu0 }
0x221c   : > { %15895 = vst [vmem:[#allocation75_spill] sm:$0xff] %v14305_v12 }
0x2220   : > { %v14307_v46 = vpop.f32.mrf.mxu2  ;;  %v14309_v13 = vpop.f32.mrf.mxu3 }
0x2221   : > { %15896 = vst [vmem:[#allocation76_spill] sm:$0xff] %v14307_v46  ;;  %v8803_v36 = vpop.f32.mrf.mxu1 }
0x2222   : > { %15897 = vst [vmem:[#allocation77_spill] sm:$0xff] %v14309_v13  ;;  %v8989_v22 = vmul.f32 0.17677669, %v8803_v36 }
0x2223   : > { %v8878_v54 = vpop.f32.mrf.mxu0 }
0x2224   : > { %v8992_v26 = vmul.f32 0.17677669, %v8878_v54  ;;  %v8997_v20 = vadd.f32 %v8989_v22, %v15882_v38 }
0x2226   : > { %v9000_v21 = vadd.f32 %v8992_v26, %v15883_v63 }
0x2228   : > { %v8828_v47 = vpop.f32.mrf.mxu2  ;;  %v8853_v7 = vpop.f32.mrf.mxu3 }
0x2229   : > { %v8990_v9 = vmul.f32 0.17677669, %v8828_v47  ;;  %v8991_v48 = vmul.f32 0.17677669, %v8853_v7  ;;  %v8903_v23 = vpop.f32.mrf.mxu1 }
0x222a   : > { %v8993_v60 = vmul.f32 0.17677669, %v8903_v23 }
0x222b   : > { %v8998_v34 = vadd.f32 %v8990_v9, %v15881_v50  ;;  %v8999_v41 = vadd.f32 %v8991_v48, %v15856_v59  ;;  %v8978_v32 = vpop.f32.mrf.mxu0  ;;  %v9017_v9 = vrot.slane %v9000_v21, 5 }
0x222c   : > { %v8996_v13 = vmul.f32 0.17677669, %v8978_v32  ;;  %v9001_v47 = vadd.f32 %v8993_v60, %v15884_v44 }
0x222d   : > { %v9013_v31 = vrot.slane %v8998_v34, 7  ;;  %v9015_v12 = vrot.slane %v8999_v41, 6 }
0x222e   : > { %v9004_v23 = vadd.f32 %v8996_v13, %v15886_v16  ;;  %v9019_v35 = vrot.slane %v9001_v47, 4 }
0x222f   : > { %v9014_v36 = vsel %vm904_vm1, %v9013_v31, %v8997_v20 }
0x2230   : > { %v9016_v54 = vsel %vm907_vm2, %v9015_v12, %v9014_v36  ;;  %v8928_v7 = vpop.f32.mrf.mxu2  ;;  %v8953_v51 = vpop.f32.mrf.mxu3  ;;  %v9025_v36 = vrot.slane %v9004_v23, 1 }
0x2231   : > { %v8994_v46 = vmul.f32 0.17677669, %v8928_v7  ;;  %v8995_v48 = vmul.f32 0.17677669, %v8953_v51  ;;  %v9018_v24 = vsel %vm910_vm3, %v9017_v9, %v9016_v54 }
0x2232   : > { %v9020_v12 = vsel %vm913_vm4, %v9019_v35, %v9018_v24 }
0x2233   : > { %v9002_v22 = vadd.f32 %v8994_v46, %v15887_v40  ;;  %v9003_v26 = vadd.f32 %v8995_v48, %v15885_v5 }
0x2235   : > { %v9021_v31 = vrot.slane %v9002_v22, 3  ;;  %v9023_v32 = vrot.slane %v9003_v26, 2 }
0x2237   : > { %v9022_v60 = vsel %vm916_vm5, %v9021_v31, %v9020_v12 }
0x2238   : > { %v9024_v55 = vsel %vm919_vm6, %v9023_v32, %v9022_v60 }
0x2239   : > { %v9026_v51 = vsel %vm922_vm7, %v9025_v36, %v9024_v55 }
0x223a   : > { %v9028_v13 = vsel %vm925_vm8, %v9026_v51, -inf }
0x223b   : > { %9029 = vmax.xlane.f32.xlu1 %v9028_v13 }
0x22ae   : > { %v9030_v46 = vpop.xlane.xlu1 %9029 }
0x22af   : > { %v9032_v7 = vrot.slane %v9030_v46, 1  ;;  %v9033_v48 = vrot.slane %v9030_v46, 2  ;;  %v9034_v27 = vrot.slane %v9030_v46, 3  ;;  %v9035_v54 = vrot.slane %v9030_v46, 4 }
0x22b0   : > { %v9036_v9 = vrot.slane %v9030_v46, 5  ;;  %v9047_v62 = vsub.f32 %v8997_v20, %v9030_v46  ;;  %v9037_v16 = vrot.slane %v9030_v46, 6  ;;  %v9038_v5 = vrot.slane %v9030_v46, 7 }
0x22b1   : > { %v9048_v35 = vsub.f32 %v8998_v34, %v9032_v7  ;;  %v9049_v24 = vsub.f32 %v8999_v41, %v9033_v48  ;;  %v9050_v40 = vsub.f32 %v9000_v21, %v9034_v27  ;;  %v9051_v31 = vsub.f32 %v9001_v47, %v9035_v54 }
0x22b2   : > { %v9055_v12 = vmul.f32 1.442695, %v9047_v62  ;;  %v9052_v32 = vsub.f32 %v9002_v22, %v9036_v9  ;;  %v9053_v60 = vsub.f32 %v9003_v26, %v9037_v16  ;;  %v9054_v13 = vsub.f32 %v9004_v23, %v9038_v5 }
0x22b3   : > { %v9057_v55 = vmul.f32 1.442695, %v9048_v35  ;;  %v9059_v36 = vmul.f32 1.442695, %v9049_v24  ;;  %v9061_v51 = vmul.f32 1.442695, %v9050_v40 }
0x22b4   : > { %11568 = vpow2.f32 %v9055_v12  ;;  %v9063_v44 = vmul.f32 1.442695, %v9051_v31  ;;  %v9065_v59 = vmul.f32 1.442695, %v9052_v32  ;;  %v9067_v63 = vmul.f32 1.442695, %v9053_v60 }
0x22b5   : > { %11570 = vpow2.f32 %v9057_v55  ;;  %v9069_v20 = vmul.f32 1.442695, %v9054_v13 }
0x22b6   : > { %11572 = vpow2.f32 %v9059_v36 }
0x22b7   : > { %11574 = vpow2.f32 %v9061_v51 }
0x22b8   : > { %11576 = vpow2.f32 %v9063_v44 }
0x22b9   : > { %11578 = vpow2.f32 %v9065_v59 }
0x22ba   : > { %v11569_v34 = vpop.eup %11568  ;;  %11580 = vpow2.f32 %v9067_v63 }
0x22bb   : > { %v11571_v27 = vpop.eup %11570  ;;  %11582 = vpow2.f32 %v9069_v20 }
0x22bc   : > { %v11573_v62 = vpop.eup %11572  ;;  %v9079_v16 = vrot.slane %v11571_v27, 7 }
0x22bd   : > { %v11575_v41 = vpop.eup %11574  ;;  %v9081_v21 = vrot.slane %v11573_v62, 6 }
0x22be   : > { %v11577_v40 = vpop.eup %11576  ;;  %v9080_v5 = vsel %vm904_vm1, %v9079_v16, %v11569_v34  ;;  %v9083_v47 = vrot.slane %v11575_v41, 5 }
0x22bf   : > { %v11579_v23 = vpop.eup %11578  ;;  %v9082_v22 = vsel %vm907_vm2, %v9081_v21, %v9080_v5  ;;  %v9085_v26 = vrot.slane %v11577_v40, 4 }
0x22c0   : > { %v11581_v46 = vpop.eup %11580  ;;  %v9084_v44 = vsel %vm910_vm3, %v9083_v47, %v9082_v22  ;;  %v9087_v59 = vrot.slane %v11579_v23, 3 }
0x22c1   : > { %v11583_v7 = vpop.eup %11582  ;;  %v9086_v63 = vsel %vm913_vm4, %v9085_v26, %v9084_v44  ;;  %v9089_v48 = vrot.slane %v11581_v46, 2 }
0x22c2   : > { %v9088_v54 = vsel %vm916_vm5, %v9087_v59, %v9086_v63  ;;  %v9091_v9 = vrot.slane %v11583_v7, 1 }
0x22c3   : > { %v9090_v35 = vsel %vm919_vm6, %v9089_v48, %v9088_v54 }
0x22c4   : > { %v9092_v24 = vsel %vm922_vm7, %v9091_v9, %v9090_v35  ;;  %v11890_v35 = vld [vmem:[%s15803_s3 + $0x28] sm:$0xff] }
0x22c5   : > { %v9094_v31 = vsel %vm925_vm8, %v9092_v24, 0.0 }
0x22c6   : > { %9095 = vadd.xlane.f32.xlu0 %v9094_v31 }
0x2339   : > { %v9096_v12 = vpop.xlane.xlu0 %9095 }
0x233a   : > { %11584 = vrcp.f32 %v9096_v12  ;;  %v9108_v36 = vand.u32 2147483648, %v9096_v12  ;;  %v9106_v13 = vand.u32 2147483647, %v9096_v12  ;;  %vm9102_vm10 = vweird.f32 %v9096_v12 }
0x233c   : > { %v9109_v16 = vor.u32 1.1754944e-38, %v9108_v36  ;;  %vm9107_vm12 = vcmp.eq.f32.partialorder %v9106_v13, 8.507059e+37 }
0x2340   : > { %v11585_v32 = vpop.eup %11584 }
0x2341   : > { %v9098_v60 = vmul.f32 %v11585_v32, %v9096_v12  ;;  %vm9103_vm9 = vweird.f32 %v11585_v32 }
0x2342   : > { %vm9104_vm11 = vmor %vm9102_vm10, %vm9103_vm9  ;;  %vm597_vm10 = vcmask 0  }
0x2343   : > { %v9099_v55 = vsub.f32 1.0, %v9098_v60 }
0x2345   : > { %v9100_v51 = vmul.f32 %v11585_v32, %v9099_v55 }
0x2347   : > { %v9101_v20 = vadd.f32 %v11585_v32, %v9100_v51 }
0x2349   : > { %v9105_v21 = vsel %vm9104_vm11, %v11585_v32, %v9101_v20  ;;  %vm1834_vm11 = vcmask 7168  }
0x234a   : > { %v9110_v5 = vsel %vm9107_vm12, %v9109_v16, %v9105_v21 }
0x234b   : > { %v9127_v47 = vmul.f32 %v11569_v34, %v9110_v5  ;;  %v9112_v22 = vrot.slane %v9110_v5, 1  ;;  %v9113_v26 = vrot.slane %v9110_v5, 2  ;;  %v9114_v44 = vrot.slane %v9110_v5, 3 }
0x234c   : > { %v9115_v54 = vrot.slane %v9110_v5, 4  ;;  %v9116_v34 = vrot.slane %v9110_v5, 5  ;;  %v9117_v9 = vrot.slane %v9110_v5, 6 }
0x234d   : > { %11270 = vmatmul.msk.f32.vlgmr.msra.gmra.mxu1 %vm925_vm8, %v9127_v47  ;;  %v9128_v59 = vmul.f32 %v11571_v27, %v9112_v22  ;;  %v9129_v63 = vmul.f32 %v11573_v62, %v9113_v26  ;;  %v9130_v48 = vmul.f32 %v11575_v41, %v9114_v44  ;;  %v9118_v27 = vrot.slane %v9110_v5, 7 }
0x234e   : > { %9342 = vmatpush.msra.mxu1 %v14000_v4  ;;  %v9131_v4 = vmul.f32 %v11577_v40, %v9115_v54 }
0x234f   : > { %11271 = vmatmul.msk.f32.vlgmr.msra.gmra.mxu2 %vm925_vm8, %v9128_v59  ;;  %11272 = vmatmul.msk.f32.vlgmr.msra.gmra.mxu3 %vm925_vm8, %v9129_v63 }
0x2350   : > { %11273 = vmatmul.msk.f32.vlgmr.msrb.gmra.mxu0 %vm925_vm8, %v9130_v48  ;;  %9406 = vmatpush.msra.mxu3 %v14009_v29  ;;  %v9132_v29 = vmul.f32 %v11579_v23, %v9116_v34  ;;  %v11891_v48 = vld [vmem:[%s15803_s3 + $0x30] sm:$0xff] }
0x2351   : > { %9343 = vmatpush.msra.mxu1 %v14015_v45  ;;  %9386 = vmatpush.msra.mxu2 %v14021_v58  ;;  %v9133_v45 = vmul.f32 %v11581_v46, %v9117_v9  ;;  %v9134_v58 = vmul.f32 %v11583_v7, %v9118_v27  ;;  %v11889_v7 = vld [vmem:[%s15803_s3 + $0x10] sm:$0xff] }
0x2352   : > { %9407 = vmatpush.msra.mxu3 %v14027_v25  ;;  %9448 = vmatpush.msrb.mxu0 %v14033_v19  ;;  %v11885_v25 = vld [vmem:[%s15803_s3] sm:$0xff]  ;;  %v15898_v19 = vld [vmem:[#allocation15_spill] sm:$0xff] }
0x2353   : > { %9344 = vmatpush.msra.mxu1 %v14039_v1  ;;  %9387 = vmatpush.msra.mxu2 %v14045_v52  ;;  %v11886_v1 = vld [vmem:[%s15803_s3 + $0x18] sm:$0xff] }
0x2354   : > { %9408 = vmatpush.msra.mxu3 %v14051_v3  ;;  %9449 = vmatpush.msrb.mxu0 %v14057_v53  ;;  %v11253_v52 = vld [vmem:[%s15813_s30 + $0x38] sm:$0xff]  ;;  %v11887_v3 = vld [vmem:[%s15803_s3 + $0x8] sm:$0xff]  ;;  %v11888_v53 = vld [vmem:[%s15803_s3 + $0x20] sm:$0xff] }
0x2355   : > { %11274 = vmatmul.msk.f32.vlgmr.msrb.gmra.mxu1 %vm925_vm8, %v9131_v4  ;;  %9388 = vmatpush.msra.mxu2 %v14066_v11 }
0x2356   : > { %9409 = vmatpush.msra.mxu3 %v14073_v61  ;;  %9345 = vmatpush.msra.mxu1 %v14079_v10 }
0x2357   : > { %11275 = vmatmul.msk.f32.vlgmr.msrb.gmra.mxu2 %vm925_vm8, %v9132_v29  ;;  %11276 = vmatmul.msk.f32.vlgmr.msrb.gmra.mxu3 %vm925_vm8, %v9133_v45 }
0x2358   : > { %11277 = vmatmul.msk.f32.vlgmr.msra.gmra.mxu0 %vm925_vm8, %v9134_v58  ;;  %9468 = vmatpush.msrb.mxu1 %v14088_v42 }
0x2359   : > { %9450 = vmatpush.msrb.mxu0 %v14100_v0  ;;  %9389 = vmatpush.msra.mxu2 %v14094_v2 }
0x235a   : > { %9469 = vmatpush.msrb.mxu1 %v14106_v8  ;;  %9530 = vmatpush.msrb.mxu3 %v14124_v49 }
0x235b   : > { %9491 = vmatpush.msrb.mxu2 %v14112_v28  ;;  %9451 = vmatpush.msrb.mxu0 %v14118_v56 }
0x235c   : > { %9470 = vmatpush.msrb.mxu1 %v14130_v17  ;;  %9531 = vmatpush.msrb.mxu3 %v14142_v30 }
0x235d   : > { %9492 = vmatpush.msrb.mxu2 %v14136_v14  ;;  %11286 = vmatpush.xpose.msk.msra.mxu0 %vm654_vm0, %v11885_v25 }
0x235e   : > { %9471 = vmatpush.msrb.mxu1 %v14150_v57  ;;  %9532 = vmatpush.msrb.mxu3 %v14170_v6 }
0x235f   : > { %9493 = vmatpush.msrb.mxu2 %v14156_v37  ;;  %11280 = vmatmul.msk.f32.vlgmr.msra.gmra.mxu3 %vm654_vm0, %v14241_v43 }
0x2360   : > { %9533 = vmatpush.msrb.mxu3 %v15898_v19  ;;  %11278 = vmatmul.msk.f32.vlgmr.msra.gmra.mxu1 %vm654_vm0, %v11253_v52 }
0x2361   : > { %9494 = vmatpush.msrb.mxu2 %v14164_v15  ;;  %11282 = vmatmul.msk.f32.vlgmr.msrb.gmra.mxu0 %vm654_vm0, %v11253_v52  ;;  %v15899_v52 = vld [vmem:[#allocation22_spill] sm:$0xff] }
0x2362   : > { %11292 = vmatpush.xpose.msk.msra.mxu3 %vm654_vm0, %v11886_v1  ;;  %11288 = vmatpush.xpose.msk.msra.mxu1 %vm654_vm0, %v11887_v3  ;;  %v1640_v3 = vadd.f32 %v15899_v52, %v15881_v50 }
0x2363   : > { %11294 = vmatpush.xpose.msk.msrb.mxu0 %vm654_vm0, %v11888_v53  ;;  %v15900_v53 = vld [vmem:[#allocation24_spill] sm:$0xff] }
0x23ca   : > { %v9155_v11 = vpop.f32.mrf.mxu1 }
0x23cd   : > { %v9224_v61 = vpop.f32.mrf.mxu0 }
0x23ce   : > { %v9362_v56 = vrot.slane %v9224_v61, 5  ;;  %v15901_v61 = vld [vmem:[#allocation17_spill] sm:$0xff] }
0x23d2   : > { %v9178_v10 = vpop.f32.mrf.mxu2  ;;  %v9201_v42 = vpop.f32.mrf.mxu3 }
0x23d3   : > { %v9358_v2 = vrot.slane %v9178_v10, 7  ;;  %v9360_v0 = vrot.slane %v9201_v42, 6  ;;  %v9247_v49 = vpop.f32.mrf.mxu1  ;;  %v15903_v42 = vld [vmem:[#allocation16_spill] sm:$0xff] }
0x23d4   : > { %v9364_v30 = vrot.slane %v9247_v49, 4 }
0x23d5   : > { %v9359_v8 = vsel %vm904_vm1, %v9358_v2, %v9155_v11  ;;  %v9316_v14 = vpop.f32.mrf.mxu0  ;;  %v1639_v11 = vadd.f32 %v15900_v53, %v15882_v38  ;;  %v15904_v2 = vld [vmem:[#allocation23_spill] sm:$0xff] }
0x23d6   : > { %v9361_v28 = vsel %vm907_vm2, %v9360_v0, %v9359_v8  ;;  %v9370_v41 = vrot.slane %v9316_v14, 1  ;;  %v1641_v0 = vadd.f32 %v15904_v2, %v15903_v42  ;;  %v15905_v8 = vld [vmem:[#allocation18_spill] sm:$0xff] }
0x23d7   : > { %v9363_v17 = vsel %vm910_vm3, %v9362_v56, %v9361_v28  ;;  %v15906_v28 = vld [vmem:[#allocation28_spill] sm:$0xff] }
0x23d8   : > { %v9365_v62 = vsel %vm913_vm4, %v9364_v30, %v9363_v17  ;;  %v1643_v56 = vadd.f32 %v15906_v28, %v15905_v8  ;;  %v1657_v14 = vrot.slane %v1641_v0, 6 }
0x23da   : > { %v9270_v57 = vpop.f32.mrf.mxu2  ;;  %v9293_v37 = vpop.f32.mrf.mxu3  ;;  %v1661_v30 = vrot.slane %v1643_v56, 4 }
0x23db   : > { %v9366_v15 = vrot.slane %v9270_v57, 3  ;;  %v9368_v6 = vrot.slane %v9293_v37, 2  ;;  %v15907_v57 = vld [vmem:[#allocation19_spill] sm:$0xff]  ;;  %v15908_v37 = vld [vmem:[#allocation26_spill] sm:$0xff] }
0x23dd   : > { %v9367_v40 = vsel %vm916_vm5, %v9366_v15, %v9365_v62  ;;  %v9347_v24 = vpop.f32.mrf.mxu1  ;;  %v1644_v15 = vadd.f32 %v15908_v37, %v15907_v57 }
0x23de   : > { %v9369_v23 = vsel %vm919_vm6, %v9368_v6, %v9367_v40  ;;  %v9453_v54 = vpop.f32.mrf.mxu0  ;;  %v15910_v40 = vld [vmem:[#allocation27_spill] sm:$0xff] }
0x23df   : > { %v9371_v46 = vsel %vm922_vm7, %v9370_v41, %v9369_v23  ;;  %v15909_v41 = vld [vmem:[#allocation20_spill] sm:$0xff] }
0x23e0   : > { %11279 = vmatmul.msk.f32.vlgmr.msra.gmra.mxu2 %vm654_vm0, %v9371_v46  ;;  %11283 = vmatmul.msk.f32.vlgmr.msrb.gmra.mxu1 %vm654_vm0, %v9371_v46  ;;  %v1645_v23 = vadd.f32 %v15910_v40, %v15909_v41 }
0x23e1   : > { %11290 = vmatpush.xpose.msk.msra.mxu2 %vm654_vm0, %v11889_v7  ;;  %11296 = vmatpush.xpose.msk.msrb.mxu1 %vm654_vm0, %v11890_v35  ;;  %v1663_v7 = vrot.slane %v1644_v15, 3  ;;  %v15911_v35 = vld [vmem:[#allocation21_spill] sm:$0xff] }
0x23e2   : > { %v9411_v32 = vpop.f32.mrf.mxu3 }
0x245d   : > { %v9473_v34 = vpop.f32.mrf.mxu1 }
0x245e   : > { %v9474_v9 = vadd.f32 %v9473_v34, %v9453_v54 }
0x2463   : > { %v9391_v31 = vpop.f32.mrf.mxu2 }
0x2464   : > { %v9392_v12 = vadd.f32 %v9391_v31, %v9347_v24  ;;  %v15912_v24 = vld [vmem:[#allocation29_spill] sm:$0xff] }
0x2465   : > { %v1646_v31 = vadd.f32 %v15912_v24, %v15911_v35 }
0x2466   : > { %v9414_v60 = vadd.f32 %v9411_v32, %v9392_v12  ;;  %v1665_v32 = vrot.slane %v1645_v23, 2 }
0x2468   : > { %v9415_v55 = vadd.f32 %v14206_v39, %v9414_v60  ;;  %v1667_v60 = vrot.slane %v1646_v31, 1 }
0x246a   : > { %v11281_v36 = vmul.f32 -1.442695, %v9415_v55 }
0x246c   : > { %11586 = vpow2.f32 %v11281_v36 }
0x2472   : > { %v11587_v51 = vpop.eup %11586 }
0x2473   : > { %v9419_v13 = vadd.f32 1.0, %v11587_v51 }
0x2475   : > { %11588 = vrcp.f32 %v9419_v13  ;;  %v9431_v5 = vand.u32 2147483648, %v9419_v13  ;;  %v9429_v22 = vand.u32 2147483647, %v9419_v13  ;;  %vm9425_vm14 = vweird.f32 %v9419_v13 }
0x2477   : > { %v9432_v44 = vor.u32 1.1754944e-38, %v9431_v5  ;;  %vm9430_vm9 = vcmp.eq.f32.partialorder %v9429_v22, 8.507059e+37 }
0x247b   : > { %v11589_v20 = vpop.eup %11588 }
0x247c   : > { %v9421_v16 = vmul.f32 %v11589_v20, %v9419_v13  ;;  %vm9426_vm13 = vweird.f32 %v11589_v20 }
0x247d   : > { %vm9427_vm15 = vmor %vm9425_vm14, %vm9426_vm13 }
0x247e   : > { %v9422_v21 = vsub.f32 1.0, %v9421_v16  ;;  %v1777_v16 = vld [vmem:[%s15735_s4] sm:$0xff] }
0x2480   : > { %v9423_v47 = vmul.f32 %v11589_v20, %v9422_v21  ;;  %v12030_v21 = vmov 0  }
0x2481   : > { %11390 = vset.pattern.permute.xlu0 %v12030_v21  ;;  %11391 = vset.pattern.permute.xlu1 %v12030_v21 }
0x2482   : > { %v9424_v26 = vadd.f32 %v11589_v20, %v9423_v47  ;;  %1779 = vperm.xlu0 %11390, %v1777_v16   ;;  %11392 = vset.pattern.permute.xlu2 %v12030_v21  ;;  %v9938_v16 = vld [vmem:[%s15742_s11 + $0x10] sm:$0xff]  ;;  %v9937_v21 = vld [vmem:[%s15742_s11 + $0x8] sm:$0xff] }
0x2484   : > { %v9428_v59 = vsel %vm9427_vm15, %v11589_v20, %v9424_v26  ;;  %v11892_v20 = vld [vmem:[%s15803_s3 + $0x38] sm:$0xff] }
0x2485   : > { %v9433_v63 = vsel %vm9430_vm9, %v9432_v44, %v9428_v59 }
0x2486   : > { %v9435_v39 = vmul.f32 %v9433_v63, %v14241_v43  ;;  %v9502_v43 = vsub.f32 1.0, %v9433_v63 }
0x2488   : > { %11284 = vmatmul.msk.f32.vlgmr.msrb.gmra.mxu2 %vm654_vm0, %v9435_v39  ;;  %v9503_v25 = vmul.f32 %v9502_v43, %v14221_v33  ;;  %v1655_v33 = vrot.slane %v1640_v3, 7 }
0x2489   : > { %11298 = vmatpush.xpose.msk.msrb.mxu2 %vm654_vm0, %v11891_v48 }
0x248a   : > { %v1656_v49 = vsel %vm904_vm1, %v1655_v33, %v1639_v11 }
0x248b   : > { %v1658_v6 = vsel %vm907_vm2, %v1657_v14, %v1656_v49 }
0x250b   : > { %v9496_v27 = vpop.f32.mrf.mxu2 }
0x250c   : > { %v9499_v4 = vadd.f32 %v9496_v27, %v9474_v9 }
0x250e   : > { %v9500_v29 = vadd.f32 %v14216_v18, %v9499_v4  ;;  %v15902_v18 = vld [vmem:[#allocation25_spill] sm:$0xff] }
0x250f   : > { %v1642_v10 = vadd.f32 %v15902_v18, %v15901_v61 }
0x2510   : > { %11590 = vtanh.f32 %v9500_v29 }
0x2511   : > { %v1659_v17 = vrot.slane %v1642_v10, 5 }
0x2513   : > { %v1660_v62 = vsel %vm910_vm3, %v1659_v17, %v1658_v6 }
0x2514   : > { %v1662_v46 = vsel %vm913_vm4, %v1661_v30, %v1660_v62 }
0x2515   : > { %v1664_v12 = vsel %vm916_vm5, %v1663_v7, %v1662_v46 }
0x2516   : > { %v11591_v45 = vpop.eup %11590  ;;  %v1666_v55 = vsel %vm919_vm6, %v1665_v32, %v1664_v12 }
0x2517   : > { %9505 = vrot.lane.b32.xlu2 %v11591_v45, %s12028_s1  ;;  %v1668_v36 = vsel %vm922_vm7, %v1667_v60, %v1666_v55  ;;  %v15913_v60 = vld [vmem:[#allocation14_spill] sm:$0xff] }
0x2518   : > { %v1670_v51 = vsel %vm925_vm8, %v1668_v36, -inf  ;;  %v9939_v36 = vld [vmem:[%s15742_s11 + $0x18] sm:$0xff] }
0x2571   : > { %v9506_v58 = vpop.permute.xlu2 %9505 }
0x2572   : > { %v9508_v19 = vmul.f32 %v9506_v58, %v9433_v63 }
0x2574   : > { %v9509_v1 = vadd.f32 %v9508_v19, %v9503_v25 }
0x2576   : > { %9511 = vrot.lane.b32.xlu2 %v9509_v1, %s12029_s25 }
0x259f   : > { %1671 = vmax.xlane.f32.xlu2 %v1670_v51 }
0x25d0   : > { %v9512_v13 = vpop.permute.xlu2 %9511 }
0x25d1   : > { %9515 = vst.msk [vmem:[#allocation2 + $0x38] sm:$0xff] %vm654_vm0, %v9512_v13  ;;  %11285 = vmatmul.msk.f32.vlgmr.msrb.gmra.mxu3 %vm654_vm0, %v9512_v13 }
0x25d2   : > { %11300 = vmatpush.xpose.msk.msrb.mxu3 %vm654_vm0, %v11892_v20 }
0x2612   : > { %v1672_v5 = vpop.xlane.xlu2 %1671 }
0x2613   : > { %v1674_v47 = vrot.slane %v1672_v5, 1  ;;  %v1675_v22 = vrot.slane %v1672_v5, 2  ;;  %v1676_v26 = vrot.slane %v1672_v5, 3  ;;  %v1677_v44 = vrot.slane %v1672_v5, 4 }
0x2614   : > { %v1678_v59 = vrot.slane %v1672_v5, 5  ;;  %v1689_v63 = vsub.f32 %v1639_v11, %v1672_v5  ;;  %v1679_v39 = vrot.slane %v1672_v5, 6  ;;  %v1680_v48 = vrot.slane %v1672_v5, 7 }
0x2615   : > { %v1690_v54 = vsub.f32 %v1640_v3, %v1674_v47  ;;  %v1691_v34 = vsub.f32 %v1641_v0, %v1675_v22  ;;  %v1692_v9 = vsub.f32 %v1642_v10, %v1676_v26  ;;  %v1693_v27 = vsub.f32 %v1643_v56, %v1677_v44  ;;  %v9936_v47 = vld [vmem:[%s15742_s11] sm:$0xff] }
0x2616   : > { %v1697_v4 = vmul.f32 1.442695, %v1689_v63  ;;  %v1694_v29 = vsub.f32 %v1644_v15, %v1678_v59  ;;  %v1695_v45 = vsub.f32 %v1645_v23, %v1679_v39  ;;  %v1696_v19 = vsub.f32 %v1646_v31, %v1680_v48  ;;  %v9928_v59 = vld [vmem:[#allocation2] sm:$0xff]  ;;  %v9930_v63 = vld [vmem:[#allocation2 + $0x10] sm:$0xff] }
0x2617   : > { %v1699_v43 = vmul.f32 1.442695, %v1690_v54  ;;  %v1701_v58 = vmul.f32 1.442695, %v1691_v34  ;;  %v1703_v25 = vmul.f32 1.442695, %v1692_v9 }
0x2618   : > { %11592 = vpow2.f32 %v1697_v4  ;;  %v1705_v1 = vmul.f32 1.442695, %v1693_v27  ;;  %v1707_v52 = vmul.f32 1.442695, %v1694_v29  ;;  %v1709_v53 = vmul.f32 1.442695, %v1695_v45 }
0x2619   : > { %11594 = vpow2.f32 %v1699_v43  ;;  %v1711_v11 = vmul.f32 1.442695, %v1696_v19  ;;  %v9932_v39 = vld [vmem:[#allocation2 + $0x20] sm:$0xff]  ;;  %v9934_v48 = vld [vmem:[#allocation2 + $0x30] sm:$0xff]  ;;  %v9929_v54 = vld [vmem:[#allocation2 + $0x8] sm:$0xff]  ;;  %v15794_v4 = vmov 0.0   ;;  %v1780_v19 = vpop.permute.xlu0 %1779 }
0x261a   : > { %11596 = vpow2.f32 %v1701_v58  ;;  %v9931_v34 = vld [vmem:[#allocation2 + $0x18] sm:$0xff]  ;;  %v9933_v9 = vld [vmem:[#allocation2 + $0x28] sm:$0xff]  ;;  %598 = vst.msk [vmem:[#allocation11] sm:$0x1] %vm597_vm10, %v15794_v4 }
0x261b   : > { %11598 = vpow2.f32 %v1703_v25  ;;  %v9935_v27 = vld [vmem:[#allocation2 + $0x38] sm:$0xff]  ;;  %10313 = vst.msk [vmem:[#allocation9] sm:$0xff] %vm1834_vm11, %v15794_v4  ;;  %v14540_v25 = vld [vmem:[%s15915_s29] sm:$0xff] }
0x261c   : > { %11600 = vpow2.f32 %v1705_v1  ;;  %10314 = vst.msk [vmem:[#allocation9 + $0x8] sm:$0xff] %vm1834_vm11, %v15794_v4  ;;  %v15914_v43 = vld [vmem:[#allocation33_spill] sm:$0xff]  ;;  %vm1781_vm12 = vcmp.eq.s32.totalorder %v14540_v25, %v1780_v19 }
0x261d   : > { %11602 = vpow2.f32 %v1707_v52  ;;  %10315 = vst.msk [vmem:[#allocation9 + $0x10] sm:$0xff] %vm1834_vm11, %v15794_v4  ;;  %v14535_v58 = vadd.f32 %v15914_v43, %v15881_v50 }
0x261e   : > { %v14455_v3 = vpop.eup %11592  ;;  %11604 = vpow2.f32 %v1709_v53  ;;  %10316 = vst.msk [vmem:[#allocation9 + $0x18] sm:$0xff] %vm1834_vm11, %v15794_v4 }
0x261f   : > { %v14457_v18 = vpop.eup %11594  ;;  %11606 = vpow2.f32 %v1711_v11  ;;  %10317 = vst.msk [vmem:[#allocation9 + $0x20] sm:$0xff] %vm1834_vm11, %v15794_v4  ;;  %v2810_v53 = vrot.slane %v14535_v58, 7 }
0x2620   : > { %v14459_v10 = vpop.eup %11596  ;;  %v1721_v2 = vrot.slane %v14457_v18, 7  ;;  %10318 = vst.msk [vmem:[#allocation9 + $0x28] sm:$0xff] %vm1834_vm11, %v15794_v4 }
0x2621   : > { %v14462_v0 = vpop.eup %11598  ;;  %v1723_v28 = vrot.slane %v14459_v10, 6  ;;  %10319 = vst.msk [vmem:[#allocation9 + $0x30] sm:$0xff] %vm1834_vm11, %v15794_v4 }
0x2622   : > { %v14465_v56 = vpop.eup %11600  ;;  %v1722_v33 = vsel %vm904_vm1, %v1721_v2, %v14455_v3  ;;  %v1725_v49 = vrot.slane %v14462_v0, 5  ;;  %10320 = vst.msk [vmem:[#allocation9 + $0x38] sm:$0xff] %vm1834_vm11, %v15794_v4 }
0x2623   : > { %v14470_v17 = vpop.eup %11602  ;;  %v1724_v14 = vsel %vm907_vm2, %v1723_v28, %v1722_v33  ;;  %v1727_v30 = vrot.slane %v14465_v56, 4  ;;  %v15916_v33 = vld [vmem:[#allocation32_spill] sm:$0xff] }
0x2624   : > { %v14474_v37 = vpop.eup %11604  ;;  %v1726_v15 = vsel %vm910_vm3, %v1725_v49, %v1724_v14  ;;  %v1729_v6 = vrot.slane %v14470_v17, 3  ;;  %v14546_v49 = vadd.f32 %v15916_v33, %v15882_v38  ;;  %v10946_v14 = vsel %vm1781_vm12, 1.0, %v15794_v4 }
0x2625   : > { %v14478_v62 = vpop.eup %11606  ;;  %v1728_v40 = vsel %vm913_vm4, %v1727_v30, %v1726_v15  ;;  %v1731_v23 = vrot.slane %v14474_v37, 2  ;;  %v15917_v30 = vld [vmem:[#allocation30_spill] sm:$0xff] }
0x2626   : > { %v1730_v46 = vsel %vm916_vm5, %v1729_v6, %v1728_v40  ;;  %v1733_v7 = vrot.slane %v14478_v62, 1  ;;  %v14551_v15 = vadd.f32 %v15917_v30, %v15903_v42  ;;  %v15918_v40 = vld [vmem:[#allocation31_spill] sm:$0xff] }
0x2627   : > { %v1732_v24 = vsel %vm919_vm6, %v1731_v23, %v1730_v46  ;;  %v14555_v23 = vadd.f32 %v15918_v40, %v15901_v61  ;;  %v2811_v46 = vsel %vm904_vm1, %v2810_v53, %v14546_v49 }
0x2628   : > { %v1734_v31 = vsel %vm922_vm7, %v1733_v7, %v1732_v24  ;;  %v15919_v7 = vld [vmem:[#allocation36_spill] sm:$0xff] }
0x2629   : > { %v1736_v12 = vsel %vm925_vm8, %v1734_v31, 0.0  ;;  %v14561_v24 = vadd.f32 %v15919_v7, %v15905_v8 }
0x262a   : > { %1737 = vadd.xlane.f32.xlu1 %v1736_v12 }
0x2654   : > { %v9535_v32 = vpop.f32.mrf.mxu3 }
0x2655   : > { %v9536_v55 = vadd.f32 %v15913_v60, %v9535_v32  ;;  %v1785_v32 = vrot.slane %v10946_v14, 1  ;;  %v1786_v60 = vrot.slane %v10946_v14, 2 }
0x2657   : > { %11287 = vmatmul.msk.f32.vlgmr.msra.gmra.mxu0 %vm654_vm0, %v9536_v55  ;;  %v9539_v51 = vrot.slane %v9536_v55, 1  ;;  %v9540_v13 = vrot.slane %v9536_v55, 2  ;;  %v9541_v20 = vrot.slane %v9536_v55, 3  ;;  %v9542_v5 = vrot.slane %v9536_v55, 4 }
0x2658   : > { %9980 = vmatpush.msra.mxu0 %v9939_v36  ;;  %v9543_v22 = vrot.slane %v9536_v55, 5  ;;  %v9544_v26 = vrot.slane %v9536_v55, 6  ;;  %v9545_v44 = vrot.slane %v9536_v55, 7 }
0x2659   : > { %11289 = vmatmul.msk.f32.vlgmr.msra.gmra.mxu1 %vm654_vm0, %v9539_v51  ;;  %11291 = vmatmul.msk.f32.vlgmr.msra.gmra.mxu2 %vm654_vm0, %v9540_v13  ;;  %v1788_v51 = vrot.slane %v10946_v14, 4  ;;  %v1789_v13 = vrot.slane %v10946_v14, 5 }
0x265a   : > { %11293 = vmatmul.msk.f32.vlgmr.msra.gmra.mxu3 %vm654_vm0, %v9541_v20  ;;  %11338 = vmatpush.msra.mxu1 %v9939_v36 }
0x265b   : > { %11339 = vmatpush.msra.mxu2 %v9939_v36  ;;  %11340 = vmatpush.msra.mxu3 %v9939_v36  ;;  %v1787_v36 = vrot.slane %v10946_v14, 3 }
0x265c   : > { %9981 = vmatpush.msra.mxu0 %v9938_v16  ;;  %11341 = vmatpush.msra.mxu1 %v9938_v16 }
0x265d   : > { %11342 = vmatpush.msra.mxu2 %v9938_v16  ;;  %11343 = vmatpush.msra.mxu3 %v9938_v16 }
0x265e   : > { %9982 = vmatpush.msra.mxu0 %v9937_v21  ;;  %11344 = vmatpush.msra.mxu1 %v9937_v21 }
0x265f   : > { %11295 = vmatmul.msk.f32.vlgmr.msrb.gmra.mxu0 %vm654_vm0, %v9542_v5  ;;  %11345 = vmatpush.msra.mxu2 %v9937_v21  ;;  %v1790_v5 = vrot.slane %v10946_v14, 6 }
0x2660   : > { %11346 = vmatpush.msra.mxu3 %v9937_v21  ;;  %9983 = vmatpush.msra.mxu0 %v9936_v47 }
0x2661   : > { %11297 = vmatmul.msk.f32.vlgmr.msrb.gmra.mxu1 %vm654_vm0, %v9543_v22  ;;  %11299 = vmatmul.msk.f32.vlgmr.msrb.gmra.mxu2 %vm654_vm0, %v9544_v26 }
0x2662   : > { %11301 = vmatmul.msk.f32.vlgmr.msrb.gmra.mxu3 %vm654_vm0, %v9545_v44  ;;  %11347 = vmatpush.msra.mxu1 %v9936_v47 }
0x2663   : > { %11348 = vmatpush.msra.mxu2 %v9936_v47  ;;  %11349 = vmatpush.msra.mxu3 %v9936_v47 }
0x2667   : > { %11304 = vmatmul.msk.f32.vlgmr.msra.gmra.mxu0 %vm654_vm0, %v9928_v59 }
0x2669   : > { %11306 = vmatmul.msk.f32.vlgmr.msra.gmra.mxu1 %vm654_vm0, %v9930_v63  ;;  %11308 = vmatmul.msk.f32.vlgmr.msra.gmra.mxu2 %vm654_vm0, %v9932_v39 }
0x266a   : > { %11310 = vmatmul.msk.f32.vlgmr.msra.gmra.mxu3 %vm654_vm0, %v9934_v48 }
0x266f   : > { %11305 = vmatmul.msk.f32.gmra.mxu0 %vm654_vm0, %v9929_v54 }
0x2671   : > { %11307 = vmatmul.msk.f32.gmra.mxu1 %vm654_vm0, %v9931_v34  ;;  %11309 = vmatmul.msk.f32.gmra.mxu2 %vm654_vm0, %v9933_v9 }
0x2672   : > { %11311 = vmatmul.msk.f32.gmra.mxu3 %vm654_vm0, %v9935_v27  ;;  %v1791_v27 = vrot.slane %v10946_v14, 7 }
0x269d   : > { %v1738_v29 = vpop.xlane.xlu1 %1737 }
0x269e   : > { %11608 = vrcp.f32 %v1738_v29  ;;  %v1750_v11 = vand.u32 2147483648, %v1738_v29  ;;  %v1748_v28 = vand.u32 2147483647, %v1738_v29  ;;  %vm1744_vm14 = vweird.f32 %v1738_v29 }
0x26a0   : > { %v1751_v31 = vor.u32 1.1754944e-38, %v1750_v11  ;;  %vm1749_vm9 = vcmp.eq.f32.partialorder %v1748_v28, 8.507059e+37 }
0x26a4   : > { %v11609_v45 = vpop.eup %11608 }
0x26a5   : > { %v1740_v1 = vmul.f32 %v11609_v45, %v1738_v29  ;;  %vm1745_vm13 = vweird.f32 %v11609_v45 }
0x26a6   : > { %vm1746_vm15 = vmor %vm1744_vm14, %vm1745_vm13 }
0x26a7   : > { %v1741_v52 = vsub.f32 1.0, %v1740_v1 }
0x26a9   : > { %v1742_v2 = vmul.f32 %v11609_v45, %v1741_v52 }
0x26ab   : > { %v1743_v6 = vadd.f32 %v11609_v45, %v1742_v2 }
0x26ad   : > { %v1747_v12 = vsel %vm1746_vm15, %v11609_v45, %v1743_v6 }
0x26ae   : > { %v1752_v55 = vsel %vm1749_vm9, %v1751_v31, %v1747_v12 }
0x26af   : > { %v1754_v20 = vrot.slane %v1752_v55, 1  ;;  %v1755_v16 = vrot.slane %v1752_v55, 2  ;;  %v1756_v21 = vrot.slane %v1752_v55, 3  ;;  %v1757_v47 = vrot.slane %v1752_v55, 4 }
0x26b0   : > { %v1758_v22 = vrot.slane %v1752_v55, 5  ;;  %v1759_v26 = vrot.slane %v1752_v55, 6  ;;  %v1760_v44 = vrot.slane %v1752_v55, 7  ;;  %v1769_v59 = vmul.f32 %v14455_v3, %v1752_v55 }
0x26b1   : > { %v1770_v63 = vmul.f32 %v14457_v18, %v1754_v20  ;;  %v1771_v39 = vmul.f32 %v14459_v10, %v1755_v16  ;;  %v1772_v48 = vmul.f32 %v14462_v0, %v1756_v21  ;;  %v1773_v54 = vmul.f32 %v14465_v56, %v1757_v47  ;;  %v15920_v18 = vld [vmem:[#allocation37_spill] sm:$0xff]  ;;  %v15922_v20 = vld [vmem:[#allocation35_spill] sm:$0xff] }
0x26b2   : > { %v1774_v34 = vmul.f32 %v14470_v17, %v1758_v22  ;;  %v1775_v9 = vmul.f32 %v14474_v37, %v1759_v26  ;;  %v1776_v45 = vmul.f32 %v14478_v62, %v1760_v44  ;;  %v2812_v3 = vrot.slane %v14551_v15, 6 }
0x26b3   : > { %v1801_v29 = vmul.f32 %v1785_v32, %v1770_v63  ;;  %v1802_v43 = vmul.f32 %v1786_v60, %v1771_v39  ;;  %v1803_v19 = vmul.f32 %v1787_v36, %v1772_v48  ;;  %v14574_v1 = vadd.f32 %v15920_v18, %v15907_v57 }
0x26b4   : > { %v1804_v10 = vmul.f32 %v1788_v51, %v1773_v54  ;;  %v1800_v0 = vmul.f32 %v10946_v14, %v1769_v59  ;;  %v1805_v52 = vmul.f32 %v1789_v13, %v1774_v34  ;;  %v2813_v17 = vsel %vm907_vm2, %v2812_v3, %v2811_v46  ;;  %v15921_v46 = vld [vmem:[#allocation34_spill] sm:$0xff] }
0x26b5   : > { %v1816_v56 = vrot.slane %v1801_v29, 7  ;;  %v1818_v53 = vrot.slane %v1802_v43, 6  ;;  %v2816_v37 = vrot.slane %v14561_v24, 4  ;;  %v1806_v11 = vmul.f32 %v1790_v5, %v1775_v9  ;;  %v11397_v29 = vld [vmem:[%s15743_s12] ss:$0 sm:$0xff] }
0x26b6   : > { %v2814_v62 = vrot.slane %v14555_v23, 5  ;;  %v1807_v2 = vmul.f32 %v1791_v27, %v1776_v45  ;;  %v1820_v33 = vrot.slane %v1803_v19, 5  ;;  %v1822_v6 = vrot.slane %v1804_v10, 4 }
0x26b7   : > { %v1817_v28 = vsel %vm904_vm1, %v1816_v56, %v1800_v0  ;;  %v2818_v40 = vrot.slane %v14574_v1, 3  ;;  %v1824_v7 = vrot.slane %v1805_v52, 3  ;;  %v14586_v12 = vadd.f32 %v15921_v46, %v15909_v41 }
0x26b8   : > { %v1819_v30 = vsel %vm907_vm2, %v1818_v53, %v1817_v28  ;;  %v2815_v31 = vsel %vm910_vm3, %v2814_v62, %v2813_v17  ;;  %v1826_v60 = vrot.slane %v1806_v11, 2  ;;  %v1828_v51 = vrot.slane %v1807_v2, 1 }
0x26b9   : > { %v1821_v14 = vsel %vm910_vm3, %v1820_v33, %v1819_v30  ;;  %v2817_v55 = vsel %vm913_vm4, %v2816_v37, %v2815_v31  ;;  %v14594_v16 = vadd.f32 %v15922_v20, %v15911_v35  ;;  %v2820_v47 = vrot.slane %v14586_v12, 2 }
0x26ba   : > { %v1823_v32 = vsel %vm913_vm4, %v1822_v6, %v1821_v14  ;;  %v2819_v5 = vsel %vm916_vm5, %v2818_v40, %v2817_v55  ;;  %v10996_v40 = vld [vmem:[%s15735_s4 + $0x8] sm:$0xff] }
0x26bb   : > { %v1825_v36 = vsel %vm916_vm5, %v1824_v7, %v1823_v32  ;;  %v2821_v26 = vsel %vm919_vm6, %v2820_v47, %v2819_v5  ;;  %v2822_v44 = vrot.slane %v14594_v16, 1 }
0x26bc   : > { %v1827_v13 = vsel %vm919_vm6, %v1826_v60, %v1825_v36 }
0x26bd   : > { %v1829_v21 = vsel %vm922_vm7, %v1828_v51, %v1827_v13  ;;  %v2823_v59 = vsel %vm922_vm7, %v2822_v44, %v2821_v26 }
0x26be   : > { %v1831_v22 = vsel %vm925_vm8, %v1829_v21, 0.0  ;;  %v2825_v63 = vsel %vm925_vm8, %v2823_v59, -inf }
0x26bf   : > { %1832 = vadd.xlane.f32.xlu1 %v1831_v22 }
0x26c7   : > { %2826 = vmax.xlane.f32.xlu1 %v2825_v63 }
0x26d4   : > { %v14604_v39 = vpop.f32.mrf.mxu0 }
0x26d6   : > { %v14606_v48 = vpop.f32.mrf.mxu1 }
0x26dc   : > { %v14608_v54 = vpop.f32.mrf.mxu2  ;;  %v14610_v34 = vpop.f32.mrf.mxu0 }
0x26dd   : > { %v14612_v9 = vpop.f32.mrf.mxu3 }
0x26de   : > { %v14614_v27 = vpop.f32.mrf.mxu1 }
0x26df   : > { %15923 = vst [vmem:[#allocation15_spill] sm:$0xff] %v14614_v27 }
0x26e0   : > { %2935 = vperm.xlu1 %11391, %v10996_v40  }
0x26e4   : > { %v14619_v45 = vpop.f32.mrf.mxu2  ;;  %v9985_v43 = vpop.f32.mrf.mxu0 }
0x26e5   : > { %15924 = vst [vmem:[#allocation22_spill] sm:$0xff] %v14619_v45  ;;  %v14621_v19 = vpop.f32.mrf.mxu3  ;;  %v14623_v3 = vadd.f32 %v11397_v29, %v9985_v43 }
0x26e6   : > { %15925 = vst [vmem:[#allocation24_spill] sm:$0xff] %v14621_v19  ;;  %v9991_v18 = vpop.f32.mrf.mxu1 }
0x26e7   : > { %10009 = vst.msk [vmem:[#allocation4] sm:$0xff] %vm654_vm0, %v14623_v3  ;;  %v14627_v10 = vadd.f32 %v11397_v29, %v9991_v18 }
0x26e9   : > { %15926 = vst [vmem:[#allocation17_spill] sm:$0xff] %v14627_v10 }
0x26ea   : > { %10011 = vst.msk [vmem:[#allocation4 + $0x10] sm:$0xff] %vm654_vm0, %v14627_v10  ;;  %v15933_v10 = vld [vmem:[#allocation45_spill] sm:$0xff] }
0x26eb   : > { %v14711_v19 = vadd.f32 %v15933_v10, %v15907_v57  ;;  %v15935_v10 = vld [vmem:[#allocation46_spill] sm:$0xff] }
0x26ec   : > { %v9988_v0 = vpop.f32.mrf.mxu0  ;;  %v9997_v52 = vpop.f32.mrf.mxu2 }
0x26ed   : > { %v14631_v56 = vadd.f32 %v11397_v29, %v9988_v0  ;;  %v14633_v53 = vadd.f32 %v11397_v29, %v9997_v52  ;;  %v10003_v17 = vpop.f32.mrf.mxu3 }
0x26ee   : > { %v14635_v37 = vadd.f32 %v11397_v29, %v10003_v17  ;;  %v9994_v11 = vpop.f32.mrf.mxu1 }
0x26ef   : > { %10010 = vst.msk [vmem:[#allocation4 + $0x8] sm:$0xff] %vm654_vm0, %v14631_v56  ;;  %v14639_v62 = vadd.f32 %v11397_v29, %v9994_v11 }
0x26f0   : > { %10013 = vst.msk [vmem:[#allocation4 + $0x20] sm:$0xff] %vm654_vm0, %v14633_v53 }
0x26f1   : > { %10015 = vst.msk [vmem:[#allocation4 + $0x30] sm:$0xff] %vm654_vm0, %v14635_v37 }
0x26f2   : > { %10012 = vst.msk [vmem:[#allocation4 + $0x18] sm:$0xff] %vm654_vm0, %v14639_v62 }
0x26f4   : > { %v10000_v2 = vpop.f32.mrf.mxu2 }
0x26f5   : > { %v14647_v28 = vadd.f32 %v11397_v29, %v10000_v2  ;;  %v10006_v33 = vpop.f32.mrf.mxu3 }
0x26f6   : > { %v14649_v30 = vadd.f32 %v11397_v29, %v10006_v33 }
0x26f7   : > { %15927 = vst [vmem:[#allocation25_spill] sm:$0xff] %v14647_v28 }
0x26f8   : > { %15928 = vst [vmem:[#allocation16_spill] sm:$0xff] %v14649_v30 }
0x26f9   : > { %10014 = vst.msk [vmem:[#allocation4 + $0x28] sm:$0xff] %vm654_vm0, %v14647_v28 }
0x26fa   : > { %10016 = vst.msk [vmem:[#allocation4 + $0x38] sm:$0xff] %vm654_vm0, %v14649_v30 }
0x2732   : > { %v1833_v6 = vpop.xlane.xlu1 %1832 }
0x2733   : > { %1835 = vst.msk [vmem:[#allocation3] sm:$0xff] %vm1834_vm11, %v1833_v6 }
0x273a   : > { %v2827_v14 = vpop.xlane.xlu1 %2826 }
0x273b   : > { %v2829_v7 = vrot.slane %v2827_v14, 1  ;;  %v2830_v31 = vrot.slane %v2827_v14, 2  ;;  %v2831_v46 = vrot.slane %v2827_v14, 3  ;;  %v2832_v32 = vrot.slane %v2827_v14, 4 }
0x273c   : > { %v2833_v60 = vrot.slane %v2827_v14, 5  ;;  %v2844_v55 = vsub.f32 %v14546_v49, %v2827_v14  ;;  %v2834_v36 = vrot.slane %v2827_v14, 6  ;;  %v2835_v51 = vrot.slane %v2827_v14, 7 }
0x273d   : > { %v2845_v13 = vsub.f32 %v14535_v58, %v2829_v7  ;;  %v2846_v20 = vsub.f32 %v14551_v15, %v2830_v31  ;;  %v2847_v21 = vsub.f32 %v14555_v23, %v2831_v46  ;;  %v2848_v5 = vsub.f32 %v14561_v24, %v2832_v32 }
0x273e   : > { %v2852_v47 = vmul.f32 1.442695, %v2844_v55  ;;  %v2849_v22 = vsub.f32 %v14574_v1, %v2833_v60  ;;  %v2850_v26 = vsub.f32 %v14586_v12, %v2834_v36  ;;  %v2851_v49 = vsub.f32 %v14594_v16, %v2835_v51 }
0x273f   : > { %v2854_v44 = vmul.f32 1.442695, %v2845_v13  ;;  %v2856_v59 = vmul.f32 1.442695, %v2846_v20  ;;  %v2858_v63 = vmul.f32 1.442695, %v2847_v21 }
0x2740   : > { %11610 = vpow2.f32 %v2852_v47  ;;  %v2860_v29 = vmul.f32 1.442695, %v2848_v5  ;;  %v2862_v58 = vmul.f32 1.442695, %v2849_v22  ;;  %v2864_v15 = vmul.f32 1.442695, %v2850_v26 }
0x2741   : > { %11612 = vpow2.f32 %v2854_v44  ;;  %v2866_v23 = vmul.f32 1.442695, %v2851_v49  ;;  %v15929_v21 = vld [vmem:[#allocation41_spill] sm:$0xff] }
0x2742   : > { %11614 = vpow2.f32 %v2856_v59  ;;  %v14686_v5 = vadd.f32 %v15929_v21, %v15881_v50  ;;  %v15930_v59 = vld [vmem:[#allocation42_spill] sm:$0xff] }
0x2743   : > { %11616 = vpow2.f32 %v2858_v63  ;;  %v14692_v63 = vadd.f32 %v15930_v59, %v15903_v42 }
0x2744   : > { %11618 = vpow2.f32 %v2860_v29  ;;  %v3966_v44 = vrot.slane %v14686_v5, 7 }
0x2745   : > { %11620 = vpow2.f32 %v2862_v58 }
0x2746   : > { %v14667_v24 = vpop.eup %11610  ;;  %11622 = vpow2.f32 %v2864_v15  ;;  %v15931_v15 = vld [vmem:[#allocation39_spill] sm:$0xff] }
0x2747   : > { %v14669_v1 = vpop.eup %11612  ;;  %11624 = vpow2.f32 %v2866_v23  ;;  %v14696_v23 = vadd.f32 %v15931_v15, %v15882_v38 }
0x2748   : > { %v14671_v12 = vpop.eup %11614  ;;  %v2876_v16 = vrot.slane %v14669_v1, 7 }
0x2749   : > { %v11617_v43 = vpop.eup %11616  ;;  %v2878_v18 = vrot.slane %v14671_v12, 6 }
0x274a   : > { %v11619_v0 = vpop.eup %11618  ;;  %v2877_v52 = vsel %vm904_vm1, %v2876_v16, %v14667_v24  ;;  %v2880_v17 = vrot.slane %v11617_v43, 5 }
0x274b   : > { %v11621_v11 = vpop.eup %11620  ;;  %v2879_v2 = vsel %vm907_vm2, %v2878_v18, %v2877_v52  ;;  %v2882_v33 = vrot.slane %v11619_v0, 4  ;;  %v15932_v52 = vld [vmem:[#allocation40_spill] sm:$0xff] }
0x274c   : > { %v11623_v6 = vpop.eup %11622  ;;  %v2881_v40 = vsel %vm910_vm3, %v2880_v17, %v2879_v2  ;;  %v2884_v14 = vrot.slane %v11621_v11, 3  ;;  %v14701_v17 = vadd.f32 %v15932_v52, %v15901_v61  ;;  %v3967_v2 = vsel %vm904_vm1, %v3966_v44, %v14696_v23 }
0x274d   : > { %v11625_v7 = vpop.eup %11624  ;;  %v2883_v31 = vsel %vm913_vm4, %v2882_v33, %v2881_v40  ;;  %v2886_v46 = vrot.slane %v11623_v6, 2  ;;  %v3968_v33 = vrot.slane %v14692_v63, 6 }
0x274e   : > { %v2885_v32 = vsel %vm916_vm5, %v2884_v14, %v2883_v31  ;;  %v2888_v60 = vrot.slane %v11625_v7, 1 }
0x274f   : > { %v2887_v55 = vsel %vm919_vm6, %v2886_v46, %v2885_v32 }
0x2750   : > { %v2889_v36 = vsel %vm922_vm7, %v2888_v60, %v2887_v55 }
0x2751   : > { %v2891_v51 = vsel %vm925_vm8, %v2889_v36, 0.0 }
0x2752   : > { %2892 = vadd.xlane.f32.xlu2 %v2891_v51  ;;  %v2936_v47 = vpop.permute.xlu1 %2935 }
0x2753   : > { %vm2937_vm10 = vcmp.eq.s32.totalorder %v14540_v25, %v2936_v47 }
0x2754   : > { %v10997_v16 = vsel %vm2937_vm10, 1.0, %v15794_v4 }
0x2755   : > { %v2941_v31 = vrot.slane %v10997_v16, 1  ;;  %v2942_v46 = vrot.slane %v10997_v16, 2  ;;  %v2943_v60 = vrot.slane %v10997_v16, 3  ;;  %v2944_v55 = vrot.slane %v10997_v16, 4 }
0x2756   : > { %v2945_v36 = vrot.slane %v10997_v16, 5  ;;  %v2946_v47 = vrot.slane %v10997_v16, 6 }
0x27c5   : > { %v2893_v13 = vpop.xlane.xlu2 %2892 }
0x27c6   : > { %11626 = vrcp.f32 %v2893_v13  ;;  %v2905_v49 = vand.u32 2147483648, %v2893_v13  ;;  %v2903_v58 = vand.u32 2147483647, %v2893_v13  ;;  %vm2899_vm13 = vweird.f32 %v2893_v13 }
0x27c8   : > { %v2906_v40 = vor.u32 1.1754944e-38, %v2905_v49  ;;  %vm2904_vm15 = vcmp.eq.f32.partialorder %v2903_v58, 8.507059e+37 }
0x27cc   : > { %v11627_v20 = vpop.eup %11626 }
0x27cd   : > { %v2895_v22 = vmul.f32 %v11627_v20, %v2893_v13  ;;  %vm2900_vm12 = vweird.f32 %v11627_v20 }
0x27ce   : > { %vm2901_vm14 = vmor %vm2899_vm13, %vm2900_vm12 }
0x27cf   : > { %v2896_v26 = vsub.f32 1.0, %v2895_v22 }
0x27d1   : > { %v2897_v29 = vmul.f32 %v11627_v20, %v2896_v26 }
0x27d3   : > { %v2898_v18 = vadd.f32 %v11627_v20, %v2897_v29 }
0x27d5   : > { %v2902_v14 = vsel %vm2901_vm14, %v11627_v20, %v2898_v18 }
0x27d6   : > { %v2907_v32 = vsel %vm2904_vm15, %v2906_v40, %v2902_v14  ;;  %v2947_v40 = vrot.slane %v10997_v16, 7 }
0x27d7   : > { %v2909_v51 = vrot.slane %v2907_v32, 1  ;;  %v2910_v13 = vrot.slane %v2907_v32, 2  ;;  %v2911_v21 = vrot.slane %v2907_v32, 3  ;;  %v2912_v22 = vrot.slane %v2907_v32, 4 }
0x27d8   : > { %v2913_v26 = vrot.slane %v2907_v32, 5  ;;  %v2914_v59 = vrot.slane %v2907_v32, 6  ;;  %v2915_v44 = vrot.slane %v2907_v32, 7  ;;  %v2924_v29 = vmul.f32 %v14667_v24, %v2907_v32 }
0x27d9   : > { %v2925_v49 = vmul.f32 %v14669_v1, %v2909_v51  ;;  %v2926_v20 = vmul.f32 %v14671_v12, %v2910_v13  ;;  %v2927_v58 = vmul.f32 %v11617_v43, %v2911_v21  ;;  %v2928_v15 = vmul.f32 %v11619_v0, %v2912_v22  ;;  %v15934_v43 = vld [vmem:[#allocation43_spill] sm:$0xff]  ;;  %v15936_v22 = vld [vmem:[#allocation44_spill] sm:$0xff] }
0x27da   : > { %v2929_v18 = vmul.f32 %v11621_v11, %v2913_v26  ;;  %v2930_v52 = vmul.f32 %v11623_v6, %v2914_v59  ;;  %v2931_v4 = vmul.f32 %v11625_v7, %v2915_v44  ;;  %v2956_v27 = vmul.f32 %v10997_v16, %v2924_v29 }
0x27db   : > { %v2957_v14 = vmul.f32 %v2941_v31, %v2925_v49  ;;  %v2958_v30 = vmul.f32 %v2942_v46, %v2926_v20  ;;  %v2959_v28 = vmul.f32 %v2943_v60, %v2927_v58  ;;  %v2960_v45 = vmul.f32 %v2944_v55, %v2928_v15 }
0x27dc   : > { %v2961_v24 = vmul.f32 %v2945_v36, %v2929_v18  ;;  %v3969_v12 = vsel %vm907_vm2, %v3968_v33, %v3967_v2  ;;  %v14716_v0 = vadd.f32 %v15934_v43, %v15905_v8  ;;  %v2962_v11 = vmul.f32 %v2946_v47, %v2930_v52  ;;  %v11047_v18 = vld [vmem:[%s15735_s4 + $0x10] sm:$0xff] }
0x27dd   : > { %v2972_v32 = vrot.slane %v2957_v14, 7  ;;  %v2974_v1 = vrot.slane %v2958_v30, 6  ;;  %v3970_v6 = vrot.slane %v14701_v17, 5  ;;  %v2963_v7 = vmul.f32 %v2947_v40, %v2931_v4  ;;  %v15937_v52 = vld [vmem:[#allocation47_spill] sm:$0xff]  ;;  %v15938_v14 = vld [vmem:[#allocation48_spill] sm:$0xff] }
0x27de   : > { %v2976_v46 = vrot.slane %v2959_v28, 5  ;;  %v14722_v60 = vadd.f32 %v15935_v10, %v15909_v41  ;;  %v2978_v30 = vrot.slane %v2960_v45, 4  ;;  %v3974_v2 = vrot.slane %v14711_v19, 3  ;;  %v15941_v10 = vld [vmem:[#allocation49_spill] sm:$0xff] }
0x27df   : > { %v2973_v31 = vsel %vm904_vm1, %v2972_v32, %v2956_v27  ;;  %v2980_v55 = vrot.slane %v2961_v24, 3  ;;  %v3971_v36 = vsel %vm910_vm3, %v3970_v6, %v3969_v12  ;;  %v3972_v51 = vrot.slane %v14716_v0, 4 }
0x27e0   : > { %v2975_v16 = vsel %vm907_vm2, %v2974_v1, %v2973_v31  ;;  %v2982_v27 = vrot.slane %v2962_v11, 2  ;;  %v2984_v13 = vrot.slane %v2963_v7, 1  ;;  %v3976_v21 = vrot.slane %v14722_v60, 2  ;;  %v15939_v1 = vld [vmem:[#allocation50_spill] sm:$0xff] }
0x27e1   : > { %v2977_v33 = vsel %vm910_vm3, %v2976_v46, %v2975_v16  ;;  %v3973_v45 = vsel %vm913_vm4, %v3972_v51, %v3971_v36  ;;  %v3957_v26 = vadd.f32 %v15936_v22, %v15911_v35  ;;  %v14747_v40 = vadd.f32 %v15937_v52, %v15881_v50  ;;  %v15940_v11 = vld [vmem:[#allocation38_spill] sm:$0xff] }
0x27e2   : > { %v2979_v4 = vsel %vm913_vm4, %v2978_v30, %v2977_v33  ;;  %v3975_v44 = vsel %vm916_vm5, %v3974_v2, %v3973_v45  ;;  %v14751_v24 = vadd.f32 %v15938_v14, %v15903_v42  ;;  %v14756_v12 = vadd.f32 %v15939_v1, %v15901_v61  ;;  %v15942_v30 = vld [vmem:[#allocation51_spill] sm:$0xff]  ;;  %v15943_v33 = vld [vmem:[#allocation52_spill] sm:$0xff] }
0x27e3   : > { %v2981_v28 = vsel %vm916_vm5, %v2980_v55, %v2979_v4  ;;  %v3977_v49 = vsel %vm919_vm6, %v3976_v21, %v3975_v44  ;;  %v3978_v20 = vrot.slane %v3957_v26, 1  ;;  %v5122_v32 = vrot.slane %v14747_v40, 7 }
0x27e4   : > { %v2983_v47 = vsel %vm919_vm6, %v2982_v27, %v2981_v28  ;;  %v5124_v43 = vrot.slane %v14751_v24, 6  ;;  %v14761_v6 = vadd.f32 %v15940_v11, %v15882_v38  ;;  %v5126_v31 = vrot.slane %v14756_v12, 5  ;;  %v15944_v27 = vld [vmem:[#allocation53_spill] sm:$0xff] }
0x27e5   : > { %v2985_v59 = vsel %vm922_vm7, %v2984_v13, %v2983_v47  ;;  %v3979_v58 = vsel %vm922_vm7, %v3978_v20, %v3977_v49  ;;  %v14769_v16 = vadd.f32 %v15941_v10, %v15905_v8  ;;  %v14773_v2 = vadd.f32 %v15942_v30, %v15907_v57 }
0x27e6   : > { %v2987_v29 = vsel %vm925_vm8, %v2985_v59, 0.0  ;;  %v3981_v15 = vsel %vm925_vm8, %v3979_v58, -inf  ;;  %v5123_v7 = vsel %vm904_vm1, %v5122_v32, %v14761_v6  ;;  %v14777_v55 = vadd.f32 %v15943_v33, %v15909_v41 }
0x27e7   : > { %2988 = vadd.xlane.f32.xlu2 %v2987_v29  ;;  %v5125_v46 = vsel %vm907_vm2, %v5124_v43, %v5123_v7  ;;  %v5128_v51 = vrot.slane %v14769_v16, 4  ;;  %v5130_v4 = vrot.slane %v14773_v2, 3  ;;  %v14784_v28 = vadd.f32 %v15944_v27, %v15911_v35  ;;  %v11149_v29 = vld [vmem:[%s15735_s4 + $0x20] sm:$0xff] }
0x27e8   : > { %v5127_v36 = vsel %vm910_vm3, %v5126_v31, %v5125_v46  ;;  %v5132_v13 = vrot.slane %v14777_v55, 2 }
0x27e9   : > { %v5129_v21 = vsel %vm913_vm4, %v5128_v51, %v5127_v36  ;;  %v5134_v47 = vrot.slane %v14784_v28, 1 }
0x27ea   : > { %v5131_v45 = vsel %vm916_vm5, %v5130_v4, %v5129_v21 }
0x27eb   : > { %v5133_v22 = vsel %vm919_vm6, %v5132_v13, %v5131_v45 }
0x27ec   : > { %v5135_v59 = vsel %vm922_vm7, %v5134_v47, %v5133_v22 }
0x27ed   : > { %v5137_v44 = vsel %vm925_vm8, %v5135_v59, -inf }
0x27ef   : > { %3982 = vmax.xlane.f32.xlu2 %v3981_v15 }
0x2807   : > { %4091 = vperm.xlu2 %11392, %v11047_v18  }
0x2830   : > { %5138 = vmax.xlane.f32.xlu2 %v5137_v44 }
0x2848   : > { %6403 = vperm.xlu2 %11392, %v11149_v29  }
0x285a   : > { %v2989_v49 = vpop.xlane.xlu2 %2988 }
0x285b   : > { %2991 = vst.msk [vmem:[#allocation3 + $0x8] sm:$0xff] %vm1834_vm11, %v2989_v49 }
0x2862   : > { %v3983_v20 = vpop.xlane.xlu2 %3982 }
0x2863   : > { %v3985_v58 = vrot.slane %v3983_v20, 1  ;;  %v3986_v15 = vrot.slane %v3983_v20, 2  ;;  %v3987_v18 = vrot.slane %v3983_v20, 3  ;;  %v3988_v52 = vrot.slane %v3983_v20, 4 }
0x2864   : > { %v3989_v14 = vrot.slane %v3983_v20, 5  ;;  %v4000_v32 = vsub.f32 %v14696_v23, %v3983_v20  ;;  %v3990_v1 = vrot.slane %v3983_v20, 6  ;;  %v3991_v43 = vrot.slane %v3983_v20, 7 }
0x2865   : > { %v4001_v11 = vsub.f32 %v14686_v5, %v3985_v58  ;;  %v4002_v7 = vsub.f32 %v14692_v63, %v3986_v15  ;;  %v4003_v31 = vsub.f32 %v14701_v17, %v3987_v18  ;;  %v4004_v46 = vsub.f32 %v14716_v0, %v3988_v52 }
0x2866   : > { %v4008_v10 = vmul.f32 1.442695, %v4000_v32  ;;  %v4005_v30 = vsub.f32 %v14711_v19, %v3989_v14  ;;  %v4006_v33 = vsub.f32 %v14722_v60, %v3990_v1  ;;  %v4007_v27 = vsub.f32 %v3957_v26, %v3991_v43 }
0x2867   : > { %v4010_v36 = vmul.f32 1.442695, %v4001_v11  ;;  %v4012_v51 = vmul.f32 1.442695, %v4002_v7  ;;  %v4014_v4 = vmul.f32 1.442695, %v4003_v31 }
0x2868   : > { %11628 = vpow2.f32 %v4008_v10  ;;  %v4016_v23 = vmul.f32 1.442695, %v4004_v46  ;;  %v4018_v13 = vmul.f32 1.442695, %v4005_v30  ;;  %v4020_v5 = vmul.f32 1.442695, %v4006_v33 }
0x2869   : > { %11630 = vpow2.f32 %v4010_v36  ;;  %v4022_v63 = vmul.f32 1.442695, %v4007_v27 }
0x286a   : > { %11632 = vpow2.f32 %v4012_v51  ;;  %v14836_v7 = vpop.permute.xlu2 %4091 }
0x286b   : > { %11634 = vpow2.f32 %v4014_v4  ;;  %vm4093_vm9 = vcmp.eq.s32.totalorder %v14540_v25, %v14836_v7 }
0x286c   : > { %11636 = vpow2.f32 %v4016_v23 }
0x286d   : > { %11638 = vpow2.f32 %v4018_v13 }
0x286e   : > { %v14804_v17 = vpop.eup %11628  ;;  %11640 = vpow2.f32 %v4020_v5 }
0x286f   : > { %v14806_v19 = vpop.eup %11630  ;;  %11642 = vpow2.f32 %v4022_v63 }
0x2870   : > { %v14808_v0 = vpop.eup %11632  ;;  %v4032_v60 = vrot.slane %v14806_v19, 7 }
0x2871   : > { %v14811_v26 = vpop.eup %11634  ;;  %v4034_v21 = vrot.slane %v14808_v0, 6 }
0x2872   : > { %v14814_v47 = vpop.eup %11636  ;;  %v4033_v45 = vsel %vm904_vm1, %v4032_v60, %v14804_v17  ;;  %v4036_v22 = vrot.slane %v14811_v26, 5 }
0x2873   : > { %v14819_v59 = vpop.eup %11638  ;;  %v4035_v44 = vsel %vm907_vm2, %v4034_v21, %v4033_v45  ;;  %v4038_v29 = vrot.slane %v14814_v47, 4 }
0x2874   : > { %v14823_v49 = vpop.eup %11640  ;;  %v4037_v20 = vsel %vm910_vm3, %v4036_v22, %v4035_v44  ;;  %v4040_v58 = vrot.slane %v14819_v59, 3 }
0x2875   : > { %v14827_v15 = vpop.eup %11642  ;;  %v4039_v18 = vsel %vm913_vm4, %v4038_v29, %v4037_v20  ;;  %v4042_v52 = vrot.slane %v14823_v49, 2 }
0x2876   : > { %v4041_v14 = vsel %vm916_vm5, %v4040_v58, %v4039_v18  ;;  %v4044_v32 = vrot.slane %v14827_v15, 1 }
0x2877   : > { %v4043_v1 = vsel %vm919_vm6, %v4042_v52, %v4041_v14 }
0x2878   : > { %v4045_v43 = vsel %vm922_vm7, %v4044_v32, %v4043_v1 }
0x2879   : > { %v4047_v11 = vsel %vm925_vm8, %v4045_v43, 0.0 }
0x287a   : > { %4048 = vadd.xlane.f32.xlu0 %v4047_v11 }
0x28a3   : > { %v5139_v31 = vpop.xlane.xlu2 %5138 }
0x28a4   : > { %v5141_v46 = vrot.slane %v5139_v31, 1  ;;  %v5142_v10 = vrot.slane %v5139_v31, 2  ;;  %v5143_v30 = vrot.slane %v5139_v31, 3  ;;  %v5144_v33 = vrot.slane %v5139_v31, 4 }
0x28a5   : > { %v5145_v36 = vrot.slane %v5139_v31, 5  ;;  %v5156_v51 = vsub.f32 %v14761_v6, %v5139_v31  ;;  %v5146_v4 = vrot.slane %v5139_v31, 6  ;;  %v5147_v27 = vrot.slane %v5139_v31, 7 }
0x28a6   : > { %v5157_v23 = vsub.f32 %v14747_v40, %v5141_v46  ;;  %v5158_v13 = vsub.f32 %v14751_v24, %v5142_v10  ;;  %v5159_v5 = vsub.f32 %v14756_v12, %v5143_v30  ;;  %v5160_v63 = vsub.f32 %v14769_v16, %v5144_v33 }
0x28a7   : > { %v5164_v60 = vmul.f32 1.442695, %v5156_v51  ;;  %v5161_v21 = vsub.f32 %v14773_v2, %v5145_v36  ;;  %v5162_v45 = vsub.f32 %v14777_v55, %v5146_v4  ;;  %v5163_v6 = vsub.f32 %v14784_v28, %v5147_v27 }
0x28a8   : > { %v5166_v22 = vmul.f32 1.442695, %v5157_v23  ;;  %v5168_v44 = vmul.f32 1.442695, %v5158_v13  ;;  %v5170_v29 = vmul.f32 1.442695, %v5159_v5 }
0x28a9   : > { %11644 = vpow2.f32 %v5164_v60  ;;  %v5172_v20 = vmul.f32 1.442695, %v5160_v63  ;;  %v5174_v40 = vmul.f32 1.442695, %v5161_v21  ;;  %v5176_v24 = vmul.f32 1.442695, %v5162_v45 }
0x28aa   : > { %11646 = vpow2.f32 %v5166_v22  ;;  %v5178_v12 = vmul.f32 1.442695, %v5163_v6 }
0x28ab   : > { %11648 = vpow2.f32 %v5168_v44 }
0x28ac   : > { %11650 = vpow2.f32 %v5170_v29  ;;  %v15945_v29 = vmov 0.0  }
0x28ad   : > { %11652 = vpow2.f32 %v5172_v20  ;;  %v11048_v6 = vsel %vm4093_vm9, 1.0, %v15945_v29 }
0x28ae   : > { %11654 = vpow2.f32 %v5174_v40 }
0x28af   : > { %v14846_v16 = vpop.eup %11644  ;;  %11656 = vpow2.f32 %v5176_v24 }
0x28b0   : > { %v14848_v2 = vpop.eup %11646  ;;  %11658 = vpow2.f32 %v5178_v12  ;;  %v4097_v12 = vrot.slane %v11048_v6, 1 }
0x28b1   : > { %v14850_v55 = vpop.eup %11648  ;;  %v5188_v28 = vrot.slane %v14848_v2, 7 }
0x28b2   : > { %v14853_v58 = vpop.eup %11650  ;;  %v5190_v18 = vrot.slane %v14850_v55, 6 }
0x28b3   : > { %v14856_v52 = vpop.eup %11652  ;;  %v5189_v14 = vsel %vm904_vm1, %v5188_v28, %v14846_v16  ;;  %v5192_v32 = vrot.slane %v14853_v58, 5  ;;  %v4098_v28 = vrot.slane %v11048_v6, 2 }
0x28b4   : > { %v14861_v1 = vpop.eup %11654  ;;  %v5191_v43 = vsel %vm907_vm2, %v5190_v18, %v5189_v14  ;;  %v5194_v11 = vrot.slane %v14856_v52, 4  ;;  %v4099_v14 = vrot.slane %v11048_v6, 3 }
0x28b5   : > { %v14865_v31 = vpop.eup %11656  ;;  %v5193_v46 = vsel %vm910_vm3, %v5192_v32, %v5191_v43  ;;  %v5196_v10 = vrot.slane %v14861_v1, 3 }
0x28b6   : > { %v14869_v30 = vpop.eup %11658  ;;  %v5195_v33 = vsel %vm913_vm4, %v5194_v11, %v5193_v46  ;;  %v5198_v36 = vrot.slane %v14865_v31, 2 }
0x28b7   : > { %v5197_v51 = vsel %vm916_vm5, %v5196_v10, %v5195_v33  ;;  %v5200_v4 = vrot.slane %v14869_v30, 1 }
0x28b8   : > { %v5199_v27 = vsel %vm919_vm6, %v5198_v36, %v5197_v51 }
0x28b9   : > { %v5201_v23 = vsel %vm922_vm7, %v5200_v4, %v5199_v27 }
0x28ba   : > { %v5203_v13 = vsel %vm925_vm8, %v5201_v23, 0.0 }
0x28bb   : > { %5204 = vadd.xlane.f32.xlu0 %v5203_v13 }
0x28ed   : > { %v4049_v5 = vpop.xlane.xlu0 %4048 }
0x28ee   : > { %11660 = vrcp.f32 %v4049_v5  ;;  %v4061_v45 = vand.u32 2147483648, %v4049_v5  ;;  %v4059_v44 = vand.u32 2147483647, %v4049_v5  ;;  %vm4055_vm12 = vweird.f32 %v4049_v5 }
0x28f0   : > { %v4062_v40 = vor.u32 1.1754944e-38, %v4061_v45  ;;  %vm4060_vm14 = vcmp.eq.f32.partialorder %v4059_v44, 8.507059e+37 }
0x28f4   : > { %v11661_v63 = vpop.eup %11660 }
0x28f5   : > { %v4051_v60 = vmul.f32 %v11661_v63, %v4049_v5  ;;  %vm4056_vm10 = vweird.f32 %v11661_v63 }
0x28f6   : > { %vm4057_vm13 = vmor %vm4055_vm12, %vm4056_vm10 }
0x28f7   : > { %v4052_v21 = vsub.f32 1.0, %v4051_v60  ;;  %v4101_v60 = vrot.slane %v11048_v6, 5 }
0x28f9   : > { %v4053_v22 = vmul.f32 %v11661_v63, %v4052_v21 }
0x28fb   : > { %v4054_v20 = vadd.f32 %v11661_v63, %v4053_v22 }
0x28fd   : > { %v4058_v24 = vsel %vm4057_vm13, %v11661_v63, %v4054_v20  ;;  %v4100_v63 = vrot.slane %v11048_v6, 4  ;;  %v4103_v20 = vrot.slane %v11048_v6, 7 }
0x28fe   : > { %v4063_v18 = vsel %vm4060_vm14, %v4062_v40, %v4058_v24 }
0x28ff   : > { %v4065_v32 = vrot.slane %v4063_v18, 1  ;;  %v4066_v43 = vrot.slane %v4063_v18, 2  ;;  %v4067_v11 = vrot.slane %v4063_v18, 3  ;;  %v4068_v7 = vrot.slane %v4063_v18, 4 }
0x2900   : > { %v4069_v46 = vrot.slane %v4063_v18, 5  ;;  %v4070_v10 = vrot.slane %v4063_v18, 6  ;;  %v4071_v33 = vrot.slane %v4063_v18, 7  ;;  %v4080_v36 = vmul.f32 %v14804_v17, %v4063_v18 }
0x2901   : > { %v4081_v51 = vmul.f32 %v14806_v19, %v4065_v32  ;;  %v4082_v4 = vmul.f32 %v14808_v0, %v4066_v43  ;;  %v4083_v27 = vmul.f32 %v14811_v26, %v4067_v11  ;;  %v4084_v23 = vmul.f32 %v14814_v47, %v4068_v7 }
0x2902   : > { %v4085_v13 = vmul.f32 %v14819_v59, %v4069_v46  ;;  %v4086_v5 = vmul.f32 %v14823_v49, %v4070_v10  ;;  %v4087_v21 = vmul.f32 %v14827_v15, %v4071_v33  ;;  %v4102_v17 = vrot.slane %v11048_v6, 6  ;;  %v11098_v33 = vld [vmem:[%s15735_s4 + $0x18] sm:$0xff] }
0x2903   : > { %v4113_v45 = vmul.f32 %v4097_v12, %v4081_v51  ;;  %v4114_v22 = vmul.f32 %v4098_v28, %v4082_v4  ;;  %v4115_v44 = vmul.f32 %v4099_v14, %v4083_v27  ;;  %v4116_v19 = vmul.f32 %v4100_v63, %v4084_v23 }
0x2904   : > { %v4112_v40 = vmul.f32 %v11048_v6, %v4080_v36  ;;  %v4117_v0 = vmul.f32 %v4101_v60, %v4085_v13  ;;  %v4118_v18 = vmul.f32 %v4102_v17, %v4086_v5  ;;  %v4119_v47 = vmul.f32 %v4103_v20, %v4087_v21  ;;  %v15947_v20 = vld [vmem:[#allocation57_spill] sm:$0xff] }
0x2905   : > { %v4128_v24 = vrot.slane %v4113_v45, 7  ;;  %v4130_v26 = vrot.slane %v4114_v22, 6  ;;  %v4132_v32 = vrot.slane %v4115_v44, 5  ;;  %v4134_v43 = vrot.slane %v4116_v19, 4  ;;  %v15946_v22 = vld [vmem:[#allocation55_spill] sm:$0xff] }
0x2906   : > { %v4136_v12 = vrot.slane %v4117_v0, 3  ;;  %v4138_v14 = vrot.slane %v4118_v18, 2  ;;  %v4140_v6 = vrot.slane %v4119_v47, 1  ;;  %v14903_v44 = vadd.f32 %v15946_v22, %v15881_v50  ;;  %v15948_v18 = vld [vmem:[#allocation56_spill] sm:$0xff] }
0x2907   : > { %v4129_v59 = vsel %vm904_vm1, %v4128_v24, %v4112_v40  ;;  %v14907_v19 = vadd.f32 %v15947_v20, %v15882_v38  ;;  %v14912_v47 = vadd.f32 %v15948_v18, %v15903_v42 }
0x2908   : > { %v4131_v49 = vsel %vm907_vm2, %v4130_v26, %v4129_v59  ;;  %v6278_v40 = vrot.slane %v14903_v44, 7 }
0x2909   : > { %v4133_v15 = vsel %vm910_vm3, %v4132_v32, %v4131_v49  ;;  %v15949_v49 = vld [vmem:[#allocation58_spill] sm:$0xff] }
0x290a   : > { %v4135_v28 = vsel %vm913_vm4, %v4134_v43, %v4133_v15  ;;  %v6279_v32 = vsel %vm904_vm1, %v6278_v40, %v14907_v19  ;;  %v14918_v43 = vadd.f32 %v15949_v49, %v15901_v61  ;;  %v15950_v15 = vld [vmem:[#allocation61_spill] sm:$0xff] }
0x290b   : > { %v4137_v11 = vsel %vm916_vm5, %v4136_v12, %v4135_v28  ;;  %v14922_v12 = vadd.f32 %v15950_v15, %v15905_v8 }
0x290c   : > { %v4139_v7 = vsel %vm919_vm6, %v4138_v14, %v4137_v11 }
0x290d   : > { %v4141_v46 = vsel %vm922_vm7, %v4140_v6, %v4139_v7 }
0x290e   : > { %v4143_v10 = vsel %vm925_vm8, %v4141_v46, 0.0 }
0x290f   : > { %4144 = vadd.xlane.f32.xlu1 %v4143_v10 }
0x2928   : > { %5247 = vperm.xlu1 %11391, %v11098_v33  }
0x292e   : > { %v5205_v36 = vpop.xlane.xlu0 %5204 }
0x292f   : > { %11662 = vrcp.f32 %v5205_v36  ;;  %v5217_v63 = vand.u32 2147483648, %v5205_v36  ;;  %vm5211_vm9 = vweird.f32 %v5205_v36  ;;  %v5215_v60 = vand.u32 2147483647, %v5205_v36 }
0x2931   : > { %v5218_v45 = vor.u32 1.1754944e-38, %v5217_v63  ;;  %vm5216_vm12 = vcmp.eq.f32.partialorder %v5215_v60, 8.507059e+37 }
0x2935   : > { %v11663_v51 = vpop.eup %11662 }
0x2936   : > { %v5207_v4 = vmul.f32 %v11663_v51, %v5205_v36  ;;  %vm5212_vm15 = vweird.f32 %v11663_v51 }
0x2937   : > { %vm5213_vm10 = vmor %vm5211_vm9, %vm5212_vm15 }
0x2938   : > { %v5208_v23 = vsub.f32 1.0, %v5207_v4 }
0x293a   : > { %v5209_v13 = vmul.f32 %v11663_v51, %v5208_v23 }
0x293c   : > { %v5210_v5 = vadd.f32 %v11663_v51, %v5209_v13 }
0x293e   : > { %v5214_v21 = vsel %vm5213_vm10, %v11663_v51, %v5210_v5 }
0x293f   : > { %v5219_v17 = vsel %vm5216_vm12, %v5218_v45, %v5214_v21  ;;  %v6282_v45 = vrot.slane %v14918_v43, 5 }
0x2940   : > { %v5221_v0 = vrot.slane %v5219_v17, 1  ;;  %v5222_v24 = vrot.slane %v5219_v17, 2  ;;  %v5223_v26 = vrot.slane %v5219_v17, 3  ;;  %v5224_v59 = vrot.slane %v5219_v17, 4 }
0x2941   : > { %v5225_v14 = vrot.slane %v5219_v17, 5  ;;  %v5236_v11 = vmul.f32 %v14846_v16, %v5219_v17  ;;  %v5226_v6 = vrot.slane %v5219_v17, 6  ;;  %v5227_v7 = vrot.slane %v5219_v17, 7 }
0x2942   : > { %v5237_v46 = vmul.f32 %v14848_v2, %v5221_v0  ;;  %v5238_v33 = vmul.f32 %v14850_v55, %v5222_v24  ;;  %v5239_v36 = vmul.f32 %v14853_v58, %v5223_v26  ;;  %v6284_v0 = vrot.slane %v14922_v12, 4  ;;  %v15951_v26 = vld [vmem:[#allocation59_spill] sm:$0xff] }
0x2943   : > { %v5241_v13 = vmul.f32 %v14861_v1, %v5225_v14  ;;  %v5242_v55 = vmul.f32 %v14865_v31, %v5226_v6  ;;  %v5243_v58 = vmul.f32 %v14869_v30, %v5227_v7  ;;  %v6280_v1 = vrot.slane %v14912_v47, 6  ;;  %v15952_v7 = vld [vmem:[#allocation60_spill] sm:$0xff] }
0x2944   : > { %v6267_v18 = vadd.f32 %v15951_v26, %v15907_v57 }
0x2945   : > { %v6281_v31 = vsel %vm907_vm2, %v6280_v1, %v6279_v32 }
0x2946   : > { %v6283_v14 = vsel %vm910_vm3, %v6282_v45, %v6281_v31  ;;  %v15954_v31 = vld [vmem:[#allocation65_spill] sm:$0xff] }
0x2982   : > { %v4145_v27 = vpop.xlane.xlu1 %4144 }
0x2983   : > { %4147 = vst.msk [vmem:[#allocation3 + $0x10] sm:$0xff] %vm1834_vm11, %v4145_v27  ;;  %v5240_v27 = vmul.f32 %v14856_v52, %v5224_v59 }
0x299a   : > { %v5248_v28 = vpop.permute.xlu1 %5247 }
0x299b   : > { %vm5249_vm13 = vcmp.eq.s32.totalorder %v14540_v25, %v5248_v28 }
0x299c   : > { %v11099_v10 = vsel %vm5249_vm13, 1.0, %v15945_v29 }
0x299d   : > { %v5253_v51 = vrot.slane %v11099_v10, 1  ;;  %v5254_v4 = vrot.slane %v11099_v10, 2  ;;  %v5255_v23 = vrot.slane %v11099_v10, 3  ;;  %v5256_v16 = vrot.slane %v11099_v10, 4 }
0x299e   : > { %v5257_v5 = vrot.slane %v11099_v10, 5  ;;  %v5258_v25 = vrot.slane %v11099_v10, 6  ;;  %v5259_v60 = vrot.slane %v11099_v10, 7  ;;  %v5268_v17 = vmul.f32 %v11099_v10, %v5236_v11 }
0x299f   : > { %v5269_v63 = vmul.f32 %v5253_v51, %v5237_v46  ;;  %v5270_v21 = vmul.f32 %v5254_v4, %v5238_v33  ;;  %v5271_v2 = vmul.f32 %v5255_v23, %v5239_v36  ;;  %v5272_v22 = vmul.f32 %v5256_v16, %v5240_v27  ;;  %v15953_v4 = vld [vmem:[#allocation62_spill] sm:$0xff] }
0x29a0   : > { %v5273_v20 = vmul.f32 %v5257_v5, %v5241_v13  ;;  %v5274_v24 = vmul.f32 %v5258_v25, %v5242_v55  ;;  %v5275_v59 = vmul.f32 %v5259_v60, %v5243_v58  ;;  %v6268_v46 = vadd.f32 %v15952_v7, %v15909_v41 }
0x29a1   : > { %v5284_v52 = vrot.slane %v5269_v63, 7  ;;  %v5286_v40 = vrot.slane %v5270_v21, 6  ;;  %v5288_v15 = vrot.slane %v5271_v2, 5  ;;  %v5290_v28 = vrot.slane %v5272_v22, 4 }
0x29a2   : > { %v5292_v6 = vrot.slane %v5273_v20, 3  ;;  %v5294_v33 = vrot.slane %v5274_v24, 2  ;;  %v6285_v36 = vsel %vm913_vm4, %v6284_v0, %v6283_v14  ;;  %v6286_v51 = vrot.slane %v6267_v18, 3 }
0x29a3   : > { %v5285_v49 = vsel %vm904_vm1, %v5284_v52, %v5268_v17  ;;  %v6269_v32 = vadd.f32 %v15953_v4, %v15911_v35  ;;  %v5296_v23 = vrot.slane %v5275_v59, 1  ;;  %v6288_v25 = vrot.slane %v6268_v46, 2  ;;  %v15957_v4 = vld [vmem:[#allocation68_spill] sm:$0xff] }
0x29a4   : > { %v5287_v30 = vsel %vm907_vm2, %v5286_v40, %v5285_v49  ;;  %v6287_v5 = vsel %vm916_vm5, %v6286_v51, %v6285_v36 }
0x29a5   : > { %v5289_v11 = vsel %vm910_vm3, %v5288_v15, %v5287_v30  ;;  %v6290_v60 = vrot.slane %v6269_v32, 1  ;;  %v6289_v21 = vsel %vm919_vm6, %v6288_v25, %v6287_v5  ;;  %v14966_v30 = vadd.f32 %v15954_v31, %v15881_v50 }
0x29a6   : > { %v5291_v10 = vsel %vm913_vm4, %v5290_v28, %v5289_v11 }
0x29a7   : > { %v5293_v27 = vsel %vm916_vm5, %v5292_v6, %v5291_v10  ;;  %v6291_v2 = vsel %vm922_vm7, %v6290_v60, %v6289_v21  ;;  %v15959_v60 = vld [vmem:[#allocation69_spill] sm:$0xff] }
0x29a8   : > { %v5295_v13 = vsel %vm919_vm6, %v5294_v33, %v5293_v27  ;;  %v6293_v45 = vsel %vm925_vm8, %v6291_v2, -inf  ;;  %v14996_v21 = vadd.f32 %v15959_v60, %v15907_v57 }
0x29a9   : > { %v5297_v16 = vsel %vm922_vm7, %v5296_v23, %v5295_v13  ;;  %v15958_v23 = vld [vmem:[#allocation63_spill] sm:$0xff] }
0x29aa   : > { %v5299_v63 = vsel %vm925_vm8, %v5297_v16, 0.0  ;;  %v14985_v13 = vadd.f32 %v15958_v23, %v15901_v61 }
0x29ab   : > { %5300 = vadd.xlane.f32.xlu0 %v5299_v63 }
0x29b3   : > { %6294 = vmax.xlane.f32.xlu0 %v6293_v45 }
0x2a1e   : > { %v5301_v55 = vpop.xlane.xlu0 %5300 }
0x2a1f   : > { %5303 = vst.msk [vmem:[#allocation3 + $0x18] sm:$0xff] %vm1834_vm11, %v5301_v55 }
0x2a26   : > { %v6295_v58 = vpop.xlane.xlu0 %6294 }
0x2a27   : > { %v6297_v22 = vrot.slane %v6295_v58, 1  ;;  %v6298_v17 = vrot.slane %v6295_v58, 2  ;;  %v6299_v20 = vrot.slane %v6295_v58, 3  ;;  %v6300_v52 = vrot.slane %v6295_v58, 4 }
0x2a28   : > { %v6301_v40 = vrot.slane %v6295_v58, 5  ;;  %v6312_v1 = vsub.f32 %v14907_v19, %v6295_v58  ;;  %v6302_v0 = vrot.slane %v6295_v58, 6  ;;  %v6303_v24 = vrot.slane %v6295_v58, 7 }
0x2a29   : > { %v6313_v26 = vsub.f32 %v14903_v44, %v6297_v22  ;;  %v6314_v59 = vsub.f32 %v14912_v47, %v6298_v17  ;;  %v6315_v49 = vsub.f32 %v14918_v43, %v6299_v20  ;;  %v6316_v15 = vsub.f32 %v14922_v12, %v6300_v52  ;;  %v15955_v12 = vld [vmem:[#allocation54_spill] sm:$0xff] }
0x2a2a   : > { %v6320_v28 = vmul.f32 1.442695, %v6312_v1  ;;  %v6317_v14 = vsub.f32 %v6267_v18, %v6301_v40  ;;  %v6318_v11 = vsub.f32 %v6268_v46, %v6302_v0  ;;  %v6319_v10 = vsub.f32 %v6269_v32, %v6303_v24  ;;  %v15956_v18 = vld [vmem:[#allocation64_spill] sm:$0xff] }
0x2a2b   : > { %v6322_v6 = vmul.f32 1.442695, %v6313_v26  ;;  %v6324_v7 = vmul.f32 1.442695, %v6314_v59  ;;  %v6326_v19 = vmul.f32 1.442695, %v6315_v49  ;;  %v14971_v36 = vadd.f32 %v15955_v12, %v15903_v42 }
0x2a2c   : > { %11664 = vpow2.f32 %v6320_v28  ;;  %v6328_v33 = vmul.f32 1.442695, %v6316_v15  ;;  %v6330_v44 = vmul.f32 1.442695, %v6317_v14  ;;  %v7434_v47 = vrot.slane %v14966_v30, 7  ;;  %v15960_v14 = vld [vmem:[#allocation66_spill] sm:$0xff] }
0x2a2d   : > { %11666 = vpow2.f32 %v6322_v6  ;;  %v6332_v43 = vmul.f32 1.442695, %v6318_v11  ;;  %v6334_v51 = vmul.f32 1.442695, %v6319_v10  ;;  %v14975_v46 = vadd.f32 %v15956_v18, %v15882_v38 }
0x2a2e   : > { %11668 = vpow2.f32 %v6324_v7  ;;  %v14979_v32 = vadd.f32 %v15957_v4, %v15905_v8  ;;  %v7436_v25 = vrot.slane %v14971_v36, 6  ;;  %v7438_v20 = vrot.slane %v14985_v13, 5 }
0x2a2f   : > { %11670 = vpow2.f32 %v6326_v19  ;;  %v7435_v16 = vsel %vm904_vm1, %v7434_v47, %v14975_v46  ;;  %v7442_v49 = vrot.slane %v14996_v21, 3  ;;  %v7424_v11 = vadd.f32 %v15960_v14, %v15909_v41  ;;  %v15961_v47 = vld [vmem:[#allocation67_spill] sm:$0xff] }
0x2a30   : > { %11672 = vpow2.f32 %v6328_v33  ;;  %v7437_v55 = vsel %vm907_vm2, %v7436_v25, %v7435_v16  ;;  %v7440_v58 = vrot.slane %v14979_v32, 4 }
0x2a31   : > { %11674 = vpow2.f32 %v6330_v44  ;;  %v7439_v59 = vsel %vm910_vm3, %v7438_v20, %v7437_v55  ;;  %v7444_v18 = vrot.slane %v7424_v11, 2  ;;  %v15041_v55 = vld [vmem:[%s15915_s29] sm:$0xff] }
0x2a32   : > { %v14981_v27 = vpop.eup %11664  ;;  %11676 = vpow2.f32 %v6332_v43  ;;  %v7441_v6 = vsel %vm913_vm4, %v7440_v58, %v7439_v59  ;;  %v7425_v43 = vadd.f32 %v15961_v47, %v15911_v35 }
0x2a33   : > { %v14989_v5 = vpop.eup %11666  ;;  %11678 = vpow2.f32 %v6334_v51  ;;  %v7443_v51 = vsel %vm916_vm5, %v7442_v49, %v7441_v6 }
0x2a34   : > { %v14992_v63 = vpop.eup %11668  ;;  %v6344_v2 = vrot.slane %v14989_v5, 7  ;;  %v7445_v23 = vsel %vm919_vm6, %v7444_v18, %v7443_v51  ;;  %v7446_v16 = vrot.slane %v7425_v43, 1 }
0x2a35   : > { %v14999_v45 = vpop.eup %11670  ;;  %v6346_v22 = vrot.slane %v14992_v63, 6 }
0x2a36   : > { %v15004_v17 = vpop.eup %11672  ;;  %v6345_v52 = vsel %vm904_vm1, %v6344_v2, %v14981_v27  ;;  %v6348_v40 = vrot.slane %v14999_v45, 5  ;;  %v7447_v25 = vsel %vm922_vm7, %v7446_v16, %v7445_v23  ;;  %v6404_v2 = vpop.permute.xlu2 %6403 }
0x2a37   : > { %v15010_v1 = vpop.eup %11674  ;;  %v6347_v0 = vsel %vm907_vm2, %v6346_v22, %v6345_v52  ;;  %v6350_v24 = vrot.slane %v15004_v17, 4  ;;  %v7449_v60 = vsel %vm925_vm8, %v7447_v25, -inf  ;;  %vm6405_vm14 = vcmp.eq.s32.totalorder %v15041_v55, %v6404_v2 }
0x2a38   : > { %v15014_v26 = vpop.eup %11676  ;;  %v6349_v15 = vsel %vm910_vm3, %v6348_v40, %v6347_v0  ;;  %v6352_v31 = vrot.slane %v15010_v1, 3  ;;  %v15045_v22 = vsel %vm6405_vm14, 1.0, %v15945_v29 }
0x2a39   : > { %v15020_v28 = vpop.eup %11678  ;;  %v6351_v7 = vsel %vm913_vm4, %v6350_v24, %v6349_v15  ;;  %v6354_v19 = vrot.slane %v15014_v26, 2 }
0x2a3a   : > { %v6353_v10 = vsel %vm916_vm5, %v6352_v31, %v6351_v7  ;;  %v6356_v33 = vrot.slane %v15020_v28, 1 }
0x2a3b   : > { %v6355_v44 = vsel %vm919_vm6, %v6354_v19, %v6353_v10 }
0x2a3c   : > { %v6357_v12 = vsel %vm922_vm7, %v6356_v33, %v6355_v44 }
0x2a3d   : > { %v6359_v4 = vsel %vm925_vm8, %v6357_v12, 0.0 }
0x2a3e   : > { %6360 = vadd.xlane.f32.xlu0 %v6359_v4 }
0x2a46   : > { %7450 = vmax.xlane.f32.xlu0 %v7449_v60 }
0x2ab1   : > { %v6361_v58 = vpop.xlane.xlu0 %6360 }
0x2ab2   : > { %11680 = vrcp.f32 %v6361_v58  ;;  %vm6367_vm15 = vweird.f32 %v6361_v58  ;;  %v6371_v49 = vand.u32 2147483647, %v6361_v58  ;;  %v6373_v15 = vand.u32 2147483648, %v6361_v58 }
0x2ab4   : > { %vm6372_vm12 = vcmp.eq.f32.partialorder %v6371_v49, 8.507059e+37 }
0x2ab8   : > { %v11681_v52 = vpop.eup %11680 }
0x2ab9   : > { %v6363_v59 = vmul.f32 %v11681_v52, %v6361_v58  ;;  %vm6368_vm9 = vweird.f32 %v11681_v52  ;;  %v7451_v31 = vpop.xlane.xlu0 %7450 }
0x2aba   : > { %v7453_v14 = vrot.slane %v7451_v31, 1  ;;  %v7454_v6 = vrot.slane %v7451_v31, 2  ;;  %v7455_v7 = vrot.slane %v7451_v31, 3  ;;  %v7456_v19 = vrot.slane %v7451_v31, 4  ;;  %vm6369_vm10 = vmor %vm6367_vm15, %vm6368_vm9 }
0x2abb   : > { %v6364_v10 = vsub.f32 1.0, %v6363_v59  ;;  %v7457_v33 = vrot.slane %v7451_v31, 5  ;;  %v7468_v44 = vsub.f32 %v14975_v46, %v7451_v31  ;;  %v7458_v47 = vrot.slane %v7451_v31, 6 }
0x2abc   : > { %v7469_v12 = vsub.f32 %v14966_v30, %v7453_v14  ;;  %v7470_v51 = vsub.f32 %v14971_v36, %v7454_v6  ;;  %v7471_v18 = vsub.f32 %v14985_v13, %v7455_v7  ;;  %v7459_v4 = vrot.slane %v7451_v31, 7 }
0x2abd   : > { %v6365_v23 = vmul.f32 %v11681_v52, %v6364_v10  ;;  %v7476_v16 = vmul.f32 1.442695, %v7468_v44  ;;  %v7472_v25 = vsub.f32 %v14979_v32, %v7456_v19  ;;  %v7473_v60 = vsub.f32 %v14996_v21, %v7457_v33 }
0x2abe   : > { %v7478_v2 = vmul.f32 1.442695, %v7469_v12  ;;  %v7480_v24 = vmul.f32 1.442695, %v7470_v51  ;;  %v7482_v59 = vmul.f32 1.442695, %v7471_v18  ;;  %v7474_v0 = vsub.f32 %v7424_v11, %v7458_v47 }
0x2abf   : > { %v6366_v40 = vadd.f32 %v11681_v52, %v6365_v23  ;;  %11682 = vpow2.f32 %v7476_v16  ;;  %v7475_v46 = vsub.f32 %v7425_v43, %v7459_v4  ;;  %v7484_v20 = vmul.f32 1.442695, %v7472_v25 }
0x2ac0   : > { %v6374_v30 = vor.u32 1.1754944e-38, %v6373_v15  ;;  %11684 = vpow2.f32 %v7478_v2  ;;  %v7486_v36 = vmul.f32 1.442695, %v7473_v60  ;;  %v6413_v13 = vrot.slane %v15045_v22, 5 }
0x2ac1   : > { %v6370_v31 = vsel %vm6369_vm10, %v11681_v52, %v6366_v40  ;;  %11686 = vpow2.f32 %v7480_v24  ;;  %v7488_v32 = vmul.f32 1.442695, %v7474_v0  ;;  %v7490_v14 = vmul.f32 1.442695, %v7475_v46 }
0x2ac2   : > { %v6375_v21 = vsel %vm6372_vm12, %v6374_v30, %v6370_v31  ;;  %11688 = vpow2.f32 %v7482_v59  ;;  %v6414_v11 = vrot.slane %v15045_v22, 6  ;;  %v15964_v60 = vrot.slane %v15045_v22, 3 }
0x2ac3   : > { %11690 = vpow2.f32 %v7484_v20  ;;  %v6377_v43 = vrot.slane %v6375_v21, 1  ;;  %v6378_v6 = vrot.slane %v6375_v21, 2  ;;  %v6379_v7 = vrot.slane %v6375_v21, 3 }
0x2ac4   : > { %11692 = vpow2.f32 %v7486_v36  ;;  %v6380_v58 = vrot.slane %v6375_v21, 4  ;;  %v6381_v15 = vrot.slane %v6375_v21, 5  ;;  %v6382_v19 = vrot.slane %v6375_v21, 6 }
0x2ac5   : > { %v15061_v10 = vpop.eup %11682  ;;  %11694 = vpow2.f32 %v7488_v32  ;;  %v6383_v52 = vrot.slane %v6375_v21, 7  ;;  %v6392_v40 = vmul.f32 %v14981_v27, %v6375_v21  ;;  %v6393_v0 = vmul.f32 %v14989_v5, %v6377_v43 }
0x2ac6   : > { %v15065_v24 = vpop.eup %11684  ;;  %11696 = vpow2.f32 %v7490_v14  ;;  %v6394_v20 = vmul.f32 %v14992_v63, %v6378_v6  ;;  %v6395_v49 = vmul.f32 %v14999_v45, %v6379_v7  ;;  %v6396_v33 = vmul.f32 %v15004_v17, %v6380_v58 }
0x2ac7   : > { %v15070_v44 = vpop.eup %11686  ;;  %v7500_v47 = vrot.slane %v15065_v24, 7  ;;  %v6397_v12 = vmul.f32 %v15010_v1, %v6381_v15  ;;  %v6398_v51 = vmul.f32 %v15014_v26, %v6382_v19  ;;  %v6415_v27 = vrot.slane %v15045_v22, 7 }
0x2ac8   : > { %v15076_v5 = vpop.eup %11688  ;;  %v7502_v18 = vrot.slane %v15070_v44, 6  ;;  %v6399_v63 = vmul.f32 %v15020_v28, %v6383_v52  ;;  %v15962_v45 = vrot.slane %v15045_v22, 1  ;;  %v15963_v17 = vrot.slane %v15045_v22, 2 }
0x2ac9   : > { %v15084_v16 = vpop.eup %11690  ;;  %v7501_v1 = vsel %vm904_vm1, %v7500_v47, %v15061_v10  ;;  %v7504_v26 = vrot.slane %v15076_v5, 5  ;;  %v6424_v25 = vmul.f32 %v15045_v22, %v6392_v40  ;;  %v6427_v2 = vmul.f32 %v15964_v60, %v6395_v49  ;;  %v15967_v60 = vld [vmem:[#allocation73_spill] sm:$0xff] }
0x2aca   : > { %v6425_v4 = vmul.f32 %v15962_v45, %v6393_v0  ;;  %v6426_v23 = vmul.f32 %v15963_v17, %v6394_v20  ;;  %v15092_v59 = vpop.eup %11692  ;;  %v7503_v28 = vsel %vm907_vm2, %v7502_v18, %v7501_v1  ;;  %v7506_v46 = vrot.slane %v15084_v16, 4  ;;  %v11200_v1 = vld [vmem:[%s15735_s4 + $0x28] sm:$0xff] }
0x2acb   : > { %v15965_v30 = vrot.slane %v15045_v22, 4  ;;  %v6429_v31 = vmul.f32 %v6413_v13, %v6397_v12  ;;  %v15098_v32 = vpop.eup %11694  ;;  %v7505_v21 = vsel %vm910_vm3, %v7504_v26, %v7503_v28  ;;  %v7508_v14 = vrot.slane %v15092_v59, 3  ;;  %v15966_v26 = vld [vmem:[#allocation72_spill] sm:$0xff] }
0x2acc   : > { %v6430_v43 = vmul.f32 %v6414_v11, %v6398_v51  ;;  %v6440_v6 = vrot.slane %v6425_v4, 7  ;;  %v15102_v7 = vpop.eup %11696  ;;  %v7507_v58 = vsel %vm913_vm4, %v7506_v46, %v7505_v21  ;;  %v7510_v15 = vrot.slane %v15098_v32, 2  ;;  %v15968_v46 = vld [vmem:[#allocation70_spill] sm:$0xff] }
0x2acd   : > { %v6428_v36 = vmul.f32 %v15965_v30, %v6396_v33  ;;  %v6431_v19 = vmul.f32 %v6415_v27, %v6399_v63  ;;  %v6442_v52 = vrot.slane %v6426_v23, 6  ;;  %v7509_v22 = vsel %vm916_vm5, %v7508_v14, %v7507_v58 }
0x2ace   : > { %v7512_v13 = vrot.slane %v15102_v7, 1  ;;  %v6441_v40 = vsel %vm904_vm1, %v6440_v6, %v6424_v25  ;;  %v6444_v0 = vrot.slane %v6427_v2, 5  ;;  %v7511_v20 = vsel %vm919_vm6, %v7510_v15, %v7509_v22  ;;  %v15971_v15 = vld [vmem:[#allocation74_spill] sm:$0xff]  ;;  %v15972_v22 = vld [vmem:[#allocation77_spill] sm:$0xff] }
0x2acf   : > { %v6443_v11 = vsel %vm907_vm2, %v6442_v52, %v6441_v40  ;;  %v6446_v49 = vrot.slane %v6428_v36, 4  ;;  %v6448_v12 = vrot.slane %v6429_v31, 3  ;;  %v6450_v18 = vrot.slane %v6430_v43, 2  ;;  %v15969_v31 = vld [vmem:[#allocation71_spill] sm:$0xff]  ;;  %v15970_v43 = vld [vmem:[#allocation76_spill] sm:$0xff] }
0x2ad0   : > { %v7513_v33 = vsel %vm922_vm7, %v7512_v13, %v7511_v20  ;;  %v6445_v47 = vsel %vm910_vm3, %v6444_v0, %v6443_v11  ;;  %v6452_v45 = vrot.slane %v6431_v19, 1  ;;  %v15124_v25 = vadd.f32 %v15966_v26, %v15881_v50 }
0x2ad1   : > { %v7515_v51 = vsel %vm925_vm8, %v7513_v33, 0.0  ;;  %v6447_v27 = vsel %vm913_vm4, %v6446_v49, %v6445_v47  ;;  %v15128_v2 = vadd.f32 %v15967_v60, %v15903_v42  ;;  %v15133_v30 = vadd.f32 %v15968_v46, %v15882_v38  ;;  %v15973_v33 = vld [vmem:[#allocation75_spill] sm:$0xff]  ;;  %v10020_v60 = vld [vmem:[%s15736_s5 + $0x18] sm:$0xff]  ;;  %v10021_v46 = vld [vmem:[%s15736_s5 + $0x20] sm:$0xff] }
0x2ad2   : > { %7516 = vadd.xlane.f32.xlu0 %v7515_v51  ;;  %v6449_v63 = vsel %vm916_vm5, %v6448_v12, %v6447_v27  ;;  %v8590_v28 = vrot.slane %v15124_v25, 7  ;;  %v15138_v21 = vadd.f32 %v15969_v31, %v15901_v61  ;;  %v15144_v6 = vadd.f32 %v15970_v43, %v15907_v57  ;;  %v10023_v31 = vld [vmem:[%s15736_s5 + $0x30] sm:$0xff]  ;;  %v15198_v43 = vld [vmem:[%s15746_s15] ss:$0 sm:$0xff] }
0x2ad3   : > { %v6451_v4 = vsel %vm919_vm6, %v6450_v18, %v6449_v63  ;;  %v8592_v36 = vrot.slane %v15128_v2, 6  ;;  %v15149_v19 = vadd.f32 %v15971_v15, %v15905_v8  ;;  %v15154_v13 = vadd.f32 %v15972_v22, %v15909_v41 }
0x2ad4   : > { %v6453_v17 = vsel %vm922_vm7, %v6452_v45, %v6451_v4  ;;  %v8591_v14 = vsel %vm904_vm1, %v8590_v28, %v15133_v30  ;;  %v8594_v52 = vrot.slane %v15138_v21, 5  ;;  %v8598_v0 = vrot.slane %v15144_v6, 3  ;;  %v10017_v45 = vld [vmem:[%s15736_s5] sm:$0xff] }
0x2ad5   : > { %v6455_v23 = vsel %vm925_vm8, %v6453_v17, 0.0  ;;  %v8593_v58 = vsel %vm907_vm2, %v8592_v36, %v8591_v14  ;;  %v8596_v20 = vrot.slane %v15149_v19, 4  ;;  %v8600_v49 = vrot.slane %v15154_v13, 2 }
0x2ad6   : > { %6456 = vadd.xlane.f32.xlu1 %v6455_v23  ;;  %v8595_v40 = vsel %vm910_vm3, %v8594_v52, %v8593_v58  ;;  %v15163_v47 = vadd.f32 %v15973_v33, %v15911_v35  ;;  %v10025_v4 = vmul.f32 %v10017_v45, %v14623_v3  ;;  %v10018_v23 = vld [vmem:[%s15736_s5 + $0x8] sm:$0xff]  ;;  %v10028_v28 = vmul.f32 %v10020_v60, %v14639_v62  ;;  %v11894_v58 = vld [vmem:[#allocation2] sm:$0xff]  ;;  %v11895_v52 = vld [vmem:[#allocation2 + $0x10] sm:$0xff] }
0x2ad7   : > { %v8597_v11 = vsel %vm913_vm4, %v8596_v20, %v8595_v40  ;;  %v10029_v36 = vmul.f32 %v10021_v46, %v14633_v53  ;;  %v10031_v14 = vmul.f32 %v10023_v31, %v14635_v37  ;;  %v10069_v53 = vmul.f32 %v11894_v58, %v15198_v43 }
0x2ad8   : > { %v8599_v12 = vsel %vm916_vm5, %v8598_v0, %v8597_v11  ;;  %v8602_v27 = vrot.slane %v15163_v47, 1  ;;  %v10033_v17 = vsel %vm654_vm0, %v10025_v4, 0.0  ;;  %v10042_v3 = vsel %vm654_vm0, %v10028_v28, 0.0 }
0x2ad9   : > { %v8601_v51 = vsel %vm919_vm6, %v8600_v49, %v8599_v12  ;;  %v10051_v62 = vsel %vm654_vm0, %v10031_v14, 0.0  ;;  %v10077_v15 = vsel %vm654_vm0, %v10069_v53, 0.0  ;;  %v10071_v22 = vmul.f32 %v11895_v52, %v15198_v43 }
0x2ada   : > { %v8603_v18 = vsel %vm922_vm7, %v8602_v27, %v8601_v51 }
0x2adb   : > { %v8605_v63 = vsel %vm925_vm8, %v8603_v18, -inf  ;;  %v10083_v37 = vsel %vm654_vm0, %v10071_v22, 0.0 }
0x2ae6   : > { %7559 = vperm.xlu0 %11390, %v11200_v1   ;;  %v10026_v1 = vmul.f32 %v10018_v23, %v14631_v56  ;;  %v10045_v56 = vsel %vm654_vm0, %v10029_v36, 0.0 }
0x2ae8   : > { %v10036_v26 = vsel %vm654_vm0, %v10026_v1, 0.0 }
0x2b10   : > { %8606 = vmax.xlane.f32.xlu0 %v8605_v63 }
0x2b18   : > { %10034 = vadd.xlane.f32.xlu0 %v10033_v17 }
0x2b20   : > { %10037 = vadd.xlane.f32.xlu0 %v10036_v26 }
0x2b28   : > { %10043 = vadd.xlane.f32.xlu0 %v10042_v3 }
0x2b30   : > { %10046 = vadd.xlane.f32.xlu0 %v10045_v56 }
0x2b38   : > { %10052 = vadd.xlane.f32.xlu0 %v10051_v62 }
0x2b40   : > { %10078 = vadd.xlane.f32.xlu0 %v10077_v15 }
0x2b45   : > { %v7517_v40 = vpop.xlane.xlu0 %7516 }
0x2b46   : > { %11698 = vrcp.f32 %v7517_v40  ;;  %v7529_v33 = vand.u32 2147483648, %v7517_v40  ;;  %v7527_v51 = vand.u32 2147483647, %v7517_v40  ;;  %vm7523_vm14 = vweird.f32 %v7517_v40 }
0x2b48   : > { %10084 = vadd.xlane.f32.xlu0 %v10083_v37  ;;  %v7530_v18 = vor.u32 1.1754944e-38, %v7529_v33  ;;  %vm7528_vm9 = vcmp.eq.f32.partialorder %v7527_v51, 8.507059e+37 }
0x2b49   : > { %v6457_v0 = vpop.xlane.xlu1 %6456 }
0x2b4a   : > { %6459 = vst.msk [vmem:[#allocation3 + $0x20] sm:$0xff] %vm1834_vm11, %v6457_v0 }
0x2b4c   : > { %v11699_v20 = vpop.eup %11698 }
0x2b4d   : > { %v7519_v11 = vmul.f32 %v11699_v20, %v7517_v40  ;;  %vm7524_vm13 = vweird.f32 %v11699_v20 }
0x2b4e   : > { %vm7525_vm15 = vmor %vm7523_vm14, %vm7524_vm13 }
0x2b4f   : > { %v7520_v49 = vsub.f32 1.0, %v7519_v11 }
0x2b51   : > { %v7521_v12 = vmul.f32 %v11699_v20, %v7520_v49 }
0x2b53   : > { %v7522_v27 = vadd.f32 %v11699_v20, %v7521_v12 }
0x2b55   : > { %v7526_v63 = vsel %vm7525_vm15, %v11699_v20, %v7522_v27 }
0x2b56   : > { %v7531_v45 = vsel %vm7528_vm9, %v7530_v18, %v7526_v63 }
0x2b57   : > { %v7533_v4 = vrot.slane %v7531_v45, 1  ;;  %v7534_v17 = vrot.slane %v7531_v45, 2  ;;  %v7535_v23 = vrot.slane %v7531_v45, 3  ;;  %v7536_v26 = vrot.slane %v7531_v45, 4 }
0x2b58   : > { %v7560_v1 = vpop.permute.xlu0 %7559  ;;  %v7537_v60 = vrot.slane %v7531_v45, 5  ;;  %v7548_v28 = vmul.f32 %v15061_v10, %v7531_v45  ;;  %v7538_v3 = vrot.slane %v7531_v45, 6  ;;  %v7539_v46 = vrot.slane %v7531_v45, 7 }
0x2b59   : > { %vm7561_vm10 = vcmp.eq.s32.totalorder %v15041_v55, %v7560_v1  ;;  %v7549_v36 = vmul.f32 %v15065_v24, %v7533_v4  ;;  %v7550_v31 = vmul.f32 %v15070_v44, %v7534_v17  ;;  %v7551_v14 = vmul.f32 %v15076_v5, %v7535_v23 }
0x2b5a   : > { %v11201_v56 = vsel %vm7561_vm10, 1.0, %v15945_v29  ;;  %v7552_v15 = vmul.f32 %v15084_v16, %v7536_v26  ;;  %v7553_v52 = vmul.f32 %v15092_v59, %v7537_v60  ;;  %v7554_v49 = vmul.f32 %v15098_v32, %v7538_v3 }
0x2b5b   : > { %v7565_v62 = vrot.slane %v11201_v56, 1  ;;  %v7566_v58 = vrot.slane %v11201_v56, 2  ;;  %v7567_v53 = vrot.slane %v11201_v56, 3  ;;  %v7568_v10 = vrot.slane %v11201_v56, 4 }
0x2b5c   : > { %v7569_v22 = vrot.slane %v11201_v56, 5  ;;  %v7570_v40 = vrot.slane %v11201_v56, 6  ;;  %v7571_v0 = vrot.slane %v11201_v56, 7  ;;  %v7580_v11 = vmul.f32 %v11201_v56, %v7548_v28 }
0x2b5d   : > { %v7581_v37 = vmul.f32 %v7565_v62, %v7549_v36  ;;  %v7582_v20 = vmul.f32 %v7566_v58, %v7550_v31  ;;  %v7583_v24 = vmul.f32 %v7567_v53, %v7551_v14  ;;  %v7584_v44 = vmul.f32 %v7568_v10, %v7552_v15 }
0x2b5e   : > { %v7555_v5 = vmul.f32 %v15102_v7, %v7539_v46  ;;  %v7585_v12 = vmul.f32 %v7569_v22, %v7553_v52  ;;  %v7586_v27 = vmul.f32 %v7570_v40, %v7554_v49 }
0x2b5f   : > { %v7596_v33 = vrot.slane %v7581_v37, 7  ;;  %v7598_v51 = vrot.slane %v7582_v20, 6  ;;  %v7600_v18 = vrot.slane %v7583_v24, 5  ;;  %v7602_v45 = vrot.slane %v7584_v44, 4 }
0x2b60   : > { %v7587_v16 = vmul.f32 %v7571_v0, %v7555_v5  ;;  %v7604_v17 = vrot.slane %v7585_v12, 3  ;;  %v7606_v32 = vrot.slane %v7586_v27, 2 }
0x2b61   : > { %v7597_v59 = vsel %vm904_vm1, %v7596_v33, %v7580_v11 }
0x2b62   : > { %v7599_v63 = vsel %vm907_vm2, %v7598_v51, %v7597_v59  ;;  %v7608_v26 = vrot.slane %v7587_v16, 1 }
0x2b63   : > { %v7601_v4 = vsel %vm910_vm3, %v7600_v18, %v7599_v63 }
0x2b64   : > { %v7603_v23 = vsel %vm913_vm4, %v7602_v45, %v7601_v4 }
0x2b65   : > { %v7605_v1 = vsel %vm916_vm5, %v7604_v17, %v7603_v23 }
0x2b66   : > { %v7607_v7 = vsel %vm919_vm6, %v7606_v32, %v7605_v1 }
0x2b67   : > { %v7609_v60 = vsel %vm922_vm7, %v7608_v26, %v7607_v7 }
0x2b68   : > { %v7611_v28 = vsel %vm925_vm8, %v7609_v60, 0.0 }
0x2b69   : > { %7612 = vadd.xlane.f32.xlu2 %v7611_v28 }
0x2b83   : > { %v8607_v3 = vpop.xlane.xlu0 %8606 }
0x2b84   : > { %v8609_v46 = vrot.slane %v8607_v3, 1  ;;  %v8610_v36 = vrot.slane %v8607_v3, 2  ;;  %v8611_v56 = vrot.slane %v8607_v3, 3  ;;  %v8612_v31 = vrot.slane %v8607_v3, 4 }
0x2b85   : > { %v8613_v14 = vrot.slane %v8607_v3, 5  ;;  %v8624_v62 = vsub.f32 %v15133_v30, %v8607_v3  ;;  %v8614_v58 = vrot.slane %v8607_v3, 6  ;;  %v8615_v53 = vrot.slane %v8607_v3, 7 }
0x2b86   : > { %v8625_v15 = vsub.f32 %v15124_v25, %v8609_v46  ;;  %v8626_v52 = vsub.f32 %v15128_v2, %v8610_v36  ;;  %v8627_v10 = vsub.f32 %v15138_v21, %v8611_v56  ;;  %v8628_v22 = vsub.f32 %v15149_v19, %v8612_v31  ;;  %v15268_v31 = vld [vmem:[#allocation10] ss:$0 sm:$0xff] }
0x2b87   : > { %v8632_v40 = vmul.f32 1.442695, %v8624_v62  ;;  %v8629_v37 = vsub.f32 %v15144_v6, %v8613_v14  ;;  %v8630_v0 = vsub.f32 %v15154_v13, %v8614_v58  ;;  %v8631_v30 = vsub.f32 %v15163_v47, %v8615_v53  ;;  %v11251_v14 = vld [vmem:[%s15735_s4 + $0x30] sm:$0xff] }
0x2b88   : > { %v8634_v20 = vmul.f32 1.442695, %v8625_v15  ;;  %v8636_v24 = vmul.f32 1.442695, %v8626_v52  ;;  %v8638_v11 = vmul.f32 1.442695, %v8627_v10 }
0x2b89   : > { %11700 = vpow2.f32 %v8632_v40  ;;  %v8640_v49 = vmul.f32 1.442695, %v8628_v22  ;;  %v8642_v25 = vmul.f32 1.442695, %v8629_v37  ;;  %v8644_v44 = vmul.f32 1.442695, %v8630_v0 }
0x2b8a   : > { %11702 = vpow2.f32 %v8634_v20  ;;  %v8646_v21 = vmul.f32 1.442695, %v8631_v30 }
0x2b8b   : > { %11704 = vpow2.f32 %v8636_v24  ;;  %v10035_v2 = vpop.xlane.xlu0 %10034 }
0x2b8c   : > { %10057 = vst.msk [vmem:[#allocation5] sm:$0xff] %vm1834_vm11, %v10035_v2  ;;  %11706 = vpow2.f32 %v8638_v11 }
0x2b8d   : > { %11708 = vpow2.f32 %v8640_v49 }
0x2b8e   : > { %11710 = vpow2.f32 %v8642_v25 }
0x2b8f   : > { %v15232_v6 = vpop.eup %11700  ;;  %11712 = vpow2.f32 %v8644_v44 }
0x2b90   : > { %v15234_v19 = vpop.eup %11702  ;;  %11714 = vpow2.f32 %v8646_v21 }
0x2b91   : > { %v15236_v13 = vpop.eup %11704  ;;  %v8656_v47 = vrot.slane %v15234_v19, 7 }
0x2b92   : > { %v15239_v33 = vpop.eup %11706  ;;  %v8658_v5 = vrot.slane %v15236_v13, 6 }
0x2b93   : > { %v15242_v12 = vpop.eup %11708  ;;  %v10038_v51 = vpop.xlane.xlu0 %10037  ;;  %v8657_v27 = vsel %vm904_vm1, %v8656_v47, %v15232_v6  ;;  %v8660_v16 = vrot.slane %v15239_v33, 5 }
0x2b94   : > { %v15247_v59 = vpop.eup %11710  ;;  %10058 = vst.msk [vmem:[#allocation5 + $0x8] sm:$0xff] %vm1834_vm11, %v10038_v51  ;;  %v8659_v18 = vsel %vm907_vm2, %v8658_v5, %v8657_v27  ;;  %v8662_v63 = vrot.slane %v15242_v12, 4 }
0x2b95   : > { %v15252_v45 = vpop.eup %11712  ;;  %v8661_v4 = vsel %vm910_vm3, %v8660_v16, %v8659_v18  ;;  %v8664_v17 = vrot.slane %v15247_v59, 3  ;;  %v10281_v18 = vld [vmem:[#allocation3] sm:$0xff] }
0x2b96   : > { %v15256_v23 = vpop.eup %11714  ;;  %v8663_v32 = vsel %vm913_vm4, %v8662_v63, %v8661_v4  ;;  %v8666_v1 = vrot.slane %v15252_v45, 2 }
0x2b97   : > { %v8665_v26 = vsel %vm916_vm5, %v8664_v17, %v8663_v32  ;;  %v8668_v7 = vrot.slane %v15256_v23, 1 }
0x2b98   : > { %v8667_v60 = vsel %vm919_vm6, %v8666_v1, %v8665_v26 }
0x2b99   : > { %v8669_v28 = vsel %vm922_vm7, %v8668_v7, %v8667_v60 }
0x2b9a   : > { %v8671_v3 = vsel %vm925_vm8, %v8669_v28, 0.0 }
0x2b9b   : > { %v10044_v46 = vpop.xlane.xlu0 %10043  ;;  %8672 = vadd.xlane.f32.xlu1 %v8671_v3  ;;  %v10283_v3 = vld [vmem:[#allocation3 + $0x10] sm:$0xff] }
0x2b9c   : > { %10060 = vst.msk [vmem:[#allocation5 + $0x18] sm:$0xff] %vm1834_vm11, %v10044_v46 }
0x2ba3   : > { %v10047_v36 = vpop.xlane.xlu0 %10046 }
0x2ba4   : > { %10061 = vst.msk [vmem:[#allocation5 + $0x20] sm:$0xff] %vm1834_vm11, %v10047_v36 }
0x2bab   : > { %v10053_v56 = vpop.xlane.xlu0 %10052 }
0x2bac   : > { %10063 = vst.msk [vmem:[#allocation5 + $0x30] sm:$0xff] %vm1834_vm11, %v10053_v56 }
0x2bb3   : > { %v10079_v62 = vpop.xlane.xlu0 %10078 }
0x2bb4   : > { %v10105_v58 = vadd.f32 %v15268_v31, %v10079_v62  ;;  %8715 = vperm.xlu1 %11391, %v11251_v14  }
0x2bb6   : > { %v11312_v53 = vmul.f32 -1.442695, %v10105_v58 }
0x2bb8   : > { %11716 = vpow2.f32 %v11312_v53 }
0x2bbb   : > { %v10085_v15 = vpop.xlane.xlu0 %10084 }
0x2bbc   : > { %v10107_v52 = vadd.f32 %v15268_v31, %v10085_v15 }
0x2bbe   : > { %v11717_v10 = vpop.eup %11716  ;;  %v11314_v22 = vmul.f32 -1.442695, %v10107_v52 }
0x2bbf   : > { %v10137_v40 = vadd.f32 1.0, %v11717_v10 }
0x2bc0   : > { %11718 = vpow2.f32 %v11314_v22  ;;  %v15282_v22 = vadd.f32 %v14606_v48, %v15881_v50 }
0x2bc1   : > { %11720 = vrcp.f32 %v10137_v40  ;;  %v10156_v30 = vand.u32 2147483648, %v10137_v40  ;;  %v10154_v25 = vand.u32 2147483647, %v10137_v40  ;;  %vm10150_vm13 = vweird.f32 %v10137_v40 }
0x2bc3   : > { %v10157_v21 = vor.u32 1.1754944e-38, %v10156_v30  ;;  %vm10155_vm15 = vcmp.eq.f32.partialorder %v10154_v25, 8.507059e+37 }
0x2bc6   : > { %v11719_v37 = vpop.eup %11718 }
0x2bc7   : > { %v11721_v0 = vpop.eup %11720  ;;  %v10139_v20 = vadd.f32 1.0, %v11719_v37 }
0x2bc8   : > { %v10146_v24 = vmul.f32 %v11721_v0, %v10137_v40  ;;  %vm10151_vm12 = vweird.f32 %v11721_v0 }
0x2bc9   : > { %11722 = vrcp.f32 %v10139_v20  ;;  %vm10152_vm14 = vmor %vm10150_vm13, %vm10151_vm12  ;;  %v10186_v63 = vand.u32 2147483648, %v10139_v20  ;;  %v10184_v32 = vand.u32 2147483647, %v10139_v20  ;;  %vm10180_vm10 = vweird.f32 %v10139_v20 }
0x2bca   : > { %v10147_v11 = vsub.f32 1.0, %v10146_v24  ;;  %v15287_v24 = vadd.f32 %v14608_v54, %v15903_v42 }
0x2bcb   : > { %v10187_v26 = vor.u32 1.1754944e-38, %v10186_v63  ;;  %vm10185_vm13 = vcmp.eq.f32.partialorder %v10184_v32, 8.507059e+37 }
0x2bcc   : > { %v10148_v49 = vmul.f32 %v11721_v0, %v10147_v11  ;;  %v15291_v11 = vadd.f32 %v14604_v39, %v15882_v38  ;;  %v9748_v48 = vrot.slane %v15287_v24, 6 }
0x2bce   : > { %v10149_v2 = vadd.f32 %v11721_v0, %v10148_v49 }
0x2bcf   : > { %v11723_v44 = vpop.eup %11722 }
0x2bd0   : > { %v10153_v47 = vsel %vm10152_vm14, %v11721_v0, %v10149_v2  ;;  %v10176_v5 = vmul.f32 %v11723_v44, %v10139_v20  ;;  %vm10181_vm9 = vweird.f32 %v11723_v44  ;;  %v9746_v20 = vrot.slane %v15282_v22, 7 }
0x2bd1   : > { %v10158_v51 = vsel %vm10155_vm15, %v10157_v21, %v10153_v47  ;;  %vm10182_vm12 = vmor %vm10180_vm10, %vm10181_vm9 }
0x2bd2   : > { %10265 = vst.msk [vmem:[#allocation6] sm:$0xff] %vm1834_vm11, %v10158_v51  ;;  %v10273_v27 = vsub.f32 1.0, %v10158_v51  ;;  %v10177_v16 = vsub.f32 1.0, %v10176_v5  ;;  %v9747_v50 = vsel %vm904_vm1, %v9746_v20, %v15291_v11  ;;  %v15976_v20 = vld [vmem:[#allocation24_spill] sm:$0xff] }
0x2bd4   : > { %v10289_v4 = vmul.f32 %v10281_v18, %v10273_v27  ;;  %v10178_v17 = vmul.f32 %v11723_v44, %v10177_v16 }
0x2bd6   : > { %10297 = vst.msk [vmem:[#allocation7] sm:$0xff] %vm1834_vm11, %v10289_v4  ;;  %v10179_v1 = vadd.f32 %v11723_v44, %v10178_v17 }
0x2bd8   : > { %v10183_v7 = vsel %vm10182_vm12, %v11723_v44, %v10179_v1  ;;  %v15298_v44 = vadd.f32 %v14612_v9, %v15901_v61 }
0x2bd9   : > { %v10188_v60 = vsel %vm10185_vm13, %v10187_v26, %v10183_v7 }
0x2bda   : > { %10267 = vst.msk [vmem:[#allocation6 + $0x10] sm:$0xff] %vm1834_vm11, %v10188_v60  ;;  %v10275_v28 = vsub.f32 1.0, %v10188_v60  ;;  %v9750_v26 = vrot.slane %v15298_v44, 5 }
0x2bdc   : > { %v10291_v46 = vmul.f32 %v10283_v3, %v10275_v28  ;;  %v7613_v36 = vpop.xlane.xlu2 %7612 }
0x2bdd   : > { %7615 = vst.msk [vmem:[#allocation3 + $0x28] sm:$0xff] %vm1834_vm11, %v7613_v36 }
0x2bde   : > { %10299 = vst.msk [vmem:[#allocation7 + $0x10] sm:$0xff] %vm1834_vm11, %v10291_v46  ;;  %v9734_v46 = vadd.f32 %v14610_v34, %v15905_v8 }
0x2be0   : > { %v9752_v8 = vrot.slane %v9734_v46, 4 }
0x2c0e   : > { %v8673_v56 = vpop.xlane.xlu1 %8672 }
0x2c0f   : > { %11724 = vrcp.f32 %v8673_v56  ;;  %v8685_v15 = vand.u32 2147483648, %v8673_v56  ;;  %vm8679_vm15 = vweird.f32 %v8673_v56  ;;  %v8683_v10 = vand.u32 2147483647, %v8673_v56 }
0x2c11   : > { %v8686_v37 = vor.u32 1.1754944e-38, %v8685_v15  ;;  %vm8684_vm10 = vcmp.eq.f32.partialorder %v8683_v10, 8.507059e+37 }
0x2c15   : > { %v11725_v14 = vpop.eup %11724 }
0x2c16   : > { %v8675_v62 = vmul.f32 %v11725_v14, %v8673_v56  ;;  %vm8680_vm14 = vweird.f32 %v11725_v14  ;;  %v15974_v56 = vld [vmem:[#allocation15_spill] sm:$0xff] }
0x2c17   : > { %vm8681_vm9 = vmor %vm8679_vm15, %vm8680_vm14 }
0x2c18   : > { %v8676_v58 = vsub.f32 1.0, %v8675_v62 }
0x2c1a   : > { %v8677_v53 = vmul.f32 %v11725_v14, %v8676_v58 }
0x2c1c   : > { %v8678_v52 = vadd.f32 %v11725_v14, %v8677_v53 }
0x2c1e   : > { %v8682_v40 = vsel %vm8681_vm9, %v11725_v14, %v8678_v52  ;;  %v9735_v14 = vadd.f32 %v15974_v56, %v15907_v57 }
0x2c1f   : > { %v8687_v0 = vsel %vm8684_vm10, %v8686_v37, %v8682_v40 }
0x2c20   : > { %v8689_v30 = vrot.slane %v8687_v0, 1  ;;  %v8690_v49 = vrot.slane %v8687_v0, 2  ;;  %v8691_v25 = vrot.slane %v8687_v0, 3  ;;  %v8692_v2 = vrot.slane %v8687_v0, 4 }
0x2c21   : > { %v8693_v42 = vrot.slane %v8687_v0, 5  ;;  %v8704_v54 = vmul.f32 %v15232_v6, %v8687_v0  ;;  %v8694_v38 = vrot.slane %v8687_v0, 6  ;;  %v8695_v39 = vrot.slane %v8687_v0, 7 }
0x2c22   : > { %v8705_v47 = vmul.f32 %v15234_v19, %v8689_v30  ;;  %v8706_v51 = vmul.f32 %v15236_v13, %v8690_v49  ;;  %v8707_v27 = vmul.f32 %v15239_v33, %v8691_v25  ;;  %v8708_v9 = vmul.f32 %v15242_v12, %v8692_v2 }
0x2c23   : > { %v8709_v63 = vmul.f32 %v15247_v59, %v8693_v42  ;;  %v8710_v13 = vmul.f32 %v15252_v45, %v8694_v38  ;;  %v8711_v33 = vmul.f32 %v15256_v23, %v8695_v39  ;;  %v9749_v59 = vsel %vm907_vm2, %v9748_v48, %v9747_v50  ;;  %v15975_v23 = vld [vmem:[#allocation22_spill] sm:$0xff] }
0x2c24   : > { %v9736_v53 = vadd.f32 %v15975_v23, %v15909_v41  ;;  %v9751_v10 = vsel %vm910_vm3, %v9750_v26, %v9749_v59  ;;  %v9754_v57 = vrot.slane %v9735_v14, 3  ;;  %v9737_v30 = vadd.f32 %v15976_v20, %v15911_v35 }
0x2c25   : > { %v9753_v41 = vsel %vm913_vm4, %v9752_v8, %v9751_v10 }
0x2c26   : > { %v8716_v21 = vpop.permute.xlu1 %8715  ;;  %v9756_v2 = vrot.slane %v9736_v53, 2  ;;  %v9755_v42 = vsel %vm916_vm5, %v9754_v57, %v9753_v41 }
0x2c27   : > { %vm8717_vm12 = vcmp.eq.s32.totalorder %v15041_v55, %v8716_v21 }
0x2c28   : > { %v11252_v5 = vsel %vm8717_vm12, 1.0, %v15945_v29  ;;  %v9757_v38 = vsel %vm919_vm6, %v9756_v2, %v9755_v42 }
0x2c29   : > { %v8721_v16 = vrot.slane %v11252_v5, 1  ;;  %v8722_v18 = vrot.slane %v11252_v5, 2  ;;  %v8723_v61 = vrot.slane %v11252_v5, 3  ;;  %v8724_v6 = vrot.slane %v11252_v5, 4 }
0x2c2a   : > { %v8725_v4 = vrot.slane %v11252_v5, 5  ;;  %v8726_v55 = vrot.slane %v11252_v5, 6  ;;  %v8727_v32 = vrot.slane %v11252_v5, 7  ;;  %v8736_v60 = vmul.f32 %v11252_v5, %v8704_v54  ;;  %v10019_v5 = vld [vmem:[%s15736_s5 + $0x10] sm:$0xff] }
0x2c2b   : > { %v8737_v17 = vmul.f32 %v8721_v16, %v8705_v47  ;;  %v8738_v1 = vmul.f32 %v8722_v18, %v8706_v51  ;;  %v8739_v19 = vmul.f32 %v8723_v61, %v8707_v27  ;;  %v8740_v7 = vmul.f32 %v8724_v6, %v8708_v9  ;;  %v11302_v47 = vld [vmem:[%s15735_s4 + $0x38] sm:$0xff] }
0x2c2c   : > { %v8741_v3 = vmul.f32 %v8725_v4, %v8709_v63  ;;  %v8742_v36 = vmul.f32 %v8726_v55, %v8710_v13  ;;  %v8743_v62 = vmul.f32 %v8727_v32, %v8711_v33  ;;  %v9758_v54 = vrot.slane %v9737_v30, 1  ;;  %v15977_v51 = vld [vmem:[#allocation17_spill] sm:$0xff]  ;;  %v11897_v63 = vld [vmem:[#allocation2 + $0x30] sm:$0xff] }
0x2c2d   : > { %v8752_v28 = vrot.slane %v8737_v17, 7  ;;  %v8754_v12 = vrot.slane %v8738_v1, 6  ;;  %v8756_v45 = vrot.slane %v8739_v19, 5  ;;  %v8758_v52 = vrot.slane %v8740_v7, 4  ;;  %v11896_v18 = vld [vmem:[#allocation2 + $0x18] sm:$0xff] }
0x2c2e   : > { %v8760_v37 = vrot.slane %v8741_v3, 3  ;;  %v8762_v0 = vrot.slane %v8742_v36, 2  ;;  %v8764_v25 = vrot.slane %v8743_v62, 1  ;;  %v9759_v35 = vsel %vm922_vm7, %v9758_v54, %v9757_v38 }
0x2c2f   : > { %v8753_v58 = vsel %vm904_vm1, %v8752_v28, %v8736_v60  ;;  %v9761_v39 = vsel %vm925_vm8, %v9759_v35, -inf  ;;  %v10027_v27 = vmul.f32 %v10019_v5, %v15977_v51  ;;  %v10072_v61 = vmul.f32 %v11896_v18, %v15198_v43  ;;  %v10022_v35 = vld [vmem:[%s15736_s5 + $0x28] sm:$0xff]  ;;  %v10024_v51 = vld [vmem:[%s15736_s5 + $0x38] sm:$0xff] }
0x2c30   : > { %v8755_v15 = vsel %vm907_vm2, %v8754_v12, %v8753_v58  ;;  %v10075_v6 = vmul.f32 %v11897_v63, %v15198_v43 }
0x2c31   : > { %v8757_v40 = vsel %vm910_vm3, %v8756_v45, %v8755_v15  ;;  %v10039_v16 = vsel %vm654_vm0, %v10027_v27, 0.0  ;;  %v10086_v9 = vsel %vm654_vm0, %v10072_v61, 0.0  ;;  %v15979_v27 = vld [vmem:[#allocation16_spill] sm:$0xff]  ;;  %v11898_v61 = vld [vmem:[#allocation2 + $0x8] sm:$0xff] }
0x2c32   : > { %v8759_v34 = vsel %vm913_vm4, %v8758_v52, %v8757_v40  ;;  %v10095_v4 = vsel %vm654_vm0, %v10075_v6, 0.0  ;;  %v11899_v6 = vld [vmem:[#allocation2 + $0x20] sm:$0xff] }
0x2c33   : > { %v8761_v49 = vsel %vm916_vm5, %v8760_v37, %v8759_v34 }
0x2c34   : > { %v8763_v50 = vsel %vm919_vm6, %v8762_v0, %v8761_v49 }
0x2c35   : > { %v8765_v48 = vsel %vm922_vm7, %v8764_v25, %v8763_v50 }
0x2c36   : > { %v8767_v21 = vsel %vm925_vm8, %v8765_v48, 0.0 }
0x2c37   : > { %8768 = vadd.xlane.f32.xlu2 %v8767_v21 }
0x2c3f   : > { %9762 = vmax.xlane.f32.xlu2 %v9761_v39  ;;  %v15978_v39 = vld [vmem:[#allocation25_spill] sm:$0xff] }
0x2c57   : > { %9871 = vperm.xlu2 %11392, %v11302_v47   ;;  %v10030_v47 = vmul.f32 %v10022_v35, %v15978_v39 }
0x2c59   : > { %v10048_v5 = vsel %vm654_vm0, %v10030_v47, 0.0 }
0x2c80   : > { %10040 = vadd.xlane.f32.xlu2 %v10039_v16  ;;  %v10032_v16 = vmul.f32 %v10024_v51, %v15979_v27 }
0x2c82   : > { %v10054_v18 = vsel %vm654_vm0, %v10032_v16, 0.0 }
0x2c88   : > { %10087 = vadd.xlane.f32.xlu2 %v10086_v9  ;;  %v10070_v9 = vmul.f32 %v11898_v61, %v15198_v43 }
0x2c8a   : > { %v10080_v63 = vsel %vm654_vm0, %v10070_v9, 0.0 }
0x2c90   : > { %10096 = vadd.xlane.f32.xlu2 %v10095_v4  ;;  %v10073_v4 = vmul.f32 %v11899_v6, %v15198_v43 }
0x2caa   : > { %v8769_v55 = vpop.xlane.xlu2 %8768 }
0x2cab   : > { %8771 = vst.msk [vmem:[#allocation3 + $0x30] sm:$0xff] %vm1834_vm11, %v8769_v55  ;;  %v10089_v55 = vsel %vm654_vm0, %v10073_v4, 0.0 }
0x2cb2   : > { %v9763_v17 = vpop.xlane.xlu2 %9762  ;;  %v10287_v35 = vld [vmem:[#allocation3 + $0x30] sm:$0xff] }
0x2cb3   : > { %v9765_v32 = vrot.slane %v9763_v17, 1  ;;  %v9766_v1 = vrot.slane %v9763_v17, 2  ;;  %v9767_v19 = vrot.slane %v9763_v17, 3  ;;  %v9768_v26 = vrot.slane %v9763_v17, 4 }
0x2cb4   : > { %v9769_v13 = vrot.slane %v9763_v17, 5  ;;  %v9780_v33 = vsub.f32 %v15291_v11, %v9763_v17  ;;  %v9770_v7 = vrot.slane %v9763_v17, 6  ;;  %v9771_v60 = vrot.slane %v9763_v17, 7 }
0x2cb5   : > { %v9781_v28 = vsub.f32 %v15282_v22, %v9765_v32  ;;  %v9782_v3 = vsub.f32 %v15287_v24, %v9766_v1  ;;  %v9783_v12 = vsub.f32 %v15298_v44, %v9767_v19  ;;  %v9784_v59 = vsub.f32 %v9734_v46, %v9768_v26  ;;  %v11900_v32 = vld [vmem:[#allocation2 + $0x38] sm:$0xff] }
0x2cb6   : > { %v9788_v36 = vmul.f32 1.442695, %v9780_v33  ;;  %v9785_v56 = vsub.f32 %v9735_v14, %v9769_v13  ;;  %v9786_v62 = vsub.f32 %v9736_v53, %v9770_v7  ;;  %v9787_v15 = vsub.f32 %v9737_v30, %v9771_v60 }
0x2cb7   : > { %v9790_v58 = vmul.f32 1.442695, %v9781_v28  ;;  %v9792_v45 = vmul.f32 1.442695, %v9782_v3  ;;  %v9794_v23 = vmul.f32 1.442695, %v9783_v12  ;;  %v10076_v1 = vmul.f32 %v11900_v32, %v15198_v43 }
0x2cb8   : > { %11726 = vpow2.f32 %v9788_v36  ;;  %v9796_v52 = vmul.f32 1.442695, %v9784_v59  ;;  %v9798_v11 = vmul.f32 1.442695, %v9785_v56  ;;  %v9800_v10 = vmul.f32 1.442695, %v9786_v62 }
0x2cb9   : > { %11728 = vpow2.f32 %v9790_v58  ;;  %v9802_v22 = vmul.f32 1.442695, %v9787_v15  ;;  %v10098_v19 = vsel %vm654_vm0, %v10076_v1, 0.0 }
0x2cba   : > { %11730 = vpow2.f32 %v9792_v45  ;;  %v15397_v17 = vpop.permute.xlu2 %9871 }
0x2cbb   : > { %11732 = vpow2.f32 %v9794_v23 }
0x2cbc   : > { %11734 = vpow2.f32 %v9796_v52 }
0x2cbd   : > { %11736 = vpow2.f32 %v9798_v11 }
0x2cbe   : > { %v15351_v24 = vpop.eup %11726  ;;  %11738 = vpow2.f32 %v9800_v10 }
0x2cbf   : > { %v15353_v44 = vpop.eup %11728  ;;  %11740 = vpow2.f32 %v9802_v22 }
0x2cc0   : > { %v15355_v46 = vpop.eup %11730  ;;  %v9812_v14 = vrot.slane %v15353_v44, 7 }
0x2cc1   : > { %v15358_v53 = vpop.eup %11732  ;;  %v9814_v40 = vrot.slane %v15355_v46, 6 }
0x2cc2   : > { %v15361_v37 = vpop.eup %11734  ;;  %v9813_v8 = vsel %vm904_vm1, %v9812_v14, %v15351_v24  ;;  %v9816_v34 = vrot.slane %v15358_v53, 5 }
0x2cc3   : > { %v15366_v0 = vpop.eup %11736  ;;  %v9815_v57 = vsel %vm907_vm2, %v9814_v40, %v9813_v8  ;;  %v9818_v20 = vrot.slane %v15361_v37, 4 }
0x2cc4   : > { %v15370_v30 = vpop.eup %11738  ;;  %v9817_v49 = vsel %vm910_vm3, %v9816_v34, %v9815_v57  ;;  %v9820_v25 = vrot.slane %v15366_v0, 3 }
0x2cc5   : > { %v15374_v41 = vpop.eup %11740  ;;  %v9819_v2 = vsel %vm913_vm4, %v9818_v20, %v9817_v49  ;;  %v9822_v50 = vrot.slane %v15370_v30, 2  ;;  %v10284_v20 = vld [vmem:[#allocation3 + $0x18] sm:$0xff] }
0x2cc6   : > { %v9821_v48 = vsel %vm916_vm5, %v9820_v25, %v9819_v2  ;;  %v9824_v21 = vrot.slane %v15374_v41, 1 }
0x2cc7   : > { %v9823_v42 = vsel %vm919_vm6, %v9822_v50, %v9821_v48 }
0x2cc8   : > { %v9825_v54 = vsel %vm922_vm7, %v9824_v21, %v9823_v42 }
0x2cc9   : > { %v9827_v38 = vsel %vm925_vm8, %v9825_v54, 0.0 }
0x2cca   : > { %9828 = vadd.xlane.f32.xlu1 %v9827_v38 }
0x2cd2   : > { %10049 = vadd.xlane.f32.xlu1 %v10048_v5 }
0x2cda   : > { %10055 = vadd.xlane.f32.xlu1 %v10054_v18  ;;  %v11901_v18 = vld [vmem:[%s15915_s29] sm:$0xff] }
0x2ce2   : > { %10081 = vadd.xlane.f32.xlu1 %v10080_v63 }
0x2cea   : > { %10090 = vadd.xlane.f32.xlu1 %v10089_v55 }
0x2cf2   : > { %10099 = vadd.xlane.f32.xlu1 %v10098_v19 }
0x2cf3   : > { %v10041_v26 = vpop.xlane.xlu2 %10040 }
0x2cf4   : > { %10059 = vst.msk [vmem:[#allocation5 + $0x10] sm:$0xff] %vm1834_vm11, %v10041_v26 }
0x2cfb   : > { %v10088_v13 = vpop.xlane.xlu2 %10087 }
0x2cfc   : > { %v10108_v33 = vadd.f32 %v15268_v31, %v10088_v13 }
0x2cfe   : > { %v11315_v7 = vmul.f32 -1.442695, %v10108_v33 }
0x2d00   : > { %11742 = vpow2.f32 %v11315_v7 }
0x2d03   : > { %v10097_v60 = vpop.xlane.xlu2 %10096 }
0x2d04   : > { %v10111_v28 = vadd.f32 %v15268_v31, %v10097_v60 }
0x2d06   : > { %v11743_v3 = vpop.eup %11742  ;;  %v11318_v12 = vmul.f32 -1.442695, %v10111_v28 }
0x2d07   : > { %v10140_v59 = vadd.f32 1.0, %v11743_v3 }
0x2d08   : > { %11744 = vpow2.f32 %v11318_v12 }
0x2d09   : > { %11746 = vrcp.f32 %v10140_v59  ;;  %v10201_v23 = vand.u32 2147483648, %v10140_v59  ;;  %v10199_v52 = vand.u32 2147483647, %v10140_v59  ;;  %vm10195_vm14 = vweird.f32 %v10140_v59 }
0x2d0b   : > { %v10202_v22 = vor.u32 1.1754944e-38, %v10201_v23  ;;  %vm10200_vm9 = vcmp.eq.f32.partialorder %v10199_v52, 8.507059e+37 }
0x2d0e   : > { %v11745_v36 = vpop.eup %11744 }
0x2d0f   : > { %v11747_v56 = vpop.eup %11746  ;;  %v10143_v62 = vadd.f32 1.0, %v11745_v36 }
0x2d10   : > { %v10191_v58 = vmul.f32 %v11747_v56, %v10140_v59  ;;  %vm10196_vm13 = vweird.f32 %v11747_v56 }
0x2d11   : > { %11748 = vrcp.f32 %v10143_v62  ;;  %vm10197_vm15 = vmor %vm10195_vm14, %vm10196_vm13  ;;  %v10246_v49 = vand.u32 2147483648, %v10143_v62  ;;  %v10244_v50 = vand.u32 2147483647, %v10143_v62  ;;  %vm10240_vm12 = vweird.f32 %v10143_v62 }
0x2d12   : > { %v10192_v45 = vsub.f32 1.0, %v10191_v58 }
0x2d13   : > { %v10247_v21 = vor.u32 1.1754944e-38, %v10246_v49  ;;  %vm10245_vm14 = vcmp.eq.f32.partialorder %v10244_v50, 8.507059e+37 }
0x2d14   : > { %v10193_v15 = vmul.f32 %v11747_v56, %v10192_v45 }
0x2d16   : > { %v10194_v11 = vadd.f32 %v11747_v56, %v10193_v15 }
0x2d17   : > { %v11749_v10 = vpop.eup %11748 }
0x2d18   : > { %v10198_v14 = vsel %vm10197_vm15, %v11747_v56, %v10194_v11  ;;  %v10236_v40 = vmul.f32 %v11749_v10, %v10143_v62  ;;  %vm10241_vm10 = vweird.f32 %v11749_v10  ;;  %vm9873_vm15 = vcmp.eq.s32.totalorder %v11901_v18, %v15397_v17 }
0x2d19   : > { %v10203_v8 = vsel %vm10200_vm9, %v10202_v22, %v10198_v14  ;;  %vm10242_vm13 = vmor %vm10240_vm12, %vm10241_vm10  ;;  %v11303_v6 = vsel %vm9873_vm15, 1.0, %v15945_v29 }
0x2d1a   : > { %10268 = vst.msk [vmem:[#allocation6 + $0x18] sm:$0xff] %vm1834_vm11, %v10203_v8  ;;  %v10276_v34 = vsub.f32 1.0, %v10203_v8  ;;  %v10237_v57 = vsub.f32 1.0, %v10236_v40  ;;  %v9877_v19 = vrot.slane %v11303_v6, 1  ;;  %v9878_v26 = vrot.slane %v11303_v6, 2 }
0x2d1b   : > { %v9879_v33 = vrot.slane %v11303_v6, 3  ;;  %v9880_v15 = vrot.slane %v11303_v6, 4  ;;  %v9881_v52 = vrot.slane %v11303_v6, 5  ;;  %v9883_v40 = vrot.slane %v11303_v6, 7 }
0x2d1c   : > { %v10292_v25 = vmul.f32 %v10284_v20, %v10276_v34  ;;  %v10238_v2 = vmul.f32 %v11749_v10, %v10237_v57 }
0x2d1e   : > { %10300 = vst.msk [vmem:[#allocation7 + $0x18] sm:$0xff] %vm1834_vm11, %v10292_v25  ;;  %v10239_v48 = vadd.f32 %v11749_v10, %v10238_v2 }
0x2d20   : > { %v10243_v42 = vsel %vm10242_vm13, %v11749_v10, %v10239_v48 }
0x2d21   : > { %v10248_v54 = vsel %vm10245_vm14, %v10247_v21, %v10243_v42 }
0x2d22   : > { %10271 = vst.msk [vmem:[#allocation6 + $0x30] sm:$0xff] %vm1834_vm11, %v10248_v54  ;;  %v10279_v38 = vsub.f32 1.0, %v10248_v54 }
0x2d24   : > { %v10295_v39 = vmul.f32 %v10287_v35, %v10279_v38 }
0x2d26   : > { %10303 = vst.msk [vmem:[#allocation7 + $0x30] sm:$0xff] %vm1834_vm11, %v10295_v39 }
0x2d3d   : > { %v9829_v47 = vpop.xlane.xlu1 %9828 }
0x2d3e   : > { %11750 = vrcp.f32 %v9829_v47  ;;  %v9841_v61 = vand.u32 2147483648, %v9829_v47  ;;  %v9839_v63 = vand.u32 2147483647, %v9829_v47  ;;  %vm9835_vm10 = vweird.f32 %v9829_v47 }
0x2d40   : > { %v9842_v55 = vor.u32 1.1754944e-38, %v9841_v61  ;;  %vm9840_vm13 = vcmp.eq.f32.partialorder %v9839_v63, 8.507059e+37  ;;  %v11902_v61 = vld [vmem:[#allocation2 + $0x28] sm:$0xff] }
0x2d44   : > { %v11751_v5 = vpop.eup %11750 }
0x2d45   : > { %v9831_v51 = vmul.f32 %v11751_v5, %v9829_v47  ;;  %v10050_v27 = vpop.xlane.xlu1 %10049  ;;  %vm9836_vm9 = vweird.f32 %v11751_v5 }
0x2d46   : > { %10062 = vst.msk [vmem:[#allocation5 + $0x28] sm:$0xff] %vm1834_vm11, %v10050_v27  ;;  %vm9837_vm12 = vmor %vm9835_vm10, %vm9836_vm9 }
0x2d47   : > { %v9832_v16 = vsub.f32 1.0, %v9831_v51 }
0x2d49   : > { %v9833_v9 = vmul.f32 %v11751_v5, %v9832_v16 }
0x2d4b   : > { %v9834_v4 = vadd.f32 %v11751_v5, %v9833_v9  ;;  %v10074_v9 = vmul.f32 %v11902_v61, %v15198_v43 }
0x2d4d   : > { %v9838_v32 = vsel %vm9837_vm12, %v11751_v5, %v9834_v4  ;;  %v10056_v1 = vpop.xlane.xlu1 %10055  ;;  %v10092_v4 = vsel %vm654_vm0, %v10074_v9, 0.0 }
0x2d4e   : > { %v9843_v13 = vsel %vm9840_vm13, %v9842_v55, %v9838_v32  ;;  %10064 = vst.msk [vmem:[#allocation5 + $0x38] sm:$0xff] %vm1834_vm11, %v10056_v1 }
0x2d4f   : > { %v9845_v17 = vrot.slane %v9843_v13, 1  ;;  %v9846_v7 = vrot.slane %v9843_v13, 2  ;;  %v9847_v60 = vrot.slane %v9843_v13, 3  ;;  %v9848_v28 = vrot.slane %v9843_v13, 4 }
0x2d50   : > { %v9849_v3 = vrot.slane %v9843_v13, 5  ;;  %v9850_v12 = vrot.slane %v9843_v13, 6  ;;  %v9851_v29 = vrot.slane %v9843_v13, 7  ;;  %v9860_v59 = vmul.f32 %v15351_v24, %v9843_v13 }
0x2d51   : > { %v9861_v36 = vmul.f32 %v15353_v44, %v9845_v17  ;;  %v9862_v56 = vmul.f32 %v15355_v46, %v9846_v7  ;;  %v9863_v62 = vmul.f32 %v15358_v53, %v9847_v60  ;;  %v9864_v58 = vmul.f32 %v15361_v37, %v9848_v28 }
0x2d52   : > { %v9865_v45 = vmul.f32 %v15366_v0, %v9849_v3  ;;  %v9866_v23 = vmul.f32 %v15370_v30, %v9850_v12  ;;  %v9867_v11 = vmul.f32 %v15374_v41, %v9851_v29  ;;  %v9882_v24 = vrot.slane %v11303_v6, 6 }
0x2d53   : > { %v9893_v10 = vmul.f32 %v9877_v19, %v9861_v36  ;;  %v9894_v22 = vmul.f32 %v9878_v26, %v9862_v56  ;;  %v9895_v14 = vmul.f32 %v9879_v33, %v9863_v62  ;;  %v9896_v44 = vmul.f32 %v9880_v15, %v9864_v58  ;;  %v10282_v58 = vld [vmem:[#allocation3 + $0x8] sm:$0xff] }
0x2d54   : > { %v9892_v46 = vmul.f32 %v11303_v6, %v9860_v59  ;;  %v9897_v34 = vmul.f32 %v9881_v52, %v9865_v45  ;;  %v9898_v0 = vmul.f32 %v9882_v24, %v9866_v23  ;;  %v9899_v20 = vmul.f32 %v9883_v40, %v9867_v11 }
0x2d55   : > { %v10082_v8 = vpop.xlane.xlu1 %10081  ;;  %v9908_v53 = vrot.slane %v9893_v10, 7  ;;  %v9910_v57 = vrot.slane %v9894_v22, 6  ;;  %v9912_v49 = vrot.slane %v9895_v14, 5  ;;  %v9914_v2 = vrot.slane %v9896_v44, 4 }
0x2d56   : > { %v10106_v37 = vadd.f32 %v15268_v31, %v10082_v8  ;;  %v9916_v48 = vrot.slane %v9897_v34, 3  ;;  %v9918_v42 = vrot.slane %v9898_v0, 2  ;;  %v9920_v38 = vrot.slane %v9899_v20, 1 }
0x2d57   : > { %v9909_v30 = vsel %vm904_vm1, %v9908_v53, %v9892_v46  ;;  %v10285_v46 = vld [vmem:[#allocation3 + $0x20] sm:$0xff] }
0x2d58   : > { %v11313_v25 = vmul.f32 -1.442695, %v10106_v37  ;;  %v9911_v41 = vsel %vm907_vm2, %v9910_v57, %v9909_v30 }
0x2d59   : > { %v9913_v50 = vsel %vm910_vm3, %v9912_v49, %v9911_v41 }
0x2d5a   : > { %11752 = vpow2.f32 %v11313_v25  ;;  %v9915_v21 = vsel %vm913_vm4, %v9914_v2, %v9913_v50 }
0x2d5b   : > { %v9917_v54 = vsel %vm916_vm5, %v9916_v48, %v9915_v21 }
0x2d5c   : > { %v9919_v35 = vsel %vm919_vm6, %v9918_v42, %v9917_v54  ;;  %v12032_v54 = vmov -1e+30  }
0x2d5d   : > { %v10091_v39 = vpop.xlane.xlu1 %10090  ;;  %v9921_v47 = vsel %vm922_vm7, %v9920_v38, %v9919_v35  ;;  %10305 = vst.msk [vmem:[#allocation8] sm:$0xff] %vm1834_vm11, %v12032_v54 }
0x2d5e   : > { %v10109_v5 = vadd.f32 %v15268_v31, %v10091_v39  ;;  %v9923_v51 = vsel %vm925_vm8, %v9921_v47, 0.0  ;;  %10306 = vst.msk [vmem:[#allocation8 + $0x8] sm:$0xff] %vm1834_vm11, %v12032_v54 }
0x2d5f   : > { %9924 = vadd.xlane.f32.xlu0 %v9923_v51  ;;  %10307 = vst.msk [vmem:[#allocation8 + $0x10] sm:$0xff] %vm1834_vm11, %v12032_v54 }
0x2d60   : > { %v11753_v27 = vpop.eup %11752  ;;  %v11316_v16 = vmul.f32 -1.442695, %v10109_v5  ;;  %10308 = vst.msk [vmem:[#allocation8 + $0x18] sm:$0xff] %vm1834_vm11, %v12032_v54 }
0x2d61   : > { %v10138_v18 = vadd.f32 1.0, %v11753_v27  ;;  %10309 = vst.msk [vmem:[#allocation8 + $0x20] sm:$0xff] %vm1834_vm11, %v12032_v54 }
0x2d62   : > { %11754 = vpow2.f32 %v11316_v16  ;;  %10310 = vst.msk [vmem:[#allocation8 + $0x28] sm:$0xff] %vm1834_vm11, %v12032_v54 }
0x2d63   : > { %11756 = vrcp.f32 %v10138_v18  ;;  %v10171_v33 = vand.u32 2147483648, %v10138_v18  ;;  %v10169_v7 = vand.u32 2147483647, %v10138_v18  ;;  %vm10165_vm2 = vweird.f32 %v10138_v18  ;;  %10311 = vst.msk [vmem:[#allocation8 + $0x30] sm:$0xff] %vm1834_vm11, %v12032_v54 }
0x2d64   : > { %10312 = vst.msk [vmem:[#allocation8 + $0x38] sm:$0xff] %vm1834_vm11, %v12032_v54 }
0x2d65   : > { %v10100_v63 = vpop.xlane.xlu1 %10099  ;;  %v10172_v3 = vor.u32 1.1754944e-38, %v10171_v33  ;;  %vm10170_vm0 = vcmp.eq.f32.partialorder %v10169_v7, 8.507059e+37 }
0x2d66   : > { %v10112_v6 = vadd.f32 %v15268_v31, %v10100_v63 }
0x2d67   : > { %10093 = vadd.xlane.f32.xlu0 %v10092_v4 }
0x2d68   : > { %v11755_v55 = vpop.eup %11754  ;;  %v11319_v32 = vmul.f32 -1.442695, %v10112_v6  ;;  %v10286_v6 = vld [vmem:[#allocation3 + $0x28] sm:$0xff] }
0x2d69   : > { %v11757_v1 = vpop.eup %11756  ;;  %v10141_v19 = vadd.f32 1.0, %v11755_v55 }
0x2d6a   : > { %v10161_v26 = vmul.f32 %v11757_v1, %v10138_v18  ;;  %11758 = vpow2.f32 %v11319_v32  ;;  %vm10166_vm1 = vweird.f32 %v11757_v1 }
0x2d6b   : > { %11760 = vrcp.f32 %v10141_v19  ;;  %vm10167_vm3 = vmor %vm10165_vm2, %vm10166_vm1  ;;  %v10216_v45 = vand.u32 2147483648, %v10141_v19  ;;  %v10214_v52 = vand.u32 2147483647, %v10141_v19  ;;  %vm10210_vm5 = vweird.f32 %v10141_v19 }
0x2d6c   : > { %v10162_v13 = vsub.f32 1.0, %v10161_v26 }
0x2d6d   : > { %v10217_v22 = vor.u32 1.1754944e-38, %v10216_v45  ;;  %vm10215_vm7 = vcmp.eq.f32.partialorder %v10214_v52, 8.507059e+37 }
0x2d6e   : > { %v10163_v17 = vmul.f32 %v11757_v1, %v10162_v13 }
0x2d70   : > { %v11759_v43 = vpop.eup %11758  ;;  %v10164_v60 = vadd.f32 %v11757_v1, %v10163_v17 }
0x2d71   : > { %v11761_v28 = vpop.eup %11760  ;;  %v10144_v12 = vadd.f32 1.0, %v11759_v43 }
0x2d72   : > { %v10168_v29 = vsel %vm10167_vm3, %v11757_v1, %v10164_v60  ;;  %v10206_v59 = vmul.f32 %v11761_v28, %v10141_v19  ;;  %vm10211_vm4 = vweird.f32 %v11761_v28 }
0x2d73   : > { %v10173_v36 = vsel %vm10170_vm0, %v10172_v3, %v10168_v29  ;;  %11762 = vrcp.f32 %v10144_v12  ;;  %vm10212_vm6 = vmor %vm10210_vm5, %vm10211_vm4  ;;  %v10261_v34 = vand.u32 2147483648, %v10144_v12  ;;  %v10259_v37 = vand.u32 2147483647, %v10144_v12 }
0x2d74   : > { %10266 = vst.msk [vmem:[#allocation6 + $0x8] sm:$0xff] %vm1834_vm11, %v10173_v36  ;;  %v10274_v56 = vsub.f32 1.0, %v10173_v36  ;;  %v10207_v62 = vsub.f32 1.0, %v10206_v59  ;;  %vm10255_vm14 = vweird.f32 %v10144_v12 }
0x2d75   : > { %v10262_v20 = vor.u32 1.1754944e-38, %v10261_v34  ;;  %vm10260_vm9 = vcmp.eq.f32.partialorder %v10259_v37, 8.507059e+37 }
0x2d76   : > { %v10290_v23 = vmul.f32 %v10282_v58, %v10274_v56  ;;  %v10208_v15 = vmul.f32 %v11761_v28, %v10207_v62 }
0x2d78   : > { %10298 = vst.msk [vmem:[#allocation7 + $0x8] sm:$0xff] %vm1834_vm11, %v10290_v23  ;;  %v10209_v11 = vadd.f32 %v11761_v28, %v10208_v15 }
0x2d79   : > { %v11763_v10 = vpop.eup %11762 }
0x2d7a   : > { %v10213_v14 = vsel %vm10212_vm6, %v11761_v28, %v10209_v11  ;;  %v10251_v24 = vmul.f32 %v11763_v10, %v10144_v12  ;;  %vm10256_vm8 = vweird.f32 %v11763_v10 }
0x2d7b   : > { %v10218_v40 = vsel %vm10215_vm7, %v10217_v22, %v10213_v14  ;;  %vm10257_vm15 = vmor %vm10255_vm14, %vm10256_vm8 }
0x2d7c   : > { %10269 = vst.msk [vmem:[#allocation6 + $0x20] sm:$0xff] %vm1834_vm11, %v10218_v40  ;;  %v10277_v44 = vsub.f32 1.0, %v10218_v40  ;;  %v10252_v8 = vsub.f32 1.0, %v10251_v24 }
0x2d7e   : > { %v10293_v53 = vmul.f32 %v10285_v46, %v10277_v44  ;;  %v10253_v57 = vmul.f32 %v11763_v10, %v10252_v8 }
0x2d80   : > { %10301 = vst.msk [vmem:[#allocation7 + $0x20] sm:$0xff] %vm1834_vm11, %v10293_v53  ;;  %v10254_v0 = vadd.f32 %v11763_v10, %v10253_v57 }
0x2d82   : > { %v10258_v30 = vsel %vm10257_vm15, %v11763_v10, %v10254_v0 }
0x2d83   : > { %v10263_v49 = vsel %vm10260_vm9, %v10262_v20, %v10258_v30 }
0x2d84   : > { %10272 = vst.msk [vmem:[#allocation6 + $0x38] sm:$0xff] %vm1834_vm11, %v10263_v49  ;;  %v10280_v41 = vsub.f32 1.0, %v10263_v49 }
0x2dd2   : > { %v9925_v25 = vpop.xlane.xlu0 %9924 }
0x2dd3   : > { %9927 = vst.msk [vmem:[#allocation3 + $0x38] sm:$0xff] %vm1834_vm11, %v9925_v25 }
0x2dda   : > { %v10288_v2 = vld [vmem:[#allocation3 + $0x38] sm:$0xff]  ;;  %v10094_v50 = vpop.xlane.xlu0 %10093 }
0x2ddb   : > { %v10296_v48 = vmul.f32 %v10288_v2, %v10280_v41  ;;  %v10110_v21 = vadd.f32 %v15268_v31, %v10094_v50 }
0x2ddd   : > { %10304 = vst.msk [vmem:[#allocation7 + $0x38] sm:$0xff] %vm1834_vm11, %v10296_v48  ;;  %v11317_v42 = vmul.f32 -1.442695, %v10110_v21 }
0x2ddf   : > { %11764 = vpow2.f32 %v11317_v42 }
0x2de5   : > { %v11765_v31 = vpop.eup %11764 }
0x2de6   : > { %v10142_v38 = vadd.f32 1.0, %v11765_v31 }
0x2de8   : > { %11766 = vrcp.f32 %v10142_v38  ;;  %v10231_v5 = vand.u32 2147483648, %v10142_v38  ;;  %v10229_v27 = vand.u32 2147483647, %v10142_v38  ;;  %vm10225_vm12 = vweird.f32 %v10142_v38 }
0x2dea   : > { %v10232_v18 = vor.u32 1.1754944e-38, %v10231_v5  ;;  %vm10230_vm1 = vcmp.eq.f32.partialorder %v10229_v27, 8.507059e+37 }
0x2dee   : > { %v11767_v35 = vpop.eup %11766 }
0x2def   : > { %v10221_v39 = vmul.f32 %v11767_v35, %v10142_v38  ;;  %vm10226_vm10 = vweird.f32 %v11767_v35 }
0x2df0   : > { %vm10227_vm13 = vmor %vm10225_vm12, %vm10226_vm10 }
0x2df1   : > { %v10222_v47 = vsub.f32 1.0, %v10221_v39 }
0x2df3   : > { %v10223_v51 = vmul.f32 %v11767_v35, %v10222_v47 }
0x2df5   : > { %v10224_v16 = vadd.f32 %v11767_v35, %v10223_v51 }
0x2df7   : > { %v10228_v61 = vsel %vm10227_vm13, %v11767_v35, %v10224_v16 }
0x2df8   : > { %v10233_v9 = vsel %vm10230_vm1, %v10232_v18, %v10228_v61 }
0x2df9   : > { %10270 = vst.msk [vmem:[#allocation6 + $0x28] sm:$0xff] %vm1834_vm11, %v10233_v9  ;;  %v10278_v63 = vsub.f32 1.0, %v10233_v9 }
0x2dfb   : > { %v10294_v4 = vmul.f32 %v10286_v6, %v10278_v63 }
0x2dfd   : > { %10302 = vst.msk [vmem:[#allocation7 + $0x28] sm:$0xff] %vm1834_vm11, %v10294_v4 }
0x2dfe PF: > { %v10324_v55 = vld [vmem:[%s12153_s23 + $0x18] sm:$0xff]  ;;  %vm10333_vm2 = vcmask 261120   ;;  %v10323_v32 = vld [vmem:[%s12153_s23 + $0x10] sm:$0xff]  ;;  %v10322_v1 = vld [vmem:[%s12153_s23 + $0x8] sm:$0xff]  ;;  %v10411_v3 = vlaneseq  ;;  %v12033_v49 = vmov 0   ;;  %vm10601_vm3 = vcmask 7168  }
0x2dff   : > { %11320 = vmatpush.xpose.msk.msra.mxu0 %vm10333_vm2, %v10324_v55  ;;  %11350 = vmatpush.xpose.msk.msra.mxu1 %vm10333_vm2, %v10324_v55  ;;  %v10321_v19 = vld [vmem:[%s12153_s23] sm:$0xff]  ;;  %v10327_v13 = vld [vmem:[#allocation4 + $0x10] sm:$0xff]  ;;  %v10328_v7 = vld [vmem:[#allocation4 + $0x18] sm:$0xff]  ;;  %s11332_s23 = sshll.u32 %s12145_s21, 5  ;;  %p11333_p5 = scmp.ne.s32.totalorder %s12145_s21, 2 }
0x2e00   : > { %11351 = vmatpush.xpose.msk.msra.mxu2 %vm10333_vm2, %v10324_v55  ;;  %11352 = vmatpush.xpose.msk.msra.mxu3 %vm10333_vm2, %v10324_v55  ;;  %v10325_v26 = vld [vmem:[#allocation4] sm:$0xff]  ;;  %v10331_v17 = vld [vmem:[#allocation4 + $0x30] sm:$0xff]  ;;  %v10326_v43 = vld [vmem:[#allocation4 + $0x8] sm:$0xff]  ;;  %v10412_v12 = vand.u32 127, %v10411_v3  ;;  %v10414_v29 = vstv %s11332_s23  ;;  %s12034_s24 = smov (!%p11333_p5), 1.0  }
0x2e01   : > { %v10329_v33 = vld [vmem:[#allocation4 + $0x20] sm:$0xff]  ;;  %v10330_v60 = vld [vmem:[#allocation4 + $0x28] sm:$0xff]  ;;  %v10332_v28 = vld [vmem:[#allocation4 + $0x38] sm:$0xff]  ;;  %11904 = vset.pattern.permute.xlu1 %v12033_v49  ;;  %11903 = vset.pattern.permute.xlu2 %v12033_v49 }
0x2e02   : > { %v10415_v59 = vadd.s32 %v10414_v29, %v10412_v12  ;;  %11905 = vset.pattern.permute.xlu0 %v12033_v49  ;;  %v15523_v25 = vld [vmem:[#allocation8 + $0x10] sm:$0xff]  ;;  %v15525_v41 = vld [vmem:[#allocation8] sm:$0xff]  ;;  %v15547_v35 = vld [vmem:[#allocation8 + $0x18] sm:$0xff] }
0x2e03   : > { %11321 = vmatpush.xpose.msk.msra.mxu0 %vm10333_vm2, %v10323_v32  ;;  %11353 = vmatpush.xpose.msk.msra.mxu1 %vm10333_vm2, %v10323_v32  ;;  %v15543_v31 = vld [vmem:[#allocation8 + $0x20] sm:$0xff]  ;;  %v15545_v38 = vld [vmem:[#allocation8 + $0x30] sm:$0xff]  ;;  %v15571_v63 = vld [vmem:[#allocation8 + $0x28] sm:$0xff] }
0x2e04   : > { %11354 = vmatpush.xpose.msk.msra.mxu2 %vm10333_vm2, %v10323_v32  ;;  %11355 = vmatpush.xpose.msk.msra.mxu3 %vm10333_vm2, %v10323_v32  ;;  %vm10416_vm11 = vcmp.lt.s32.totalorder %v10415_v59, 80  ;;  %v15573_v6 = vld [vmem:[#allocation8 + $0x8] sm:$0xff]  ;;  %v15575_v4 = vld [vmem:[#allocation8 + $0x38] sm:$0xff] }
0x2e07   : > { %11322 = vmatpush.xpose.msk.msra.mxu0 %vm10333_vm2, %v10322_v1  ;;  %11356 = vmatpush.xpose.msk.msra.mxu1 %vm10333_vm2, %v10322_v1 }
0x2e08   : > { %11357 = vmatpush.xpose.msk.msra.mxu2 %vm10333_vm2, %v10322_v1  ;;  %11358 = vmatpush.xpose.msk.msra.mxu3 %vm10333_vm2, %v10322_v1 }
0x2e0b   : > { %11323 = vmatpush.xpose.msk.msra.mxu0 %vm10333_vm2, %v10321_v19  ;;  %11359 = vmatpush.xpose.msk.msra.mxu1 %vm10333_vm2, %v10321_v19 }
0x2e0c   : > { %11360 = vmatpush.xpose.msk.msra.mxu2 %vm10333_vm2, %v10321_v19  ;;  %11361 = vmatpush.xpose.msk.msra.mxu3 %vm10333_vm2, %v10321_v19 }
0x2e0e   : > { %11324 = vmatmul.msk.f32.vlgmr.msra.gmra.mxu0 %vm10333_vm2, %v10325_v26  ;;  %11326 = vmatmul.msk.f32.vlgmr.msra.gmra.mxu1 %vm10333_vm2, %v10327_v13 }
0x2e0f   : > { %11328 = vmatmul.msk.f32.vlgmr.msra.gmra.mxu2 %vm10333_vm2, %v10329_v33  ;;  %11330 = vmatmul.msk.f32.vlgmr.msra.gmra.mxu3 %vm10333_vm2, %v10331_v17 }
0x2e16   : > { %11327 = vmatmul.msk.f32.gmra.mxu1 %vm10333_vm2, %v10328_v7  ;;  %11325 = vmatmul.msk.f32.gmra.mxu0 %vm10333_vm2, %v10326_v43 }
0x2e17   : > { %11329 = vmatmul.msk.f32.gmra.mxu2 %vm10333_vm2, %v10330_v60  ;;  %11331 = vmatmul.msk.f32.gmra.mxu3 %vm10333_vm2, %v10332_v28 }
0x2e8b   : > { %v10387_v36 = vpop.f32.mrf.mxu0  ;;  %v10393_v56 = vpop.f32.mrf.mxu1 }
0x2e8c   : > { %v15484_v62 = vsel %vm10416_vm11, %v10387_v36, -1e+30  ;;  %v15487_v58 = vsel %vm10416_vm11, %v10393_v56, -1e+30 }
0x2e8d   : > { %v10447_v45 = vsel %vm10333_vm2, %v15487_v58, -inf  ;;  %v10441_v23 = vsel %vm10333_vm2, %v15484_v62, -inf }
0x2e8e   : > { %10448 = vmax.xlane.f32.xlu1 %v10447_v45  ;;  %10442 = vmax.xlane.f32.xlu0 %v10441_v23 }
0x2e92   : > { %v10399_v15 = vpop.f32.mrf.mxu2  ;;  %v10405_v52 = vpop.f32.mrf.mxu3 }
0x2e93   : > { %v15494_v11 = vsel %vm10416_vm11, %v10399_v15, -1e+30  ;;  %v15497_v10 = vsel %vm10416_vm11, %v10405_v52, -1e+30  ;;  %v10396_v22 = vpop.f32.mrf.mxu1  ;;  %v10390_v44 = vpop.f32.mrf.mxu0 }
0x2e94   : > { %v10453_v14 = vsel %vm10333_vm2, %v15494_v11, -inf  ;;  %v10459_v24 = vsel %vm10333_vm2, %v15497_v10, -inf  ;;  %v15504_v40 = vsel %vm10416_vm11, %v10396_v22, -1e+30  ;;  %v15509_v46 = vsel %vm10416_vm11, %v10390_v44, -1e+30 }
0x2e95   : > { %10454 = vmax.xlane.f32.xlu2 %v10453_v14  ;;  %v10450_v8 = vsel %vm10333_vm2, %v15504_v40, -inf  ;;  %v10444_v37 = vsel %vm10333_vm2, %v15509_v46, -inf }
0x2e96   : > { %10460 = vmax.xlane.f32.xlu0 %v10459_v24  ;;  %10451 = vmax.xlane.f32.xlu1 %v10450_v8 }
0x2e9a   : > { %v10402_v34 = vpop.f32.mrf.mxu2  ;;  %v10408_v53 = vpop.f32.mrf.mxu3 }
0x2e9b   : > { %v15512_v57 = vsel %vm10416_vm11, %v10402_v34, -1e+30  ;;  %v15517_v0 = vsel %vm10416_vm11, %v10408_v53, -1e+30 }
0x2e9c   : > { %v10456_v20 = vsel %vm10333_vm2, %v15512_v57, -inf  ;;  %v10462_v30 = vsel %vm10333_vm2, %v15517_v0, -inf }
0x2e9d   : > { %10457 = vmax.xlane.f32.xlu2 %v10456_v20 }
0x2e9e   : > { %10445 = vmax.xlane.f32.xlu0 %v10444_v37  ;;  %10463 = vmax.xlane.f32.xlu1 %v10462_v30 }
0x2f01   : > { %v10449_v2 = vpop.xlane.xlu1 %10448  ;;  %v10443_v50 = vpop.xlane.xlu0 %10442 }
0x2f02   : > { %v15528_v48 = vmax.f32 %v15523_v25, %v10449_v2  ;;  %v15531_v21 = vmax.f32 %v15525_v41, %v10443_v50 }
0x2f04   : > { %v10475_v42 = vsub.f32 %v15523_v25, %v15528_v48  ;;  %10612 = vst.msk [vmem:[#allocation8 + $0x10] sm:$0xff] %vm10601_vm3, %v15528_v48  ;;  %v10473_v54 = vsub.f32 %v15525_v41, %v15531_v21  ;;  %10517 = vperm.xlu1 %11904, %v15528_v48   ;;  %10507 = vperm.xlu2 %11903, %v15531_v21  }
0x2f05   : > { %10610 = vst.msk [vmem:[#allocation8] sm:$0xff] %vm10601_vm3, %v15531_v21 }
0x2f06   : > { %v10485_v41 = vmul.f32 1.442695, %v10475_v42 }
0x2f08   : > { %v10455_v39 = vpop.xlane.xlu2 %10454 }
0x2f09   : > { %v15550_v47 = vmax.f32 %v15543_v31, %v10455_v39  ;;  %v10461_v5 = vpop.xlane.xlu0 %10460  ;;  %v10452_v51 = vpop.xlane.xlu1 %10451 }
0x2f0a   : > { %v15553_v27 = vmax.f32 %v15545_v38, %v10461_v5  ;;  %v15556_v16 = vmax.f32 %v15547_v35, %v10452_v51 }
0x2f0b   : > { %v10477_v18 = vsub.f32 %v15543_v31, %v15550_v47  ;;  %10614 = vst.msk [vmem:[#allocation8 + $0x20] sm:$0xff] %vm10601_vm3, %v15550_v47 }
0x2f0c   : > { %v10479_v61 = vsub.f32 %v15545_v38, %v15553_v27  ;;  %10616 = vst.msk [vmem:[#allocation8 + $0x30] sm:$0xff] %vm10601_vm3, %v15553_v27  ;;  %10527 = vperm.xlu2 %11903, %v15550_v47   ;;  %v10476_v9 = vsub.f32 %v15547_v35, %v15556_v16 }
0x2f0d   : > { %10613 = vst.msk [vmem:[#allocation8 + $0x18] sm:$0xff] %vm10601_vm3, %v15556_v16 }
0x2f0e   : > { %v10487_v48 = vmul.f32 1.442695, %v10476_v9 }
0x2f10   : > { %v10458_v55 = vpop.xlane.xlu2 %10457 }
0x2f11   : > { %v15578_v32 = vmax.f32 %v15571_v63, %v10458_v55  ;;  %v10446_v1 = vpop.xlane.xlu0 %10445  ;;  %v10464_v19 = vpop.xlane.xlu1 %10463 }
0x2f12   : > { %v15581_v26 = vmax.f32 %v15573_v6, %v10446_v1  ;;  %v15584_v13 = vmax.f32 %v15575_v4, %v10464_v19 }
0x2f13   : > { %v10478_v33 = vsub.f32 %v15571_v63, %v15578_v32  ;;  %10615 = vst.msk [vmem:[#allocation8 + $0x28] sm:$0xff] %vm10601_vm3, %v15578_v32  ;;  %10532 = vperm.xlu1 %11904, %v15578_v32   ;;  %v10438_v63 = vld [vmem:[#allocation9 + $0x28] sm:$0xff] }
0x2f14   : > { %v10474_v17 = vsub.f32 %v15573_v6, %v15581_v26  ;;  %10611 = vst.msk [vmem:[#allocation8 + $0x8] sm:$0xff] %vm10601_vm3, %v15581_v26  ;;  %10522 = vperm.xlu2 %11903, %v15556_v16   ;;  %10512 = vperm.xlu0 %11905, %v15581_v26   ;;  %v10480_v7 = vsub.f32 %v15575_v4, %v15584_v13  ;;  %v10493_v4 = vmul.f32 1.442695, %v10479_v61  ;;  %v10440_v16 = vld [vmem:[#allocation9 + $0x38] sm:$0xff] }
0x2f15   : > { %10617 = vst.msk [vmem:[#allocation8 + $0x38] sm:$0xff] %vm10601_vm3, %v15584_v13 }
0x2f16   : > { %v10495_v25 = vmul.f32 1.442695, %v10480_v7 }
0x2f1b   : > { %10542 = vperm.xlu1 %11904, %v15584_v13   ;;  %v10436_v13 = vld [vmem:[#allocation9 + $0x18] sm:$0xff] }
0x2f1c   : > { %10537 = vperm.xlu2 %11903, %v15553_v27   ;;  %v10439_v27 = vld [vmem:[#allocation9 + $0x30] sm:$0xff] }
0x2f5e   : > { %v10508_v43 = vpop.permute.xlu2 %10507 }
0x2f5f   : > { %v10545_v60 = vsub.f32 %v15484_v62, %v10508_v43  ;;  %v10481_v43 = vmul.f32 1.442695, %v10473_v54  ;;  %v10435_v54 = vld [vmem:[#allocation9 + $0x10] sm:$0xff] }
0x2f61   : > { %v10553_v28 = vmul.f32 1.442695, %v10545_v60  ;;  %v10489_v60 = vmul.f32 1.442695, %v10477_v18  ;;  %v10491_v18 = vmul.f32 1.442695, %v10478_v33 }
0x2f62   : > { %v10434_v33 = vld [vmem:[#allocation9 + $0x8] sm:$0xff] }
0x2f63   : > { %11906 = vpow2.f32 %v10553_v28 }
0x2f66   : > { %v10528_v3 = vpop.permute.xlu2 %10527 }
0x2f67   : > { %v10549_v12 = vsub.f32 %v15494_v11, %v10528_v3  ;;  %v10433_v3 = vld [vmem:[#allocation9] sm:$0xff] }
0x2f69   : > { %v11907_v29 = vpop.eup %11906  ;;  %v10561_v59 = vmul.f32 1.442695, %v10549_v12 }
0x2f6a   : > { %v10569_v36 = vsel %vm10333_vm2, %v11907_v29, 0.0 }
0x2f6b   : > { %11908 = vpow2.f32 %v10561_v59  ;;  %10570 = vadd.xlane.f32.xlu0 %v10569_v36 }
0x2f6e   : > { %v10523_v11 = vpop.permute.xlu2 %10522 }
0x2f6f   : > { %v10548_v53 = vsub.f32 %v15504_v40, %v10523_v11 }
0x2f71   : > { %v11909_v56 = vpop.eup %11908 }
0x2f72   : > { %v10581_v45 = vsel %vm10333_vm2, %v11909_v56, 0.0  ;;  %v10437_v56 = vld [vmem:[#allocation9 + $0x20] sm:$0xff] }
0x2f73   : > { %10582 = vadd.xlane.f32.xlu0 %v10581_v45 }
0x2f76   : > { %v10518_v23 = vpop.permute.xlu1 %10517  ;;  %v10538_v30 = vpop.permute.xlu2 %10537 }
0x2f77   : > { %v10547_v15 = vsub.f32 %v15487_v58, %v10518_v23  ;;  %v10559_v58 = vmul.f32 1.442695, %v10548_v53 }
0x2f79   : > { %v10557_v52 = vmul.f32 1.442695, %v10547_v15 }
0x2f7b   : > { %11910 = vpow2.f32 %v10557_v52 }
0x2f81   : > { %v11911_v62 = vpop.eup %11910 }
0x2f82   : > { %v10575_v22 = vsel %vm10333_vm2, %v11911_v62, 0.0  ;;  %v10483_v62 = vmul.f32 1.442695, %v10474_v17 }
0x2f83   : > { %10576 = vadd.xlane.f32.xlu1 %v10575_v22 }
0x2f85   : > { %v10533_v14 = vpop.permute.xlu1 %10532 }
0x2f86   : > { %v10550_v24 = vsub.f32 %v15512_v57, %v10533_v14  ;;  %v10513_v44 = vpop.permute.xlu0 %10512  ;;  %v10551_v57 = vsub.f32 %v15497_v10, %v10538_v30 }
0x2f87   : > { %v10546_v8 = vsub.f32 %v15509_v46, %v10513_v44 }
0x2f88   : > { %v10563_v34 = vmul.f32 1.442695, %v10550_v24  ;;  %v10565_v46 = vmul.f32 1.442695, %v10551_v57 }
0x2f89   : > { %v10555_v37 = vmul.f32 1.442695, %v10546_v8 }
0x2f8a   : > { %11912 = vpow2.f32 %v10563_v34 }
0x2f8b   : > { %11914 = vpow2.f32 %v10555_v37 }
0x2f8c   : > { %11916 = vpow2.f32 %v10559_v58 }
0x2f8d   : > { %v10543_v20 = vpop.permute.xlu1 %10542 }
0x2f8e   : > { %v10552_v49 = vsub.f32 %v15517_v0, %v10543_v20 }
0x2f90   : > { %v11913_v2 = vpop.eup %11912  ;;  %v10567_v50 = vmul.f32 1.442695, %v10552_v49 }
0x2f91   : > { %v11915_v39 = vpop.eup %11914  ;;  %v10584_v5 = vsel %vm10333_vm2, %v11913_v2, 0.0 }
0x2f92   : > { %11918 = vpow2.f32 %v10567_v50  ;;  %10585 = vadd.xlane.f32.xlu1 %v10584_v5  ;;  %v10572_v40 = vsel %vm10333_vm2, %v11915_v39, 0.0  ;;  %v11917_v51 = vpop.eup %11916 }
0x2f93   : > { %10573 = vadd.xlane.f32.xlu2 %v10572_v40  ;;  %11920 = vpow2.f32 %v10565_v46  ;;  %v10578_v0 = vsel %vm10333_vm2, %v11917_v51, 0.0 }
0x2f94   : > { %11922 = vpow2.f32 %v10481_v43 }
0x2f95   : > { %11924 = vpow2.f32 %v10489_v60 }
0x2f96   : > { %11926 = vpow2.f32 %v10485_v41 }
0x2f97   : > { %11928 = vpow2.f32 %v10491_v18 }
0x2f98   : > { %v11919_v55 = vpop.eup %11918  ;;  %11930 = vpow2.f32 %v10483_v62 }
0x2f99   : > { %v10590_v1 = vsel %vm10333_vm2, %v11919_v55, 0.0  ;;  %v11921_v19 = vpop.eup %11920  ;;  %11932 = vpow2.f32 %v10495_v25 }
0x2f9a   : > { %10591 = vadd.xlane.f32.xlu0 %v10590_v1  ;;  %v10587_v10 = vsel %vm10333_vm2, %v11921_v19, 0.0  ;;  %v11923_v28 = vpop.eup %11922  ;;  %11934 = vpow2.f32 %v10487_v48 }
0x2f9b   : > { %10579 = vadd.xlane.f32.xlu2 %v10578_v0  ;;  %v10497_v12 = vmul.f32 %v11923_v28, %v10433_v3  ;;  %v11925_v36 = vpop.eup %11924  ;;  %11936 = vpow2.f32 %v10493_v4 }
0x2f9c   : > { %v10501_v45 = vmul.f32 %v11925_v36, %v10437_v56  ;;  %v11927_v21 = vpop.eup %11926 }
0x2f9d   : > { %v10499_v31 = vmul.f32 %v11927_v21, %v10435_v54  ;;  %v11929_v42 = vpop.eup %11928 }
0x2f9e   : > { %v11931_v32 = vpop.eup %11930  ;;  %v10502_v6 = vmul.f32 %v11929_v42, %v10438_v63 }
0x2f9f   : > { %v10498_v17 = vmul.f32 %v11931_v32, %v10434_v33  ;;  %v11933_v35 = vpop.eup %11932 }
0x2fa0   : > { %v11935_v9 = vpop.eup %11934  ;;  %v10504_v7 = vmul.f32 %v11933_v35, %v10440_v16 }
0x2fa1   : > { %v10500_v44 = vmul.f32 %v11935_v9, %v10436_v13  ;;  %v11937_v38 = vpop.eup %11936 }
0x2fa2   : > { %v10503_v61 = vmul.f32 %v11937_v38, %v10439_v27 }
0x2fa3   : > { %10588 = vadd.xlane.f32.xlu2 %v10587_v10 }
0x2fde   : > { %v10571_v29 = vpop.xlane.xlu0 %10570 }
0x2fdf   : > { %v10593_v59 = vadd.f32 %v10571_v29, %v10497_v12 }
0x2fe1   : > { %10602 = vst.msk [vmem:[#allocation9] sm:$0xff] %vm10601_vm3, %v10593_v59 }
0x2fe6   : > { %v10583_v23 = vpop.xlane.xlu0 %10582 }
0x2fe7   : > { %v10597_v15 = vadd.f32 %v10583_v23, %v10501_v45 }
0x2fe9   : > { %10606 = vst.msk [vmem:[#allocation9 + $0x20] sm:$0xff] %vm10601_vm3, %v10597_v15 }
0x2ff6   : > { %v10577_v47 = vpop.xlane.xlu1 %10576 }
0x2ff7   : > { %v10595_v52 = vadd.f32 %v10577_v47, %v10499_v31 }
0x2ff9   : > { %10604 = vst.msk [vmem:[#allocation9 + $0x10] sm:$0xff] %vm10601_vm3, %v10595_v52 }
0x3005   : > { %v10586_v26 = vpop.xlane.xlu1 %10585 }
0x3006   : > { %v10598_v22 = vadd.f32 %v10586_v26, %v10502_v6  ;;  %v10574_v11 = vpop.xlane.xlu2 %10573 }
0x3007   : > { %v10594_v14 = vadd.f32 %v10574_v11, %v10498_v17 }
0x3008   : > { %10607 = vst.msk [vmem:[#allocation9 + $0x28] sm:$0xff] %vm10601_vm3, %v10598_v22 }
0x3009   : > { %10603 = vst.msk [vmem:[#allocation9 + $0x8] sm:$0xff] %vm10601_vm3, %v10594_v14 }
0x300d   : > { %v10592_v24 = vpop.xlane.xlu0 %10591 }
0x300e   : > { %v10600_v8 = vadd.f32 %v10592_v24, %v10504_v7  ;;  %v10580_v34 = vpop.xlane.xlu2 %10579 }
0x300f   : > { %v10596_v53 = vadd.f32 %v10580_v34, %v10500_v44 }
0x3010   : > { %10609 = vst.msk [vmem:[#allocation9 + $0x38] sm:$0xff] %vm10601_vm3, %v10600_v8 }
0x3011   : > { %10605 = vst.msk [vmem:[#allocation9 + $0x18] sm:$0xff] %vm10601_vm3, %v10596_v53 }
0x3015   : > { %10621 = sbr.rel (%p11333_p5) target bundleno = 12581 (0x3125), region = 104 }
0x3016   : > { %v10589_v37 = vpop.xlane.xlu2 %10588 }
0x3017   : > { %v10599_v58 = vadd.f32 %v10589_v37, %v10503_v61 }
0x3019   : > { %10608 = vst.msk [vmem:[#allocation9 + $0x30] sm:$0xff] %vm10601_vm3, %v10599_v58 }
0x301a   : > { %v15655_v20 = vld [vmem:[%s15737_s6] sm:$0xff]  ;;  %v15660_v30 = vld [vmem:[%s15737_s6 + $0x8] sm:$0xff]  ;;  %v15665_v49 = vld [vmem:[%s15737_s6 + $0x10] sm:$0xff]  ;;  %vm10841_vm7 = vcmask 0  }
0x301b   : > { %v15670_v2 = vld [vmem:[%s15737_s6 + $0x18] sm:$0xff]  ;;  %v10774_v50 = vsel %vm10601_vm3, %v15655_v20, 0.0  ;;  %v10775_v39 = vsel %vm10601_vm3, %v15660_v30, 0.0  ;;  %v10777_v57 = vsel %vm10601_vm3, %v15665_v49, 0.0  ;;  %v15681_v5 = vld [vmem:[%s15737_s6 + $0x20] sm:$0xff]  ;;  %v15688_v51 = vld [vmem:[%s15737_s6 + $0x28] sm:$0xff] }
0x301c   : > { %v10776_v40 = vadd.f32 %v10775_v39, %v10774_v50  ;;  %v10779_v46 = vsel %vm10601_vm3, %v15670_v2, 0.0  ;;  %v10781_v1 = vsel %vm10601_vm3, %v15681_v5, 0.0  ;;  %v10630_v0 = vld [vmem:[#allocation9] sm:$0xff]  ;;  %v10631_v19 = vld [vmem:[#allocation9 + $0x8] sm:$0xff]  ;;  %v15695_v10 = vld [vmem:[%s15737_s6 + $0x30] sm:$0xff]  ;;  %v10783_v3 = vsel %vm10601_vm3, %v15688_v51, 0.0 }
0x301d   : > { %v10632_v60 = vld [vmem:[#allocation9 + $0x10] sm:$0xff]  ;;  %v10633_v28 = vld [vmem:[#allocation9 + $0x18] sm:$0xff]  ;;  %11938 = vlog2.f32 %v10630_v0  ;;  %v10634_v12 = vld [vmem:[#allocation9 + $0x20] sm:$0xff]  ;;  %v10785_v56 = vsel %vm10601_vm3, %v15695_v10, 0.0 }
0x301e   : > { %v10778_v55 = vadd.f32 %v10777_v57, %v10776_v40  ;;  %11940 = vlog2.f32 %v10631_v19  ;;  %v15702_v29 = vld [vmem:[%s15737_s6 + $0x38] sm:$0xff]  ;;  %v10635_v36 = vld [vmem:[#allocation9 + $0x28] sm:$0xff]  ;;  %v10622_v31 = vld [vmem:[#allocation8] sm:$0xff] }
0x301f   : > { %11942 = vlog2.f32 %v10632_v60  ;;  %v10637_v15 = vld [vmem:[#allocation9 + $0x38] sm:$0xff]  ;;  %v10787_v41 = vsel %vm10601_vm3, %v15702_v29, 0.0  ;;  %v10623_v18 = vld [vmem:[#allocation8 + $0x8] sm:$0xff]  ;;  %v10624_v48 = vld [vmem:[#allocation8 + $0x10] sm:$0xff] }
0x3020   : > { %v10780_v43 = vadd.f32 %v10779_v46, %v10778_v55  ;;  %v10636_v45 = vld [vmem:[#allocation9 + $0x30] sm:$0xff]  ;;  %11944 = vlog2.f32 %v10633_v28  ;;  %v10670_v63 = vld [vmem:[#allocation5] sm:$0xff]  ;;  %v10625_v33 = vld [vmem:[#allocation8 + $0x18] sm:$0xff] }
0x3021   : > { %11946 = vlog2.f32 %v10634_v12  ;;  %v10671_v17 = vld [vmem:[#allocation5 + $0x8] sm:$0xff]  ;;  %v10626_v11 = vld [vmem:[#allocation8 + $0x20] sm:$0xff]  ;;  %v10672_v35 = vld [vmem:[#allocation5 + $0x10] sm:$0xff] }
0x3022   : > { %v10782_v59 = vadd.f32 %v10781_v1, %v10780_v43  ;;  %11948 = vlog2.f32 %v10635_v36  ;;  %v10627_v9 = vld [vmem:[#allocation8 + $0x28] sm:$0xff]  ;;  %v10673_v24 = vld [vmem:[#allocation5 + $0x18] sm:$0xff]  ;;  %v10628_v34 = vld [vmem:[#allocation8 + $0x30] sm:$0xff] }
0x3023   : > { %v11939_v21 = vpop.eup %11938  ;;  %11950 = vlog2.f32 %v10636_v45  ;;  %v10674_v27 = vld [vmem:[#allocation5 + $0x20] sm:$0xff]  ;;  %v10629_v58 = vld [vmem:[#allocation8 + $0x38] sm:$0xff]  ;;  %v10675_v57 = vld [vmem:[#allocation5 + $0x28] sm:$0xff] }
0x3024   : > { %v10784_v23 = vadd.f32 %v10783_v3, %v10782_v59  ;;  %v11941_v47 = vpop.eup %11940  ;;  %v10639_v52 = vmul.f32 0.6931472, %v11939_v21  ;;  %11952 = vlog2.f32 %v10637_v15  ;;  %v10676_v0 = vld [vmem:[#allocation5 + $0x30] sm:$0xff]  ;;  %v10677_v28 = vld [vmem:[#allocation5 + $0x38] sm:$0xff]  ;;  %v10662_v21 = vld [vmem:[#allocation6] sm:$0xff] }
0x3025   : > { %v11943_v62 = vpop.eup %11942  ;;  %v10641_v42 = vmul.f32 0.6931472, %v11941_v47 }
0x3026   : > { %v10786_v54 = vadd.f32 %v10785_v56, %v10784_v23  ;;  %v11945_v32 = vpop.eup %11944  ;;  %v10643_v6 = vmul.f32 0.6931472, %v11943_v62  ;;  %v10654_v26 = vadd.f32 %v10639_v52, %v10622_v31  ;;  %v10663_v31 = vld [vmem:[#allocation6 + $0x8] sm:$0xff]  ;;  %v10664_v52 = vld [vmem:[#allocation6 + $0x10] sm:$0xff]  ;;  %v10710_v62 = vld [vmem:[#allocation7] sm:$0xff] }
0x3027   : > { %v11947_v22 = vpop.eup %11946  ;;  %v10645_v14 = vmul.f32 0.6931472, %v11945_v32  ;;  %v10655_v4 = vadd.f32 %v10641_v42, %v10623_v18 }
0x3028   : > { %v10788_v25 = vadd.f32 %v10787_v41, %v10786_v54  ;;  %v11949_v16 = vpop.eup %11948  ;;  %v10647_v13 = vmul.f32 0.6931472, %v11947_v22  ;;  %v10656_v7 = vadd.f32 %v10643_v6, %v10624_v48  ;;  %v10678_v44 = vsub.f32 %v10670_v63, %v10654_v26  ;;  %v10665_v48 = vld [vmem:[#allocation6 + $0x18] sm:$0xff]  ;;  %v10711_v63 = vld [vmem:[#allocation7 + $0x8] sm:$0xff]  ;;  %v10712_v26 = vld [vmem:[#allocation7 + $0x10] sm:$0xff] }
0x3029   : > { %v11951_v8 = vpop.eup %11950  ;;  %v10649_v53 = vmul.f32 0.6931472, %v11949_v16  ;;  %v10657_v38 = vadd.f32 %v10645_v14, %v10625_v33  ;;  %v10679_v61 = vsub.f32 %v10671_v17, %v10655_v4  ;;  %v10666_v33 = vld [vmem:[#allocation6 + $0x20] sm:$0xff]  ;;  %v10667_v22 = vld [vmem:[#allocation6 + $0x28] sm:$0xff]  ;;  %v10713_v14 = vld [vmem:[#allocation7 + $0x18] sm:$0xff] }
0x302a   : > { %10789 = vadd.xlane.f32.xlu0 %v10788_v25  ;;  %v11953_v37 = vpop.eup %11952  ;;  %v10651_v50 = vmul.f32 0.6931472, %v11951_v8  ;;  %v10658_v39 = vadd.f32 %v10647_v13, %v10626_v11  ;;  %v10680_v40 = vsub.f32 %v10672_v35, %v10656_v7  ;;  %v10686_v46 = vmul.f32 1.442695, %v10678_v44  ;;  %v10668_v16 = vld [vmem:[#allocation6 + $0x30] sm:$0xff]  ;;  %v10714_v13 = vld [vmem:[#allocation7 + $0x20] sm:$0xff] }
0x302b   : > { %v10653_v55 = vmul.f32 0.6931472, %v11953_v37  ;;  %v10659_v1 = vadd.f32 %v10649_v53, %v10627_v9  ;;  %v10681_v19 = vsub.f32 %v10673_v24, %v10657_v38  ;;  %v10688_v43 = vmul.f32 1.442695, %v10679_v61  ;;  %v10669_v44 = vld [vmem:[#allocation6 + $0x38] sm:$0xff]  ;;  %v10716_v37 = vld [vmem:[#allocation7 + $0x30] sm:$0xff] }
0x302c   : > { %v10660_v60 = vadd.f32 %v10651_v50, %v10628_v34  ;;  %v10682_v3 = vsub.f32 %v10674_v27, %v10658_v39  ;;  %11954 = vpow2.f32 %v10686_v46  ;;  %v10690_v12 = vmul.f32 1.442695, %v10680_v40  ;;  %v10715_v34 = vld [vmem:[#allocation7 + $0x28] sm:$0xff]  ;;  %v10717_v40 = vld [vmem:[#allocation7 + $0x38] sm:$0xff] }
0x302d   : > { %v10661_v59 = vadd.f32 %v10653_v55, %v10629_v58  ;;  %v10683_v36 = vsub.f32 %v10675_v57, %v10659_v1  ;;  %11956 = vpow2.f32 %v10688_v43  ;;  %v10692_v56 = vmul.f32 1.442695, %v10681_v19 }
0x302e   : > { %v10684_v45 = vsub.f32 %v10676_v0, %v10660_v60  ;;  %11958 = vpow2.f32 %v10690_v12  ;;  %v10694_v23 = vmul.f32 1.442695, %v10682_v3 }
0x302f   : > { %v10685_v15 = vsub.f32 %v10677_v28, %v10661_v59  ;;  %11960 = vpow2.f32 %v10692_v56  ;;  %v10696_v41 = vmul.f32 1.442695, %v10683_v36 }
0x3030   : > { %11962 = vpow2.f32 %v10694_v23  ;;  %v10698_v54 = vmul.f32 1.442695, %v10684_v45 }
0x3031   : > { %11964 = vpow2.f32 %v10696_v41  ;;  %v10700_v47 = vmul.f32 1.442695, %v10685_v15 }
0x3032   : > { %v11955_v18 = vpop.eup %11954  ;;  %11966 = vpow2.f32 %v10698_v54 }
0x3033   : > { %v11957_v25 = vpop.eup %11956  ;;  %11968 = vpow2.f32 %v10700_v47  ;;  %v10702_v42 = vmul.f32 %v11955_v18, %v10662_v21 }
0x3034   : > { %v11959_v32 = vpop.eup %11958  ;;  %v10703_v6 = vmul.f32 %v11957_v25, %v10663_v31 }
0x3035   : > { %v11961_v17 = vpop.eup %11960  ;;  %v10704_v11 = vmul.f32 %v11959_v32, %v10664_v52  ;;  %v10718_v4 = vadd.f32 %v10710_v62, %v10702_v42 }
0x3036   : > { %v11963_v35 = vpop.eup %11962  ;;  %v10705_v9 = vmul.f32 %v11961_v17, %v10665_v48  ;;  %v10719_v7 = vadd.f32 %v10711_v63, %v10703_v6 }
0x3037   : > { %v11965_v24 = vpop.eup %11964  ;;  %v10706_v8 = vmul.f32 %v11963_v35, %v10666_v33  ;;  %v10720_v53 = vadd.f32 %v10712_v26, %v10704_v11  ;;  %v10734_v38 = vadd.f32 1e-06, %v10718_v4 }
0x3038   : > { %v11967_v27 = vpop.eup %11966  ;;  %v10707_v61 = vmul.f32 %v11965_v24, %v10667_v22  ;;  %v10721_v58 = vadd.f32 %v10713_v14, %v10705_v9  ;;  %v10735_v50 = vadd.f32 1e-06, %v10719_v7 }
0x3039   : > { %v11969_v39 = vpop.eup %11968  ;;  %v10708_v57 = vmul.f32 %v11967_v27, %v10668_v16  ;;  %v10722_v46 = vadd.f32 %v10714_v13, %v10706_v8  ;;  %v10736_v55 = vadd.f32 1e-06, %v10720_v53  ;;  %11970 = vlog2.f32 %v10734_v38 }
0x303a   : > { %v10709_v1 = vmul.f32 %v11969_v39, %v10669_v44  ;;  %v10723_v0 = vadd.f32 %v10715_v34, %v10707_v61  ;;  %v10737_v19 = vadd.f32 1e-06, %v10721_v58  ;;  %11972 = vlog2.f32 %v10735_v50 }
0x303b   : > { %v10724_v43 = vadd.f32 %v10716_v37, %v10708_v57  ;;  %v10738_v60 = vadd.f32 1e-06, %v10722_v46  ;;  %11974 = vlog2.f32 %v10736_v55 }
0x303c   : > { %v10725_v28 = vadd.f32 %v10717_v40, %v10709_v1  ;;  %v10739_v3 = vadd.f32 1e-06, %v10723_v0  ;;  %11976 = vlog2.f32 %v10737_v19 }
0x303d   : > { %v10740_v12 = vadd.f32 1e-06, %v10724_v43  ;;  %11978 = vlog2.f32 %v10738_v60 }
0x303e   : > { %v10741_v59 = vadd.f32 1e-06, %v10725_v28  ;;  %11980 = vlog2.f32 %v10739_v3 }
0x303f   : > { %v11971_v36 = vpop.eup %11970  ;;  %11982 = vlog2.f32 %v10740_v12 }
0x3040   : > { %v11973_v56 = vpop.eup %11972  ;;  %v10743_v45 = vmul.f32 0.6931472, %v11971_v36  ;;  %11984 = vlog2.f32 %v10741_v59 }
0x3041   : > { %v11975_v23 = vpop.eup %11974  ;;  %v10745_v15 = vmul.f32 0.6931472, %v11973_v56 }
0x3042   : > { %v11977_v41 = vpop.eup %11976  ;;  %v10747_v21 = vmul.f32 0.6931472, %v11975_v23  ;;  %v10758_v54 = vsub.f32 0.0, %v10743_v45 }
0x3043   : > { %v11979_v31 = vpop.eup %11978  ;;  %v10749_v47 = vmul.f32 0.6931472, %v11977_v41  ;;  %v10759_v18 = vsub.f32 0.0, %v10745_v15 }
0x3044   : > { %v11981_v52 = vpop.eup %11980  ;;  %v10751_v62 = vmul.f32 0.6931472, %v11979_v31  ;;  %v10760_v25 = vsub.f32 0.0, %v10747_v21  ;;  %v10766_v48 = vmul.f32 %v10758_v54, %v15655_v20 }
0x3045   : > { %v11983_v42 = vpop.eup %11982  ;;  %v10753_v63 = vmul.f32 0.6931472, %v11981_v52  ;;  %v10761_v32 = vsub.f32 0.0, %v10749_v47  ;;  %v10767_v33 = vmul.f32 %v10759_v18, %v15660_v30 }
0x3046   : > { %v11985_v6 = vpop.eup %11984  ;;  %v10755_v26 = vmul.f32 0.6931472, %v11983_v42  ;;  %v10762_v17 = vsub.f32 0.0, %v10751_v62  ;;  %v10768_v22 = vmul.f32 %v10760_v25, %v15665_v49  ;;  %v10798_v11 = vsel %vm10601_vm3, %v10766_v48, 0.0 }
0x3047   : > { %v10757_v14 = vmul.f32 0.6931472, %v11985_v6  ;;  %v10763_v4 = vsub.f32 0.0, %v10753_v63  ;;  %v10769_v35 = vmul.f32 %v10761_v32, %v15670_v2  ;;  %v10799_v16 = vsel %vm10601_vm3, %v10767_v33, 0.0 }
0x3048   : > { %v10764_v9 = vsub.f32 0.0, %v10755_v26  ;;  %v10770_v20 = vmul.f32 %v10762_v17, %v15681_v5  ;;  %v10800_v13 = vadd.f32 %v10799_v16, %v10798_v11  ;;  %v10801_v7 = vsel %vm10601_vm3, %v10768_v22, 0.0 }
0x3049   : > { %v10765_v30 = vsub.f32 0.0, %v10757_v14  ;;  %v10771_v24 = vmul.f32 %v10763_v4, %v15688_v51  ;;  %v10803_v44 = vsel %vm10601_vm3, %v10769_v35, 0.0 }
0x304a   : > { %v10802_v49 = vadd.f32 %v10801_v7, %v10800_v13  ;;  %v10772_v8 = vmul.f32 %v10764_v9, %v15695_v10  ;;  %v10805_v34 = vsel %vm10601_vm3, %v10770_v20, 0.0 }
0x304b   : > { %v10773_v2 = vmul.f32 %v10765_v30, %v15702_v29  ;;  %v10807_v38 = vsel %vm10601_vm3, %v10771_v24, 0.0 }
0x304c   : > { %v10804_v53 = vadd.f32 %v10803_v44, %v10802_v49  ;;  %v10809_v5 = vsel %vm10601_vm3, %v10772_v8, 0.0 }
0x304d   : > { %v10811_v37 = vsel %vm10601_vm3, %v10773_v2, 0.0 }
0x304e   : > { %v10806_v27 = vadd.f32 %v10805_v34, %v10804_v53 }
0x3050   : > { %v10808_v61 = vadd.f32 %v10807_v38, %v10806_v27 }
0x3052   : > { %v10810_v58 = vadd.f32 %v10809_v5, %v10808_v61 }
0x3054   : > { %v10812_v51 = vadd.f32 %v10811_v37, %v10810_v58 }
0x3056   : > { %10813 = vadd.xlane.f32.xlu0 %v10812_v51 }
0x309d   : > { %v10790_v50 = vpop.xlane.xlu0 %10789 }
0x309e   : > { %v10791_v39 = vrot.slane %v10790_v50, 4 }
0x30a0   : > { %v10792_v57 = vadd.f32 %v10791_v39, %v10790_v50 }
0x30a2   : > { %v10793_v10 = vrot.slane %v10792_v57, 2 }
0x30a4   : > { %v10794_v40 = vadd.f32 %v10793_v10, %v10792_v57 }
0x30a6   : > { %v10795_v46 = vrot.slane %v10794_v40, 1 }
0x30a8   : > { %v10796_v55 = vadd.f32 %v10795_v46, %v10794_v40 }
0x30aa   : > { %11362 = vpush %v10796_v55 }
0x30c9   : > { %v10814_v29 = vpop.xlane.xlu0 %10813 }
0x30ca   : > { %v10815_v1 = vrot.slane %v10814_v29, 4 }
0x30cc   : > { %v10816_v0 = vadd.f32 %v10815_v1, %v10814_v29 }
0x30ce   : > { %v10817_v19 = vrot.slane %v10816_v0, 2 }
0x30d0   : > { %v10818_v43 = vadd.f32 %v10817_v19, %v10816_v0 }
0x30d2   : > { %v10819_v60 = vrot.slane %v10818_v43, 1 }
0x30d4   : > { %v10820_v28 = vadd.f32 %v10819_v60, %v10818_v43 }
0x30d6   : > { %11364 = vpush %v10820_v28 }
0x30db   : > { %s11363_s2 = spop %11362 }
0x30dc   : > { %s10822_s26 = smax.f32 %s12034_s24, %s11363_s2 }
0x30dd   : > { %v10823_v3 = vstv %s10822_s26 }
0x30de   : > { %11986 = vrcp.f32 %v10823_v3  ;;  %v10835_v56 = vand.u32 2147483648, %v10823_v3  ;;  %v10833_v23 = vand.u32 2147483647, %v10823_v3  ;;  %vm10829_vm4 = vweird.f32 %v10823_v3 }
0x30e0   : > { %v10836_v41 = vor.u32 1.1754944e-38, %v10835_v56  ;;  %vm10834_vm6 = vcmp.eq.f32.partialorder %v10833_v23, 8.507059e+37 }
0x30e4   : > { %v11987_v12 = vpop.eup %11986 }
0x30e5   : > { %v10825_v59 = vmul.f32 %v11987_v12, %v10823_v3  ;;  %vm10830_vm0 = vweird.f32 %v11987_v12 }
0x30e6   : > { %vm10831_vm5 = vmor %vm10829_vm4, %vm10830_vm0 }
0x30e7   : > { %v10826_v36 = vsub.f32 1.0, %v10825_v59 }
0x30e9   : > { %v10827_v45 = vmul.f32 %v11987_v12, %v10826_v36 }
0x30eb   : > { %v10828_v15 = vadd.f32 %v11987_v12, %v10827_v45 }
0x30ed   : > { %v10832_v21 = vsel %vm10831_vm5, %v11987_v12, %v10828_v15 }
0x30ee   : > { %v10837_v54 = vsel %vm10834_vm6, %v10836_v41, %v10832_v21 }
0x30ef   : > { %11366 = vpush %v10837_v54 }
0x3107   : > { %s11365_s27 = spop %11364 }
0x3120   : > { %s11367_s1 = spop %11366 }
0x3121   : > { %s10839_s23 = smul.f32 %s11367_s1, %s11365_s27 }
0x3123   : > { %v10840_v31 = vstv %s10839_s23 }
0x3124   : > { %10842 = vst.msk [vmem:[#allocation11] sm:$0x1] %vm10841_vm7, %v10840_v31 }
0x3125 PF: > { %p11372_p6 = scmp.eq.s32.totalorder %s12145_s21, 2  ;;  %s12035_s25 = smov [#allocation11]  }
0x3126   : > { %s10849_s28 = sshll.u32 %s12035_s25, 4  ;;  %s10851_s22 = sshll.u32 %s15750_s19, 4  ;;  %s10850_s28 = int_to_ptr.vmem [resolvable:$true] %s10849_s28  ;;  %s10852_s22 = int_to_ptr.hbm [resolvable:$true] %s10851_s22 }
0x3127   : > { %11369 = dma.vmem_to_hbm [thread:$0]  (%p11372_p6), %s10850_s28, 16, %s10852_s22, [#allocation12]  }
0x3128   : > { %12021 = dma.done.wait (%p11372_p6), [#allocation12], 16  }
0x3129   : > { %12023 = vsyncadd (%p11372_p6), [#allocation12], 4294967280 }
0x312a PF: > { %s32_s20 = sadd.s32 1, %s12026_s20  }
0x312b   : > { %p29_p7 = scmp.ge.s32.totalorder %s32_s20, 5  }
0x312d   :  { %31 = sbr.rel (!%p29_p7) target bundleno = 6 (0x6), region = 159 }
0x3132   :  { %10865 = vsyncpa [#allocation12], 1 }
0x3133   :  { %10867 = vsyncpa [#allocation12 + $0x1], 1 }

</bundles_post_ra>
